<compile_context>
chip_gen: v7x
topology: tpu7x:2x2x1
jax: 0.10.0
libtpu: 0.0.40
codegen_flags: <defaults>
</compile_context>

<pallas_src>
import math
import functools

import jax
import jax.numpy as jnp
from jax.experimental import pallas as pl
from jax.experimental.pallas import tpu as pltpu


def _tpu_defaults():
    """Per-generation tile sizes and VMEM limit."""
    kind = ""
    try:
        kind = jax.devices()[0].device_kind.lower()
    except Exception:
        pass
    if "v7" in kind:                      # v7x: 64 MiB VMEM per TensorCore
        return 256, 256, 48 * 1024 * 1024
    return 512, 512, 64 * 1024 * 1024     # v5e / v6e: 128 MiB VMEM


TM, TE, _VMEM_LIMIT = _tpu_defaults()

_CPARAMS = pltpu.CompilerParams(
    dimension_semantics=("parallel",),
    vmem_limit_bytes=_VMEM_LIMIT,
)


# ----------------------------------------------------------------------------
# Grouping helper: bucket rows by group id into a tile-aligned padded layout.
# Returns:
#   pos        (N,)  int32 : padded-layout position of each original row
#   block_grp  (B,)  int32 : group id owning each tile of the padded layout
#   num_blocks       int   : static number of tiles (upper bound)
# Optional `secondary` key -> rows within a group are ordered by it
# (relation-major / dst-minor edge layout for scatter locality).
# ----------------------------------------------------------------------------
def build_groups(type_ids, num_groups, tile, secondary=None):
    n = type_ids.shape[0]
    num_blocks = (-(-n // tile)) + num_groups            # static upper bound
    counts = jnp.bincount(type_ids, length=num_groups).astype(jnp.int32)
    blocks_per = (counts + tile - 1) // tile
    padded_counts = blocks_per * tile

    group_start = jnp.cumsum(counts) - counts             # exclusive prefix sum
    padded_start = jnp.cumsum(padded_counts) - padded_counts

    if secondary is None:
        order = jnp.argsort(type_ids)
    else:
        order = jnp.lexsort((secondary, type_ids))         # primary = type_ids
    sorted_t = type_ids[order]
    ranks = jnp.arange(n, dtype=jnp.int32) - group_start[sorted_t]
    dest_sorted = (padded_start[sorted_t] + ranks).astype(jnp.int32)
    pos = jnp.zeros((n,), jnp.int32).at[order].set(dest_sorted)

    block_bounds = jnp.cumsum(blocks_per)
    block_grp = jnp.searchsorted(block_bounds,
                                 jnp.arange(num_blocks, dtype=jnp.int32),
                                 side="right")
    # Tail tiles get clamped to the last group; they only ever see zero rows
    # and are never gathered back through pos -- keep that invariant.
    block_grp = jnp.minimum(block_grp, num_groups - 1).astype(jnp.int32)
    return pos, block_grp, num_blocks


def _block_diag(rel):
    """(R, H, dk, dk) -> (R, H*dk, H*dk) block-diagonal per-relation matrices."""
    R, H, dk, _ = rel.shape
    eye = jnp.eye(H, dtype=rel.dtype)
    bd = eye[None, :, None, :, None] * rel[:, :, :, None, :]   # (R,H,dk,H,dk)
    return bd.reshape(R, H * dk, H * dk)


# ----------------------------------------------------------------------------
# Kernel 1: grouped linear  y = act( x @ W[group(tile)] + b[group(tile)] )
# ----------------------------------------------------------------------------
def _group_linear_kernel(blk_ref, x_ref, w_ref, b_ref, o_ref, *, act):
    del blk_ref
    y = jnp.dot(x_ref[...], w_ref[0], preferred_element_type=jnp.float32)
    y = y + b_ref[0]
    if act == "tanh":
        y = jnp.tanh(y)
    o_ref[...] = y.astype(o_ref.dtype)


def grouped_linear(x_pad, W, b, blk, nblocks, *, act=None,
                   out_dtype=jnp.bfloat16):
    """x_pad: (nblocks*TM, K) bf16 in type-grouped padded layout.
       W: (T, K, M) bf16, b: (T, 1, M) f32, blk: (nblocks,) int32 tile->type."""
    P, K = x_pad.shape
    M = W.shape[2]
    return pl.pallas_call(
        functools.partial(_group_linear_kernel, act=act),
        grid_spec=pltpu.PrefetchScalarGridSpec(
            num_scalar_prefetch=1,
            grid=(nblocks,),
            in_specs=[
                pl.BlockSpec((TM, K), lambda i, bt: (i, 0)),
                pl.BlockSpec((1, K, M), lambda i, bt: (bt[i], 0, 0)),
                pl.BlockSpec((1, 1, M), lambda i, bt: (bt[i], 0, 0)),
            ],
            out_specs=pl.BlockSpec((TM, M), lambda i, bt: (i, 0)),
        ),
        out_shape=jax.ShapeDtypeStruct((P, M), out_dtype),
        compiler_params=_CPARAMS,
    )(blk, x_pad, W, b)


# ----------------------------------------------------------------------------
# Kernel 2: grouped per-edge attention logits + messages (lane-dense layout)
#   input qkv : single (TE, 3D) bf16 slab (q | k | v), static column slices
#   kr  = k @ rel_att'[r]         (rel_pri / sqrt(dk) already folded in)
#   att = (q * kr) @ sel_pad      written into a lane-dense (TE, 128+) block
#   msg = v @ rel_msg[r]
# dk >= 128 uses per-head dense matmuls instead of the block-diagonal form.
# ----------------------------------------------------------------------------
def _edge_group_kernel(blk_ref, qkv_ref, ra_ref, rm_ref, sel_ref,
                       att_ref, msg_ref, *, D, H, dk, per_head):
    del blk_ref
    qkv = qkv_ref[...]
    q = qkv[:, 0:D]
    k = qkv[:, D:2 * D]
    v = qkv[:, 2 * D:3 * D]
    if per_head:
        kr = jnp.concatenate(
            [jnp.dot(k[:, h * dk:(h + 1) * dk], ra_ref[0, h],
                     preferred_element_type=jnp.float32) for h in range(H)],
            axis=-1)
        msg = jnp.concatenate(
            [jnp.dot(v[:, h * dk:(h + 1) * dk], rm_ref[0, h],
                     preferred_element_type=jnp.float32) for h in range(H)],
            axis=-1)
    else:
        kr = jnp.dot(k, ra_ref[0], preferred_element_type=jnp.float32)
        msg = jnp.dot(v, rm_ref[0], preferred_element_type=jnp.float32)
    msg_ref[...] = msg
    prod = (q.astype(jnp.float32) * kr).astype(jnp.bfloat16)
    att_ref[...] = jnp.dot(prod, sel_ref[...],
                           preferred_element_type=jnp.float32)


def edge_compute(qkv_e, ra, rm, sel, blk, nblocks, *, H, dk):
    Pe, D3 = qkv_e.shape
    D = D3 // 3
    lanes = sel.shape[-1]
    per_head = (ra.ndim == 4)

    def w_spec():
        if per_head:
            return pl.BlockSpec((1, H, dk, dk), lambda i, bt: (bt[i], 0, 0, 0))
        return pl.BlockSpec((1, D, D), lambda i, bt: (bt[i], 0, 0))

    att, msg = pl.pallas_call(
        functools.partial(_edge_group_kernel, D=D, H=H, dk=dk,
                          per_head=per_head),
        grid_spec=pltpu.PrefetchScalarGridSpec(
            num_scalar_prefetch=1,
            grid=(nblocks,),
            in_specs=[
                pl.BlockSpec((TE, D3), lambda i, bt: (i, 0)),
                w_spec(),
                w_spec(),
                pl.BlockSpec((D, lanes), lambda i, bt: (0, 0)),
            ],
            out_specs=[
                pl.BlockSpec((TE, lanes), lambda i, bt: (i, 0)),
                pl.BlockSpec((TE, D), lambda i, bt: (i, 0)),
            ],
        ),
        out_shape=(jax.ShapeDtypeStruct((Pe, lanes), jnp.float32),
                   jax.ShapeDtypeStruct((Pe, D), jnp.float32)),
        compiler_params=_CPARAMS,
    )(blk, qkv_e, ra, rm, sel)
    return att, msg


# ----------------------------------------------------------------------------
# Kernel 3: grouped target-specific update (skip-gate folded into the linear)
#   h  = g @ (alpha_t*W_t) + alpha_t*b_t + x * (1-alpha_t)
#   out = LayerNorm_t(h)            (f32 math, bf16 store)
# ----------------------------------------------------------------------------
def _update_group_kernel(blk_ref, g_ref, x_ref, w_ref, b_ref, rs_ref, gam_ref,
                         bet_ref, o_ref, *, eps):
    del blk_ref
    trans = jnp.dot(g_ref[...], w_ref[0],
                    preferred_element_type=jnp.float32) + b_ref[0]
    h = trans + x_ref[...].astype(jnp.float32) * rs_ref[0]
    mu = jnp.mean(h, axis=-1, keepdims=True)
    var = jnp.mean(jnp.square(h - mu), axis=-1, keepdims=True)
    out = (h - mu) * jax.lax.rsqrt(var + eps) * gam_ref[0] + bet_ref[0]
    o_ref[...] = out.astype(o_ref.dtype)


def update_call(g_pad, x_pad, Wa, ba, rs, gam, bet, blk, nblocks, eps=1e-5):
    P, M = x_pad.shape
    return pl.pallas_call(
        functools.partial(_update_group_kernel, eps=eps),
        grid_spec=pltpu.PrefetchScalarGridSpec(
            num_scalar_prefetch=1,
            grid=(nblocks,),
            in_specs=[
                pl.BlockSpec((TM, M), lambda i, bt: (i, 0)),        # gelu(aggr)
                pl.BlockSpec((TM, M), lambda i, bt: (i, 0)),        # residual
                pl.BlockSpec((1, M, M), lambda i, bt: (bt[i], 0, 0)),
                pl.BlockSpec((1, 1, M), lambda i, bt: (bt[i], 0, 0)),
                pl.BlockSpec((1, 1, M), lambda i, bt: (bt[i], 0, 0)),
                pl.BlockSpec((1, 1, M), lambda i, bt: (bt[i], 0, 0)),
                pl.BlockSpec((1, 1, M), lambda i, bt: (bt[i], 0, 0)),
            ],
            out_specs=pl.BlockSpec((TM, M), lambda i, bt: (i, 0)),
        ),
        out_shape=jax.ShapeDtypeStruct((P, M), jnp.bfloat16),
        compiler_params=_CPARAMS,
    )(blk, g_pad, x_pad, Wa, ba, rs, gam, bet)


# ----------------------------------------------------------------------------
# One HGTConv layer (message -> segment softmax -> aggregate -> update)
# ----------------------------------------------------------------------------
def hgt_conv(c, h_pad, npos, nblk, n_nb, epos, eblk, n_eb,
             pos_src, pos_dst, dst, sel, N, E, H, dk):
    D = H * dk
    Pn = n_nb * TM
    Pe = n_eb * TE

    # fused per-type q/k/v projection (grouped matmul, bf16 output)
    qkv_pad = grouped_linear(h_pad, c["Wqkv"], c["bqkv"], nblk, n_nb,
                             out_dtype=jnp.bfloat16)           # (Pn, 3D)

    # one gather for q (target rows), one for k|v (source rows), single scatter
    # of the concatenated slab into the relation-grouped padded edge layout
    q_e = qkv_pad[pos_dst, 0:D]                                 # (E, D)
    kv_e = qkv_pad[pos_src, D:3 * D]                            # (E, 2D)
    qkv_e = jnp.concatenate([q_e, kv_e], axis=-1)               # (E, 3D)
    qkv_ep = jnp.zeros((Pe, 3 * D), jnp.bfloat16).at[epos].set(qkv_e)

    att_pad, msg_pad = edge_compute(qkv_ep, c["ra"], c["rm"], sel,
                                    eblk, n_eb, H=H, dk=dk)
    att = att_pad[epos, :H]                                     # (E, H) f32
    msg = msg_pad[epos]                                         # (E, D) f32

    # segment softmax over target node id + scatter-add aggregation (plain JAX)
    seg_max = jax.ops.segment_max(att, dst, num_segments=N)
    att = jnp.exp(att - seg_max[dst])
    denom = jax.ops.segment_sum(att, dst, num_segments=N)
    att = att / (denom[dst] + 1e-16)
    weighted = (msg.reshape(E, H, dk) * att[:, :, None]).reshape(E, D)
    aggr = jax.ops.segment_sum(weighted, dst, num_segments=N)

    g = jax.nn.gelu(aggr, approximate=False)                    # exact (erf)
    g_pad = jnp.zeros((Pn, D), jnp.bfloat16).at[npos].set(g.astype(jnp.bfloat16))

    return update_call(g_pad, h_pad, c["Wa"], c["ba"], c["rs"],
                       c["gamma"], c["beta"], nblk, n_nb)


# ----------------------------------------------------------------------------
# Parameter init (deterministic, mirrors the PyTorch shapes)
# ----------------------------------------------------------------------------
def _glorot(key, shape):
    a = math.sqrt(6.0 / (shape[-2] + shape[-1]))
    return jax.random.uniform(key, shape, jnp.float32, -a, a)


def _linear_stack(key, T, fan_in, fan_out):
    k1, k2 = jax.random.split(key)
    bound = 1.0 / math.sqrt(fan_in)
    W = jax.random.uniform(k1, (T, fan_in, fan_out), jnp.float32, -bound, bound)
    b = jax.random.uniform(k2, (T, fan_out), jnp.float32, -bound, bound)
    return W, b


def init_conv(key, n_hid, T, R, H):
    dk = n_hid // H
    ks = jax.random.split(key, 6)
    Wk, bk = _linear_stack(ks[0], T, n_hid, n_hid)
    Wq, bq = _linear_stack(ks[1], T, n_hid, n_hid)
    Wv, bv = _linear_stack(ks[2], T, n_hid, n_hid)
    Wa, ba = _linear_stack(ks[3], T, n_hid, n_hid)
    return dict(
        Wk=Wk, bk=bk, Wq=Wq, bq=bq, Wv=Wv, bv=bv, Wa=Wa, ba=ba,
        rel_pri=jnp.ones((R, H), jnp.float32),
        rel_att=_glorot(ks[4], (R, H, dk, dk)),
        rel_msg=_glorot(ks[5], (R, H, dk, dk)),
        skip=jnp.ones((T,), jnp.float32),
        gamma=jnp.ones((T, n_hid), jnp.float32),
        beta=jnp.zeros((T, n_hid), jnp.float32),
    )


def init_model(key, in_dim, n_hid, T, R, H, n_layers):
    ks = jax.random.split(key, n_layers + 1)
    Wenc, benc = _linear_stack(ks[0], T, in_dim, n_hid)
    # (n_layers - 1) intermediate HGTConv layers + 1 embedder = n_layers convs
    convs = [init_conv(ks[1 + l], n_hid, T, R, H) for l in range(n_layers)]
    return dict(Wenc=Wenc, benc=benc, convs=convs)


# ----------------------------------------------------------------------------
# One-time parameter preparation (outside jit): fused QKV stacks, pri/sqrt(dk)
# folded into rel_att, block-diag (or per-head) relation weights, sigmoid(skip)
# folded into the update linear, bf16 weight casts, lane-padded head selector.
# ----------------------------------------------------------------------------
def prepare_params(params, n_heads):
    Wenc = params["Wenc"]
    T, in_dim, n_hid = Wenc.shape
    H = n_heads
    dk = n_hid // H
    D = n_hid
    per_head = dk >= 128          # dense per-head matmuls beat block-diag waste

    def prep_conv(p):
        alpha = jax.nn.sigmoid(p["skip"])                      # (T,)
        Wqkv = jnp.concatenate([p["Wq"], p["Wk"], p["Wv"]],
                               axis=-1).astype(jnp.bfloat16)   # (T, D, 3D)
        bqkv = jnp.concatenate([p["bq"], p["bk"], p["bv"]],
                               axis=-1)[:, None, :].astype(jnp.float32)
        scale = (p["rel_pri"] / math.sqrt(dk))[:, :, None, None]
        ra_h = p["rel_att"] * scale                            # pri/sqrt(dk) folded
        rm_h = p["rel_msg"]
        if per_head:
            ra = ra_h.astype(jnp.bfloat16)                     # (R, H, dk, dk)
            rm = rm_h.astype(jnp.bfloat16)
        else:
            ra = _block_diag(ra_h).astype(jnp.bfloat16)        # (R, D, D)
            rm = _block_diag(rm_h).astype(jnp.bfloat16)
        return dict(
            Wqkv=Wqkv, bqkv=bqkv, ra=ra, rm=rm,
            Wa=(p["Wa"] * alpha[:, None, None]).astype(jnp.bfloat16),
            ba=(p["ba"] * alpha[:, None])[:, None, :].astype(jnp.float32),
            rs=jnp.broadcast_to((1.0 - alpha)[:, None, None],
                                (T, 1, D)).astype(jnp.float32),
            gamma=p["gamma"][:, None, :].astype(jnp.float32),
            beta=p["beta"][:, None, :].astype(jnp.float32),
        )

    # lane-padded per-head sum selector (D, 128*ceil(H/128)), zero beyond H
    lanes = max(128, (-(-H // 128)) * 128)
    sel = jnp.zeros((D, lanes), jnp.float32).at[:, :H].set(
        jnp.repeat(jnp.eye(H, dtype=jnp.float32), dk, axis=0)
    ).astype(jnp.bfloat16)

    return dict(
        Wenc=Wenc.astype(jnp.bfloat16),
        benc=params["benc"][:, None, :].astype(jnp.float32),
        sel=sel,
        convs=[prep_conv(p) for p in params["convs"]],
    )


# ----------------------------------------------------------------------------
# HGTModel forward
# ----------------------------------------------------------------------------
@functools.partial(jax.jit, static_argnames=("n_heads",))
def hgt_forward(prepared, node_feature, node_type, edge_time, edge_index,
                edge_type, *, n_heads):
    del edge_time  # use_RTE=False (HGTModel default)
    T, in_dim, n_hid = prepared["Wenc"].shape
    H = n_heads
    dk = n_hid // H
    N = node_feature.shape[0]
    src = edge_index[0]   # j (source)
    dst = edge_index[1]   # i (target)
    E = src.shape[0]
    R = prepared["convs"][0]["ra"].shape[0]

    # grouping metadata (node types / edge relations are fixed across layers);
    # edges are relation-major / dst-minor for scatter locality
    npos, nblk, n_nb = build_groups(node_type, T, TM)
    epos, eblk, n_eb = build_groups(edge_type, R, TE, secondary=dst)
    pos_src = npos[src]
    pos_dst = npos[dst]
    Pn = n_nb * TM

    # per-type encoder: tanh(Linear_t(x)); dropout = identity (inference)
    xf_pad = jnp.zeros((Pn, in_dim), jnp.bfloat16).at[npos].set(
        node_feature.astype(jnp.bfloat16))
    h_pad = grouped_linear(xf_pad, prepared["Wenc"], prepared["benc"],
                           nblk, n_nb, act="tanh", out_dtype=jnp.bfloat16)

    for c in prepared["convs"]:
        h_pad = hgt_conv(c, h_pad, npos, nblk, n_nb, epos, eblk, n_eb,
                         pos_src, pos_dst, dst, prepared["sel"], N, E, H, dk)
    return h_pad[npos].astype(jnp.float32)


# ----------------------------------------------------------------------------
if __name__ == "__main__":
    in_dim, n_hid = 16, 32
    num_types, num_relations, n_heads, n_layers = 3, 2, 4, 2
    N, E = 24, 48

    key = jax.random.PRNGKey(0)
    k_feat, k_ntype, k_src, k_dst, k_etype, k_etime, k_param = jax.random.split(key, 7)

    node_feature = jax.random.normal(k_feat, (N, in_dim), jnp.float32)
    node_type = jax.random.randint(k_ntype, (N,), 0, num_types, jnp.int32)
    edge_index = jnp.stack([
        jax.random.randint(k_src, (E,), 0, N, jnp.int32),
        jax.random.randint(k_dst, (E,), 0, N, jnp.int32),
    ], axis=0)
    edge_type = jax.random.randint(k_etype, (E,), 0, num_relations, jnp.int32)
    edge_time = jax.random.randint(k_etime, (E,), 0, 240, jnp.int32)

    params = init_model(k_param, in_dim, n_hid, num_types, num_relations,
                        n_heads, n_layers)
    prepared = prepare_params(params, n_heads)

    out = hgt_forward(prepared, node_feature, node_type, edge_time,
                      edge_index, edge_type, n_heads=n_heads)
    out = jax.block_until_ready(out)

    assert out.shape == (N, n_hid), out.shape
    assert bool(jnp.all(jnp.isfinite(out)))
    print("KERNEL_OK")
</pallas_src>

<mosaic_0001>
module attributes {stable_mosaic.version = 11 : i64} {
  func.func private @main(%arg0: i32) attributes {dimension_semantics = [#tpu.dimension_semantics<core_parallel>], iteration_bounds = array<i64: 2>, tpu.core_type = #tpu.core_type<sc_scalar_subcore>, window_params = []} {
    return
  }
}

module attributes {stable_mosaic.version = 11 : i64} {
  func.func private @main(%arg0: i32) attributes {dimension_semantics = [#tpu.dimension_semantics<core_parallel>], iteration_bounds = array<i64: 2>, tpu.core_type = #tpu.core_type<sc_scalar_subcore>, window_params = []} {
    return
  }
}

module attributes {stable_mosaic.version = 11 : i64} {
  func.func @_group_linear_kernel(%arg0: i32, %arg1: memref<4xi32, #tpu.memory_space<smem>>, %arg2: memref<512x16xbf16, #tpu.memory_space<vmem>>, %arg3: memref<1x16x32xbf16, #tpu.memory_space<vmem>>, %arg4: memref<1x1x32xf32, #tpu.memory_space<vmem>>, %arg5: memref<512x32xbf16, #tpu.memory_space<vmem>>) attributes {dimension_semantics = [#tpu.dimension_semantics<parallel>], iteration_bounds = array<i64: 4>, scalar_prefetch = 1 : i64, scratch_operands = 0 : i64, tpu.core_type = #tpu.core_type<tc>, window_params = [{transform_indices = @transform_0, window_bounds = array<i64: 512, 16>}, {transform_indices = @transform_1, window_bounds = array<i64: 1, 16, 32>}, {transform_indices = @transform_2, window_bounds = array<i64: 1, 1, 32>}, {transform_indices = @transform_3, window_bounds = array<i64: 512, 32>}]} {
    %c0 = arith.constant 0 : index
    %c0_0 = arith.constant 0 : index
    %0 = vector.load %arg2[%c0, %c0_0] : memref<512x16xbf16, #tpu.memory_space<vmem>>, vector<512x16xbf16>
    %c0_1 = arith.constant 0 : index
    %c0_2 = arith.constant 0 : index
    %c0_3 = arith.constant 0 : index
    %1 = vector.load %arg3[%c0_1, %c0_2, %c0_3] : memref<1x16x32xbf16, #tpu.memory_space<vmem>>, vector<1x16x32xbf16>
    %2 = vector.shape_cast %1 : vector<1x16x32xbf16> to vector<16x32xbf16>
    %cst = arith.constant dense<0.000000e+00> : vector<512x32xf32>
    %3 = tpu.matmul %0, %2, %cst {dimension_numbers = #tpu.dot_dimension_numbers<[1], [0], [0], [1], [0, 0, 1, 1], [], []>} : vector<512x16xbf16>, vector<16x32xbf16>, vector<512x32xf32> -> vector<512x32xf32>
    %c0_4 = arith.constant 0 : index
    %c0_5 = arith.constant 0 : index
    %c0_6 = arith.constant 0 : index
    %4 = vector.load %arg4[%c0_4, %c0_5, %c0_6] : memref<1x1x32xf32, #tpu.memory_space<vmem>>, vector<1x1x32xf32>
    %5 = vector.shape_cast %4 : vector<1x1x32xf32> to vector<1x32xf32>
    %6 = vector.broadcast %5 : vector<1x32xf32> to vector<512x32xf32>
    %7 = arith.addf %3, %6 : vector<512x32xf32>
    %8 = math.tanh %7 : vector<512x32xf32>
    %9 = arith.truncf %8 : vector<512x32xf32> to vector<512x32xbf16>
    %c0_7 = arith.constant 0 : index
    %c0_8 = arith.constant 0 : index
    %10 = vector.load %arg5[%c0_7, %c0_8] : memref<512x32xbf16, #tpu.memory_space<vmem>>, vector<512x32xbf16>
    tpu.vector_store %arg5[%c0_7, %c0_8], %9 {strides = array<i32>} : memref<512x32xbf16, #tpu.memory_space<vmem>>, vector<512x32xbf16>,
    return
  }
  func.func @transform_0(%arg0: i32, %arg1: memref<4xi32, #tpu.memory_space<smem>>) -> (i32, i32) {
    %c0_i32 = arith.constant 0 : i32
    %c0_i32_0 = arith.constant 0 : i32
    return %arg0, %c0_i32 : i32, i32
  }
  func.func @transform_1(%arg0: i32, %arg1: memref<4xi32, #tpu.memory_space<smem>>) -> (i32, i32, i32) {
    %0 = arith.index_cast %arg0 : i32 to index
    %1 = memref.load %arg1[%0] : memref<4xi32, #tpu.memory_space<smem>>
    %c0_i32 = arith.constant 0 : i32
    %c0_i32_0 = arith.constant 0 : i32
    %c0_i32_1 = arith.constant 0 : i32
    return %1, %c0_i32, %c0_i32_0 : i32, i32, i32
  }
  func.func @transform_2(%arg0: i32, %arg1: memref<4xi32, #tpu.memory_space<smem>>) -> (i32, i32, i32) {
    %0 = arith.index_cast %arg0 : i32 to index
    %1 = memref.load %arg1[%0] : memref<4xi32, #tpu.memory_space<smem>>
    %c0_i32 = arith.constant 0 : i32
    %c0_i32_0 = arith.constant 0 : i32
    %c0_i32_1 = arith.constant 0 : i32
    return %1, %c0_i32, %c0_i32_0 : i32, i32, i32
  }
  func.func @transform_3(%arg0: i32, %arg1: memref<4xi32, #tpu.memory_space<smem>>) -> (i32, i32) {
    %c0_i32 = arith.constant 0 : i32
    %c0_i32_0 = arith.constant 0 : i32
    return %arg0, %c0_i32 : i32, i32
  }
}

module attributes {stable_mosaic.version = 11 : i64} {
  func.func @_group_linear_kernel(%arg0: i32, %arg1: memref<4xi32, #tpu.memory_space<smem>>, %arg2: memref<512x32xbf16, #tpu.memory_space<vmem>>, %arg3: memref<1x32x96xbf16, #tpu.memory_space<vmem>>, %arg4: memref<1x1x96xf32, #tpu.memory_space<vmem>>, %arg5: memref<512x96xbf16, #tpu.memory_space<vmem>>) attributes {dimension_semantics = [#tpu.dimension_semantics<parallel>], iteration_bounds = array<i64: 4>, scalar_prefetch = 1 : i64, scratch_operands = 0 : i64, tpu.core_type = #tpu.core_type<tc>, window_params = [{transform_indices = @transform_0, window_bounds = array<i64: 512, 32>}, {transform_indices = @transform_1, window_bounds = array<i64: 1, 32, 96>}, {transform_indices = @transform_2, window_bounds = array<i64: 1, 1, 96>}, {transform_indices = @transform_3, window_bounds = array<i64: 512, 96>}]} {
    %c0 = arith.constant 0 : index
    %c0_0 = arith.constant 0 : index
    %0 = vector.load %arg2[%c0, %c0_0] : memref<512x32xbf16, #tpu.memory_space<vmem>>, vector<512x32xbf16>
    %c0_1 = arith.constant 0 : index
    %c0_2 = arith.constant 0 : index
    %c0_3 = arith.constant 0 : index
    %1 = vector.load %arg3[%c0_1, %c0_2, %c0_3] : memref<1x32x96xbf16, #tpu.memory_space<vmem>>, vector<1x32x96xbf16>
    %2 = vector.shape_cast %1 : vector<1x32x96xbf16> to vector<32x96xbf16>
    %cst = arith.constant dense<0.000000e+00> : vector<512x96xf32>
    %3 = tpu.matmul %0, %2, %cst {dimension_numbers = #tpu.dot_dimension_numbers<[1], [0], [0], [1], [0, 0, 1, 1], [], []>} : vector<512x32xbf16>, vector<32x96xbf16>, vector<512x96xf32> -> vector<512x96xf32>
    %c0_4 = arith.constant 0 : index
    %c0_5 = arith.constant 0 : index
    %c0_6 = arith.constant 0 : index
    %4 = vector.load %arg4[%c0_4, %c0_5, %c0_6] : memref<1x1x96xf32, #tpu.memory_space<vmem>>, vector<1x1x96xf32>
    %5 = vector.shape_cast %4 : vector<1x1x96xf32> to vector<1x96xf32>
    %6 = vector.broadcast %5 : vector<1x96xf32> to vector<512x96xf32>
    %7 = arith.addf %3, %6 : vector<512x96xf32>
    %8 = arith.truncf %7 : vector<512x96xf32> to vector<512x96xbf16>
    %c0_7 = arith.constant 0 : index
    %c0_8 = arith.constant 0 : index
    %9 = vector.load %arg5[%c0_7, %c0_8] : memref<512x96xbf16, #tpu.memory_space<vmem>>, vector<512x96xbf16>
    tpu.vector_store %arg5[%c0_7, %c0_8], %8 {strides = array<i32>} : memref<512x96xbf16, #tpu.memory_space<vmem>>, vector<512x96xbf16>,
    return
  }
  func.func @transform_0(%arg0: i32, %arg1: memref<4xi32, #tpu.memory_space<smem>>) -> (i32, i32) {
    %c0_i32 = arith.constant 0 : i32
    %c0_i32_0 = arith.constant 0 : i32
    return %arg0, %c0_i32 : i32, i32
  }
  func.func @transform_1(%arg0: i32, %arg1: memref<4xi32, #tpu.memory_space<smem>>) -> (i32, i32, i32) {
    %0 = arith.index_cast %arg0 : i32 to index
    %1 = memref.load %arg1[%0] : memref<4xi32, #tpu.memory_space<smem>>
    %c0_i32 = arith.constant 0 : i32
    %c0_i32_0 = arith.constant 0 : i32
    %c0_i32_1 = arith.constant 0 : i32
    return %1, %c0_i32, %c0_i32_0 : i32, i32, i32
  }
  func.func @transform_2(%arg0: i32, %arg1: memref<4xi32, #tpu.memory_space<smem>>) -> (i32, i32, i32) {
    %0 = arith.index_cast %arg0 : i32 to index
    %1 = memref.load %arg1[%0] : memref<4xi32, #tpu.memory_space<smem>>
    %c0_i32 = arith.constant 0 : i32
    %c0_i32_0 = arith.constant 0 : i32
    %c0_i32_1 = arith.constant 0 : i32
    return %1, %c0_i32, %c0_i32_0 : i32, i32, i32
  }
  func.func @transform_3(%arg0: i32, %arg1: memref<4xi32, #tpu.memory_space<smem>>) -> (i32, i32) {
    %c0_i32 = arith.constant 0 : i32
    %c0_i32_0 = arith.constant 0 : i32
    return %arg0, %c0_i32 : i32, i32
  }
}

module attributes {stable_mosaic.version = 11 : i64} {
  func.func @_edge_group_kernel(%arg0: i32, %arg1: memref<3xi32, #tpu.memory_space<smem>>, %arg2: memref<512x96xbf16, #tpu.memory_space<vmem>>, %arg3: memref<1x32x32xbf16, #tpu.memory_space<vmem>>, %arg4: memref<1x32x32xbf16, #tpu.memory_space<vmem>>, %arg5: memref<32x128xbf16, #tpu.memory_space<vmem>>, %arg6: memref<512x128xf32, #tpu.memory_space<vmem>>, %arg7: memref<512x32xf32, #tpu.memory_space<vmem>>) attributes {dimension_semantics = [#tpu.dimension_semantics<parallel>], iteration_bounds = array<i64: 3>, scalar_prefetch = 1 : i64, scratch_operands = 0 : i64, tpu.core_type = #tpu.core_type<tc>, window_params = [{transform_indices = @transform_0, window_bounds = array<i64: 512, 96>}, {transform_indices = @transform_1, window_bounds = array<i64: 1, 32, 32>}, {transform_indices = @transform_2, window_bounds = array<i64: 1, 32, 32>}, {pipeline_mode = #tpu.pipeline_mode<synchronous>, transform_indices = @transform_3, window_bounds = array<i64: 32, 128>}, {transform_indices = @transform_4, window_bounds = array<i64: 512, 128>}, {transform_indices = @transform_5, window_bounds = array<i64: 512, 32>}]} {
    %c0 = arith.constant 0 : index
    %c0_0 = arith.constant 0 : index
    %0 = vector.load %arg2[%c0, %c0_0] : memref<512x96xbf16, #tpu.memory_space<vmem>>, vector<512x96xbf16>
    %1 = vector.extract_strided_slice %0 {offsets = [0, 0], sizes = [512, 32], strides = [1, 1]} : vector<512x96xbf16> to vector<512x32xbf16>
    %2 = vector.extract_strided_slice %0 {offsets = [0, 32], sizes = [512, 32], strides = [1, 1]} : vector<512x96xbf16> to vector<512x32xbf16>
    %3 = vector.extract_strided_slice %0 {offsets = [0, 64], sizes = [512, 32], strides = [1, 1]} : vector<512x96xbf16> to vector<512x32xbf16>
    %c0_1 = arith.constant 0 : index
    %c0_2 = arith.constant 0 : index
    %c0_3 = arith.constant 0 : index
    %4 = vector.load %arg3[%c0_1, %c0_2, %c0_3] : memref<1x32x32xbf16, #tpu.memory_space<vmem>>, vector<1x32x32xbf16>
    %5 = vector.shape_cast %4 : vector<1x32x32xbf16> to vector<32x32xbf16>
    %cst = arith.constant dense<0.000000e+00> : vector<512x32xf32>
    %6 = tpu.matmul %2, %5, %cst {dimension_numbers = #tpu.dot_dimension_numbers<[1], [0], [0], [1], [0, 0, 1, 1], [], []>} : vector<512x32xbf16>, vector<32x32xbf16>, vector<512x32xf32> -> vector<512x32xf32>
    %c0_4 = arith.constant 0 : index
    %c0_5 = arith.constant 0 : index
    %c0_6 = arith.constant 0 : index
    %7 = vector.load %arg4[%c0_4, %c0_5, %c0_6] : memref<1x32x32xbf16, #tpu.memory_space<vmem>>, vector<1x32x32xbf16>
    %8 = vector.shape_cast %7 : vector<1x32x32xbf16> to vector<32x32xbf16>
    %cst_7 = arith.constant dense<0.000000e+00> : vector<512x32xf32>
    %9 = tpu.matmul %3, %8, %cst_7 {dimension_numbers = #tpu.dot_dimension_numbers<[1], [0], [0], [1], [0, 0, 1, 1], [], []>} : vector<512x32xbf16>, vector<32x32xbf16>, vector<512x32xf32> -> vector<512x32xf32>
    %c0_8 = arith.constant 0 : index
    %c0_9 = arith.constant 0 : index
    %10 = vector.load %arg7[%c0_8, %c0_9] : memref<512x32xf32, #tpu.memory_space<vmem>>, vector<512x32xf32>
    tpu.vector_store %arg7[%c0_8, %c0_9], %9 {strides = array<i32>} : memref<512x32xf32, #tpu.memory_space<vmem>>, vector<512x32xf32>,
    %11 = arith.extf %1 : vector<512x32xbf16> to vector<512x32xf32>
    %12 = arith.mulf %11, %6 : vector<512x32xf32>
    %13 = arith.truncf %12 : vector<512x32xf32> to vector<512x32xbf16>
    %c0_10 = arith.constant 0 : index
    %c0_11 = arith.constant 0 : index
    %14 = vector.load %arg5[%c0_10, %c0_11] : memref<32x128xbf16, #tpu.memory_space<vmem>>, vector<32x128xbf16>
    %cst_12 = arith.constant dense<0.000000e+00> : vector<512x128xf32>
    %15 = tpu.matmul %13, %14, %cst_12 {dimension_numbers = #tpu.dot_dimension_numbers<[1], [0], [0], [1], [0, 0, 1, 1], [], []>} : vector<512x32xbf16>, vector<32x128xbf16>, vector<512x128xf32> -> vector<512x128xf32>
    %c0_13 = arith.constant 0 : index
    %c0_14 = arith.constant 0 : index
    %16 = vector.load %arg6[%c0_13, %c0_14] : memref<512x128xf32, #tpu.memory_space<vmem>>, vector<512x128xf32>
    tpu.vector_store %arg6[%c0_13, %c0_14], %15 {strides = array<i32>} : memref<512x128xf32, #tpu.memory_space<vmem>>, vector<512x128xf32>,
    return
  }
  func.func @transform_0(%arg0: i32, %arg1: memref<3xi32, #tpu.memory_space<smem>>) -> (i32, i32) {
    %c0_i32 = arith.constant 0 : i32
    %c0_i32_0 = arith.constant 0 : i32
    return %arg0, %c0_i32 : i32, i32
  }
  func.func @transform_1(%arg0: i32, %arg1: memref<3xi32, #tpu.memory_space<smem>>) -> (i32, i32, i32) {
    %0 = arith.index_cast %arg0 : i32 to index
    %1 = memref.load %arg1[%0] : memref<3xi32, #tpu.memory_space<smem>>
    %c0_i32 = arith.constant 0 : i32
    %c0_i32_0 = arith.constant 0 : i32
    %c0_i32_1 = arith.constant 0 : i32
    return %1, %c0_i32, %c0_i32_0 : i32, i32, i32
  }
  func.func @transform_2(%arg0: i32, %arg1: memref<3xi32, #tpu.memory_space<smem>>) -> (i32, i32, i32) {
    %0 = arith.index_cast %arg0 : i32 to index
    %1 = memref.load %arg1[%0] : memref<3xi32, #tpu.memory_space<smem>>
    %c0_i32 = arith.constant 0 : i32
    %c0_i32_0 = arith.constant 0 : i32
    %c0_i32_1 = arith.constant 0 : i32
    return %1, %c0_i32, %c0_i32_0 : i32, i32, i32
  }
  func.func @transform_3(%arg0: i32, %arg1: memref<3xi32, #tpu.memory_space<smem>>) -> (i32, i32) {
    %c0_i32 = arith.constant 0 : i32
    %c0_i32_0 = arith.constant 0 : i32
    %c0_i32_1 = arith.constant 0 : i32
    return %c0_i32, %c0_i32_0 : i32, i32
  }
  func.func @transform_4(%arg0: i32, %arg1: memref<3xi32, #tpu.memory_space<smem>>) -> (i32, i32) {
    %c0_i32 = arith.constant 0 : i32
    %c0_i32_0 = arith.constant 0 : i32
    return %arg0, %c0_i32 : i32, i32
  }
  func.func @transform_5(%arg0: i32, %arg1: memref<3xi32, #tpu.memory_space<smem>>) -> (i32, i32) {
    %c0_i32 = arith.constant 0 : i32
    %c0_i32_0 = arith.constant 0 : i32
    return %arg0, %c0_i32 : i32, i32
  }
}

module attributes {stable_mosaic.version = 11 : i64} {
  func.func @_update_group_kernel(%arg0: i32, %arg1: memref<4xi32, #tpu.memory_space<smem>>, %arg2: memref<512x32xbf16, #tpu.memory_space<vmem>>, %arg3: memref<512x32xbf16, #tpu.memory_space<vmem>>, %arg4: memref<1x32x32xbf16, #tpu.memory_space<vmem>>, %arg5: memref<1x1x32xf32, #tpu.memory_space<vmem>>, %arg6: memref<1x1x32xf32, #tpu.memory_space<vmem>>, %arg7: memref<1x1x32xf32, #tpu.memory_space<vmem>>, %arg8: memref<1x1x32xf32, #tpu.memory_space<vmem>>, %arg9: memref<512x32xbf16, #tpu.memory_space<vmem>>) attributes {dimension_semantics = [#tpu.dimension_semantics<parallel>], iteration_bounds = array<i64: 4>, scalar_prefetch = 1 : i64, scratch_operands = 0 : i64, tpu.core_type = #tpu.core_type<tc>, window_params = [{transform_indices = @transform_0, window_bounds = array<i64: 512, 32>}, {transform_indices = @transform_1, window_bounds = array<i64: 512, 32>}, {transform_indices = @transform_2, window_bounds = array<i64: 1, 32, 32>}, {transform_indices = @transform_3, window_bounds = array<i64: 1, 1, 32>}, {transform_indices = @transform_4, window_bounds = array<i64: 1, 1, 32>}, {transform_indices = @transform_5, window_bounds = array<i64: 1, 1, 32>}, {transform_indices = @transform_6, window_bounds = array<i64: 1, 1, 32>}, {transform_indices = @transform_7, window_bounds = array<i64: 512, 32>}]} {
    %c0 = arith.constant 0 : index
    %c0_0 = arith.constant 0 : index
    %0 = vector.load %arg2[%c0, %c0_0] : memref<512x32xbf16, #tpu.memory_space<vmem>>, vector<512x32xbf16>
    %c0_1 = arith.constant 0 : index
    %c0_2 = arith.constant 0 : index
    %c0_3 = arith.constant 0 : index
    %1 = vector.load %arg4[%c0_1, %c0_2, %c0_3] : memref<1x32x32xbf16, #tpu.memory_space<vmem>>, vector<1x32x32xbf16>
    %2 = vector.shape_cast %1 : vector<1x32x32xbf16> to vector<32x32xbf16>
    %cst = arith.constant dense<0.000000e+00> : vector<512x32xf32>
    %3 = tpu.matmul %0, %2, %cst {dimension_numbers = #tpu.dot_dimension_numbers<[1], [0], [0], [1], [0, 0, 1, 1], [], []>} : vector<512x32xbf16>, vector<32x32xbf16>, vector<512x32xf32> -> vector<512x32xf32>
    %c0_4 = arith.constant 0 : index
    %c0_5 = arith.constant 0 : index
    %c0_6 = arith.constant 0 : index
    %4 = vector.load %arg5[%c0_4, %c0_5, %c0_6] : memref<1x1x32xf32, #tpu.memory_space<vmem>>, vector<1x1x32xf32>
    %5 = vector.shape_cast %4 : vector<1x1x32xf32> to vector<1x32xf32>
    %6 = vector.broadcast %5 : vector<1x32xf32> to vector<512x32xf32>
    %7 = arith.addf %3, %6 : vector<512x32xf32>
    %c0_7 = arith.constant 0 : index
    %c0_8 = arith.constant 0 : index
    %8 = vector.load %arg3[%c0_7, %c0_8] : memref<512x32xbf16, #tpu.memory_space<vmem>>, vector<512x32xbf16>
    %9 = arith.extf %8 : vector<512x32xbf16> to vector<512x32xf32>
    %c0_9 = arith.constant 0 : index
    %c0_10 = arith.constant 0 : index
    %c0_11 = arith.constant 0 : index
    %10 = vector.load %arg6[%c0_9, %c0_10, %c0_11] : memref<1x1x32xf32, #tpu.memory_space<vmem>>, vector<1x1x32xf32>
    %11 = vector.shape_cast %10 : vector<1x1x32xf32> to vector<1x32xf32>
    %12 = vector.broadcast %11 : vector<1x32xf32> to vector<512x32xf32>
    %13 = arith.mulf %9, %12 : vector<512x32xf32>
    %14 = arith.addf %7, %13 : vector<512x32xf32>
    %cst_12 = arith.constant dense<0.000000e+00> : vector<512xf32>
    %15 = vector.multi_reduction <add>, %14, %cst_12 [1] : vector<512x32xf32> to vector<512xf32>
    %16 = vector.shape_cast %15 : vector<512xf32> to vector<512x1xf32>
    %cst_13 = arith.constant 3.200000e+01 : f32
    %17 = vector.broadcast %cst_13 : f32 to vector<512x1xf32>
    %18 = arith.divf %16, %17 : vector<512x1xf32>
    %19 = vector.broadcast %18 : vector<512x1xf32> to vector<512x32xf32>
    %20 = arith.subf %14, %19 : vector<512x32xf32>
    %21 = arith.mulf %20, %20 : vector<512x32xf32>
    %cst_14 = arith.constant dense<0.000000e+00> : vector<512xf32>
    %22 = vector.multi_reduction <add>, %21, %cst_14 [1] : vector<512x32xf32> to vector<512xf32>
    %23 = vector.shape_cast %22 : vector<512xf32> to vector<512x1xf32>
    %cst_15 = arith.constant 3.200000e+01 : f32
    %24 = vector.broadcast %cst_15 : f32 to vector<512x1xf32>
    %25 = arith.divf %23, %24 : vector<512x1xf32>
    %26 = vector.broadcast %18 : vector<512x1xf32> to vector<512x32xf32>
    %27 = arith.subf %14, %26 : vector<512x32xf32>
    %cst_16 = arith.constant 9.99999974E-6 : f32
    %28 = vector.broadcast %cst_16 : f32 to vector<512x1xf32>
    %29 = arith.addf %25, %28 : vector<512x1xf32>
    %30 = math.rsqrt %29 : vector<512x1xf32>
    %31 = vector.broadcast %30 : vector<512x1xf32> to vector<512x32xf32>
    %32 = arith.mulf %27, %31 : vector<512x32xf32>
    %c0_17 = arith.constant 0 : index
    %c0_18 = arith.constant 0 : index
    %c0_19 = arith.constant 0 : index
    %33 = vector.load %arg7[%c0_17, %c0_18, %c0_19] : memref<1x1x32xf32, #tpu.memory_space<vmem>>, vector<1x1x32xf32>
    %34 = vector.shape_cast %33 : vector<1x1x32xf32> to vector<1x32xf32>
    %35 = vector.broadcast %34 : vector<1x32xf32> to vector<512x32xf32>
    %36 = arith.mulf %32, %35 : vector<512x32xf32>
    %c0_20 = arith.constant 0 : index
    %c0_21 = arith.constant 0 : index
    %c0_22 = arith.constant 0 : index
    %37 = vector.load %arg8[%c0_20, %c0_21, %c0_22] : memref<1x1x32xf32, #tpu.memory_space<vmem>>, vector<1x1x32xf32>
    %38 = vector.shape_cast %37 : vector<1x1x32xf32> to vector<1x32xf32>
    %39 = vector.broadcast %38 : vector<1x32xf32> to vector<512x32xf32>
    %40 = arith.addf %36, %39 : vector<512x32xf32>
    %41 = arith.truncf %40 : vector<512x32xf32> to vector<512x32xbf16>
    %c0_23 = arith.constant 0 : index
    %c0_24 = arith.constant 0 : index
    %42 = vector.load %arg9[%c0_23, %c0_24] : memref<512x32xbf16, #tpu.memory_space<vmem>>, vector<512x32xbf16>
    tpu.vector_store %arg9[%c0_23, %c0_24], %41 {strides = array<i32>} : memref<512x32xbf16, #tpu.memory_space<vmem>>, vector<512x32xbf16>,
    return
  }
  func.func @transform_0(%arg0: i32, %arg1: memref<4xi32, #tpu.memory_space<smem>>) -> (i32, i32) {
    %c0_i32 = arith.constant 0 : i32
    %c0_i32_0 = arith.constant 0 : i32
    return %arg0, %c0_i32 : i32, i32
  }
  func.func @transform_1(%arg0: i32, %arg1: memref<4xi32, #tpu.memory_space<smem>>) -> (i32, i32) {
    %c0_i32 = arith.constant 0 : i32
    %c0_i32_0 = arith.constant 0 : i32
    return %arg0, %c0_i32 : i32, i32
  }
  func.func @transform_2(%arg0: i32, %arg1: memref<4xi32, #tpu.memory_space<smem>>) -> (i32, i32, i32) {
    %0 = arith.index_cast %arg0 : i32 to index
    %1 = memref.load %arg1[%0] : memref<4xi32, #tpu.memory_space<smem>>
    %c0_i32 = arith.constant 0 : i32
    %c0_i32_0 = arith.constant 0 : i32
    %c0_i32_1 = arith.constant 0 : i32
    return %1, %c0_i32, %c0_i32_0 : i32, i32, i32
  }
  func.func @transform_3(%arg0: i32, %arg1: memref<4xi32, #tpu.memory_space<smem>>) -> (i32, i32, i32) {
    %0 = arith.index_cast %arg0 : i32 to index
    %1 = memref.load %arg1[%0] : memref<4xi32, #tpu.memory_space<smem>>
    %c0_i32 = arith.constant 0 : i32
    %c0_i32_0 = arith.constant 0 : i32
    %c0_i32_1 = arith.constant 0 : i32
    return %1, %c0_i32, %c0_i32_0 : i32, i32, i32
  }
  func.func @transform_4(%arg0: i32, %arg1: memref<4xi32, #tpu.memory_space<smem>>) -> (i32, i32, i32) {
    %0 = arith.index_cast %arg0 : i32 to index
    %1 = memref.load %arg1[%0] : memref<4xi32, #tpu.memory_space<smem>>
    %c0_i32 = arith.constant 0 : i32
    %c0_i32_0 = arith.constant 0 : i32
    %c0_i32_1 = arith.constant 0 : i32
    return %1, %c0_i32, %c0_i32_0 : i32, i32, i32
  }
  func.func @transform_5(%arg0: i32, %arg1: memref<4xi32, #tpu.memory_space<smem>>) -> (i32, i32, i32) {
    %0 = arith.index_cast %arg0 : i32 to index
    %1 = memref.load %arg1[%0] : memref<4xi32, #tpu.memory_space<smem>>
    %c0_i32 = arith.constant 0 : i32
    %c0_i32_0 = arith.constant 0 : i32
    %c0_i32_1 = arith.constant 0 : i32
    return %1, %c0_i32, %c0_i32_0 : i32, i32, i32
  }
  func.func @transform_6(%arg0: i32, %arg1: memref<4xi32, #tpu.memory_space<smem>>) -> (i32, i32, i32) {
    %0 = arith.index_cast %arg0 : i32 to index
    %1 = memref.load %arg1[%0] : memref<4xi32, #tpu.memory_space<smem>>
    %c0_i32 = arith.constant 0 : i32
    %c0_i32_0 = arith.constant 0 : i32
    %c0_i32_1 = arith.constant 0 : i32
    return %1, %c0_i32, %c0_i32_0 : i32, i32, i32
  }
  func.func @transform_7(%arg0: i32, %arg1: memref<4xi32, #tpu.memory_space<smem>>) -> (i32, i32) {
    %c0_i32 = arith.constant 0 : i32
    %c0_i32_0 = arith.constant 0 : i32
    return %arg0, %c0_i32 : i32, i32
  }
}

</mosaic_0001>

<bundles_post_ra>
// kernel: custom-call.16
= control target key start
LH: loop header
LB: loop body
LE: loop exit
PB: predicated region body
PF: predicated region fallthrough
CT: control target
= control target key end

     0   :  { %s6_s0 = inlined_call_operand.vmem [shape: u32[4], index: 0, kind: output, shape index: {}]  }

// kernel: custom-call.18
= control target key start
LH: loop header
LB: loop body
LE: loop exit
PB: predicated region body
PF: predicated region fallthrough
CT: control target
= control target key end

     0   :  { %s6_s0 = inlined_call_operand.hbm [shape: u32[3], index: 0, kind: output, shape index: {}]  }

// kernel: hgt_forward.7
= control target key start
LH: loop header
LB: loop body
LE: loop exit
PB: predicated region body
PF: predicated region fallthrough
CT: control target
= control target key end

     0   :  { %s2920_s0 = inlined_call_operand.hbm [shape: s32[4], index: 0, kind: input, shape index: {}]   ;;  %s2921_s1 = inlined_call_operand.hbm [shape: bf16[2048,16], index: 1, kind: input, shape index: {}]   ;;  %s2922_s2 = inlined_call_operand.hbm [shape: bf16[3,16,32], index: 2, kind: input, shape index: {}]   ;;  %s2923_s3 = inlined_call_operand.hbm [shape: f32[3,1,32], index: 3, kind: input, shape index: {}]   ;;  %s2924_s4 = inlined_call_operand.hbm [shape: bf16[2048,32], index: 4, kind: output, shape index: {}]  }
   0x1   :  { %2935 = sst [smem:[#allocation25_spill]] %s2921_s1  ;;  %s2008_s17 = scalar_lea.hbm %s2920_s0, 16 }
   0x2   :  { %2936 = sst [smem:[#allocation26_spill]] %s2922_s2  ;;  %p2009_p0 = scmp.ne.s32.totalorder %s2920_s0, %s2008_s17 }
   0x3   :  { %p2012_p1 = scmp.lt.u32.totalorder %s2008_s17, %s2920_s0 }
   0x5   :  { %p2014_p2 = pnand %p2012_p1, %p2009_p0 }
   0x7   :  { %2017 = shalt.err (!%p2014_p2)  }
   0x8   :  { %s2234_s22 = smov [#allocation3]  }
   0x9   :  { %10 = dma.hbm_to_smem %s2920_s0, 16, %s2234_s22, [#allocation2] }
   0xa   :  { %2176 = dma.done.wait [#allocation2], 16 }
   0xb   :  { %2177 = vsyncadd [#allocation2], 4294967280 }
   0xc   :  { %12 = sfence }
   0xd   :  { %13 = vsyncpa [#allocation5], 0 }
   0xe   :  { %15 = vsyncpa [#allocation5 + $0x1], 0 }
   0xf   :  { %16 = vsyncpa [#allocation8], 0 }
  0x10   :  { %18 = vsyncpa [#allocation8 + $0x1], 0 }
  0x11   :  { %19 = vsyncpa [#allocation6], 0 }
  0x12   :  { %21 = vsyncpa [#allocation6 + $0x1], 0  ;;  %s2280_s25 = smov 0   ;;  %s2282_s26 = smov 0  }
  0x13   :  { %s2284_s27 = smov 0   ;;  %s2286_s28 = smov 0  }
  0x14   :  { %s2288_s29 = smov 0   ;;  %s2290_s0 = smov 0  }
  0x15   :  { %s2292_s30 = smov 0   ;;  %s2294_s5 = smov 0  }
  0x16   :  { %s2296_s6 = smov 0   ;;  %s2298_s7 = smov 0  }
  0x17 LB: > { %2937 = sst [smem:[#allocation20_spill]] %s2216_s0  ;;  %s2329_s8 = sadd.s32 4294967295, %s2232_s7   ;;  %s2232_s7 = sphi %s2298_s7, %s2982_s7   ;;  %s2228_s6 = sphi %s2296_s6, %s2974_s6   ;;  %s2224_s5 = sphi %s2294_s5, %s2981_s5   ;;  %s2220_s30 = sphi %s2292_s30, %s2980_s30   ;;  %s2216_s0 = sphi %s2290_s0, %s2972_s0   ;;  %s2212_s29 = sphi %s2288_s29, %s2979_s29   ;;  %s2208_s28 = sphi %s2286_s28, %s2978_s28   ;;  %s2204_s27 = sphi %s2284_s27, %s2977_s27   ;;  %s2200_s26 = sphi %s2282_s26, %s2976_s26   ;;  %s2196_s25 = sphi %s2280_s25, %s2975_s25  }
  0x18   : > { %2938 = sst [smem:[#allocation21_spill]] %s2228_s6  ;;  %s2332_s9 = sadd.s32 1, %s2232_s7  }
  0x19   : > { %p2927_p3 = scmp.eq.s32.totalorder %s2232_s7, 0  ;;  %p2926_p4 = scmp.eq.s32.totalorder %s2329_s8, 0 }
  0x1a   : > { %s57_s10 = sld [smem:[#allocation3 + %s2232_s7]]  ;;  %s62_s12 = sadd.s32 1, %s2216_s0 }
  0x1b   : > { %s58_s11 = sld [smem:[#allocation3 + %s2332_s9]]  ;;  %p69_p5 = scmp.ne.s32.totalorder %s2216_s0, %s2212_s29 }
  0x1c   : > { %p75_p6 = scmp.ne.s32.totalorder %s2212_s29, %s2208_s28  ;;  %p2925_p8 = scmp.lt.s32.totalorder %s2232_s7, 4 }
  0x1d   : > { %p2344_p7 = por %p69_p5, %p2927_p3  ;;  %s174_s15 = sand.u32 1, %s2232_s7  }
  0x1e   : > { %p2351_p9 = por %p75_p6, %p2926_p4  ;;  %s176_s17 = sand.u32 1, %s2216_s0  }
  0x1f   : > { %s1419_s18 = sshll.u32 %s176_s17, 3  ;;  %p2361_p11 = pnand %p2925_p8, %p2344_p7 }
  0x20   : > { %s2940_s14 = scalar_select %p2351_p9, 1, 0 }
  0x21   : > { %s59_s16 = ssub.s32 %s57_s10, %s58_s11  ;;  %s178_s23 = scalar_lea.vmem [#allocation7], %s1419_s18 }
  0x22   : > { %p60_p10 = scmp.eq.s32.totalorder %s59_s16, 0  ;;  %s186_s24 = sshll.u32 %s178_s23, 4  ;;  %s2378_s24 = int_to_ptr.vmem [resolvable:$true] %s186_s24 }
  0x23   : > { %s1731_s21 = scalar_select %p2344_p7, [#allocation3], [#allocation11] }
  0x24   : > { %s2366_s20 = scalar_select %p60_p10, %s2216_s0, %s62_s12  }
  0x25   : > { %s1732_s22 = scalar_select %p2344_p7, %s2232_s7, 0 }
  0x26   : > { %2942 = sst [smem:[#allocation22_spill]] %s2366_s20  ;;  %s2984_s21 = smov (!%p2925_p8, %s1731_s21), [#allocation13] }
  0x27   : > { %s2986_s22 = smov (!%p2925_p8, %s1732_s22), 0  ;;  %p1423_p12 = scmp.ge.s32.totalorder %s2232_s7, 1 }
  0x28   : > { %s179_s28 = sld [smem:[%s2984_s21 + %s2986_s22]]  ;;  %p212_p13 = scmp.lt.s32.totalorder %s2232_s7, 5 }
  0x29   : > { %s1413_s11 = sadd.s32 4294967294, %s2232_s7   ;;  %s31_s12 = ssub.s32 %s2232_s7, %s2332_s9 }
  0x2a   : > { %p2381_p0 = pnand %p1423_p12, %p212_p13  ;;  %p2388_p1 = scmp.eq.s32.totalorder %s31_s12, 0 }
  0x2b   : > { %s2945_s2 = sld [smem:[#allocation26_spill]]  ;;  %s34_s21 = sadd.s32 1, %s2228_s6 }
  0x2c   : > { %s2943_s10 = scalar_select %p2381_p0, 1, 0 }
  0x2d   : > { %s2398_s22 = scalar_lea.sflag [#allocation8], %s174_s15  ;;  %p2020_p5 = pneg %p2361_p11 }
  0x2e   : > { %s1563_s13 = sshll.u32 %s179_s28, 7 }
  0x31   : > { %s2395_s23 = scalar_lea.hbm %s2945_s2, %s1563_s13  ;;  %s2023_s13 = scalar_lea.hbm %s2945_s2, 384 }
  0x32   : > { %s2018_s20 = scalar_lea.hbm %s2395_s23, 128  ;;  %p2024_p10 = scmp.lt.u32.totalorder %s2395_s23, %s2945_s2 }
  0x33   : > { %p2019_p2 = scmp.ne.s32.totalorder %s2395_s23, %s2018_s20  ;;  %p2025_p12 = scmp.lt.u32.totalorder %s2023_s13, %s2018_s20 }
  0x34   : > { %p2027_p8 = scmp.lt.u32.totalorder %s2018_s20, %s2395_s23 }
  0x35   : > { %p2021_p6 = pnand %p2020_p5, %p2019_p2  ;;  %p2026_p13 = por %p2025_p12, %p2024_p10 }
  0x37   : > { %p2022_p7 = pneg %p2021_p6  ;;  %p2028_p4 = por %p2027_p8, %p2026_p13 }
  0x39   : > { %p2029_p3 = pnand %p2028_p4, %p2022_p7 }
  0x3b   : > { %2032 = shalt.err (!%p2029_p3)
}
  0x3c   : > { %s2033_s15 = scalar_lea.vmem %s2378_s24, 128  ;;  %s2235_s28 = smov [#allocation7]  }
  0x3d   : > { %p2034_p2 = scmp.ne.s32.totalorder %s2378_s24, %s2033_s15  ;;  %s2038_s12 = sshll.u32 %s2235_s28, 4  ;;  %s2039_s12 = int_to_ptr.vmem [resolvable:$false] %s2038_s12 }
  0x3e   : > { %s2040_s17 = scalar_lea.vmem %s2039_s12, 256  ;;  %p2041_p0 = scmp.lt.s32.totalorder %s2378_s24, %s2039_s12 }
  0x3f   : > { %p2036_p6 = pnand %p2034_p2, %p2020_p5  ;;  %p2042_p10 = scmp.lt.s32.totalorder %s2040_s17, %s2033_s15 }
  0x41   : > { %p2037_p9 = pneg %p2036_p6  ;;  %p2043_p12 = por %p2042_p10, %p2041_p0 }
  0x43   : > { %p2044_p8 = pnand %p2043_p12, %p2037_p9 }
  0x45   : > { %2047 = shalt.err (!%p2044_p8)
}
  0x46   : > { %s2929_s20 = smov 64   ;;  %s2930_s13 = smov 4  }
  0x47   : > { %1750 = dma.hbm_to_vmem [thread:$0]  (!%p2361_p11), %s2395_s23, 128, %s2378_s24, %s2398_s22, %s2929_s20, %s2929_s20, %s2930_s13  }
  0x48   : > { %s2434_s18 = scalar_select %p2388_p1, %s2228_s6, %s34_s21  }
  0x49   : > { %p41_p3 = scmp.ne.s32.totalorder %s2228_s6, %s2224_s5  ;;  %p47_p4 = scmp.ne.s32.totalorder %s2224_s5, %s2220_s30 }
  0x4a   : > { %2946 = sst [smem:[#allocation23_spill]] %s2434_s18  ;;  %p127_p9 = scmp.eq.s32.totalorder %s2329_s8, 3 }
  0x4b   : > { %p133_p0 = scmp.eq.s32.totalorder %s1413_s11, 3  ;;  %p2947_p5 = scmp.eq.s32.totalorder %s2232_s7, 0 }
  0x4c   : > { %p2948_p13 = scmp.eq.s32.totalorder %s2329_s8, 0  ;;  %p2451_p6 = por %p127_p9, %p41_p3 }
  0x4d   : > { %p43_p7 = por %p2947_p5, %p41_p3  ;;  %p2455_p11 = por %p133_p0, %p47_p4 }
  0x4e   : > { %p2447_p2 = por %p2948_p13, %p47_p4  ;;  %s153_s16 = sand.u32 1, %s2228_s6  }
  0x4f   : > { %s2950_s19 = scalar_select %p2451_p6, 1, 0 }
  0x50   : > { %s2951_s24 = scalar_select %p2455_p11, 1, 0 }
  0x51   : > { %s1562_s23 = sshll.u32 %s2232_s7, 12  ;;  %s1416_s21 = sshll.u32 %s153_s16, 8 }
  0x52   : > { %s2952_s1 = sld [smem:[#allocation25_spill]]  ;;  %s157_s17 = scalar_lea.vmem [#allocation4], %s1416_s21 }
  0x53   : > { %s164_s20 = sshll.u32 %s157_s17, 4  ;;  %p2953_p1 = scmp.lt.s32.totalorder %s2232_s7, 4  ;;  %s2472_s20 = int_to_ptr.vmem [resolvable:$true] %s164_s20 }
  0x54   : > { %s2474_s2 = scalar_lea.sflag [#allocation5], %s153_s16 }
  0x55   : > { %p2468_p10 = pnand %p2953_p1, %p43_p7 }
  0x57   : > { %p2050_p8 = pneg %p2468_p10 }
  0x58   : > { %s2464_s12 = scalar_lea.hbm %s2952_s1, %s1562_s23  ;;  %s2053_s11 = scalar_lea.hbm %s2952_s1, 16384 }
  0x59   : > { %s2048_s28 = scalar_lea.hbm %s2464_s12, 4096  ;;  %p2054_p9 = scmp.lt.u32.totalorder %s2464_s12, %s2952_s1 }
  0x5a   : > { %p2049_p12 = scmp.ne.s32.totalorder %s2464_s12, %s2048_s28  ;;  %p2055_p0 = scmp.lt.u32.totalorder %s2053_s11, %s2048_s28 }
  0x5b   : > { %p2057_p7 = scmp.lt.u32.totalorder %s2048_s28, %s2464_s12 }
  0x5c   : > { %p2051_p3 = pnand %p2050_p8, %p2049_p12  ;;  %p2056_p5 = por %p2055_p0, %p2054_p9 }
  0x5e   : > { %p2052_p4 = pneg %p2051_p3  ;;  %p2058_p13 = por %p2057_p7, %p2056_p5 }
  0x60   : > { %p2059_p1 = pnand %p2058_p13, %p2052_p4 }
  0x62   : > { %2062 = shalt.err (!%p2059_p1)
}
  0x63   : > { %s2063_s16 = scalar_lea.vmem %s2472_s20, 4096  ;;  %s2238_s23 = smov [#allocation4]  }
  0x64   : > { %p2064_p12 = scmp.ne.s32.totalorder %s2472_s20, %s2063_s16  ;;  %s2068_s21 = sshll.u32 %s2238_s23, 4  ;;  %s2069_s21 = int_to_ptr.vmem [resolvable:$false] %s2068_s21 }
  0x65   : > { %s2070_s18 = scalar_lea.vmem %s2069_s21, 8192  ;;  %p2071_p6 = scmp.lt.s32.totalorder %s2472_s20, %s2069_s21 }
  0x66   : > { %p2066_p3 = pnand %p2064_p12, %p2050_p8  ;;  %p2072_p9 = scmp.lt.s32.totalorder %s2070_s18, %s2063_s16 }
  0x68   : > { %p2067_p11 = pneg %p2066_p3  ;;  %p2073_p0 = por %p2072_p9, %p2071_p6 }
  0x6a   : > { %p2074_p5 = pnand %p2073_p0, %p2067_p11 }
  0x6c   : > { %2077 = shalt.err (!%p2074_p5)
}
  0x6d   : > { %s2955_s28 = smov 4   ;;  %s2956_s11 = smov 64  }
  0x6e   : > { %1745 = dma.hbm_to_vmem [thread:$0]  (!%p2468_p10), %s2464_s12, 4096, %s2472_s20, %s2474_s2, %s2956_s11, %s2956_s11, %s2955_s28  }
  0x6f   : > { %s85_s13 = sld [smem:[#allocation3 + %s2232_s7]]  ;;  %p97_p6 = scmp.ne.s32.totalorder %s2204_s27, %s2200_s26 }
  0x70   : > { %s86_s17 = sld [smem:[#allocation3 + %s2332_s9]]  ;;  %p103_p11 = scmp.ne.s32.totalorder %s2200_s26, %s2196_s25 }
  0x71   : > { %p2957_p8 = scmp.eq.s32.totalorder %s2232_s7, 0  ;;  %s90_s16 = sadd.s32 1, %s2204_s27 }
  0x72   : > { %p2958_p7 = scmp.eq.s32.totalorder %s2329_s8, 0  ;;  %s198_s1 = sand.u32 1, %s2204_s27  }
  0x73   : > { %p99_p4 = por %p97_p6, %p2957_p8  ;;  %p2960_p12 = scmp.lt.s32.totalorder %s2232_s7, 4 }
  0x74   : > { %p2516_p13 = por %p103_p11, %p2958_p7  ;;  %s199_s28 = scalar_lea.vmem [#allocation9], %s198_s1 }
  0x75   : > { %s1734_s21 = scalar_select %p99_p4, [#allocation3], [#allocation12] }
  0x76   : > { %s2959_s23 = scalar_select %p2516_p13, 1, 0 }
  0x77   : > { %s87_s18 = ssub.s32 %s85_s13, %s86_s17  ;;  %p2523_p3 = pnand %p2960_p12, %p99_p4 }
  0x78   : > { %p88_p1 = scmp.eq.s32.totalorder %s87_s18, 0  ;;  %p2963_p10 = pmov %p2960_p12 }
  0x79   : > { %s1735_s25 = scalar_select %p99_p4, %s2232_s7, 0 }
  0x7a   : > { %s2529_s20 = scalar_select %p88_p1, %s2204_s27, %s90_s16  }
  0x7b   : > { %s2988_s21 = smov (!%p2963_p10, %s1734_s21), [#allocation14]  ;;  %p2964_p9 = pmov %p2963_p10 }
  0x7c   : > { %2962 = sst [smem:[#allocation24_spill]] %s2529_s20  ;;  %s207_s11 = sshll.u32 %s199_s28, 4  ;;  %s2535_s11 = int_to_ptr.vmem [resolvable:$true] %s207_s11 }
  0x7d   : > { %s2990_s25 = smov (!%p2964_p9, %s1735_s25), 0  ;;  %p2080_p5 = pneg %p2523_p3 }
  0x7e   : > { %s200_s12 = sld [smem:[%s2988_s21 + %s2990_s25]]  ;;  %s2083_s1 = scalar_lea.hbm %s2923_s3, 48 }
  0x84   : > { %s1422_s13 = sshll.u32 %s200_s12, 4 }
  0x85   : > { %s205_s6 = scalar_lea.hbm %s2923_s3, %s1422_s13 }
  0x86   : > { %s2078_s0 = scalar_lea.hbm %s205_s6, 16  ;;  %p2084_p8 = scmp.lt.u32.totalorder %s205_s6, %s2923_s3 }
  0x87   : > { %p2079_p0 = scmp.ne.s32.totalorder %s205_s6, %s2078_s0  ;;  %p2085_p4 = scmp.lt.u32.totalorder %s2083_s1, %s2078_s0 }
  0x88   : > { %p2087_p1 = scmp.lt.u32.totalorder %s2078_s0, %s205_s6 }
  0x89   : > { %p2081_p6 = pnand %p2080_p5, %p2079_p0  ;;  %p2086_p7 = por %p2085_p4, %p2084_p8 }
  0x8b   : > { %p2082_p11 = pneg %p2081_p6  ;;  %p2088_p12 = por %p2087_p1, %p2086_p7 }
  0x8d   : > { %p2089_p10 = pnand %p2088_p12, %p2082_p11 }
  0x8f   : > { %2092 = shalt.err (!%p2089_p10)
}
  0x90   : > { %s2093_s12 = scalar_lea.vmem %s2535_s11, 16  ;;  %s2239_s20 = smov [#allocation9]  }
  0x91   : > { %p2094_p9 = scmp.ne.s32.totalorder %s2535_s11, %s2093_s12  ;;  %s2098_s28 = sshll.u32 %s2239_s20, 4  ;;  %s2099_s28 = int_to_ptr.vmem [resolvable:$false] %s2098_s28 }
  0x92   : > { %s2100_s13 = scalar_lea.vmem %s2099_s28, 32  ;;  %p2101_p13 = scmp.lt.s32.totalorder %s2535_s11, %s2099_s28 }
  0x93   : > { %p2096_p0 = pnand %p2094_p9, %p2080_p5  ;;  %p2102_p8 = scmp.lt.s32.totalorder %s2100_s13, %s2093_s12 }
  0x95   : > { %p2097_p6 = pneg %p2096_p0  ;;  %p2103_p4 = por %p2102_p8, %p2101_p13 }
  0x97   : > { %p2104_p7 = pnand %p2103_p4, %p2097_p6 }
  0x99   : > { %2107 = shalt.err (!%p2104_p7)
}
  0x9a   : > { %1755 = dma.hbm_to_vmem [thread:$0]  (!%p2523_p3), %s205_s6, 16, %s2535_s11, %s2398_s22  }
  0x9b   : > { %p2965_p11 = scmp.ne.s32.totalorder %s2943_s10, 0 }
  0x9c   : > { %s2564_s0 = sand.u32 (!%p2965_p11), 1, %s2224_s5  }
  0x9d   : > { %216 = sbr.rel (%p2965_p11) target bundleno = 486 (0x1e6), region = 32  ;;  %s1424_s17 = sshll.u32 (!%p2965_p11), %s2564_s0, 8 }
  0x9e   : > { %s219_s18 = scalar_lea.sflag (!%p2965_p11), [#allocation5], %s2564_s0  ;;  %s2570_s16 = scalar_lea.vmem (!%p2965_p11), [#allocation4], %s1424_s17 }
  0xa4   : > { %2179 = dma.done.wait (%p2447_p2), %s219_s18, 4096  }
  0xa5   : > { %2181 = vsyncadd (%p2447_p2), %s219_s18, 4294963200  ;;  %s227_s6 = sand.u32 1, %s2329_s8   ;;  %s229_s10 = sand.u32 1, %s2212_s29  }
  0xa6   : > { %s1425_s22 = sshll.u32 %s229_s10, 3  ;;  %s228_s2 = scalar_lea.sflag [#allocation8], %s227_s6 }
  0xa7   : > { %s231_s11 = scalar_lea.vmem [#allocation7], %s1425_s22  ;;  %p2966_p13 = scmp.ne.s32.totalorder %s2940_s14, 0 }
  0xa9   : > { %2183 = dma.done.wait (%p2966_p13), %s228_s2, 128  }
  0xaa   : > { %2185 = vsyncadd (%p2966_p13), %s228_s2, 4294967168  ;;  %s238_s1 = sand.u32 1, %s2200_s26   ;;  %p2967_p3 = scmp.ne.s32.totalorder %s2959_s23, 0 }
  0xab   : > { %s2583_s21 = scalar_lea.vmem [#allocation9], %s238_s1 }
  0xac   : > { %2187 = dma.done.wait (%p2967_p3), %s228_s2, 16  }
  0xad   : > { %2189 = vsyncadd (%p2967_p3), %s228_s2, 4294967280  ;;  %v1847_v0 = vld [vmem:[%s231_s11] sm:$0xff]   ;;  %vm515_vm0 = vcmask 130048   ;;  %v1852_v5 = vld [vmem:[%s2570_s16 + $0x10] sm:$0xff]   ;;  %vm1221_vm1 = vcmask 257024   ;;  %s2674_s14 = scalar_lea.vmem [#allocation10], %s1424_s17 }
  0xae   : > { %v1848_v1 = vld [vmem:[%s2570_s16] sm:$0xff]   ;;  %1662 = vmatprep.subr.bf16.mxu0 %v1847_v0  ;;  %1728 = vmatprep.subr.bf16.mxu1 %v1847_v0  ;;  %v1850_v3 = vld [vmem:[%s2570_s16 + $0x8] sm:$0xff]   ;;  %v1853_v6 = vld [vmem:[%s2570_s16 + $0x90] sm:$0xff]   ;;  %s1628_s15 = sshll.u32 %s2329_s8, 12  ;;  %s1300_s23 = sshll.u32 %s2674_s14, 4  ;;  %s2853_s23 = int_to_ptr.vmem [resolvable:$true] %s1300_s23 }
  0xaf   : > { %v1849_v2 = vld [vmem:[%s2570_s16 + $0x80] sm:$0xff]   ;;  %1663 = vmatpush3.bf16.msra.mxu0 %v1847_v0  ;;  %1729 = vmatpush3.bf16.msra.mxu1 %v1847_v0  ;;  %v1851_v4 = vld [vmem:[%s2570_s16 + $0x88] sm:$0xff]   ;;  %v1854_v7 = vld [vmem:[%s2570_s16 + $0x18] sm:$0xff]   ;;  %s2851_s8 = scalar_lea.hbm %s2924_s4, %s1628_s15  ;;  %s1287_s20 = scalar_lea.sflag [#allocation6], %s2564_s0 }
  0xb0   : > { %1664 = vmatprep.mubr.msk.bf16.mxu0 %vm515_vm0, %v1848_v1  ;;  %1696 = vmatprep.mubr.msk.bf16.mxu1 %vm515_vm0, %v1849_v2  ;;  %v1855_v8 = vld [vmem:[%s2570_s16 + $0x98] sm:$0xff]   ;;  %v1856_v9 = vld [vmem:[%s2570_s16 + $0x20] sm:$0xff]   ;;  %v1858_v11 = vld [vmem:[%s2570_s16 + $0x28] sm:$0xff]   ;;  %s2108_s28 = scalar_lea.vmem %s2853_s23, 4096  ;;  %p2968_p5 = scmp.ne.s32.totalorder %s2950_s19, 0 }
  0xb1   : > { %v1857_v10 = vld [vmem:[%s2570_s16 + $0xa0] sm:$0xff]   ;;  %v1859_v12 = vld [vmem:[%s2570_s16 + $0xa8] sm:$0xff]   ;;  %v1860_v13 = vld [vmem:[%s2570_s16 + $0x30] sm:$0xff]   ;;  %p2109_p2 = scmp.ne.s32.totalorder %s2853_s23, %s2108_s28  ;;  %s2240_s13 = smov [#allocation10]  }
  0xb2   : > { %1665 = vmatmul.mubr.msk.bf16.vlgmr.msra.gmra.mrb[0].mxu0 %vm515_vm0, %v1850_v3  ;;  %1697 = vmatmul.mubr.msk.bf16.vlgmr.msra.gmra.mrb[0].mxu1 %vm515_vm0, %v1851_v4  ;;  %v1861_v14 = vld [vmem:[%s2570_s16 + $0xb0] sm:$0xff]   ;;  %v1862_v15 = vld [vmem:[%s2570_s16 + $0x38] sm:$0xff]   ;;  %v1864_v17 = vld [vmem:[%s2570_s16 + $0x40] sm:$0xff]   ;;  %s2112_s17 = sshll.u32 %s2240_s13, 4  ;;  %s2113_s17 = int_to_ptr.vmem [resolvable:$false] %s2112_s17 }
  0xb3   : > { %1668 = vmatprep.mubr.msk.bf16.mxu0 %vm515_vm0, %v1852_v5  ;;  %1700 = vmatprep.mubr.msk.bf16.mxu1 %vm515_vm0, %v1853_v6  ;;  %v1863_v16 = vld [vmem:[%s2570_s16 + $0xb8] sm:$0xff]   ;;  %v1865_v18 = vld [vmem:[%s2570_s16 + $0xc0] sm:$0xff]   ;;  %v1866_v19 = vld [vmem:[%s2570_s16 + $0x48] sm:$0xff]   ;;  %p2110_p1 = pnand %p2109_p2, %p2968_p5  ;;  %s2114_s18 = scalar_lea.vmem %s2113_s17, 8192 }
  0xb4   : > { %v1867_v20 = vld [vmem:[%s2570_s16 + $0xc8] sm:$0xff]   ;;  %v1868_v21 = vld [vmem:[%s2570_s16 + $0x50] sm:$0xff]   ;;  %v1870_v23 = vld [vmem:[%s2570_s16 + $0x58] sm:$0xff]   ;;  %p2115_p10 = scmp.lt.s32.totalorder %s2853_s23, %s2113_s17  ;;  %p2116_p9 = scmp.lt.s32.totalorder %s2114_s18, %s2108_s28 }
  0xb5   : > { %v1869_v22 = vld [vmem:[%s2570_s16 + $0xd0] sm:$0xff]   ;;  %v1871_v24 = vld [vmem:[%s2570_s16 + $0xd8] sm:$0xff]   ;;  %v1872_v25 = vld [vmem:[%s2570_s16 + $0x60] sm:$0xff]   ;;  %p2111_p12 = pneg %p2110_p1 }
  0xb6   : > { %v1873_v26 = vld [vmem:[%s2570_s16 + $0xe0] sm:$0xff]   ;;  %v1874_v27 = vld [vmem:[%s2570_s16 + $0x68] sm:$0xff]   ;;  %v1876_v29 = vld [vmem:[%s2570_s16 + $0x70] sm:$0xff]   ;;  %p2117_p0 = por %p2116_p9, %p2115_p10 }
  0xb7   : > { %v1875_v28 = vld [vmem:[%s2570_s16 + $0xe8] sm:$0xff]   ;;  %v1877_v30 = vld [vmem:[%s2570_s16 + $0xf0] sm:$0xff]   ;;  %v1878_v31 = vld [vmem:[%s2570_s16 + $0x78] sm:$0xff]  }
  0xb8   : > { %v1879_v32 = vld [vmem:[%s2570_s16 + $0xf8] sm:$0xff]   ;;  %v2654_v33 = vld [vmem:[%s2583_s21] ss:$0 sm:$0xff]  ;;  %p2118_p6 = pnand %p2117_p0, %p2111_p12 }
  0xba   : > { %1669 = vmatmul.mubr.msk.bf16.gmra.mrb[4].mxu0 %vm515_vm0, %v1854_v7  ;;  %1701 = vmatmul.mubr.msk.bf16.gmra.mrb[4].mxu1 %vm515_vm0, %v1855_v8 }
  0xbb   : > { %1672 = vmatprep.mubr.msk.bf16.mxu0 %vm515_vm0, %v1856_v9  ;;  %1704 = vmatprep.mubr.msk.bf16.mxu1 %vm515_vm0, %v1857_v10 }
  0xc2   : > { %1673 = vmatmul.mubr.msk.bf16.gmra.mrb[8].mxu0 %vm515_vm0, %v1858_v11  ;;  %1705 = vmatmul.mubr.msk.bf16.gmra.mrb[8].mxu1 %vm515_vm0, %v1859_v12 }
  0xc3   : > { %1676 = vmatprep.mubr.msk.bf16.mxu0 %vm515_vm0, %v1860_v13  ;;  %1708 = vmatprep.mubr.msk.bf16.mxu1 %vm515_vm0, %v1861_v14 }
  0xca   : > { %1677 = vmatmul.mubr.msk.bf16.gmra.mrb[12].mxu0 %vm515_vm0, %v1862_v15  ;;  %1709 = vmatmul.mubr.msk.bf16.gmra.mrb[12].mxu1 %vm515_vm0, %v1863_v16 }
  0xcb   : > { %1680 = vmatprep.mubr.msk.bf16.mxu0 %vm515_vm0, %v1864_v17  ;;  %1712 = vmatprep.mubr.msk.bf16.mxu1 %vm515_vm0, %v1865_v18 }
  0xd2   : > { %1681 = vmatmul.mubr.msk.bf16.gmra.mrb[16].mxu0 %vm515_vm0, %v1866_v19  ;;  %1713 = vmatmul.mubr.msk.bf16.gmra.mrb[16].mxu1 %vm515_vm0, %v1867_v20 }
  0xd3   : > { %1684 = vmatprep.mubr.msk.bf16.mxu0 %vm515_vm0, %v1868_v21  ;;  %1716 = vmatprep.mubr.msk.bf16.mxu1 %vm515_vm0, %v1869_v22 }
  0xda   : > { %1685 = vmatmul.mubr.msk.bf16.gmra.mrb[20].mxu0 %vm515_vm0, %v1870_v23  ;;  %1717 = vmatmul.mubr.msk.bf16.gmra.mrb[20].mxu1 %vm515_vm0, %v1871_v24 }
  0xdb   : > { %1688 = vmatprep.mubr.msk.bf16.mxu0 %vm515_vm0, %v1872_v25  ;;  %1720 = vmatprep.mubr.msk.bf16.mxu1 %vm515_vm0, %v1873_v26 }
  0xe2   : > { %1689 = vmatmul.mubr.msk.bf16.gmra.mrb[24].mxu0 %vm515_vm0, %v1874_v27  ;;  %1721 = vmatmul.mubr.msk.bf16.gmra.mrb[24].mxu1 %vm515_vm0, %v1875_v28 }
  0xe3   : > { %1692 = vmatprep.mubr.msk.bf16.mxu0 %vm515_vm0, %v1876_v29  ;;  %1724 = vmatprep.mubr.msk.bf16.mxu1 %vm515_vm0, %v1877_v30 }
  0xea   : > { %1693 = vmatmul.mubr.msk.bf16.gmra.mrb[28].mxu0 %vm515_vm0, %v1878_v31  ;;  %1725 = vmatmul.mubr.msk.bf16.gmra.mrb[28].mxu1 %vm515_vm0, %v1879_v32 }
 0x185   : > { %v1666_v34 = vpop.f32.mrb[0].mxu0  ;;  %v1698_v35 = vpop.f32.mrb[0].mxu1 }
 0x186   : > { %v655_v36 = vadd.f32 %v1666_v34, %v2654_v33  ;;  %v783_v37 = vadd.f32 %v1698_v35, %v2654_v33  ;;  %v646_v38 = vpop.f32.mrb[1].mxu0  ;;  %v774_v39 = vpop.f32.mrb[1].mxu1 }
 0x187   : > { %v647_v40 = vadd.f32 %v2654_v33, %v646_v38  ;;  %v775_v41 = vadd.f32 %v2654_v33, %v774_v39  ;;  %v1667_v42 = vpop.f32.mrb[2].mxu0  ;;  %v1699_v43 = vpop.f32.mrb[2].mxu1 }
 0x188   : > { %1880 = vtanh.f32 %v655_v36  ;;  %v658_v44 = vadd.f32 %v1667_v42, %v2654_v33  ;;  %v649_v45 = vpop.f32.mrb[3].mxu0  ;;  %v777_v46 = vpop.f32.mrb[3].mxu1  ;;  %v786_v47 = vadd.f32 %v1699_v43, %v2654_v33 }
 0x189   : > { %1882 = vtanh.f32 %v783_v37  ;;  %v650_v48 = vadd.f32 %v2654_v33, %v649_v45  ;;  %v778_v49 = vadd.f32 %v2654_v33, %v777_v46 }
 0x18a   : > { %1884 = vtanh.f32 %v647_v40 }
 0x18b   : > { %1886 = vtanh.f32 %v775_v41 }
 0x18c   : > { %1888 = vtanh.f32 %v658_v44 }
 0x18d   : > { %1890 = vtanh.f32 %v786_v47  ;;  %v1670_v50 = vpop.f32.mrb[4].mxu0  ;;  %v1702_v51 = vpop.f32.mrb[4].mxu1 }
 0x18e   : > { %1892 = vtanh.f32 %v650_v48  ;;  %v671_v52 = vadd.f32 %v1670_v50, %v2654_v33  ;;  %v799_v53 = vadd.f32 %v1702_v51, %v2654_v33  ;;  %v662_v54 = vpop.f32.mrb[5].mxu0  ;;  %v790_v55 = vpop.f32.mrb[5].mxu1 }
 0x18f   : > { %1894 = vtanh.f32 %v778_v49  ;;  %v663_v56 = vadd.f32 %v2654_v33, %v662_v54  ;;  %v791_v57 = vadd.f32 %v2654_v33, %v790_v55  ;;  %v1671_v58 = vpop.f32.mrb[6].mxu0  ;;  %v1703_v59 = vpop.f32.mrb[6].mxu1 }
 0x190   : > { %1896 = vtanh.f32 %v671_v52  ;;  %v674_v60 = vadd.f32 %v1671_v58, %v2654_v33  ;;  %v665_v61 = vpop.f32.mrb[7].mxu0  ;;  %v793_v62 = vpop.f32.mrb[7].mxu1  ;;  %v802_v63 = vadd.f32 %v1703_v59, %v2654_v33 }
 0x191   : > { %1898 = vtanh.f32 %v799_v53  ;;  %v666_v1 = vadd.f32 %v2654_v33, %v665_v61  ;;  %v794_v4 = vadd.f32 %v2654_v33, %v793_v62 }
 0x192   : > { %v1881_v0 = vpop.eup %1880  ;;  %1900 = vtanh.f32 %v663_v56 }
 0x193   : > { %v1883_v2 = vpop.eup %1882  ;;  %v1566_v3 = vpack.c.bf16 %v1881_v0, %v1881_v0  ;;  %1902 = vtanh.f32 %v791_v57 }
 0x194   : > { %v1885_v5 = vpop.eup %1884  ;;  %v1598_v6 = vpack.c.bf16 %v1883_v2, %v1883_v2  ;;  %1904 = vtanh.f32 %v674_v60 }
 0x195   : > { %v1887_v7 = vpop.eup %1886  ;;  %1224 = vst.msk [vmem:[%s2674_s14 + $0x8] sm:$0xf] %vm1221_vm1, %v1566_v3  ;;  %v1564_v8 = vpack.c.bf16 %v1885_v5, %v1885_v5  ;;  %1906 = vtanh.f32 %v802_v63  ;;  %v1674_v9 = vpop.f32.mrb[8].mxu0 }
 0x196   : > { %v1706_v10 = vpop.f32.mrb[8].mxu1  ;;  %v1889_v11 = vpop.eup %1888  ;;  %1256 = vst.msk [vmem:[%s2674_s14 + $0x88] sm:$0xf] %vm1221_vm1, %v1598_v6  ;;  %v1596_v12 = vpack.c.bf16 %v1887_v7, %v1887_v7  ;;  %1908 = vtanh.f32 %v666_v1  ;;  %v687_v13 = vadd.f32 %v1674_v9, %v2654_v33 }
 0x197   : > { %v815_v14 = vadd.f32 %v1706_v10, %v2654_v33  ;;  %v678_v15 = vpop.f32.mrb[9].mxu0  ;;  %v806_v16 = vpop.f32.mrb[9].mxu1  ;;  %1222 = vst.msk [vmem:[%s2674_s14] sm:$0xf] %vm1221_vm1, %v1564_v8  ;;  %v1567_v18 = vpack.c.bf16 %v1889_v11, %v1889_v11  ;;  %1910 = vtanh.f32 %v794_v4 }
 0x198   : > { %v1891_v17 = vpop.eup %1890  ;;  %v679_v19 = vadd.f32 %v2654_v33, %v678_v15  ;;  %v807_v20 = vadd.f32 %v2654_v33, %v806_v16  ;;  %v1675_v21 = vpop.f32.mrb[10].mxu0  ;;  %1254 = vst.msk [vmem:[%s2674_s14 + $0x80] sm:$0xf] %vm1221_vm1, %v1596_v12  ;;  %1912 = vtanh.f32 %v687_v13 }
 0x199   : > { %v1707_v22 = vpop.f32.mrb[10].mxu1  ;;  %v1893_v23 = vpop.eup %1892  ;;  %v1599_v24 = vpack.c.bf16 %v1891_v17, %v1891_v17  ;;  %v690_v25 = vadd.f32 %v1675_v21, %v2654_v33  ;;  %1225 = vst.msk [vmem:[%s2674_s14 + $0xc] sm:$0xf] %vm1221_vm1, %v1567_v18  ;;  %1914 = vtanh.f32 %v815_v14 }
 0x19a   : > { %v681_v26 = vpop.f32.mrb[11].mxu0  ;;  %v809_v27 = vpop.f32.mrb[11].mxu1  ;;  %v1565_v29 = vpack.c.bf16 %v1893_v23, %v1893_v23  ;;  %v818_v30 = vadd.f32 %v1707_v22, %v2654_v33  ;;  %1916 = vtanh.f32 %v679_v19 }
 0x19b   : > { %v1895_v28 = vpop.eup %1894  ;;  %1257 = vst.msk [vmem:[%s2674_s14 + $0x8c] sm:$0xf] %vm1221_vm1, %v1599_v24  ;;  %v682_v34 = vadd.f32 %v2654_v33, %v681_v26  ;;  %1918 = vtanh.f32 %v807_v20  ;;  %v810_v37 = vadd.f32 %v2654_v33, %v809_v27 }
 0x19c   : > { %v1897_v31 = vpop.eup %1896  ;;  %v1597_v32 = vpack.c.bf16 %v1895_v28, %v1895_v28  ;;  %1223 = vst.msk [vmem:[%s2674_s14 + $0x4] sm:$0xf] %vm1221_vm1, %v1565_v29  ;;  %1920 = vtanh.f32 %v690_v25 }
 0x19d   : > { %v1899_v35 = vpop.eup %1898  ;;  %v1570_v36 = vpack.c.bf16 %v1897_v31, %v1897_v31  ;;  %1922 = vtanh.f32 %v818_v30  ;;  %v1678_v42 = vpop.f32.mrb[12].mxu0 }
 0x19e   : > { %v1901_v38 = vpop.eup %1900  ;;  %1255 = vst.msk [vmem:[%s2674_s14 + $0x84] sm:$0xf] %vm1221_vm1, %v1597_v32  ;;  %v1602_v39 = vpack.c.bf16 %v1899_v35, %v1899_v35  ;;  %v1710_v43 = vpop.f32.mrb[12].mxu1  ;;  %1924 = vtanh.f32 %v682_v34  ;;  %v703_v46 = vadd.f32 %v1678_v42, %v2654_v33 }
 0x19f   : > { %v1903_v40 = vpop.eup %1902  ;;  %1228 = vst.msk [vmem:[%s2674_s14 + $0x18] sm:$0xf] %vm1221_vm1, %v1570_v36  ;;  %v1568_v41 = vpack.c.bf16 %v1901_v38, %v1901_v38  ;;  %v831_v47 = vadd.f32 %v1710_v43, %v2654_v33  ;;  %v694_v48 = vpop.f32.mrb[13].mxu0  ;;  %1926 = vtanh.f32 %v810_v37 }
 0x1a0   : > { %v1905_v44 = vpop.eup %1904  ;;  %1260 = vst.msk [vmem:[%s2674_s14 + $0x98] sm:$0xf] %vm1221_vm1, %v1602_v39  ;;  %v1600_v45 = vpack.c.bf16 %v1903_v40, %v1903_v40  ;;  %v822_v49 = vpop.f32.mrb[13].mxu1  ;;  %v695_v52 = vadd.f32 %v2654_v33, %v694_v48  ;;  %1928 = vtanh.f32 %v703_v46 }
 0x1a1   : > { %v1907_v50 = vpop.eup %1906  ;;  %1226 = vst.msk [vmem:[%s2674_s14 + $0x10] sm:$0xf] %vm1221_vm1, %v1568_v41  ;;  %v1571_v51 = vpack.c.bf16 %v1905_v44, %v1905_v44  ;;  %v823_v53 = vadd.f32 %v2654_v33, %v822_v49  ;;  %v1679_v54 = vpop.f32.mrb[14].mxu0  ;;  %1930 = vtanh.f32 %v831_v47 }
 0x1a2   : > { %v1711_v55 = vpop.f32.mrb[14].mxu1  ;;  %v1909_v56 = vpop.eup %1908  ;;  %1258 = vst.msk [vmem:[%s2674_s14 + $0x90] sm:$0xf] %vm1221_vm1, %v1600_v45  ;;  %v1603_v57 = vpack.c.bf16 %v1907_v50, %v1907_v50  ;;  %v706_v58 = vadd.f32 %v1679_v54, %v2654_v33  ;;  %1932 = vtanh.f32 %v695_v52 }
 0x1a3   : > { %v697_v59 = vpop.f32.mrb[15].mxu0  ;;  %v825_v60 = vpop.f32.mrb[15].mxu1  ;;  %1229 = vst.msk [vmem:[%s2674_s14 + $0x1c] sm:$0xf] %vm1221_vm1, %v1571_v51  ;;  %v1569_v62 = vpack.c.bf16 %v1909_v56, %v1909_v56  ;;  %v834_v63 = vadd.f32 %v1711_v55, %v2654_v33  ;;  %1934 = vtanh.f32 %v823_v53 }
 0x1a4   : > { %v1911_v61 = vpop.eup %1910  ;;  %1261 = vst.msk [vmem:[%s2674_s14 + $0x9c] sm:$0xf] %vm1221_vm1, %v1603_v57  ;;  %v698_v2 = vadd.f32 %v2654_v33, %v697_v59  ;;  %v826_v5 = vadd.f32 %v2654_v33, %v825_v60  ;;  %1936 = vtanh.f32 %v706_v58 }
 0x1a5   : > { %v1913_v0 = vpop.eup %1912  ;;  %v1601_v1 = vpack.c.bf16 %v1911_v61, %v1911_v61  ;;  %1227 = vst.msk [vmem:[%s2674_s14 + $0x14] sm:$0xf] %vm1221_vm1, %v1569_v62  ;;  %1938 = vtanh.f32 %v834_v63  ;;  %v1682_v10 = vpop.f32.mrb[16].mxu0 }
 0x1a6   : > { %v1915_v3 = vpop.eup %1914  ;;  %v1574_v4 = vpack.c.bf16 %v1913_v0, %v1913_v0  ;;  %v1714_v11 = vpop.f32.mrb[16].mxu1  ;;  %1940 = vtanh.f32 %v698_v2  ;;  %v719_v14 = vadd.f32 %v1682_v10, %v2654_v33 }
 0x1a7   : > { %v1917_v6 = vpop.eup %1916  ;;  %1259 = vst.msk [vmem:[%s2674_s14 + $0x94] sm:$0xf] %vm1221_vm1, %v1601_v1  ;;  %v1606_v7 = vpack.c.bf16 %v1915_v3, %v1915_v3  ;;  %v847_v15 = vadd.f32 %v1714_v11, %v2654_v33  ;;  %v710_v16 = vpop.f32.mrb[17].mxu0  ;;  %1942 = vtanh.f32 %v826_v5 }
 0x1a8   : > { %v1919_v8 = vpop.eup %1918  ;;  %1232 = vst.msk [vmem:[%s2674_s14 + $0x28] sm:$0xf] %vm1221_vm1, %v1574_v4  ;;  %v1572_v9 = vpack.c.bf16 %v1917_v6, %v1917_v6  ;;  %v838_v17 = vpop.f32.mrb[17].mxu1  ;;  %v711_v20 = vadd.f32 %v2654_v33, %v710_v16  ;;  %1944 = vtanh.f32 %v719_v14 }
 0x1a9   : > { %v1921_v12 = vpop.eup %1920  ;;  %1264 = vst.msk [vmem:[%s2674_s14 + $0xa8] sm:$0xf] %vm1221_vm1, %v1606_v7  ;;  %v1604_v13 = vpack.c.bf16 %v1919_v8, %v1919_v8  ;;  %v839_v21 = vadd.f32 %v2654_v33, %v838_v17  ;;  %v1683_v22 = vpop.f32.mrb[18].mxu0  ;;  %1946 = vtanh.f32 %v847_v15 }
 0x1aa   : > { %v1923_v18 = vpop.eup %1922  ;;  %1230 = vst.msk [vmem:[%s2674_s14 + $0x20] sm:$0xf] %vm1221_vm1, %v1572_v9  ;;  %v1575_v19 = vpack.c.bf16 %v1921_v12, %v1921_v12  ;;  %v1715_v23 = vpop.f32.mrb[18].mxu1  ;;  %v722_v26 = vadd.f32 %v1683_v22, %v2654_v33  ;;  %1948 = vtanh.f32 %v711_v20 }
 0x1ab   : > { %v1925_v24 = vpop.eup %1924  ;;  %1262 = vst.msk [vmem:[%s2674_s14 + $0xa0] sm:$0xf] %vm1221_vm1, %v1604_v13  ;;  %v1607_v25 = vpack.c.bf16 %v1923_v18, %v1923_v18  ;;  %v713_v27 = vpop.f32.mrb[19].mxu0  ;;  %v850_v31 = vadd.f32 %v1715_v23, %v2654_v33  ;;  %1950 = vtanh.f32 %v839_v21 }
 0x1ac   : > { %v841_v28 = vpop.f32.mrb[19].mxu1  ;;  %v1927_v29 = vpop.eup %1926  ;;  %1233 = vst.msk [vmem:[%s2674_s14 + $0x2c] sm:$0xf] %vm1221_vm1, %v1575_v19  ;;  %v1573_v30 = vpack.c.bf16 %v1925_v24, %v1925_v24  ;;  %v714_v35 = vadd.f32 %v2654_v33, %v713_v27  ;;  %1952 = vtanh.f32 %v722_v26 }
 0x1ad   : > { %v1929_v32 = vpop.eup %1928  ;;  %1265 = vst.msk [vmem:[%s2674_s14 + $0xac] sm:$0xf] %vm1221_vm1, %v1607_v25  ;;  %v1605_v34 = vpack.c.bf16 %v1927_v29, %v1927_v29  ;;  %v842_v38 = vadd.f32 %v2654_v33, %v841_v28  ;;  %1954 = vtanh.f32 %v850_v31  ;;  %v1686_v43 = vpop.f32.mrb[20].mxu0 }
 0x1ae   : > { %v1931_v36 = vpop.eup %1930  ;;  %1231 = vst.msk [vmem:[%s2674_s14 + $0x24] sm:$0xf] %vm1221_vm1, %v1573_v30  ;;  %v1578_v37 = vpack.c.bf16 %v1929_v32, %v1929_v32  ;;  %v1718_v44 = vpop.f32.mrb[20].mxu1  ;;  %1956 = vtanh.f32 %v714_v35  ;;  %v735_v47 = vadd.f32 %v1686_v43, %v2654_v33 }
 0x1af   : > { %v1933_v39 = vpop.eup %1932  ;;  %1263 = vst.msk [vmem:[%s2674_s14 + $0xa4] sm:$0xf] %vm1221_vm1, %v1605_v34  ;;  %v1610_v40 = vpack.c.bf16 %v1931_v36, %v1931_v36  ;;  %v863_v48 = vadd.f32 %v1718_v44, %v2654_v33  ;;  %v726_v49 = vpop.f32.mrb[21].mxu0  ;;  %1958 = vtanh.f32 %v842_v38 }
 0x1b0   : > { %v1935_v41 = vpop.eup %1934  ;;  %1236 = vst.msk [vmem:[%s2674_s14 + $0x38] sm:$0xf] %vm1221_vm1, %v1578_v37  ;;  %v1576_v42 = vpack.c.bf16 %v1933_v39, %v1933_v39  ;;  %v854_v50 = vpop.f32.mrb[21].mxu1  ;;  %v727_v53 = vadd.f32 %v2654_v33, %v726_v49  ;;  %1960 = vtanh.f32 %v735_v47 }
 0x1b1   : > { %v1937_v45 = vpop.eup %1936  ;;  %1268 = vst.msk [vmem:[%s2674_s14 + $0xb8] sm:$0xf] %vm1221_vm1, %v1610_v40  ;;  %v1608_v46 = vpack.c.bf16 %v1935_v41, %v1935_v41  ;;  %v855_v54 = vadd.f32 %v2654_v33, %v854_v50  ;;  %v1687_v55 = vpop.f32.mrb[22].mxu0  ;;  %1962 = vtanh.f32 %v863_v48 }
 0x1b2   : > { %v1939_v51 = vpop.eup %1938  ;;  %1234 = vst.msk [vmem:[%s2674_s14 + $0x30] sm:$0xf] %vm1221_vm1, %v1576_v42  ;;  %v1579_v52 = vpack.c.bf16 %v1937_v45, %v1937_v45  ;;  %v1719_v56 = vpop.f32.mrb[22].mxu1  ;;  %v738_v59 = vadd.f32 %v1687_v55, %v2654_v33  ;;  %1964 = vtanh.f32 %v727_v53 }
 0x1b3   : > { %v1941_v57 = vpop.eup %1940  ;;  %1266 = vst.msk [vmem:[%s2674_s14 + $0xb0] sm:$0xf] %vm1221_vm1, %v1608_v46  ;;  %v1611_v58 = vpack.c.bf16 %v1939_v51, %v1939_v51  ;;  %v729_v60 = vpop.f32.mrb[23].mxu0  ;;  %v866_v0 = vadd.f32 %v1719_v56, %v2654_v33  ;;  %1966 = vtanh.f32 %v855_v54 }
 0x1b4   : > { %v857_v61 = vpop.f32.mrb[23].mxu1  ;;  %v1943_v62 = vpop.eup %1942  ;;  %1237 = vst.msk [vmem:[%s2674_s14 + $0x3c] sm:$0xf] %vm1221_vm1, %v1579_v52  ;;  %v1577_v63 = vpack.c.bf16 %v1941_v57, %v1941_v57  ;;  %v730_v3 = vadd.f32 %v2654_v33, %v729_v60  ;;  %1968 = vtanh.f32 %v738_v59 }
 0x1b5   : > { %v1945_v1 = vpop.eup %1944  ;;  %1269 = vst.msk [vmem:[%s2674_s14 + $0xbc] sm:$0xf] %vm1221_vm1, %v1611_v58  ;;  %v1609_v2 = vpack.c.bf16 %v1943_v62, %v1943_v62  ;;  %v858_v6 = vadd.f32 %v2654_v33, %v857_v61  ;;  %1970 = vtanh.f32 %v866_v0  ;;  %v1690_v11 = vpop.f32.mrb[24].mxu0 }
 0x1b6   : > { %v1947_v4 = vpop.eup %1946  ;;  %1235 = vst.msk [vmem:[%s2674_s14 + $0x34] sm:$0xf] %vm1221_vm1, %v1577_v63  ;;  %v1582_v5 = vpack.c.bf16 %v1945_v1, %v1945_v1  ;;  %v1722_v12 = vpop.f32.mrb[24].mxu1  ;;  %1972 = vtanh.f32 %v730_v3  ;;  %v751_v15 = vadd.f32 %v1690_v11, %v2654_v33 }
 0x1b7   : > { %v1949_v7 = vpop.eup %1948  ;;  %1267 = vst.msk [vmem:[%s2674_s14 + $0xb4] sm:$0xf] %vm1221_vm1, %v1609_v2  ;;  %v1614_v8 = vpack.c.bf16 %v1947_v4, %v1947_v4  ;;  %v879_v16 = vadd.f32 %v1722_v12, %v2654_v33  ;;  %v742_v17 = vpop.f32.mrb[25].mxu0  ;;  %1974 = vtanh.f32 %v858_v6 }
 0x1b8   : > { %v1951_v9 = vpop.eup %1950  ;;  %1240 = vst.msk [vmem:[%s2674_s14 + $0x48] sm:$0xf] %vm1221_vm1, %v1582_v5  ;;  %v1580_v10 = vpack.c.bf16 %v1949_v7, %v1949_v7  ;;  %v870_v18 = vpop.f32.mrb[25].mxu1  ;;  %v743_v21 = vadd.f32 %v2654_v33, %v742_v17  ;;  %1976 = vtanh.f32 %v751_v15 }
 0x1b9   : > { %v1953_v13 = vpop.eup %1952  ;;  %1272 = vst.msk [vmem:[%s2674_s14 + $0xc8] sm:$0xf] %vm1221_vm1, %v1614_v8  ;;  %v1612_v14 = vpack.c.bf16 %v1951_v9, %v1951_v9  ;;  %v871_v22 = vadd.f32 %v2654_v33, %v870_v18  ;;  %v1691_v23 = vpop.f32.mrb[26].mxu0  ;;  %1978 = vtanh.f32 %v879_v16 }
 0x1ba   : > { %v1955_v19 = vpop.eup %1954  ;;  %1238 = vst.msk [vmem:[%s2674_s14 + $0x40] sm:$0xf] %vm1221_vm1, %v1580_v10  ;;  %v1583_v20 = vpack.c.bf16 %v1953_v13, %v1953_v13  ;;  %v1723_v24 = vpop.f32.mrb[26].mxu1  ;;  %v754_v27 = vadd.f32 %v1691_v23, %v2654_v33  ;;  %1980 = vtanh.f32 %v743_v21 }
 0x1bb   : > { %v1957_v25 = vpop.eup %1956  ;;  %1270 = vst.msk [vmem:[%s2674_s14 + $0xc0] sm:$0xf] %vm1221_vm1, %v1612_v14  ;;  %v1615_v26 = vpack.c.bf16 %v1955_v19, %v1955_v19  ;;  %v745_v28 = vpop.f32.mrb[27].mxu0  ;;  %v882_v32 = vadd.f32 %v1723_v24, %v2654_v33  ;;  %1982 = vtanh.f32 %v871_v22 }
 0x1bc   : > { %v873_v29 = vpop.f32.mrb[27].mxu1  ;;  %v1959_v30 = vpop.eup %1958  ;;  %1241 = vst.msk [vmem:[%s2674_s14 + $0x4c] sm:$0xf] %vm1221_vm1, %v1583_v20  ;;  %v1581_v31 = vpack.c.bf16 %v1957_v25, %v1957_v25  ;;  %v746_v36 = vadd.f32 %v2654_v33, %v745_v28  ;;  %1984 = vtanh.f32 %v754_v27 }
 0x1bd   : > { %v1961_v34 = vpop.eup %1960  ;;  %1273 = vst.msk [vmem:[%s2674_s14 + $0xcc] sm:$0xf] %vm1221_vm1, %v1615_v26  ;;  %v1613_v35 = vpack.c.bf16 %v1959_v30, %v1959_v30  ;;  %v874_v39 = vadd.f32 %v2654_v33, %v873_v29  ;;  %1986 = vtanh.f32 %v882_v32  ;;  %v1694_v44 = vpop.f32.mrb[28].mxu0 }
 0x1be   : > { %v1963_v37 = vpop.eup %1962  ;;  %1239 = vst.msk [vmem:[%s2674_s14 + $0x44] sm:$0xf] %vm1221_vm1, %v1581_v31  ;;  %v1586_v38 = vpack.c.bf16 %v1961_v34, %v1961_v34  ;;  %v1726_v45 = vpop.f32.mrb[28].mxu1  ;;  %1988 = vtanh.f32 %v746_v36  ;;  %v767_v48 = vadd.f32 %v1694_v44, %v2654_v33 }
 0x1bf   : > { %v1965_v40 = vpop.eup %1964  ;;  %1271 = vst.msk [vmem:[%s2674_s14 + $0xc4] sm:$0xf] %vm1221_vm1, %v1613_v35  ;;  %v1618_v41 = vpack.c.bf16 %v1963_v37, %v1963_v37  ;;  %v895_v49 = vadd.f32 %v1726_v45, %v2654_v33  ;;  %v758_v50 = vpop.f32.mrb[29].mxu0  ;;  %1990 = vtanh.f32 %v874_v39 }
 0x1c0   : > { %v1967_v42 = vpop.eup %1966  ;;  %1244 = vst.msk [vmem:[%s2674_s14 + $0x58] sm:$0xf] %vm1221_vm1, %v1586_v38  ;;  %v1584_v43 = vpack.c.bf16 %v1965_v40, %v1965_v40  ;;  %v886_v51 = vpop.f32.mrb[29].mxu1  ;;  %v759_v54 = vadd.f32 %v2654_v33, %v758_v50  ;;  %1992 = vtanh.f32 %v767_v48 }
 0x1c1   : > { %v1969_v46 = vpop.eup %1968  ;;  %1276 = vst.msk [vmem:[%s2674_s14 + $0xd8] sm:$0xf] %vm1221_vm1, %v1618_v41  ;;  %v1616_v47 = vpack.c.bf16 %v1967_v42, %v1967_v42  ;;  %v887_v55 = vadd.f32 %v2654_v33, %v886_v51  ;;  %v1695_v56 = vpop.f32.mrb[30].mxu0  ;;  %1994 = vtanh.f32 %v895_v49 }
 0x1c2   : > { %v1971_v52 = vpop.eup %1970  ;;  %1242 = vst.msk [vmem:[%s2674_s14 + $0x50] sm:$0xf] %vm1221_vm1, %v1584_v43  ;;  %v1587_v53 = vpack.c.bf16 %v1969_v46, %v1969_v46  ;;  %v1727_v57 = vpop.f32.mrb[30].mxu1  ;;  %v770_v60 = vadd.f32 %v1695_v56, %v2654_v33  ;;  %1996 = vtanh.f32 %v759_v54 }
 0x1c3   : > { %v1973_v58 = vpop.eup %1972  ;;  %1274 = vst.msk [vmem:[%s2674_s14 + $0xd0] sm:$0xf] %vm1221_vm1, %v1616_v47  ;;  %v1619_v59 = vpack.c.bf16 %v1971_v52, %v1971_v52  ;;  %v761_v61 = vpop.f32.mrb[31].mxu0  ;;  %v898_v1 = vadd.f32 %v1727_v57, %v2654_v33  ;;  %1998 = vtanh.f32 %v887_v55 }
 0x1c4   : > { %v889_v62 = vpop.f32.mrb[31].mxu1  ;;  %v1975_v63 = vpop.eup %1974  ;;  %1245 = vst.msk [vmem:[%s2674_s14 + $0x5c] sm:$0xf] %vm1221_vm1, %v1587_v53  ;;  %v1585_v0 = vpack.c.bf16 %v1973_v58, %v1973_v58  ;;  %v762_v4 = vadd.f32 %v2654_v33, %v761_v61  ;;  %2000 = vtanh.f32 %v770_v60 }
 0x1c5   : > { %v1977_v2 = vpop.eup %1976  ;;  %1277 = vst.msk [vmem:[%s2674_s14 + $0xdc] sm:$0xf] %vm1221_vm1, %v1619_v59  ;;  %v1617_v3 = vpack.c.bf16 %v1975_v63, %v1975_v63  ;;  %v890_v7 = vadd.f32 %v2654_v33, %v889_v62  ;;  %2002 = vtanh.f32 %v898_v1 }
 0x1c6   : > { %v1979_v5 = vpop.eup %1978  ;;  %1243 = vst.msk [vmem:[%s2674_s14 + $0x54] sm:$0xf] %vm1221_vm1, %v1585_v0  ;;  %v1590_v6 = vpack.c.bf16 %v1977_v2, %v1977_v2  ;;  %2004 = vtanh.f32 %v762_v4 }
 0x1c7   : > { %v1981_v8 = vpop.eup %1980  ;;  %1275 = vst.msk [vmem:[%s2674_s14 + $0xd4] sm:$0xf] %vm1221_vm1, %v1617_v3  ;;  %v1622_v9 = vpack.c.bf16 %v1979_v5, %v1979_v5  ;;  %2006 = vtanh.f32 %v890_v7 }
 0x1c8   : > { %v1983_v10 = vpop.eup %1982  ;;  %1248 = vst.msk [vmem:[%s2674_s14 + $0x68] sm:$0xf] %vm1221_vm1, %v1590_v6  ;;  %v1588_v11 = vpack.c.bf16 %v1981_v8, %v1981_v8 }
 0x1c9   : > { %v1985_v12 = vpop.eup %1984  ;;  %1280 = vst.msk [vmem:[%s2674_s14 + $0xe8] sm:$0xf] %vm1221_vm1, %v1622_v9  ;;  %v1620_v13 = vpack.c.bf16 %v1983_v10, %v1983_v10 }
 0x1ca   : > { %v1987_v33 = vpop.eup %1986  ;;  %1246 = vst.msk [vmem:[%s2674_s14 + $0x60] sm:$0xf] %vm1221_vm1, %v1588_v11  ;;  %v1591_v14 = vpack.c.bf16 %v1985_v12, %v1985_v12 }
 0x1cb   : > { %v1989_v15 = vpop.eup %1988  ;;  %1278 = vst.msk [vmem:[%s2674_s14 + $0xe0] sm:$0xf] %vm1221_vm1, %v1620_v13  ;;  %v1623_v16 = vpack.c.bf16 %v1987_v33, %v1987_v33 }
 0x1cc   : > { %v1991_v17 = vpop.eup %1990  ;;  %1249 = vst.msk [vmem:[%s2674_s14 + $0x6c] sm:$0xf] %vm1221_vm1, %v1591_v14  ;;  %v1589_v18 = vpack.c.bf16 %v1989_v15, %v1989_v15 }
 0x1cd   : > { %v1993_v19 = vpop.eup %1992  ;;  %1281 = vst.msk [vmem:[%s2674_s14 + $0xec] sm:$0xf] %vm1221_vm1, %v1623_v16  ;;  %v1621_v20 = vpack.c.bf16 %v1991_v17, %v1991_v17 }
 0x1ce   : > { %v1995_v21 = vpop.eup %1994  ;;  %1247 = vst.msk [vmem:[%s2674_s14 + $0x64] sm:$0xf] %vm1221_vm1, %v1589_v18  ;;  %v1594_v22 = vpack.c.bf16 %v1993_v19, %v1993_v19 }
 0x1cf   : > { %v1997_v23 = vpop.eup %1996  ;;  %1279 = vst.msk [vmem:[%s2674_s14 + $0xe4] sm:$0xf] %vm1221_vm1, %v1621_v20  ;;  %v1626_v24 = vpack.c.bf16 %v1995_v21, %v1995_v21 }
 0x1d0   : > { %v1999_v25 = vpop.eup %1998  ;;  %1252 = vst.msk [vmem:[%s2674_s14 + $0x78] sm:$0xf] %vm1221_vm1, %v1594_v22  ;;  %v1592_v26 = vpack.c.bf16 %v1997_v23, %v1997_v23 }
 0x1d1   : > { %v2001_v27 = vpop.eup %2000  ;;  %1284 = vst.msk [vmem:[%s2674_s14 + $0xf8] sm:$0xf] %vm1221_vm1, %v1626_v24  ;;  %v1624_v28 = vpack.c.bf16 %v1999_v25, %v1999_v25 }
 0x1d2   : > { %v2003_v29 = vpop.eup %2002  ;;  %1250 = vst.msk [vmem:[%s2674_s14 + $0x70] sm:$0xf] %vm1221_vm1, %v1592_v26  ;;  %v1595_v30 = vpack.c.bf16 %v2001_v27, %v2001_v27 }
 0x1d3   : > { %v2005_v31 = vpop.eup %2004  ;;  %1282 = vst.msk [vmem:[%s2674_s14 + $0xf0] sm:$0xf] %vm1221_vm1, %v1624_v28  ;;  %v1627_v32 = vpack.c.bf16 %v2003_v29, %v2003_v29 }
 0x1d4   : > { %v2007_v34 = vpop.eup %2006  ;;  %1253 = vst.msk [vmem:[%s2674_s14 + $0x7c] sm:$0xf] %vm1221_vm1, %v1595_v30  ;;  %v1593_v35 = vpack.c.bf16 %v2005_v31, %v2005_v31 }
 0x1d5   : > { %1285 = vst.msk [vmem:[%s2674_s14 + $0xfc] sm:$0xf] %vm1221_vm1, %v1627_v32  ;;  %v1625_v36 = vpack.c.bf16 %v2007_v34, %v2007_v34 }
 0x1d6   : > { %1251 = vst.msk [vmem:[%s2674_s14 + $0x74] sm:$0xf] %vm1221_vm1, %v1593_v35 }
 0x1d7   : > { %1283 = vst.msk [vmem:[%s2674_s14 + $0xf4] sm:$0xf] %vm1221_vm1, %v1625_v36 }
 0x1d8   : > { %2121 = shalt.err (!%p2118_p6)
}
 0x1d9   : > { %s2122_s16 = scalar_lea.hbm %s2851_s8, 4096  ;;  %s2126_s22 = scalar_lea.hbm %s2924_s4, 16384 }
 0x1da   : > { %p2123_p8 = scmp.ne.s32.totalorder %s2851_s8, %s2122_s16  ;;  %p2127_p11 = scmp.lt.u32.totalorder %s2851_s8, %s2924_s4 }
 0x1db   : > { %p2128_p13 = scmp.lt.u32.totalorder %s2126_s22, %s2122_s16  ;;  %p2130_p2 = scmp.lt.u32.totalorder %s2122_s16, %s2851_s8 }
 0x1dc   : > { %p2124_p4 = pnand %p2123_p8, %p2968_p5 }
 0x1dd   : > { %p2129_p3 = por %p2128_p13, %p2127_p11 }
 0x1de   : > { %p2125_p7 = pneg %p2124_p4 }
 0x1df   : > { %p2131_p1 = por %p2130_p2, %p2129_p3 }
 0x1e1   : > { %p2132_p12 = pnand %p2131_p1, %p2125_p7 }
 0x1e3   : > { %2135 = shalt.err (!%p2132_p12)
}
 0x1e4   : > { %s2241_s1 = smov 64   ;;  %s2242_s21 = smov 4  }
 0x1e5   : > { %1740 = dma.vmem_to_hbm [thread:$0]  (%p2968_p5), %s2853_s23, 4096, %s2851_s8, %s1287_s20, %s2241_s1, %s2241_s1, %s2242_s21  }
 0x1e6 PF: > { %p1761_p10 = scmp.ge.s32.totalorder %s2232_s7, 2  ;;  %s1315_s14 = sand.u32 1, %s2220_s30  }
 0x1e7   : > { %p2969_p9 = scmp.ne.s32.totalorder %s2951_s24, 0  ;;  %s1316_s15 = scalar_lea.sflag [#allocation6], %s1315_s14 }
 0x1e9   : > { %p1757_p0 = pnand %p1761_p10, %p2969_p9 }
 0x1eb   : > { %2191 = dma.done.wait (!%p1757_p0), %s1316_s15, 4096  }
 0x1ec   : > { %2193 = vsyncadd (!%p1757_p0), %s1316_s15, 4294963200  ;;  %s2970_s12 = sld [smem:[#allocation24_spill]]  ;;  %s2971_s13 = sld [smem:[#allocation20_spill]] }
 0x1ed   : > { %s2972_s0 = sld [smem:[#allocation22_spill]]  ;;  %s2973_s19 = sld [smem:[#allocation21_spill]] }
 0x1ee   : > { %s2974_s6 = sld [smem:[#allocation23_spill]]  ;;  %p24_p5 = scmp.ge.s32.totalorder %s2332_s9, 6  }
 0x1ef   : > { %s2975_s25 = smov %s2200_s26  ;;  %s2976_s26 = smov %s2204_s27 }
 0x1f0   : > { %s2978_s28 = smov %s2212_s29  ;;  %s2980_s30 = smov %s2224_s5 }
 0x1f1   : > { %s2982_s7 = smov %s2332_s9  ;;  %26 = sbr.rel (!%p24_p5) target bundleno = 23 (0x17), region = 101 }
 0x1f2   : > { %s2977_s27 = smov %s2970_s12  ;;  %s2979_s29 = smov %s2971_s13 }
 0x1f3   : > { %s2981_s5 = smov %s2973_s19 }
 0x1f8   :  { %1321 = vsyncpa [#allocation5], 1 }
 0x1f9   :  { %1323 = vsyncpa [#allocation5 + $0x1], 1 }
 0x1fa   :  { %1324 = vsyncpa [#allocation8], 1 }
 0x1fb   :  { %1326 = vsyncpa [#allocation8 + $0x1], 1 }
 0x1fc   :  { %1327 = vsyncpa [#allocation6], 1 }
 0x1fd   :  { %1329 = vsyncpa [#allocation6 + $0x1], 1 }

// kernel: hgt_forward.8
= control target key start
LH: loop header
LB: loop body
LE: loop exit
PB: predicated region body
PF: predicated region fallthrough
CT: control target
= control target key end

     0   :  { %s2743_s0 = inlined_call_operand.hbm [shape: s32[4], index: 0, kind: input, shape index: {}]   ;;  %s2744_s1 = inlined_call_operand.hbm [shape: bf16[2048,32], index: 1, kind: input, shape index: {}]   ;;  %s2745_s2 = inlined_call_operand.hbm [shape: bf16[3,32,96], index: 2, kind: input, shape index: {}]   ;;  %s2746_s3 = inlined_call_operand.hbm [shape: f32[3,1,96], index: 3, kind: input, shape index: {}]   ;;  %s2747_s4 = inlined_call_operand.hbm [shape: bf16[2048,96], index: 4, kind: output, shape index: {}]  }
   0x1   :  { %2758 = sst [smem:[#allocation25_spill]] %s2744_s1  ;;  %s1831_s17 = scalar_lea.hbm %s2743_s0, 16 }
   0x2   :  { %2759 = sst [smem:[#allocation26_spill]] %s2745_s2  ;;  %p1832_p0 = scmp.ne.s32.totalorder %s2743_s0, %s1831_s17 }
   0x3   :  { %p1835_p1 = scmp.lt.u32.totalorder %s1831_s17, %s2743_s0 }
   0x5   :  { %p1837_p2 = pnand %p1835_p1, %p1832_p0 }
   0x7   :  { %1840 = shalt.err (!%p1837_p2)  }
   0x8   :  { %s2057_s22 = smov [#allocation3]  }
   0x9   :  { %10 = dma.hbm_to_smem %s2743_s0, 16, %s2057_s22, [#allocation2] }
   0xa   :  { %1999 = dma.done.wait [#allocation2], 16 }
   0xb   :  { %2000 = vsyncadd [#allocation2], 4294967280 }
   0xc   :  { %12 = sfence }
   0xd   :  { %13 = vsyncpa [#allocation5], 0 }
   0xe   :  { %15 = vsyncpa [#allocation5 + $0x1], 0 }
   0xf   :  { %16 = vsyncpa [#allocation8], 0 }
  0x10   :  { %18 = vsyncpa [#allocation8 + $0x1], 0 }
  0x11   :  { %19 = vsyncpa [#allocation6], 0 }
  0x12   :  { %21 = vsyncpa [#allocation6 + $0x1], 0  ;;  %s2103_s25 = smov 0   ;;  %s2105_s26 = smov 0  }
  0x13   :  { %s2107_s27 = smov 0   ;;  %s2109_s28 = smov 0  }
  0x14   :  { %s2111_s29 = smov 0   ;;  %s2113_s0 = smov 0  }
  0x15   :  { %s2115_s30 = smov 0   ;;  %s2117_s5 = smov 0  }
  0x16   :  { %s2119_s6 = smov 0   ;;  %s2121_s7 = smov 0  }
  0x17 LB: > { %2760 = sst [smem:[#allocation20_spill]] %s2039_s0  ;;  %s2152_s8 = sadd.s32 4294967295, %s2055_s7   ;;  %s2055_s7 = sphi %s2121_s7, %s2805_s7   ;;  %s2051_s6 = sphi %s2119_s6, %s2797_s6   ;;  %s2047_s5 = sphi %s2117_s5, %s2804_s5   ;;  %s2043_s30 = sphi %s2115_s30, %s2803_s30   ;;  %s2039_s0 = sphi %s2113_s0, %s2795_s0   ;;  %s2035_s29 = sphi %s2111_s29, %s2802_s29   ;;  %s2031_s28 = sphi %s2109_s28, %s2801_s28   ;;  %s2027_s27 = sphi %s2107_s27, %s2800_s27   ;;  %s2023_s26 = sphi %s2105_s26, %s2799_s26   ;;  %s2019_s25 = sphi %s2103_s25, %s2798_s25  }
  0x18   : > { %2761 = sst [smem:[#allocation21_spill]] %s2051_s6  ;;  %s2155_s9 = sadd.s32 1, %s2055_s7  }
  0x19   : > { %p2750_p3 = scmp.eq.s32.totalorder %s2055_s7, 0  ;;  %p2749_p4 = scmp.eq.s32.totalorder %s2152_s8, 0 }
  0x1a   : > { %s57_s10 = sld [smem:[#allocation3 + %s2055_s7]]  ;;  %s62_s12 = sadd.s32 1, %s2039_s0 }
  0x1b   : > { %s58_s11 = sld [smem:[#allocation3 + %s2155_s9]]  ;;  %p69_p5 = scmp.ne.s32.totalorder %s2039_s0, %s2035_s29 }
  0x1c   : > { %p75_p6 = scmp.ne.s32.totalorder %s2035_s29, %s2031_s28  ;;  %p2748_p8 = scmp.lt.s32.totalorder %s2055_s7, 4 }
  0x1d   : > { %p2167_p7 = por %p69_p5, %p2750_p3  ;;  %s174_s15 = sand.u32 1, %s2055_s7  }
  0x1e   : > { %p2174_p9 = por %p75_p6, %p2749_p4  ;;  %s176_s17 = sand.u32 1, %s2039_s0  }
  0x1f   : > { %s1363_s18 = sshll.u32 %s176_s17, 4  ;;  %p2184_p11 = pnand %p2748_p8, %p2167_p7 }
  0x20   : > { %s2763_s14 = scalar_select %p2174_p9, 1, 0 }
  0x21   : > { %s59_s16 = ssub.s32 %s57_s10, %s58_s11  ;;  %s178_s23 = scalar_lea.vmem [#allocation7], %s1363_s18 }
  0x22   : > { %p60_p10 = scmp.eq.s32.totalorder %s59_s16, 0  ;;  %s186_s24 = sshll.u32 %s178_s23, 4  ;;  %s2201_s24 = int_to_ptr.vmem [resolvable:$true] %s186_s24 }
  0x23   : > { %s1681_s21 = scalar_select %p2167_p7, [#allocation3], [#allocation11] }
  0x24   : > { %s2189_s20 = scalar_select %p60_p10, %s2039_s0, %s62_s12  }
  0x25   : > { %s1682_s22 = scalar_select %p2167_p7, %s2055_s7, 0 }
  0x26   : > { %2765 = sst [smem:[#allocation22_spill]] %s2189_s20  ;;  %s2807_s21 = smov (!%p2748_p8, %s1681_s21), [#allocation13] }
  0x27   : > { %s2809_s22 = smov (!%p2748_p8, %s1682_s22), 0  ;;  %p1367_p12 = scmp.ge.s32.totalorder %s2055_s7, 1 }
  0x28   : > { %s179_s28 = sld [smem:[%s2807_s21 + %s2809_s22]]  ;;  %p212_p13 = scmp.lt.s32.totalorder %s2055_s7, 5 }
  0x29   : > { %s1357_s11 = sadd.s32 4294967294, %s2055_s7   ;;  %s31_s12 = ssub.s32 %s2055_s7, %s2155_s9 }
  0x2a   : > { %p2204_p0 = pnand %p1367_p12, %p212_p13  ;;  %p2211_p1 = scmp.eq.s32.totalorder %s31_s12, 0 }
  0x2b   : > { %s2768_s2 = sld [smem:[#allocation26_spill]]  ;;  %s34_s21 = sadd.s32 1, %s2051_s6 }
  0x2c   : > { %s2766_s10 = scalar_select %p2204_p0, 1, 0 }
  0x2d   : > { %s2221_s22 = scalar_lea.sflag [#allocation8], %s174_s15  ;;  %p1843_p5 = pneg %p2184_p11 }
  0x2e   : > { %s1508_s13 = sshll.u32 %s179_s28, 8 }
  0x31   : > { %s2218_s23 = scalar_lea.hbm %s2768_s2, %s1508_s13  ;;  %s1846_s13 = scalar_lea.hbm %s2768_s2, 768 }
  0x32   : > { %s1841_s20 = scalar_lea.hbm %s2218_s23, 256  ;;  %p1847_p10 = scmp.lt.u32.totalorder %s2218_s23, %s2768_s2 }
  0x33   : > { %p1842_p2 = scmp.ne.s32.totalorder %s2218_s23, %s1841_s20  ;;  %p1848_p12 = scmp.lt.u32.totalorder %s1846_s13, %s1841_s20 }
  0x34   : > { %p1850_p8 = scmp.lt.u32.totalorder %s1841_s20, %s2218_s23 }
  0x35   : > { %p1844_p6 = pnand %p1843_p5, %p1842_p2  ;;  %p1849_p13 = por %p1848_p12, %p1847_p10 }
  0x37   : > { %p1845_p7 = pneg %p1844_p6  ;;  %p1851_p4 = por %p1850_p8, %p1849_p13 }
  0x39   : > { %p1852_p3 = pnand %p1851_p4, %p1845_p7 }
  0x3b   : > { %1855 = shalt.err (!%p1852_p3)
}
  0x3c   : > { %s1856_s15 = scalar_lea.vmem %s2201_s24, 256  ;;  %s2058_s28 = smov [#allocation7]  }
  0x3d   : > { %p1857_p2 = scmp.ne.s32.totalorder %s2201_s24, %s1856_s15  ;;  %s1861_s12 = sshll.u32 %s2058_s28, 4  ;;  %s1862_s12 = int_to_ptr.vmem [resolvable:$false] %s1861_s12 }
  0x3e   : > { %s1863_s17 = scalar_lea.vmem %s1862_s12, 512  ;;  %p1864_p0 = scmp.lt.s32.totalorder %s2201_s24, %s1862_s12 }
  0x3f   : > { %p1859_p6 = pnand %p1857_p2, %p1843_p5  ;;  %p1865_p10 = scmp.lt.s32.totalorder %s1863_s17, %s1856_s15 }
  0x41   : > { %p1860_p9 = pneg %p1859_p6  ;;  %p1866_p12 = por %p1865_p10, %p1864_p0 }
  0x43   : > { %p1867_p8 = pnand %p1866_p12, %p1860_p9 }
  0x45   : > { %1870 = shalt.err (!%p1867_p8)
}
  0x46   : > { %s2752_s20 = smov 64   ;;  %s2753_s13 = smov 4  }
  0x47   : > { %1700 = dma.hbm_to_vmem [thread:$0]  (!%p2184_p11), %s2218_s23, 256, %s2201_s24, %s2221_s22, %s2752_s20, %s2752_s20, %s2753_s13  }
  0x48   : > { %s2257_s18 = scalar_select %p2211_p1, %s2051_s6, %s34_s21  }
  0x49   : > { %p41_p3 = scmp.ne.s32.totalorder %s2051_s6, %s2047_s5  ;;  %p47_p4 = scmp.ne.s32.totalorder %s2047_s5, %s2043_s30 }
  0x4a   : > { %2769 = sst [smem:[#allocation23_spill]] %s2257_s18  ;;  %p127_p9 = scmp.eq.s32.totalorder %s2152_s8, 3 }
  0x4b   : > { %p133_p0 = scmp.eq.s32.totalorder %s1357_s11, 3  ;;  %p2770_p5 = scmp.eq.s32.totalorder %s2055_s7, 0 }
  0x4c   : > { %p2771_p13 = scmp.eq.s32.totalorder %s2152_s8, 0  ;;  %p2274_p6 = por %p127_p9, %p41_p3 }
  0x4d   : > { %p43_p7 = por %p2770_p5, %p41_p3  ;;  %p2278_p11 = por %p133_p0, %p47_p4 }
  0x4e   : > { %p2270_p2 = por %p2771_p13, %p47_p4  ;;  %s153_s16 = sand.u32 1, %s2051_s6  }
  0x4f   : > { %s2773_s19 = scalar_select %p2274_p6, 1, 0 }
  0x50   : > { %s2774_s24 = scalar_select %p2278_p11, 1, 0 }
  0x51   : > { %s1507_s23 = sshll.u32 %s2055_s7, 12  ;;  %s1360_s21 = sshll.u32 %s153_s16, 8 }
  0x52   : > { %s2775_s1 = sld [smem:[#allocation25_spill]]  ;;  %s157_s17 = scalar_lea.vmem [#allocation4], %s1360_s21 }
  0x53   : > { %s164_s20 = sshll.u32 %s157_s17, 4  ;;  %p2776_p1 = scmp.lt.s32.totalorder %s2055_s7, 4  ;;  %s2295_s20 = int_to_ptr.vmem [resolvable:$true] %s164_s20 }
  0x54   : > { %s2297_s2 = scalar_lea.sflag [#allocation5], %s153_s16 }
  0x55   : > { %p2291_p10 = pnand %p2776_p1, %p43_p7 }
  0x57   : > { %p1873_p8 = pneg %p2291_p10 }
  0x58   : > { %s2287_s12 = scalar_lea.hbm %s2775_s1, %s1507_s23  ;;  %s1876_s11 = scalar_lea.hbm %s2775_s1, 16384 }
  0x59   : > { %s1871_s28 = scalar_lea.hbm %s2287_s12, 4096  ;;  %p1877_p9 = scmp.lt.u32.totalorder %s2287_s12, %s2775_s1 }
  0x5a   : > { %p1872_p12 = scmp.ne.s32.totalorder %s2287_s12, %s1871_s28  ;;  %p1878_p0 = scmp.lt.u32.totalorder %s1876_s11, %s1871_s28 }
  0x5b   : > { %p1880_p7 = scmp.lt.u32.totalorder %s1871_s28, %s2287_s12 }
  0x5c   : > { %p1874_p3 = pnand %p1873_p8, %p1872_p12  ;;  %p1879_p5 = por %p1878_p0, %p1877_p9 }
  0x5e   : > { %p1875_p4 = pneg %p1874_p3  ;;  %p1881_p13 = por %p1880_p7, %p1879_p5 }
  0x60   : > { %p1882_p1 = pnand %p1881_p13, %p1875_p4 }
  0x62   : > { %1885 = shalt.err (!%p1882_p1)
}
  0x63   : > { %s1886_s16 = scalar_lea.vmem %s2295_s20, 4096  ;;  %s2061_s23 = smov [#allocation4]  }
  0x64   : > { %p1887_p12 = scmp.ne.s32.totalorder %s2295_s20, %s1886_s16  ;;  %s1891_s21 = sshll.u32 %s2061_s23, 4  ;;  %s1892_s21 = int_to_ptr.vmem [resolvable:$false] %s1891_s21 }
  0x65   : > { %s1893_s18 = scalar_lea.vmem %s1892_s21, 8192  ;;  %p1894_p6 = scmp.lt.s32.totalorder %s2295_s20, %s1892_s21 }
  0x66   : > { %p1889_p3 = pnand %p1887_p12, %p1873_p8  ;;  %p1895_p9 = scmp.lt.s32.totalorder %s1893_s18, %s1886_s16 }
  0x68   : > { %p1890_p11 = pneg %p1889_p3  ;;  %p1896_p0 = por %p1895_p9, %p1894_p6 }
  0x6a   : > { %p1897_p5 = pnand %p1896_p0, %p1890_p11 }
  0x6c   : > { %1900 = shalt.err (!%p1897_p5)
}
  0x6d   : > { %s2778_s28 = smov 4   ;;  %s2779_s11 = smov 64  }
  0x6e   : > { %1695 = dma.hbm_to_vmem [thread:$0]  (!%p2291_p10), %s2287_s12, 4096, %s2295_s20, %s2297_s2, %s2779_s11, %s2779_s11, %s2778_s28  }
  0x6f   : > { %s85_s13 = sld [smem:[#allocation3 + %s2055_s7]]  ;;  %p97_p6 = scmp.ne.s32.totalorder %s2027_s27, %s2023_s26 }
  0x70   : > { %s86_s17 = sld [smem:[#allocation3 + %s2155_s9]]  ;;  %p103_p11 = scmp.ne.s32.totalorder %s2023_s26, %s2019_s25 }
  0x71   : > { %p2780_p8 = scmp.eq.s32.totalorder %s2055_s7, 0  ;;  %s90_s16 = sadd.s32 1, %s2027_s27 }
  0x72   : > { %p2781_p7 = scmp.eq.s32.totalorder %s2152_s8, 0  ;;  %s198_s1 = sand.u32 1, %s2027_s27  }
  0x73   : > { %p99_p4 = por %p97_p6, %p2780_p8  ;;  %p2783_p12 = scmp.lt.s32.totalorder %s2055_s7, 4 }
  0x74   : > { %p2339_p13 = por %p103_p11, %p2781_p7  ;;  %s199_s28 = scalar_lea.vmem [#allocation9], %s198_s1 }
  0x75   : > { %s1684_s21 = scalar_select %p99_p4, [#allocation3], [#allocation12] }
  0x76   : > { %s2782_s23 = scalar_select %p2339_p13, 1, 0 }
  0x77   : > { %s87_s18 = ssub.s32 %s85_s13, %s86_s17  ;;  %p2346_p3 = pnand %p2783_p12, %p99_p4 }
  0x78   : > { %p88_p1 = scmp.eq.s32.totalorder %s87_s18, 0  ;;  %p2786_p10 = pmov %p2783_p12 }
  0x79   : > { %s1685_s25 = scalar_select %p99_p4, %s2055_s7, 0 }
  0x7a   : > { %s2352_s20 = scalar_select %p88_p1, %s2027_s27, %s90_s16  }
  0x7b   : > { %s2811_s21 = smov (!%p2786_p10, %s1684_s21), [#allocation14]  ;;  %p2787_p9 = pmov %p2786_p10 }
  0x7c   : > { %2785 = sst [smem:[#allocation24_spill]] %s2352_s20  ;;  %s207_s11 = sshll.u32 %s199_s28, 4  ;;  %s2358_s11 = int_to_ptr.vmem [resolvable:$true] %s207_s11 }
  0x7d   : > { %s2813_s25 = smov (!%p2787_p9, %s1685_s25), 0  ;;  %p1903_p5 = pneg %p2346_p3 }
  0x7e   : > { %s200_s12 = sld [smem:[%s2811_s21 + %s2813_s25]]  ;;  %s1906_s1 = scalar_lea.hbm %s2746_s3, 48 }
  0x84   : > { %s1366_s13 = sshll.u32 %s200_s12, 4 }
  0x85   : > { %s205_s6 = scalar_lea.hbm %s2746_s3, %s1366_s13 }
  0x86   : > { %s1901_s0 = scalar_lea.hbm %s205_s6, 16  ;;  %p1907_p8 = scmp.lt.u32.totalorder %s205_s6, %s2746_s3 }
  0x87   : > { %p1902_p0 = scmp.ne.s32.totalorder %s205_s6, %s1901_s0  ;;  %p1908_p4 = scmp.lt.u32.totalorder %s1906_s1, %s1901_s0 }
  0x88   : > { %p1910_p1 = scmp.lt.u32.totalorder %s1901_s0, %s205_s6 }
  0x89   : > { %p1904_p6 = pnand %p1903_p5, %p1902_p0  ;;  %p1909_p7 = por %p1908_p4, %p1907_p8 }
  0x8b   : > { %p1905_p11 = pneg %p1904_p6  ;;  %p1911_p12 = por %p1910_p1, %p1909_p7 }
  0x8d   : > { %p1912_p10 = pnand %p1911_p12, %p1905_p11 }
  0x8f   : > { %1915 = shalt.err (!%p1912_p10)
}
  0x90   : > { %s1916_s12 = scalar_lea.vmem %s2358_s11, 16  ;;  %s2062_s20 = smov [#allocation9]  }
  0x91   : > { %p1917_p9 = scmp.ne.s32.totalorder %s2358_s11, %s1916_s12  ;;  %s1921_s28 = sshll.u32 %s2062_s20, 4  ;;  %s1922_s28 = int_to_ptr.vmem [resolvable:$false] %s1921_s28 }
  0x92   : > { %s1923_s13 = scalar_lea.vmem %s1922_s28, 32  ;;  %p1924_p13 = scmp.lt.s32.totalorder %s2358_s11, %s1922_s28 }
  0x93   : > { %p1919_p0 = pnand %p1917_p9, %p1903_p5  ;;  %p1925_p8 = scmp.lt.s32.totalorder %s1923_s13, %s1916_s12 }
  0x95   : > { %p1920_p6 = pneg %p1919_p0  ;;  %p1926_p4 = por %p1925_p8, %p1924_p13 }
  0x97   : > { %p1927_p7 = pnand %p1926_p4, %p1920_p6 }
  0x99   : > { %1930 = shalt.err (!%p1927_p7)
}
  0x9a   : > { %1705 = dma.hbm_to_vmem [thread:$0]  (!%p2346_p3), %s205_s6, 16, %s2358_s11, %s2221_s22  }
  0x9b   : > { %p2788_p11 = scmp.ne.s32.totalorder %s2766_s10, 0 }
  0x9c   : > { %s2387_s0 = sand.u32 (!%p2788_p11), 1, %s2047_s5  }
  0x9d   : > { %216 = sbr.rel (%p2788_p11) target bundleno = 472 (0x1d8), region = 32  ;;  %s1368_s17 = sshll.u32 (!%p2788_p11), %s2387_s0, 8 }
  0x9e   : > { %s219_s18 = scalar_lea.sflag (!%p2788_p11), [#allocation5], %s2387_s0  ;;  %s2393_s16 = scalar_lea.vmem (!%p2788_p11), [#allocation4], %s1368_s17 }
  0xa4   : > { %2002 = dma.done.wait (%p2270_p2), %s219_s18, 4096  }
  0xa5   : > { %2004 = vsyncadd (%p2270_p2), %s219_s18, 4294963200  ;;  %s227_s6 = sand.u32 1, %s2152_s8   ;;  %s229_s10 = sand.u32 1, %s2035_s29  }
  0xa6   : > { %s1369_s22 = sshll.u32 %s229_s10, 4  ;;  %s228_s2 = scalar_lea.sflag [#allocation8], %s227_s6 }
  0xa7   : > { %s231_s11 = scalar_lea.vmem [#allocation7], %s1369_s22  ;;  %p2789_p13 = scmp.ne.s32.totalorder %s2763_s14, 0 }
  0xa9   : > { %2006 = dma.done.wait (%p2789_p13), %s228_s2, 256  }
  0xaa   : > { %2008 = vsyncadd (%p2789_p13), %s228_s2, 4294967040  ;;  %s238_s1 = sand.u32 1, %s2023_s26   ;;  %p2790_p3 = scmp.ne.s32.totalorder %s2782_s23, 0 }
  0xab   : > { %s2406_s21 = scalar_lea.vmem [#allocation9], %s238_s1 }
  0xac   : > { %2010 = dma.done.wait (%p2790_p3), %s228_s2, 16  }
  0xad   : > { %2012 = vsyncadd (%p2790_p3), %s228_s2, 4294967280  ;;  %v1797_v0 = vld [vmem:[%s231_s11] sm:$0xff]   ;;  %v1798_v1 = vld [vmem:[%s231_s11 + $0x8] sm:$0xff]   ;;  %vm523_vm0 = vcmask 261120   ;;  %vm1165_vm1 = vcmask 781312   ;;  %s2489_s14 = scalar_lea.vmem [#allocation10], %s1368_s17 }
  0xae   : > { %1608 = vmatprep.subr.bf16.mxu0 %v1797_v0  ;;  %1676 = vmatprep.subr.bf16.mxu1 %v1797_v0  ;;  %v1799_v2 = vld [vmem:[%s2393_s16] sm:$0xff]   ;;  %v1801_v4 = vld [vmem:[%s2393_s16 + $0x8] sm:$0xff]   ;;  %v1803_v6 = vld [vmem:[%s2393_s16 + $0x10] sm:$0xff]   ;;  %s1573_s15 = sshll.u32 %s2152_s8, 12  ;;  %s1244_s23 = sshll.u32 %s2489_s14, 4  ;;  %s2670_s23 = int_to_ptr.vmem [resolvable:$true] %s1244_s23 }
  0xaf   : > { %1609 = vmatpush3.bf16.msra.mxu0 %v1797_v0  ;;  %1678 = vmatpush3.bf16.msra.mxu1 %v1797_v0  ;;  %v1800_v3 = vld [vmem:[%s2393_s16 + $0x80] sm:$0xff]   ;;  %v1802_v5 = vld [vmem:[%s2393_s16 + $0x88] sm:$0xff]   ;;  %v1804_v7 = vld [vmem:[%s2393_s16 + $0x90] sm:$0xff]   ;;  %s2668_s12 = scalar_lea.hbm %s2747_s4, %s1573_s15  ;;  %s1231_s20 = scalar_lea.sflag [#allocation6], %s2387_s0 }
  0xb0   : > { %1610 = vmatprep.subr.bf16.mxu0 %v1798_v1  ;;  %1677 = vmatprep.subr.bf16.mxu1 %v1798_v1  ;;  %v1805_v8 = vld [vmem:[%s2393_s16 + $0x18] sm:$0xff]   ;;  %v1807_v10 = vld [vmem:[%s2393_s16 + $0x20] sm:$0xff]   ;;  %v1809_v12 = vld [vmem:[%s2393_s16 + $0x28] sm:$0xff]   ;;  %s1931_s28 = scalar_lea.vmem %s2670_s23, 4096  ;;  %p2791_p5 = scmp.ne.s32.totalorder %s2773_s19, 0 }
  0xb1   : > { %1612 = vmatprep.mubr.msk.bf16.mxu0 %vm523_vm0, %v1799_v2  ;;  %1644 = vmatprep.mubr.msk.bf16.mxu1 %vm523_vm0, %v1800_v3  ;;  %v1806_v9 = vld [vmem:[%s2393_s16 + $0x98] sm:$0xff]   ;;  %v1808_v11 = vld [vmem:[%s2393_s16 + $0xa0] sm:$0xff]   ;;  %v1810_v13 = vld [vmem:[%s2393_s16 + $0xa8] sm:$0xff]   ;;  %p1932_p2 = scmp.ne.s32.totalorder %s2670_s23, %s1931_s28  ;;  %s2063_s13 = smov [#allocation10]  }
  0xb2   : > { %v1811_v14 = vld [vmem:[%s2393_s16 + $0x30] sm:$0xff]   ;;  %v1813_v16 = vld [vmem:[%s2393_s16 + $0x38] sm:$0xff]   ;;  %v1815_v18 = vld [vmem:[%s2393_s16 + $0x40] sm:$0xff]   ;;  %s1935_s17 = sshll.u32 %s2063_s13, 4  ;;  %s1936_s17 = int_to_ptr.vmem [resolvable:$false] %s1935_s17 }
  0xb3   : > { %1611 = vmatpush3.bf16.msra.mxu0 %v1798_v1  ;;  %1679 = vmatpush3.bf16.msra.mxu1 %v1798_v1  ;;  %v1812_v15 = vld [vmem:[%s2393_s16 + $0xb0] sm:$0xff]   ;;  %v1814_v17 = vld [vmem:[%s2393_s16 + $0xb8] sm:$0xff]   ;;  %v1816_v19 = vld [vmem:[%s2393_s16 + $0xc0] sm:$0xff]   ;;  %p1933_p1 = pnand %p1932_p2, %p2791_p5  ;;  %s1937_s18 = scalar_lea.vmem %s1936_s17, 8192 }
  0xb4   : > { %v1817_v20 = vld [vmem:[%s2393_s16 + $0x48] sm:$0xff]   ;;  %v1819_v22 = vld [vmem:[%s2393_s16 + $0x50] sm:$0xff]   ;;  %v1821_v24 = vld [vmem:[%s2393_s16 + $0x58] sm:$0xff]   ;;  %p1938_p10 = scmp.lt.s32.totalorder %s2670_s23, %s1936_s17  ;;  %p1939_p9 = scmp.lt.s32.totalorder %s1937_s18, %s1931_s28 }
  0xb5   : > { %v1818_v21 = vld [vmem:[%s2393_s16 + $0xc8] sm:$0xff]   ;;  %v1820_v23 = vld [vmem:[%s2393_s16 + $0xd0] sm:$0xff]   ;;  %v1822_v25 = vld [vmem:[%s2393_s16 + $0xd8] sm:$0xff]   ;;  %p1934_p12 = pneg %p1933_p1 }
  0xb6   : > { %1613 = vmatmul.mubr.msk.bf16.vlgmr.msra.gmra.mrb[0].mxu0 %vm523_vm0, %v1801_v4  ;;  %1645 = vmatmul.mubr.msk.bf16.vlgmr.msra.gmra.mrb[0].mxu1 %vm523_vm0, %v1802_v5  ;;  %v1823_v26 = vld [vmem:[%s2393_s16 + $0x60] sm:$0xff]   ;;  %v1825_v28 = vld [vmem:[%s2393_s16 + $0x68] sm:$0xff]   ;;  %v1827_v30 = vld [vmem:[%s2393_s16 + $0x70] sm:$0xff]   ;;  %p1940_p0 = por %p1939_p9, %p1938_p10 }
  0xb7   : > { %1616 = vmatprep.mubr.msk.bf16.mxu0 %vm523_vm0, %v1803_v6  ;;  %1648 = vmatprep.mubr.msk.bf16.mxu1 %vm523_vm0, %v1804_v7  ;;  %v1824_v27 = vld [vmem:[%s2393_s16 + $0xe0] sm:$0xff]   ;;  %v1826_v29 = vld [vmem:[%s2393_s16 + $0xe8] sm:$0xff]   ;;  %v1828_v31 = vld [vmem:[%s2393_s16 + $0xf0] sm:$0xff]  }
  0xb8   : > { %v1829_v32 = vld [vmem:[%s2393_s16 + $0x78] sm:$0xff]   ;;  %v2477_v34 = vld [vmem:[%s2406_s21] ss:$0 sm:$0xff]  ;;  %p1941_p6 = pnand %p1940_p0, %p1934_p12 }
  0xb9   : > { %v1830_v33 = vld [vmem:[%s2393_s16 + $0xf8] sm:$0xff]  }
  0xbe   : > { %1617 = vmatmul.mubr.msk.bf16.gmra.mrb[4].mxu0 %vm523_vm0, %v1805_v8  ;;  %1649 = vmatmul.mubr.msk.bf16.gmra.mrb[4].mxu1 %vm523_vm0, %v1806_v9 }
  0xbf   : > { %1620 = vmatprep.mubr.msk.bf16.mxu0 %vm523_vm0, %v1807_v10  ;;  %1652 = vmatprep.mubr.msk.bf16.mxu1 %vm523_vm0, %v1808_v11 }
  0xc6   : > { %1621 = vmatmul.mubr.msk.bf16.gmra.mrb[8].mxu0 %vm523_vm0, %v1809_v12  ;;  %1653 = vmatmul.mubr.msk.bf16.gmra.mrb[8].mxu1 %vm523_vm0, %v1810_v13 }
  0xc7   : > { %1624 = vmatprep.mubr.msk.bf16.mxu0 %vm523_vm0, %v1811_v14  ;;  %1656 = vmatprep.mubr.msk.bf16.mxu1 %vm523_vm0, %v1812_v15 }
  0xce   : > { %1625 = vmatmul.mubr.msk.bf16.gmra.mrb[12].mxu0 %vm523_vm0, %v1813_v16  ;;  %1657 = vmatmul.mubr.msk.bf16.gmra.mrb[12].mxu1 %vm523_vm0, %v1814_v17 }
  0xcf   : > { %1628 = vmatprep.mubr.msk.bf16.mxu0 %vm523_vm0, %v1815_v18  ;;  %1660 = vmatprep.mubr.msk.bf16.mxu1 %vm523_vm0, %v1816_v19 }
  0xd6   : > { %1629 = vmatmul.mubr.msk.bf16.gmra.mrb[16].mxu0 %vm523_vm0, %v1817_v20  ;;  %1661 = vmatmul.mubr.msk.bf16.gmra.mrb[16].mxu1 %vm523_vm0, %v1818_v21 }
  0xd7   : > { %1632 = vmatprep.mubr.msk.bf16.mxu0 %vm523_vm0, %v1819_v22  ;;  %1664 = vmatprep.mubr.msk.bf16.mxu1 %vm523_vm0, %v1820_v23 }
  0xde   : > { %1633 = vmatmul.mubr.msk.bf16.gmra.mrb[20].mxu0 %vm523_vm0, %v1821_v24  ;;  %1665 = vmatmul.mubr.msk.bf16.gmra.mrb[20].mxu1 %vm523_vm0, %v1822_v25 }
  0xdf   : > { %1636 = vmatprep.mubr.msk.bf16.mxu0 %vm523_vm0, %v1823_v26  ;;  %1668 = vmatprep.mubr.msk.bf16.mxu1 %vm523_vm0, %v1824_v27 }
  0xe6   : > { %1637 = vmatmul.mubr.msk.bf16.gmra.mrb[24].mxu0 %vm523_vm0, %v1825_v28  ;;  %1669 = vmatmul.mubr.msk.bf16.gmra.mrb[24].mxu1 %vm523_vm0, %v1826_v29 }
  0xe7   : > { %1640 = vmatprep.mubr.msk.bf16.mxu0 %vm523_vm0, %v1827_v30  ;;  %1672 = vmatprep.mubr.msk.bf16.mxu1 %vm523_vm0, %v1828_v31 }
  0xee   : > { %1641 = vmatmul.mubr.msk.bf16.gmra.mrb[28].mxu0 %vm523_vm0, %v1829_v32  ;;  %1673 = vmatmul.mubr.msk.bf16.gmra.mrb[28].mxu1 %vm523_vm0, %v1830_v33 }
 0x189   : > { %v1614_v35 = vpop.f32.mrb[0].mxu0  ;;  %v1646_v36 = vpop.f32.mrb[0].mxu1 }
 0x18a   : > { %v663_v37 = vadd.f32 %v1614_v35, %v2477_v34  ;;  %v791_v38 = vadd.f32 %v1646_v36, %v2477_v34  ;;  %v654_v39 = vpop.f32.mrb[1].mxu0  ;;  %v782_v40 = vpop.f32.mrb[1].mxu1 }
 0x18b   : > { %v655_v41 = vadd.f32 %v2477_v34, %v654_v39  ;;  %v783_v42 = vadd.f32 %v2477_v34, %v782_v40  ;;  %v1615_v43 = vpop.f32.mrb[2].mxu0  ;;  %v1647_v44 = vpop.f32.mrb[2].mxu1 }
 0x18c   : > { %v1511_v45 = vpack.c.bf16 %v663_v37, %v663_v37  ;;  %v1543_v46 = vpack.c.bf16 %v791_v38, %v791_v38  ;;  %v666_v47 = vadd.f32 %v1615_v43, %v2477_v34  ;;  %v794_v48 = vadd.f32 %v1647_v44, %v2477_v34  ;;  %v657_v49 = vpop.f32.mrb[3].mxu0  ;;  %v785_v50 = vpop.f32.mrb[3].mxu1 }
 0x18d   : > { %v1509_v51 = vpack.c.bf16 %v655_v41, %v655_v41  ;;  %v1541_v52 = vpack.c.bf16 %v783_v42, %v783_v42  ;;  %v658_v53 = vadd.f32 %v2477_v34, %v657_v49  ;;  %v786_v54 = vadd.f32 %v2477_v34, %v785_v50 }
 0x18e   : > { %1168 = vst.msk [vmem:[%s2489_s14 + $0x8] sm:$0xf] %vm1165_vm1, %v1511_v45  ;;  %1200 = vst.msk [vmem:[%s2489_s14 + $0x88] sm:$0xf] %vm1165_vm1, %v1543_v46  ;;  %v1512_v55 = vpack.c.bf16 %v666_v47, %v666_v47  ;;  %v1544_v56 = vpack.c.bf16 %v794_v48, %v794_v48 }
 0x18f   : > { %1166 = vst.msk [vmem:[%s2489_s14] sm:$0xf] %vm1165_vm1, %v1509_v51  ;;  %1198 = vst.msk [vmem:[%s2489_s14 + $0x80] sm:$0xf] %vm1165_vm1, %v1541_v52  ;;  %v1510_v57 = vpack.c.bf16 %v658_v53, %v658_v53  ;;  %v1542_v58 = vpack.c.bf16 %v786_v54, %v786_v54 }
 0x190   : > { %1169 = vst.msk [vmem:[%s2489_s14 + $0xc] sm:$0xf] %vm1165_vm1, %v1512_v55  ;;  %1201 = vst.msk [vmem:[%s2489_s14 + $0x8c] sm:$0xf] %vm1165_vm1, %v1544_v56 }
 0x191   : > { %1167 = vst.msk [vmem:[%s2489_s14 + $0x4] sm:$0xf] %vm1165_vm1, %v1510_v57  ;;  %1199 = vst.msk [vmem:[%s2489_s14 + $0x84] sm:$0xf] %vm1165_vm1, %v1542_v58  ;;  %v1618_v59 = vpop.f32.mrb[4].mxu0  ;;  %v1650_v60 = vpop.f32.mrb[4].mxu1 }
 0x192   : > { %v679_v61 = vadd.f32 %v1618_v59, %v2477_v34  ;;  %v807_v62 = vadd.f32 %v1650_v60, %v2477_v34  ;;  %v670_v63 = vpop.f32.mrb[5].mxu0  ;;  %v798_v0 = vpop.f32.mrb[5].mxu1 }
 0x193   : > { %v671_v1 = vadd.f32 %v2477_v34, %v670_v63  ;;  %v799_v2 = vadd.f32 %v2477_v34, %v798_v0  ;;  %v1619_v3 = vpop.f32.mrb[6].mxu0  ;;  %v1651_v4 = vpop.f32.mrb[6].mxu1 }
 0x194   : > { %v1515_v5 = vpack.c.bf16 %v679_v61, %v679_v61  ;;  %v1547_v6 = vpack.c.bf16 %v807_v62, %v807_v62  ;;  %v682_v7 = vadd.f32 %v1619_v3, %v2477_v34  ;;  %v810_v8 = vadd.f32 %v1651_v4, %v2477_v34  ;;  %v673_v9 = vpop.f32.mrb[7].mxu0  ;;  %v801_v10 = vpop.f32.mrb[7].mxu1 }
 0x195   : > { %v1513_v11 = vpack.c.bf16 %v671_v1, %v671_v1  ;;  %v1545_v12 = vpack.c.bf16 %v799_v2, %v799_v2  ;;  %v674_v13 = vadd.f32 %v2477_v34, %v673_v9  ;;  %v802_v14 = vadd.f32 %v2477_v34, %v801_v10 }
 0x196   : > { %1172 = vst.msk [vmem:[%s2489_s14 + $0x18] sm:$0xf] %vm1165_vm1, %v1515_v5  ;;  %1204 = vst.msk [vmem:[%s2489_s14 + $0x98] sm:$0xf] %vm1165_vm1, %v1547_v6  ;;  %v1516_v15 = vpack.c.bf16 %v682_v7, %v682_v7  ;;  %v1548_v16 = vpack.c.bf16 %v810_v8, %v810_v8 }
 0x197   : > { %1170 = vst.msk [vmem:[%s2489_s14 + $0x10] sm:$0xf] %vm1165_vm1, %v1513_v11  ;;  %1202 = vst.msk [vmem:[%s2489_s14 + $0x90] sm:$0xf] %vm1165_vm1, %v1545_v12  ;;  %v1514_v17 = vpack.c.bf16 %v674_v13, %v674_v13  ;;  %v1546_v18 = vpack.c.bf16 %v802_v14, %v802_v14 }
 0x198   : > { %1173 = vst.msk [vmem:[%s2489_s14 + $0x1c] sm:$0xf] %vm1165_vm1, %v1516_v15  ;;  %1205 = vst.msk [vmem:[%s2489_s14 + $0x9c] sm:$0xf] %vm1165_vm1, %v1548_v16 }
 0x199   : > { %1171 = vst.msk [vmem:[%s2489_s14 + $0x14] sm:$0xf] %vm1165_vm1, %v1514_v17  ;;  %1203 = vst.msk [vmem:[%s2489_s14 + $0x94] sm:$0xf] %vm1165_vm1, %v1546_v18  ;;  %v1622_v19 = vpop.f32.mrb[8].mxu0  ;;  %v1654_v20 = vpop.f32.mrb[8].mxu1 }
 0x19a   : > { %v695_v21 = vadd.f32 %v1622_v19, %v2477_v34  ;;  %v823_v22 = vadd.f32 %v1654_v20, %v2477_v34  ;;  %v686_v23 = vpop.f32.mrb[9].mxu0  ;;  %v814_v24 = vpop.f32.mrb[9].mxu1 }
 0x19b   : > { %v687_v25 = vadd.f32 %v2477_v34, %v686_v23  ;;  %v815_v26 = vadd.f32 %v2477_v34, %v814_v24  ;;  %v1623_v27 = vpop.f32.mrb[10].mxu0  ;;  %v1655_v28 = vpop.f32.mrb[10].mxu1 }
 0x19c   : > { %v1519_v29 = vpack.c.bf16 %v695_v21, %v695_v21  ;;  %v1551_v30 = vpack.c.bf16 %v823_v22, %v823_v22  ;;  %v698_v31 = vadd.f32 %v1623_v27, %v2477_v34  ;;  %v826_v32 = vadd.f32 %v1655_v28, %v2477_v34  ;;  %v689_v33 = vpop.f32.mrb[11].mxu0  ;;  %v817_v35 = vpop.f32.mrb[11].mxu1 }
 0x19d   : > { %v1517_v36 = vpack.c.bf16 %v687_v25, %v687_v25  ;;  %v1549_v37 = vpack.c.bf16 %v815_v26, %v815_v26  ;;  %v690_v38 = vadd.f32 %v2477_v34, %v689_v33  ;;  %v818_v39 = vadd.f32 %v2477_v34, %v817_v35 }
 0x19e   : > { %1176 = vst.msk [vmem:[%s2489_s14 + $0x28] sm:$0xf] %vm1165_vm1, %v1519_v29  ;;  %1208 = vst.msk [vmem:[%s2489_s14 + $0xa8] sm:$0xf] %vm1165_vm1, %v1551_v30  ;;  %v1520_v40 = vpack.c.bf16 %v698_v31, %v698_v31  ;;  %v1552_v41 = vpack.c.bf16 %v826_v32, %v826_v32 }
 0x19f   : > { %1174 = vst.msk [vmem:[%s2489_s14 + $0x20] sm:$0xf] %vm1165_vm1, %v1517_v36  ;;  %1206 = vst.msk [vmem:[%s2489_s14 + $0xa0] sm:$0xf] %vm1165_vm1, %v1549_v37  ;;  %v1518_v42 = vpack.c.bf16 %v690_v38, %v690_v38  ;;  %v1550_v43 = vpack.c.bf16 %v818_v39, %v818_v39 }
 0x1a0   : > { %1177 = vst.msk [vmem:[%s2489_s14 + $0x2c] sm:$0xf] %vm1165_vm1, %v1520_v40  ;;  %1209 = vst.msk [vmem:[%s2489_s14 + $0xac] sm:$0xf] %vm1165_vm1, %v1552_v41 }
 0x1a1   : > { %1175 = vst.msk [vmem:[%s2489_s14 + $0x24] sm:$0xf] %vm1165_vm1, %v1518_v42  ;;  %1207 = vst.msk [vmem:[%s2489_s14 + $0xa4] sm:$0xf] %vm1165_vm1, %v1550_v43  ;;  %v1626_v44 = vpop.f32.mrb[12].mxu0  ;;  %v1658_v45 = vpop.f32.mrb[12].mxu1 }
 0x1a2   : > { %v711_v46 = vadd.f32 %v1626_v44, %v2477_v34  ;;  %v839_v47 = vadd.f32 %v1658_v45, %v2477_v34  ;;  %v702_v48 = vpop.f32.mrb[13].mxu0  ;;  %v830_v49 = vpop.f32.mrb[13].mxu1 }
 0x1a3   : > { %v703_v50 = vadd.f32 %v2477_v34, %v702_v48  ;;  %v831_v51 = vadd.f32 %v2477_v34, %v830_v49  ;;  %v1627_v52 = vpop.f32.mrb[14].mxu0  ;;  %v1659_v53 = vpop.f32.mrb[14].mxu1 }
 0x1a4   : > { %v1523_v54 = vpack.c.bf16 %v711_v46, %v711_v46  ;;  %v1555_v55 = vpack.c.bf16 %v839_v47, %v839_v47  ;;  %v714_v56 = vadd.f32 %v1627_v52, %v2477_v34  ;;  %v842_v57 = vadd.f32 %v1659_v53, %v2477_v34  ;;  %v705_v58 = vpop.f32.mrb[15].mxu0  ;;  %v833_v59 = vpop.f32.mrb[15].mxu1 }
 0x1a5   : > { %v1521_v60 = vpack.c.bf16 %v703_v50, %v703_v50  ;;  %v1553_v61 = vpack.c.bf16 %v831_v51, %v831_v51  ;;  %v706_v62 = vadd.f32 %v2477_v34, %v705_v58  ;;  %v834_v63 = vadd.f32 %v2477_v34, %v833_v59 }
 0x1a6   : > { %1180 = vst.msk [vmem:[%s2489_s14 + $0x38] sm:$0xf] %vm1165_vm1, %v1523_v54  ;;  %1212 = vst.msk [vmem:[%s2489_s14 + $0xb8] sm:$0xf] %vm1165_vm1, %v1555_v55  ;;  %v1524_v0 = vpack.c.bf16 %v714_v56, %v714_v56  ;;  %v1556_v1 = vpack.c.bf16 %v842_v57, %v842_v57 }
 0x1a7   : > { %1178 = vst.msk [vmem:[%s2489_s14 + $0x30] sm:$0xf] %vm1165_vm1, %v1521_v60  ;;  %1210 = vst.msk [vmem:[%s2489_s14 + $0xb0] sm:$0xf] %vm1165_vm1, %v1553_v61  ;;  %v1522_v2 = vpack.c.bf16 %v706_v62, %v706_v62  ;;  %v1554_v3 = vpack.c.bf16 %v834_v63, %v834_v63 }
 0x1a8   : > { %1181 = vst.msk [vmem:[%s2489_s14 + $0x3c] sm:$0xf] %vm1165_vm1, %v1524_v0  ;;  %1213 = vst.msk [vmem:[%s2489_s14 + $0xbc] sm:$0xf] %vm1165_vm1, %v1556_v1 }
 0x1a9   : > { %1179 = vst.msk [vmem:[%s2489_s14 + $0x34] sm:$0xf] %vm1165_vm1, %v1522_v2  ;;  %1211 = vst.msk [vmem:[%s2489_s14 + $0xb4] sm:$0xf] %vm1165_vm1, %v1554_v3  ;;  %v1630_v4 = vpop.f32.mrb[16].mxu0  ;;  %v1662_v5 = vpop.f32.mrb[16].mxu1 }
 0x1aa   : > { %v727_v6 = vadd.f32 %v1630_v4, %v2477_v34  ;;  %v855_v7 = vadd.f32 %v1662_v5, %v2477_v34  ;;  %v718_v8 = vpop.f32.mrb[17].mxu0  ;;  %v846_v9 = vpop.f32.mrb[17].mxu1 }
 0x1ab   : > { %v719_v10 = vadd.f32 %v2477_v34, %v718_v8  ;;  %v847_v11 = vadd.f32 %v2477_v34, %v846_v9  ;;  %v1631_v12 = vpop.f32.mrb[18].mxu0  ;;  %v1663_v13 = vpop.f32.mrb[18].mxu1 }
 0x1ac   : > { %v1527_v14 = vpack.c.bf16 %v727_v6, %v727_v6  ;;  %v1559_v15 = vpack.c.bf16 %v855_v7, %v855_v7  ;;  %v730_v16 = vadd.f32 %v1631_v12, %v2477_v34  ;;  %v858_v17 = vadd.f32 %v1663_v13, %v2477_v34  ;;  %v721_v18 = vpop.f32.mrb[19].mxu0  ;;  %v849_v19 = vpop.f32.mrb[19].mxu1 }
 0x1ad   : > { %v1525_v20 = vpack.c.bf16 %v719_v10, %v719_v10  ;;  %v1557_v21 = vpack.c.bf16 %v847_v11, %v847_v11  ;;  %v722_v22 = vadd.f32 %v2477_v34, %v721_v18  ;;  %v850_v23 = vadd.f32 %v2477_v34, %v849_v19 }
 0x1ae   : > { %1184 = vst.msk [vmem:[%s2489_s14 + $0x48] sm:$0xf] %vm1165_vm1, %v1527_v14  ;;  %1216 = vst.msk [vmem:[%s2489_s14 + $0xc8] sm:$0xf] %vm1165_vm1, %v1559_v15  ;;  %v1528_v24 = vpack.c.bf16 %v730_v16, %v730_v16  ;;  %v1560_v25 = vpack.c.bf16 %v858_v17, %v858_v17 }
 0x1af   : > { %1182 = vst.msk [vmem:[%s2489_s14 + $0x40] sm:$0xf] %vm1165_vm1, %v1525_v20  ;;  %1214 = vst.msk [vmem:[%s2489_s14 + $0xc0] sm:$0xf] %vm1165_vm1, %v1557_v21  ;;  %v1526_v26 = vpack.c.bf16 %v722_v22, %v722_v22  ;;  %v1558_v27 = vpack.c.bf16 %v850_v23, %v850_v23 }
 0x1b0   : > { %1185 = vst.msk [vmem:[%s2489_s14 + $0x4c] sm:$0xf] %vm1165_vm1, %v1528_v24  ;;  %1217 = vst.msk [vmem:[%s2489_s14 + $0xcc] sm:$0xf] %vm1165_vm1, %v1560_v25 }
 0x1b1   : > { %1183 = vst.msk [vmem:[%s2489_s14 + $0x44] sm:$0xf] %vm1165_vm1, %v1526_v26  ;;  %1215 = vst.msk [vmem:[%s2489_s14 + $0xc4] sm:$0xf] %vm1165_vm1, %v1558_v27  ;;  %v1634_v28 = vpop.f32.mrb[20].mxu0  ;;  %v1666_v29 = vpop.f32.mrb[20].mxu1 }
 0x1b2   : > { %v743_v30 = vadd.f32 %v1634_v28, %v2477_v34  ;;  %v871_v31 = vadd.f32 %v1666_v29, %v2477_v34  ;;  %v734_v32 = vpop.f32.mrb[21].mxu0  ;;  %v862_v33 = vpop.f32.mrb[21].mxu1 }
 0x1b3   : > { %v735_v35 = vadd.f32 %v2477_v34, %v734_v32  ;;  %v863_v36 = vadd.f32 %v2477_v34, %v862_v33  ;;  %v1635_v37 = vpop.f32.mrb[22].mxu0  ;;  %v1667_v38 = vpop.f32.mrb[22].mxu1 }
 0x1b4   : > { %v1531_v39 = vpack.c.bf16 %v743_v30, %v743_v30  ;;  %v1563_v40 = vpack.c.bf16 %v871_v31, %v871_v31  ;;  %v746_v41 = vadd.f32 %v1635_v37, %v2477_v34  ;;  %v874_v42 = vadd.f32 %v1667_v38, %v2477_v34  ;;  %v737_v43 = vpop.f32.mrb[23].mxu0  ;;  %v865_v44 = vpop.f32.mrb[23].mxu1 }
 0x1b5   : > { %v1529_v45 = vpack.c.bf16 %v735_v35, %v735_v35  ;;  %v1561_v46 = vpack.c.bf16 %v863_v36, %v863_v36  ;;  %v738_v47 = vadd.f32 %v2477_v34, %v737_v43  ;;  %v866_v48 = vadd.f32 %v2477_v34, %v865_v44 }
 0x1b6   : > { %1188 = vst.msk [vmem:[%s2489_s14 + $0x58] sm:$0xf] %vm1165_vm1, %v1531_v39  ;;  %1220 = vst.msk [vmem:[%s2489_s14 + $0xd8] sm:$0xf] %vm1165_vm1, %v1563_v40  ;;  %v1532_v49 = vpack.c.bf16 %v746_v41, %v746_v41  ;;  %v1564_v50 = vpack.c.bf16 %v874_v42, %v874_v42 }
 0x1b7   : > { %1186 = vst.msk [vmem:[%s2489_s14 + $0x50] sm:$0xf] %vm1165_vm1, %v1529_v45  ;;  %1218 = vst.msk [vmem:[%s2489_s14 + $0xd0] sm:$0xf] %vm1165_vm1, %v1561_v46  ;;  %v1530_v51 = vpack.c.bf16 %v738_v47, %v738_v47  ;;  %v1562_v52 = vpack.c.bf16 %v866_v48, %v866_v48 }
 0x1b8   : > { %1189 = vst.msk [vmem:[%s2489_s14 + $0x5c] sm:$0xf] %vm1165_vm1, %v1532_v49  ;;  %1221 = vst.msk [vmem:[%s2489_s14 + $0xdc] sm:$0xf] %vm1165_vm1, %v1564_v50 }
 0x1b9   : > { %1187 = vst.msk [vmem:[%s2489_s14 + $0x54] sm:$0xf] %vm1165_vm1, %v1530_v51  ;;  %1219 = vst.msk [vmem:[%s2489_s14 + $0xd4] sm:$0xf] %vm1165_vm1, %v1562_v52  ;;  %v1638_v53 = vpop.f32.mrb[24].mxu0  ;;  %v1670_v54 = vpop.f32.mrb[24].mxu1 }
 0x1ba   : > { %v759_v55 = vadd.f32 %v1638_v53, %v2477_v34  ;;  %v887_v56 = vadd.f32 %v1670_v54, %v2477_v34  ;;  %v750_v57 = vpop.f32.mrb[25].mxu0  ;;  %v878_v58 = vpop.f32.mrb[25].mxu1 }
 0x1bb   : > { %v751_v59 = vadd.f32 %v2477_v34, %v750_v57  ;;  %v879_v60 = vadd.f32 %v2477_v34, %v878_v58  ;;  %v1639_v61 = vpop.f32.mrb[26].mxu0  ;;  %v1671_v62 = vpop.f32.mrb[26].mxu1 }
 0x1bc   : > { %v1535_v63 = vpack.c.bf16 %v759_v55, %v759_v55  ;;  %v1567_v0 = vpack.c.bf16 %v887_v56, %v887_v56  ;;  %v762_v1 = vadd.f32 %v1639_v61, %v2477_v34  ;;  %v890_v2 = vadd.f32 %v1671_v62, %v2477_v34  ;;  %v753_v3 = vpop.f32.mrb[27].mxu0  ;;  %v881_v4 = vpop.f32.mrb[27].mxu1 }
 0x1bd   : > { %v1533_v5 = vpack.c.bf16 %v751_v59, %v751_v59  ;;  %v1565_v6 = vpack.c.bf16 %v879_v60, %v879_v60  ;;  %v754_v7 = vadd.f32 %v2477_v34, %v753_v3  ;;  %v882_v8 = vadd.f32 %v2477_v34, %v881_v4 }
 0x1be   : > { %1192 = vst.msk [vmem:[%s2489_s14 + $0x68] sm:$0xf] %vm1165_vm1, %v1535_v63  ;;  %1224 = vst.msk [vmem:[%s2489_s14 + $0xe8] sm:$0xf] %vm1165_vm1, %v1567_v0  ;;  %v1536_v9 = vpack.c.bf16 %v762_v1, %v762_v1  ;;  %v1568_v10 = vpack.c.bf16 %v890_v2, %v890_v2 }
 0x1bf   : > { %1190 = vst.msk [vmem:[%s2489_s14 + $0x60] sm:$0xf] %vm1165_vm1, %v1533_v5  ;;  %1222 = vst.msk [vmem:[%s2489_s14 + $0xe0] sm:$0xf] %vm1165_vm1, %v1565_v6  ;;  %v1534_v11 = vpack.c.bf16 %v754_v7, %v754_v7  ;;  %v1566_v12 = vpack.c.bf16 %v882_v8, %v882_v8 }
 0x1c0   : > { %1193 = vst.msk [vmem:[%s2489_s14 + $0x6c] sm:$0xf] %vm1165_vm1, %v1536_v9  ;;  %1225 = vst.msk [vmem:[%s2489_s14 + $0xec] sm:$0xf] %vm1165_vm1, %v1568_v10 }
 0x1c1   : > { %1191 = vst.msk [vmem:[%s2489_s14 + $0x64] sm:$0xf] %vm1165_vm1, %v1534_v11  ;;  %1223 = vst.msk [vmem:[%s2489_s14 + $0xe4] sm:$0xf] %vm1165_vm1, %v1566_v12  ;;  %v1642_v13 = vpop.f32.mrb[28].mxu0  ;;  %v1674_v14 = vpop.f32.mrb[28].mxu1 }
 0x1c2   : > { %v775_v15 = vadd.f32 %v1642_v13, %v2477_v34  ;;  %v903_v16 = vadd.f32 %v1674_v14, %v2477_v34  ;;  %v766_v17 = vpop.f32.mrb[29].mxu0  ;;  %v894_v18 = vpop.f32.mrb[29].mxu1 }
 0x1c3   : > { %v767_v19 = vadd.f32 %v2477_v34, %v766_v17  ;;  %v895_v20 = vadd.f32 %v2477_v34, %v894_v18  ;;  %v1643_v21 = vpop.f32.mrb[30].mxu0  ;;  %v1675_v22 = vpop.f32.mrb[30].mxu1 }
 0x1c4   : > { %v1539_v23 = vpack.c.bf16 %v775_v15, %v775_v15  ;;  %v1571_v24 = vpack.c.bf16 %v903_v16, %v903_v16  ;;  %v778_v25 = vadd.f32 %v1643_v21, %v2477_v34  ;;  %v906_v26 = vadd.f32 %v1675_v22, %v2477_v34  ;;  %v769_v27 = vpop.f32.mrb[31].mxu0  ;;  %v897_v28 = vpop.f32.mrb[31].mxu1 }
 0x1c5   : > { %v1537_v29 = vpack.c.bf16 %v767_v19, %v767_v19  ;;  %v1569_v30 = vpack.c.bf16 %v895_v20, %v895_v20  ;;  %v770_v31 = vadd.f32 %v2477_v34, %v769_v27  ;;  %v898_v32 = vadd.f32 %v2477_v34, %v897_v28 }
 0x1c6   : > { %1196 = vst.msk [vmem:[%s2489_s14 + $0x78] sm:$0xf] %vm1165_vm1, %v1539_v23  ;;  %1228 = vst.msk [vmem:[%s2489_s14 + $0xf8] sm:$0xf] %vm1165_vm1, %v1571_v24  ;;  %v1540_v33 = vpack.c.bf16 %v778_v25, %v778_v25  ;;  %v1572_v35 = vpack.c.bf16 %v906_v26, %v906_v26 }
 0x1c7   : > { %1194 = vst.msk [vmem:[%s2489_s14 + $0x70] sm:$0xf] %vm1165_vm1, %v1537_v29  ;;  %1226 = vst.msk [vmem:[%s2489_s14 + $0xf0] sm:$0xf] %vm1165_vm1, %v1569_v30  ;;  %v1538_v34 = vpack.c.bf16 %v770_v31, %v770_v31  ;;  %v1570_v36 = vpack.c.bf16 %v898_v32, %v898_v32 }
 0x1c8   : > { %1197 = vst.msk [vmem:[%s2489_s14 + $0x7c] sm:$0xf] %vm1165_vm1, %v1540_v33  ;;  %1229 = vst.msk [vmem:[%s2489_s14 + $0xfc] sm:$0xf] %vm1165_vm1, %v1572_v35 }
 0x1c9   : > { %1195 = vst.msk [vmem:[%s2489_s14 + $0x74] sm:$0xf] %vm1165_vm1, %v1538_v34  ;;  %1227 = vst.msk [vmem:[%s2489_s14 + $0xf4] sm:$0xf] %vm1165_vm1, %v1570_v36 }
 0x1ca   : > { %1944 = shalt.err (!%p1941_p6)
}
 0x1cb   : > { %s1945_s16 = scalar_lea.hbm %s2668_s12, 4096  ;;  %s1949_s22 = scalar_lea.hbm %s2747_s4, 16384 }
 0x1cc   : > { %p1946_p8 = scmp.ne.s32.totalorder %s2668_s12, %s1945_s16  ;;  %p1950_p11 = scmp.lt.u32.totalorder %s2668_s12, %s2747_s4 }
 0x1cd   : > { %p1951_p13 = scmp.lt.u32.totalorder %s1949_s22, %s1945_s16  ;;  %p1953_p2 = scmp.lt.u32.totalorder %s1945_s16, %s2668_s12 }
 0x1ce   : > { %p1947_p4 = pnand %p1946_p8, %p2791_p5 }
 0x1cf   : > { %p1952_p3 = por %p1951_p13, %p1950_p11 }
 0x1d0   : > { %p1948_p7 = pneg %p1947_p4 }
 0x1d1   : > { %p1954_p1 = por %p1953_p2, %p1952_p3 }
 0x1d3   : > { %p1955_p12 = pnand %p1954_p1, %p1948_p7 }
 0x1d5   : > { %1958 = shalt.err (!%p1955_p12)
}
 0x1d6   : > { %s2064_s1 = smov 64   ;;  %s2065_s21 = smov 4  }
 0x1d7   : > { %1690 = dma.vmem_to_hbm [thread:$0]  (%p2791_p5), %s2670_s23, 4096, %s2668_s12, %s1231_s20, %s2064_s1, %s2064_s1, %s2065_s21  }
 0x1d8 PF: > { %p1711_p10 = scmp.ge.s32.totalorder %s2055_s7, 2  ;;  %s1259_s14 = sand.u32 1, %s2043_s30  }
 0x1d9   : > { %p2792_p9 = scmp.ne.s32.totalorder %s2774_s24, 0  ;;  %s1260_s15 = scalar_lea.sflag [#allocation6], %s1259_s14 }
 0x1db   : > { %p1707_p0 = pnand %p1711_p10, %p2792_p9 }
 0x1dd   : > { %2014 = dma.done.wait (!%p1707_p0), %s1260_s15, 4096  }
 0x1de   : > { %2016 = vsyncadd (!%p1707_p0), %s1260_s15, 4294963200  ;;  %s2793_s8 = sld [smem:[#allocation24_spill]]  ;;  %s2794_s13 = sld [smem:[#allocation20_spill]] }
 0x1df   : > { %s2795_s0 = sld [smem:[#allocation22_spill]]  ;;  %s2796_s19 = sld [smem:[#allocation21_spill]] }
 0x1e0   : > { %s2797_s6 = sld [smem:[#allocation23_spill]]  ;;  %p24_p5 = scmp.ge.s32.totalorder %s2155_s9, 6  }
 0x1e1   : > { %s2798_s25 = smov %s2023_s26  ;;  %s2799_s26 = smov %s2027_s27 }
 0x1e2   : > { %s2801_s28 = smov %s2035_s29  ;;  %s2803_s30 = smov %s2047_s5 }
 0x1e3   : > { %s2805_s7 = smov %s2155_s9  ;;  %26 = sbr.rel (!%p24_p5) target bundleno = 23 (0x17), region = 101 }
 0x1e4   : > { %s2800_s27 = smov %s2793_s8  ;;  %s2802_s29 = smov %s2794_s13 }
 0x1e5   : > { %s2804_s5 = smov %s2796_s19 }
 0x1ea   :  { %1265 = vsyncpa [#allocation5], 1 }
 0x1eb   :  { %1267 = vsyncpa [#allocation5 + $0x1], 1 }
 0x1ec   :  { %1268 = vsyncpa [#allocation8], 1 }
 0x1ed   :  { %1270 = vsyncpa [#allocation8 + $0x1], 1 }
 0x1ee   :  { %1271 = vsyncpa [#allocation6], 1 }
 0x1ef   :  { %1273 = vsyncpa [#allocation6 + $0x1], 1 }

// kernel: hgt_forward.9
= control target key start
LH: loop header
LB: loop body
LE: loop exit
PB: predicated region body
PF: predicated region fallthrough
CT: control target
= control target key end

     0   :  { %s4590_s0 = inlined_call_operand.hbm [shape: s32[3], index: 0, kind: input, shape index: {}]   ;;  %s4591_s1 = inlined_call_operand.hbm [shape: bf16[1536,96], index: 1, kind: input, shape index: {}]   ;;  %s4592_s2 = inlined_call_operand.hbm [shape: bf16[2,32,32], index: 2, kind: input, shape index: {}]   ;;  %s4593_s3 = inlined_call_operand.hbm [shape: bf16[2,32,32], index: 3, kind: input, shape index: {}]   ;;  %s4594_s4 = inlined_call_operand.hbm [shape: bf16[32,128], index: 4, kind: input, shape index: {}]   ;;  %s4595_s5 = inlined_call_operand.hbm [shape: f32[1536,128], index: 5, kind: output, shape index: {0}]   ;;  %s4596_s6 = inlined_call_operand.hbm [shape: f32[1536,32], index: 6, kind: output, shape index: {1}]  }
   0x1   :  { %4613 = sst [smem:[#allocation32_spill]] %s4591_s1  ;;  %s3082_s23 = scalar_lea.hbm %s4590_s0, 16 }
   0x2   :  { %4614 = sst [smem:[#allocation33_spill]] %s4592_s2  ;;  %p3083_p0 = scmp.ne.s32.totalorder %s4590_s0, %s3082_s23 }
   0x3   :  { %4615 = sst [smem:[#allocation34_spill]] %s4594_s4  ;;  %p3086_p1 = scmp.lt.u32.totalorder %s3082_s23, %s4590_s0 }
   0x5   :  { %p3088_p2 = pnand %p3086_p1, %p3083_p0 }
   0x7   :  { %3091 = shalt.err (!%p3088_p2)  }
   0x8   :  { %s3372_s28 = smov [#allocation3]  }
   0x9   :  { %13 = dma.hbm_to_smem %s4590_s0, 16, %s3372_s28, [#allocation2] }
   0xa   :  { %3306 = dma.done.wait [#allocation2], 16 }
   0xb   :  { %3307 = vsyncadd [#allocation2], 4294967280 }
   0xc   :  { %15 = sfence }
   0xd   :  { %16 = vsyncpa [#allocation5], 0 }
   0xe   :  { %18 = vsyncpa [#allocation5 + $0x1], 0 }
   0xf   :  { %19 = vsyncpa [#allocation8], 0 }
  0x10   :  { %21 = vsyncpa [#allocation8 + $0x1], 0 }
  0x11   :  { %22 = vsyncpa [#allocation11], 0 }
  0x12   :  { %23 = vsyncpa [#allocation6], 0 }
  0x13   :  { %25 = vsyncpa [#allocation6 + $0x1], 0 }
  0x14   :  { %26 = vsyncpa [#allocation14], 0 }
  0x15   :  { %28 = vsyncpa [#allocation14 + $0x1], 0  ;;  %s3432_s7 = smov 0   ;;  %s3434_s8 = smov 0  }
  0x16   :  { %s3436_s9 = smov 0   ;;  %s3438_s10 = smov 0  }
  0x17   :  { %s3440_s0 = smov 0   ;;  %s3442_s11 = smov 0  }
  0x18   :  { %s3444_s12 = smov 0   ;;  %s3446_s13 = smov 0  }
  0x19   :  { %s3448_s14 = smov 0   ;;  %s3450_s15 = smov 0  }
  0x1a LB: > { %4616 = sst [smem:[#allocation26_spill]] %s3354_s11  ;;  %s3483_s16 = sadd.s32 1, %s3370_s15   ;;  %s3370_s15 = sphi %s3450_s15, %s4656_s15   ;;  %s3366_s14 = sphi %s3448_s14, %s4660_s14   ;;  %s3362_s13 = sphi %s3446_s13, %s4667_s13   ;;  %s3358_s12 = sphi %s3444_s12, %s4666_s12   ;;  %s3354_s11 = sphi %s3442_s11, %s4658_s11   ;;  %s3350_s0 = sphi %s3440_s0, %s4665_s0   ;;  %s3346_s10 = sphi %s3438_s10, %s4664_s10   ;;  %s3342_s9 = sphi %s3436_s9, %s4663_s9   ;;  %s3338_s8 = sphi %s3434_s8, %s4662_s8   ;;  %s3334_s7 = sphi %s3432_s7, %s4661_s7  }
  0x1b   : > { %4617 = sst [smem:[#allocation27_spill]] %s3366_s14  ;;  %p4598_p3 = scmp.eq.s32.totalorder %s3370_s15, 0 }
  0x1c   : > { %4618 = sst [smem:[#allocation28_spill]] %s3483_s16  ;;  %s69_s19 = sadd.s32 1, %s3354_s11 }
  0x1d   : > { %s64_s17 = sld [smem:[#allocation3 + %s3370_s15]]  ;;  %p76_p4 = scmp.ne.s32.totalorder %s3354_s11, %s3350_s0 }
  0x1e   : > { %s65_s18 = sld [smem:[#allocation3 + %s3483_s16]]  ;;  %p82_p5 = scmp.ne.s32.totalorder %s3350_s0, %s3346_s10 }
  0x1f   : > { %p78_p6 = por %p76_p4, %p4598_p3  ;;  %p4597_p7 = scmp.lt.s32.totalorder %s3370_s15, 3 }
  0x20   : > { %s241_s20 = sand.u32 1, %s3370_s15   ;;  %s243_s21 = sand.u32 1, %s3354_s11  }
  0x21   : > { %s2407_s23 = sshll.u32 %s243_s21, 4  ;;  %p3500_p9 = pnand %p4597_p7, %p78_p6 }
  0x22   : > { %s2880_s26 = scalar_select %p78_p6, [#allocation3], [#allocation15] }
  0x23   : > { %s2881_s27 = scalar_select %p78_p6, %s3370_s15, 0 }
  0x24   : > { %s66_s22 = ssub.s32 %s64_s17, %s65_s18  ;;  %s4669_s26 = smov (!%p4597_p7, %s2880_s26), [#allocation17] }
  0x25   : > { %p67_p8 = scmp.eq.s32.totalorder %s66_s22, 0  ;;  %s4671_s27 = smov (!%p4597_p7, %s2881_s27), 0 }
  0x26   : > { %s245_s28 = scalar_lea.vmem [#allocation7], %s2407_s23  ;;  %s246_s30 = sld [smem:[%s4669_s26 + %s4671_s27]] }
  0x27   : > { %s3505_s25 = scalar_select %p67_p8, %s3354_s11, %s69_s19  }
  0x28   : > { %s253_s29 = sshll.u32 %s245_s28, 4  ;;  %s3515_s17 = sadd.s32 4294967295, %s3370_s15   ;;  %s3512_s29 = int_to_ptr.vmem [resolvable:$true] %s253_s29 }
  0x29   : > { %4620 = sst [smem:[#allocation29_spill]] %s3505_s25  ;;  %p2401_p10 = scmp.ge.s32.totalorder %s3370_s15, 1 }
  0x2a   : > { %p4599_p11 = scmp.eq.s32.totalorder %s3515_s17, 0  ;;  %p194_p13 = scmp.lt.s32.totalorder %s3370_s15, 4 }
  0x2b   : > { %s3373_s21 = smov [#allocation10]   ;;  %s4623_s2 = sld [smem:[#allocation33_spill]] }
  0x2c   : > { %p3526_p0 = por %p82_p5, %p4599_p11  ;;  %p3530_p1 = pnand %p2401_p10, %p194_p13 }
  0x2d   : > { %s206_s22 = sshll.u32 %s3373_s21, 4  ;;  %s2563_s23 = sshll.u32 %s246_s30, 8  ;;  %s3534_s22 = int_to_ptr.vmem [resolvable:$true] %s206_s22 }
  0x2e   : > { %s4621_s18 = scalar_select %p3526_p0, 1, 0 }
  0x2f   : > { %s4622_s19 = scalar_select %p3530_p1, 1, 0 }
  0x30   : > { %s3543_s10 = scalar_lea.sflag [#allocation8], %s241_s20  ;;  %p3094_p5 = pneg %p3500_p9 }
  0x31   : > { %s3539_s28 = scalar_lea.hbm %s4623_s2, %s2563_s23  ;;  %s3097_s23 = scalar_lea.hbm %s4623_s2, 512 }
  0x32   : > { %s3092_s25 = scalar_lea.hbm %s3539_s28, 256  ;;  %p3098_p10 = scmp.lt.u32.totalorder %s3539_s28, %s4623_s2 }
  0x33   : > { %p3093_p4 = scmp.ne.s32.totalorder %s3539_s28, %s3092_s25  ;;  %p3099_p13 = scmp.lt.u32.totalorder %s3097_s23, %s3092_s25 }
  0x34   : > { %p3101_p12 = scmp.lt.u32.totalorder %s3092_s25, %s3539_s28 }
  0x35   : > { %p3095_p6 = pnand %p3094_p5, %p3093_p4  ;;  %p3100_p7 = por %p3099_p13, %p3098_p10 }
  0x37   : > { %p3096_p8 = pneg %p3095_p6  ;;  %p3102_p3 = por %p3101_p12, %p3100_p7 }
  0x39   : > { %p3103_p2 = pnand %p3102_p3, %p3096_p8 }
  0x3b   : > { %3106 = shalt.err (!%p3103_p2)
}
  0x3c   : > { %s3107_s20 = scalar_lea.vmem %s3512_s29, 256  ;;  %s3374_s30 = smov [#allocation7]  }
  0x3d   : > { %p3108_p4 = scmp.ne.s32.totalorder %s3512_s29, %s3107_s20  ;;  %s3112_s21 = sshll.u32 %s3374_s30, 4  ;;  %s3113_s21 = int_to_ptr.vmem [resolvable:$false] %s3112_s21 }
  0x3e   : > { %s3114_s26 = scalar_lea.vmem %s3113_s21, 512  ;;  %p3115_p0 = scmp.lt.s32.totalorder %s3512_s29, %s3113_s21 }
  0x3f   : > { %p3110_p6 = pnand %p3108_p4, %p3094_p5  ;;  %p3116_p10 = scmp.lt.s32.totalorder %s3114_s26, %s3107_s20 }
  0x41   : > { %p3111_p11 = pneg %p3110_p6  ;;  %p3117_p13 = por %p3116_p10, %p3115_p0 }
  0x43   : > { %p3118_p7 = pnand %p3117_p13, %p3111_p11 }
  0x45   : > { %3121 = shalt.err (!%p3118_p7)
}
  0x46   : > { %s4602_s25 = smov 64   ;;  %s4604_s23 = smov 4  }
  0x47   : > { %2907 = dma.hbm_to_vmem [thread:$0]  (!%p3500_p9), %s3539_s28, 256, %s3512_s29, %s3543_s10, %s4602_s25, %s4602_s25, %s4604_s23  }
  0x48   : > { %p4624_p3 = scmp.eq.s32.totalorder %s3515_s17, 0  ;;  %p4625_p12 = pneg %p3530_p1 }
  0x49   : > { %s4627_s4 = sld [smem:[#allocation34_spill]] }
  0x4a   : > { %p3579_p2 = pnand %p4625_p12, %p4624_p3 }
  0x4c   : > { %p3124_p0 = pneg %p3579_p2 }
  0x4f   : > { %s3122_s21 = scalar_lea.hbm %s4627_s4, 256 }
  0x50   : > { %p3123_p11 = scmp.ne.s32.totalorder %s4627_s4, %s3122_s21  ;;  %p3129_p8 = scmp.lt.u32.totalorder %s3122_s21, %s4627_s4 }
  0x52   : > { %p3125_p5 = pnand %p3124_p0, %p3123_p11 }
  0x54   : > { %p3126_p9 = pneg %p3125_p5 }
  0x56   : > { %p3131_p4 = pnand %p3129_p8, %p3126_p9 }
  0x58   : > { %3134 = shalt.err (!%p3131_p4)
}
  0x59   : > { %s3135_s28 = scalar_lea.vmem %s3534_s22, 256  ;;  %p3143_p7 = scmp.lt.s32.totalorder %s3534_s22, %s3534_s22 }
  0x5a   : > { %p3136_p6 = scmp.ne.s32.totalorder %s3534_s22, %s3135_s28  ;;  %p3144_p3 = scmp.lt.s32.totalorder %s3135_s28, %s3135_s28 }
  0x5c   : > { %p3138_p10 = pnand %p3136_p6, %p3124_p0  ;;  %p3145_p12 = por %p3144_p3, %p3143_p7 }
  0x5e   : > { %p3139_p13 = pneg %p3138_p10 }
  0x60   : > { %p3146_p1 = pnand %p3145_p12, %p3139_p13 }
  0x62   : > { %3149 = shalt.err (!%p3146_p1)
}
  0x63   : > { %2898 = dma.hbm_to_vmem [thread:$0]  (!%p3579_p2), %s4627_s4, 256, %s3534_s22, [#allocation11], %s4602_s25, %s4602_s25, %s4604_s23  }
  0x64   : > { %s2400_s27 = sadd.s32 4294967294, %s3370_s15   ;;  %s38_s30 = ssub.s32 %s3370_s15, %s3483_s16 }
  0x65   : > { %p39_p1 = scmp.eq.s32.totalorder %s38_s30, 0  ;;  %s41_s21 = sadd.s32 1, %s3366_s14 }
  0x66   : > { %p48_p11 = scmp.ne.s32.totalorder %s3366_s14, %s3362_s13  ;;  %p54_p0 = scmp.ne.s32.totalorder %s3362_s13, %s3358_s12 }
  0x67   : > { %s3616_s26 = scalar_select %p39_p1, %s3366_s14, %s41_s21  }
  0x68   : > { %p4629_p5 = scmp.eq.s32.totalorder %s3370_s15, 0  ;;  %p4630_p8 = scmp.eq.s32.totalorder %s3515_s17, 0 }
  0x69   : > { %4628 = sst [smem:[#allocation30_spill]] %s3616_s26  ;;  %p4632_p6 = scmp.eq.s32.totalorder %s3515_s17, 2 }
  0x6a   : > { %p50_p9 = por %p4629_p5, %p48_p11  ;;  %p3622_p4 = por %p4630_p8, %p54_p0 }
  0x6b   : > { %p3628_p10 = por %p4632_p6, %p48_p11  ;;  %p161_p2 = scmp.eq.s32.totalorder %s2400_s27, 2 }
  0x6c   : > { %s220_s22 = sand.u32 1, %s3366_s14   ;;  %s2562_s28 = sshll.u32 %s3370_s15, 12 }
  0x6d   : > { %s4633_s29 = scalar_select %p3628_p10, 1, 0 }
  0x6e   : > { %p3634_p13 = por %p161_p2, %p54_p0  ;;  %s2404_s20 = sshll.u32 %s220_s22, 8 }
  0x6f   : > { %s4636_s1 = sld [smem:[#allocation32_spill]]  ;;  %p4637_p7 = scmp.lt.s32.totalorder %s3370_s15, 3 }
  0x70   : > { %s4634_s2 = scalar_select %p3634_p13, 1, 0 }
  0x71   : > { %p3645_p3 = pnand %p4637_p7, %p50_p9  ;;  %s224_s27 = scalar_lea.vmem [#allocation4], %s2404_s20 }
  0x72   : > { %4635 = sst [smem:[#allocation31_spill]] %s4634_s2  ;;  %s231_s4 = sshll.u32 %s224_s27, 4  ;;  %s3649_s4 = int_to_ptr.vmem [resolvable:$true] %s231_s4 }
  0x73   : > { %s3651_s26 = scalar_lea.sflag [#allocation5], %s220_s22  ;;  %p3152_p1 = pneg %p3645_p3 }
  0x75   : > { %s3641_s25 = scalar_lea.hbm %s4636_s1, %s2562_s28  ;;  %s3155_s14 = scalar_lea.hbm %s4636_s1, 12288 }
  0x76   : > { %s3150_s30 = scalar_lea.hbm %s3641_s25, 4096  ;;  %p3156_p5 = scmp.lt.u32.totalorder %s3641_s25, %s4636_s1 }
  0x77   : > { %p3151_p12 = scmp.ne.s32.totalorder %s3641_s25, %s3150_s30  ;;  %p3157_p9 = scmp.lt.u32.totalorder %s3155_s14, %s3150_s30 }
  0x78   : > { %p3159_p6 = scmp.lt.u32.totalorder %s3150_s30, %s3641_s25 }
  0x79   : > { %p3153_p11 = pnand %p3152_p1, %p3151_p12  ;;  %p3158_p8 = por %p3157_p9, %p3156_p5 }
  0x7b   : > { %p3154_p0 = pneg %p3153_p11  ;;  %p3160_p2 = por %p3159_p6, %p3158_p8 }
  0x7d   : > { %p3161_p7 = pnand %p3160_p2, %p3154_p0 }
  0x7f   : > { %3164 = shalt.err (!%p3161_p7)
}
  0x80   : > { %s3165_s22 = scalar_lea.vmem %s3649_s4, 4096  ;;  %s3377_s20 = smov [#allocation4]  }
  0x81   : > { %p3166_p12 = scmp.ne.s32.totalorder %s3649_s4, %s3165_s22  ;;  %s3170_s27 = sshll.u32 %s3377_s20, 4  ;;  %s3171_s27 = int_to_ptr.vmem [resolvable:$false] %s3170_s27 }
  0x82   : > { %s3172_s11 = scalar_lea.vmem %s3171_s27, 8192  ;;  %p3173_p10 = scmp.lt.s32.totalorder %s3649_s4, %s3171_s27 }
  0x83   : > { %p3168_p11 = pnand %p3166_p12, %p3152_p1  ;;  %p3174_p5 = scmp.lt.s32.totalorder %s3172_s11, %s3165_s22 }
  0x85   : > { %p3169_p13 = pneg %p3168_p11  ;;  %p3175_p9 = por %p3174_p5, %p3173_p10 }
  0x87   : > { %p3176_p8 = pnand %p3175_p9, %p3169_p13 }
  0x89   : > { %3179 = shalt.err (!%p3176_p8)
}
  0x8a   : > { %s4639_s14 = smov 4   ;;  %s4640_s2 = smov 64  }
  0x8b   : > { %2902 = dma.hbm_to_vmem [thread:$0]  (!%p3645_p3), %s3641_s25, 4096, %s3649_s4, %s3651_s26, %s4640_s2, %s4640_s2, %s4639_s14  }
  0x8c   : > { %s92_s23 = sld [smem:[#allocation3 + %s3370_s15]]  ;;  %p104_p10 = scmp.ne.s32.totalorder %s3342_s9, %s3338_s8 }
  0x8d   : > { %s93_s30 = sld [smem:[#allocation3 + %s3483_s16]]  ;;  %p110_p13 = scmp.ne.s32.totalorder %s3338_s8, %s3334_s7 }
  0x8e   : > { %p4641_p1 = scmp.eq.s32.totalorder %s3515_s17, 0  ;;  %s265_s21 = sand.u32 1, %s3342_s9  }
  0x8f   : > { %p4643_p6 = scmp.eq.s32.totalorder %s3370_s15, 0  ;;  %s97_s22 = sadd.s32 1, %s3342_s9 }
  0x90   : > { %p3690_p0 = por %p110_p13, %p4641_p1  ;;  %s2410_s27 = sshll.u32 %s265_s21, 4 }
  0x91   : > { %p106_p2 = por %p104_p10, %p4643_p6  ;;  %p4644_p12 = scmp.lt.s32.totalorder %s3370_s15, 3 }
  0x92   : > { %s4642_s28 = scalar_select %p3690_p0, 1, 0 }
  0x93   : > { %s94_s20 = ssub.s32 %s92_s23, %s93_s30  ;;  %p3700_p3 = pnand %p4644_p12, %p106_p2 }
  0x94   : > { %p95_p7 = scmp.eq.s32.totalorder %s94_s20, 0  ;;  %p4646_p11 = pmov %p4644_p12 }
  0x95   : > { %s2883_s7 = scalar_select %p106_p2, [#allocation3], [#allocation16] }
  0x96   : > { %s3705_s25 = scalar_select %p95_p7, %s3342_s9, %s97_s22  }
  0x97   : > { %s2884_s26 = scalar_select %p106_p2, %s3370_s15, 0 }
  0x98   : > { %s4673_s7 = smov (!%p4646_p11, %s2883_s7), [#allocation18]  ;;  %p4647_p5 = pmov %p4646_p11 }
  0x99   : > { %s267_s1 = scalar_lea.vmem [#allocation9], %s2410_s27  ;;  %p3182_p8 = pneg %p3700_p3 }
  0x9a   : > { %s4675_s26 = smov (!%p4647_p5, %s2884_s26), 0  ;;  %s275_s23 = sshll.u32 %s267_s1, 4  ;;  %s3712_s23 = int_to_ptr.vmem [resolvable:$true] %s275_s23 }
  0x9b   : > { %s268_s11 = sld [smem:[%s4673_s7 + %s4675_s26]]  ;;  %s3185_s7 = scalar_lea.hbm %s4593_s3, 512 }
  0xa1   : > { %s2564_s30 = sshll.u32 %s268_s11, 8 }
  0xa2   : > { %s3717_s16 = scalar_lea.hbm %s4593_s3, %s2564_s30 }
  0xa3   : > { %s3180_s22 = scalar_lea.hbm %s3717_s16, 256  ;;  %p3186_p1 = scmp.lt.u32.totalorder %s3717_s16, %s4593_s3 }
  0xa4   : > { %p3181_p9 = scmp.ne.s32.totalorder %s3717_s16, %s3180_s22  ;;  %p3187_p6 = scmp.lt.u32.totalorder %s3185_s7, %s3180_s22 }
  0xa5   : > { %p3189_p7 = scmp.lt.u32.totalorder %s3180_s22, %s3717_s16 }
  0xa6   : > { %p3183_p10 = pnand %p3182_p8, %p3181_p9  ;;  %p3188_p2 = por %p3187_p6, %p3186_p1 }
  0xa8   : > { %p3184_p13 = pneg %p3183_p10  ;;  %p3190_p12 = por %p3189_p7, %p3188_p2 }
  0xaa   : > { %p3191_p11 = pnand %p3190_p12, %p3184_p13 }
  0xac   : > { %3194 = shalt.err (!%p3191_p11)
}
  0xad   : > { %s3195_s30 = scalar_lea.vmem %s3712_s23, 256  ;;  %s3378_s21 = smov [#allocation9]  }
  0xae   : > { %p3196_p5 = scmp.ne.s32.totalorder %s3712_s23, %s3195_s30  ;;  %s3200_s20 = sshll.u32 %s3378_s21, 4  ;;  %s3201_s20 = int_to_ptr.vmem [resolvable:$false] %s3200_s20 }
  0xaf   : > { %s3202_s1 = scalar_lea.vmem %s3201_s20, 512  ;;  %p3203_p0 = scmp.lt.s32.totalorder %s3712_s23, %s3201_s20 }
  0xb0   : > { %p3198_p9 = pnand %p3196_p5, %p3182_p8  ;;  %p3204_p1 = scmp.lt.s32.totalorder %s3202_s1, %s3195_s30 }
  0xb2   : > { %p3199_p10 = pneg %p3198_p9  ;;  %p3205_p6 = por %p3204_p1, %p3203_p0 }
  0xb4   : > { %p3206_p2 = pnand %p3205_p6, %p3199_p10 }
  0xb6   : > { %3209 = shalt.err (!%p3206_p2)
}
  0xb7   : > { %2912 = dma.hbm_to_vmem [thread:$0]  (!%p3700_p3), %s3717_s16, 256, %s3712_s23, %s3543_s10, %s4640_s2, %s4640_s2, %s4639_s14  }
  0xb8   : > { %p4648_p8 = scmp.ne.s32.totalorder %s4622_s19, 0 }
  0xb9   : > { %s3751_s22 = sand.u32 (!%p4648_p8), 1, %s3362_s13  }
  0xba   : > { %287 = sbr.rel (%p4648_p8) target bundleno = 895 (0x37f), region = 36  ;;  %s2414_s27 = sshll.u32 (!%p4648_p8), %s3751_s22, 8 }
  0xbb   : > { %s290_s7 = scalar_lea.sflag (!%p4648_p8), [#allocation5], %s3751_s22  ;;  %s3755_s26 = scalar_lea.vmem (!%p4648_p8), [#allocation4], %s2414_s27 }
  0xc1   : > { %3309 = dma.done.wait (%p3622_p4), %s290_s7, 4096  }
  0xc2   : > { %3311 = vsyncadd (%p3622_p4), %s290_s7, 4294963200  ;;  %s298_s16 = sand.u32 1, %s3515_s17   ;;  %s300_s19 = sand.u32 1, %s3350_s0  }
  0xc3   : > { %s3763_s10 = sshll.u32 %s300_s19, 4  ;;  %s299_s14 = scalar_lea.sflag [#allocation8], %s298_s16 }
  0xc4   : > { %s302_s2 = scalar_lea.vmem [#allocation7], %s3763_s10  ;;  %p4649_p0 = scmp.ne.s32.totalorder %s4621_s18, 0 }
  0xc6   : > { %3313 = dma.done.wait (%p4649_p0), %s299_s14, 256  }
  0xc7   : > { %3315 = vsyncadd (%p4649_p0), %s299_s14, 4294967040  ;;  %s309_s4 = sand.u32 1, %s3338_s8   ;;  %p4650_p4 = scmp.ne.s32.totalorder %s4642_s28, 0 }
  0xc8   : > { %s3771_s24 = sshll.u32 %s309_s4, 4 }
  0xc9   : > { %s311_s23 = scalar_lea.vmem [#allocation9], %s3771_s24 }
  0xca   : > { %3317 = dma.done.wait (%p4650_p4), %s299_s14, 256  }
  0xcb   : > { %3319 = vsyncadd (%p4650_p4), %s299_s14, 4294967040  ;;  %p4651_p3 = scmp.eq.s32.totalorder %s3515_s17, 0 }
  0xcd   : > { %3321 = dma.done.wait (%p4651_p3), [#allocation11], 256   ;;  %p4652_p13 = pmov %p4651_p3 }
  0xce   : > { %v3783_v0 = vld [vmem:[%s3755_s26] sm:$0xff]   ;;  %v3786_v1 = vld [vmem:[%s3755_s26 + $0x8] sm:$0xff]   ;;  %v3789_v2 = vld [vmem:[%s3755_s26 + $0x10] sm:$0xff]   ;;  %s3379_s18 = smov 96   ;;  %s3380_s28 = smov 64   ;;  %vm667_vm0 = vcmask 261120  }
  0xcf   : > { %3323 = vsyncadd (%p4652_p13), [#allocation11], 4294967040  ;;  %v3792_v3 = vld [vmem:[%s3755_s26 + $0x18] sm:$0xff]   ;;  %591 = vrot.lane.b32.xlu0 %v3783_v0, %s3379_s18  ;;  %595 = vrot.lane.b32.xlu1 %v3789_v2, %s3379_s18  ;;  %v3799_v4 = vld [vmem:[%s3755_s26 + $0x20] sm:$0xff]   ;;  %s2418_s11 = sshll.u32 %s3751_s22, 9  ;;  %s2565_s21 = sshll.u32 %s3515_s17, 13 }
  0xd0   : > { %v3802_v5 = vld [vmem:[%s3755_s26 + $0x28] sm:$0xff]   ;;  %v3809_v6 = vld [vmem:[%s3755_s26 + $0x30] sm:$0xff]   ;;  %v3812_v7 = vld [vmem:[%s3755_s26 + $0x38] sm:$0xff]   ;;  %s4264_s30 = scalar_lea.vmem [#allocation13], %s2418_s11  ;;  %s4418_s27 = scalar_lea.hbm %s4596_s6, %s2565_s21 }
  0xd1   : > { %v3040_v8 = vld [vmem:[%s302_s2] sm:$0xff]   ;;  %v3822_v10 = vld [vmem:[%s3755_s26 + $0x48] sm:$0xff]   ;;  %v3832_v13 = vld [vmem:[%s3755_s26 + $0x58] sm:$0xff]   ;;  %s2242_s7 = sshll.u32 %s4264_s30, 4  ;;  %s2213_s16 = scalar_lea.sflag [#allocation14], %s3751_s22  ;;  %s4421_s7 = int_to_ptr.vmem [resolvable:$true] %s2242_s7 }
  0xd2   : > { %v3819_v9 = vld [vmem:[%s3755_s26 + $0x40] sm:$0xff]   ;;  %2669 = vmatprep.subr.bf16.mxu0 %v3040_v8  ;;  %v3043_v11 = vld [vmem:[%s302_s2 + $0x8] sm:$0xff]   ;;  %2873 = vmatprep.subr.bf16.mxu1 %v3040_v8  ;;  %v3829_v12 = vld [vmem:[%s3755_s26 + $0x50] sm:$0xff]   ;;  %s3210_s19 = scalar_lea.vmem %s4421_s7, 8192  ;;  %p4653_p12 = scmp.ne.s32.totalorder %s4633_s29, 0 }
  0xd3   : > { %593 = vrot.lane.b32.xlu0 %v3786_v1, %s3379_s18  ;;  %597 = vrot.lane.b32.xlu1 %v3792_v3, %s3379_s18  ;;  %v3839_v14 = vld [vmem:[%s3755_s26 + $0x60] sm:$0xff]   ;;  %v3842_v15 = vld [vmem:[%s3755_s26 + $0x68] sm:$0xff]   ;;  %p3211_p7 = scmp.ne.s32.totalorder %s4421_s7, %s3210_s19  ;;  %s3381_s10 = smov [#allocation13]  }
  0xd4   : > { %2670 = vmatpush3.bf16.msra.mxu0 %v3040_v8  ;;  %2875 = vmatpush3.bf16.msra.mxu1 %v3040_v8  ;;  %v3849_v16 = vld [vmem:[%s3755_s26 + $0x70] sm:$0xff]   ;;  %v3852_v17 = vld [vmem:[%s3755_s26 + $0x78] sm:$0xff]   ;;  %v3859_v18 = vld [vmem:[%s3755_s26 + $0x80] sm:$0xff]   ;;  %s3214_s14 = sshll.u32 %s3381_s10, 4  ;;  %s3215_s14 = int_to_ptr.vmem [resolvable:$false] %s3214_s14 }
  0xd5   : > { %2671 = vmatprep.subr.bf16.mxu0 %v3043_v11  ;;  %2874 = vmatprep.subr.bf16.mxu1 %v3043_v11  ;;  %v3862_v19 = vld [vmem:[%s3755_s26 + $0x88] sm:$0xff]   ;;  %v3869_v20 = vld [vmem:[%s3755_s26 + $0x90] sm:$0xff]   ;;  %v3872_v21 = vld [vmem:[%s3755_s26 + $0x98] sm:$0xff]   ;;  %p3212_p11 = pnand %p3211_p7, %p4653_p12  ;;  %s3216_s2 = scalar_lea.vmem %s3215_s14, 16384 }
  0xd6   : > { %v3879_v22 = vld [vmem:[%s3755_s26 + $0xa0] sm:$0xff]   ;;  %v3882_v23 = vld [vmem:[%s3755_s26 + $0xa8] sm:$0xff]   ;;  %v3889_v24 = vld [vmem:[%s3755_s26 + $0xb0] sm:$0xff]   ;;  %p3217_p9 = scmp.lt.s32.totalorder %s4421_s7, %s3215_s14  ;;  %p3218_p10 = scmp.lt.s32.totalorder %s3216_s2, %s3210_s19 }
  0xd7   : > { %599 = vrot.lane.b32.xlu0 %v3799_v4, %s3379_s18  ;;  %601 = vrot.lane.b32.xlu1 %v3802_v5, %s3379_s18  ;;  %v3892_v25 = vld [vmem:[%s3755_s26 + $0xb8] sm:$0xff]   ;;  %v3899_v26 = vld [vmem:[%s3755_s26 + $0xc0] sm:$0xff]   ;;  %v3049_v38 = vld [vmem:[#allocation10 + $0x8] sm:$0xff]   ;;  %p3213_p5 = pneg %p3212_p11 }
  0xd8   : > { %2672 = vmatpush3.bf16.msra.mxu0 %v3043_v11  ;;  %2876 = vmatpush3.bf16.msra.mxu1 %v3043_v11  ;;  %v3902_v27 = vld [vmem:[%s3755_s26 + $0xc8] sm:$0xff]   ;;  %v3909_v28 = vld [vmem:[%s3755_s26 + $0xd0] sm:$0xff]   ;;  %v3912_v29 = vld [vmem:[%s3755_s26 + $0xd8] sm:$0xff]   ;;  %p3219_p1 = por %p3218_p10, %p3217_p9 }
  0xd9   : > { %v3919_v30 = vld [vmem:[%s3755_s26 + $0xe0] sm:$0xff]   ;;  %v3922_v31 = vld [vmem:[%s3755_s26 + $0xe8] sm:$0xff]   ;;  %v3929_v32 = vld [vmem:[%s3755_s26 + $0xf0] sm:$0xff]  }
  0xda   : > { %v3932_v33 = vld [vmem:[%s3755_s26 + $0xf8] sm:$0xff]   ;;  %v3960_v34 = vld [vmem:[%s311_s23] sm:$0xff]   ;;  %s4425_s26 = scalar_lea.vmem [#allocation12], %s2418_s11  ;;  %p3220_p6 = pnand %p3219_p1, %p3213_p5 }
  0xdb   : > { %603 = vrot.lane.b32.xlu0 %v3809_v6, %s3379_s18  ;;  %605 = vrot.lane.b32.xlu1 %v3812_v7, %s3379_s18  ;;  %v3047_v35 = vld [vmem:[#allocation10] sm:$0xff]   ;;  %v3048_v55 = vld [vmem:[%s311_s23 + $0x8] sm:$0xff]  }
  0xdc   : > { %2737 = vmatprep.subr.bf16.mxu1 %v3960_v34  ;;  %2805 = vmatprep.subr.bf16.mxu0 %v3047_v35 }
  0xdf   : > { %607 = vrot.lane.b32.xlu0 %v3819_v9, %s3379_s18  ;;  %609 = vrot.lane.b32.xlu1 %v3822_v10, %s3379_s18 }
  0xe3   : > { %611 = vrot.lane.b32.xlu0 %v3829_v12, %s3379_s18  ;;  %613 = vrot.lane.b32.xlu1 %v3832_v13, %s3379_s18 }
  0xe7   : > { %615 = vrot.lane.b32.xlu0 %v3839_v14, %s3379_s18  ;;  %617 = vrot.lane.b32.xlu1 %v3842_v15, %s3379_s18 }
  0xeb   : > { %619 = vrot.lane.b32.xlu0 %v3849_v16, %s3379_s18  ;;  %621 = vrot.lane.b32.xlu1 %v3852_v17, %s3379_s18 }
  0xef   : > { %623 = vrot.lane.b32.xlu0 %v3859_v18, %s3379_s18  ;;  %625 = vrot.lane.b32.xlu1 %v3862_v19, %s3379_s18 }
  0xf3   : > { %627 = vrot.lane.b32.xlu0 %v3869_v20, %s3379_s18  ;;  %629 = vrot.lane.b32.xlu1 %v3872_v21, %s3379_s18 }
  0xf7   : > { %631 = vrot.lane.b32.xlu0 %v3879_v22, %s3379_s18  ;;  %633 = vrot.lane.b32.xlu1 %v3882_v23, %s3379_s18 }
  0xfb   : > { %635 = vrot.lane.b32.xlu0 %v3889_v24, %s3379_s18  ;;  %637 = vrot.lane.b32.xlu1 %v3892_v25, %s3379_s18 }
  0xff   : > { %639 = vrot.lane.b32.xlu0 %v3899_v26, %s3379_s18  ;;  %641 = vrot.lane.b32.xlu1 %v3902_v27, %s3379_s18 }
 0x103   : > { %643 = vrot.lane.b32.xlu0 %v3909_v28, %s3379_s18  ;;  %645 = vrot.lane.b32.xlu1 %v3912_v29, %s3379_s18 }
 0x107   : > { %647 = vrot.lane.b32.xlu0 %v3919_v30, %s3379_s18  ;;  %649 = vrot.lane.b32.xlu1 %v3922_v31, %s3379_s18 }
 0x10b   : > { %651 = vrot.lane.b32.xlu0 %v3929_v32, %s3379_s18  ;;  %653 = vrot.lane.b32.xlu1 %v3932_v33, %s3379_s18 }
 0x10f   : > { %1057 = vrot.lane.b32.xlu0 %v3783_v0, %s3380_s28  ;;  %1059 = vrot.lane.b32.xlu1 %v3786_v1, %s3380_s28 }
 0x113   : > { %1061 = vrot.lane.b32.xlu0 %v3789_v2, %s3380_s28  ;;  %1063 = vrot.lane.b32.xlu1 %v3792_v3, %s3380_s28 }
 0x117   : > { %1065 = vrot.lane.b32.xlu0 %v3799_v4, %s3380_s28  ;;  %1067 = vrot.lane.b32.xlu1 %v3802_v5, %s3380_s28 }
 0x11b   : > { %1069 = vrot.lane.b32.xlu0 %v3809_v6, %s3380_s28  ;;  %1071 = vrot.lane.b32.xlu1 %v3812_v7, %s3380_s28 }
 0x11f   : > { %1073 = vrot.lane.b32.xlu0 %v3819_v9, %s3380_s28  ;;  %1075 = vrot.lane.b32.xlu1 %v3822_v10, %s3380_s28 }
 0x123   : > { %1077 = vrot.lane.b32.xlu0 %v3829_v12, %s3380_s28  ;;  %1079 = vrot.lane.b32.xlu1 %v3832_v13, %s3380_s28 }
 0x127   : > { %1081 = vrot.lane.b32.xlu0 %v3839_v14, %s3380_s28  ;;  %1083 = vrot.lane.b32.xlu1 %v3842_v15, %s3380_s28 }
 0x12b   : > { %1085 = vrot.lane.b32.xlu0 %v3849_v16, %s3380_s28  ;;  %1087 = vrot.lane.b32.xlu1 %v3852_v17, %s3380_s28 }
 0x12f   : > { %1089 = vrot.lane.b32.xlu0 %v3859_v18, %s3380_s28  ;;  %1091 = vrot.lane.b32.xlu1 %v3862_v19, %s3380_s28 }
 0x133   : > { %1093 = vrot.lane.b32.xlu0 %v3869_v20, %s3380_s28  ;;  %1095 = vrot.lane.b32.xlu1 %v3872_v21, %s3380_s28 }
 0x137   : > { %1097 = vrot.lane.b32.xlu0 %v3879_v22, %s3380_s28  ;;  %1099 = vrot.lane.b32.xlu1 %v3882_v23, %s3380_s28 }
 0x13b   : > { %1101 = vrot.lane.b32.xlu0 %v3889_v24, %s3380_s28  ;;  %1103 = vrot.lane.b32.xlu1 %v3892_v25, %s3380_s28 }
 0x13f   : > { %1105 = vrot.lane.b32.xlu0 %v3899_v26, %s3380_s28  ;;  %1107 = vrot.lane.b32.xlu1 %v3902_v27, %s3380_s28 }
 0x141   : > { %v592_v36 = vpop.permute.xlu0 %591  ;;  %v596_v37 = vpop.permute.xlu1 %595 }
 0x142   : > { %2673 = vmatprep.mubr.msk.bf16.mxu0 %vm667_vm0, %v592_v36 }
 0x143   : > { %1109 = vrot.lane.b32.xlu0 %v3909_v28, %s3380_s28  ;;  %1111 = vrot.lane.b32.xlu1 %v3912_v29, %s3380_s28 }
 0x145   : > { %v594_v39 = vpop.permute.xlu0 %593  ;;  %v598_v40 = vpop.permute.xlu1 %597 }
 0x146   : > { %2674 = vmatmul.mubr.msk.bf16.vlgmr.msra.gmra.mrb[0].mxu0 %vm667_vm0, %v594_v39 }
 0x147   : > { %2677 = vmatprep.mubr.msk.bf16.mxu0 %vm667_vm0, %v596_v37  ;;  %2806 = vmatpush3.bf16.msra.mxu0 %v3047_v35 }
 0x148   : > { %2807 = vmatprep.subr.bf16.mxu0 %v3049_v38  ;;  %1113 = vrot.lane.b32.xlu0 %v3919_v30, %s3380_s28 }
 0x149   : > { %v600_v41 = vpop.permute.xlu0 %599  ;;  %v602_v42 = vpop.permute.xlu1 %601  ;;  %1115 = vrot.lane.b32.xlu1 %v3922_v31, %s3380_s28 }
 0x14b   : > { %2808 = vmatpush3.bf16.msra.mxu0 %v3049_v38 }
 0x14c   : > { %1117 = vrot.lane.b32.xlu0 %v3929_v32, %s3380_s28 }
 0x14d   : > { %v604_v43 = vpop.permute.xlu0 %603  ;;  %v606_v44 = vpop.permute.xlu1 %605  ;;  %1119 = vrot.lane.b32.xlu1 %v3932_v33, %s3380_s28 }
 0x14e   : > { %2678 = vmatmul.mubr.msk.bf16.gmra.mrb[4].mxu0 %vm667_vm0, %v598_v40 }
 0x14f   : > { %2681 = vmatprep.mubr.msk.bf16.mxu0 %vm667_vm0, %v600_v41 }
 0x151   : > { %v608_v45 = vpop.permute.xlu0 %607  ;;  %v610_v46 = vpop.permute.xlu1 %609 }
 0x155   : > { %v612_v47 = vpop.permute.xlu0 %611  ;;  %v614_v48 = vpop.permute.xlu1 %613 }
 0x156   : > { %2682 = vmatmul.mubr.msk.bf16.gmra.mrb[8].mxu0 %vm667_vm0, %v602_v42 }
 0x157   : > { %2685 = vmatprep.mubr.msk.bf16.mxu0 %vm667_vm0, %v604_v43 }
 0x159   : > { %v616_v49 = vpop.permute.xlu0 %615  ;;  %v618_v50 = vpop.permute.xlu1 %617 }
 0x15d   : > { %v620_v51 = vpop.permute.xlu0 %619  ;;  %v622_v52 = vpop.permute.xlu1 %621 }
 0x15e   : > { %2686 = vmatmul.mubr.msk.bf16.gmra.mrb[12].mxu0 %vm667_vm0, %v606_v44 }
 0x15f   : > { %2689 = vmatprep.mubr.msk.bf16.mxu0 %vm667_vm0, %v608_v45 }
 0x161   : > { %v624_v53 = vpop.permute.xlu0 %623  ;;  %v626_v54 = vpop.permute.xlu1 %625 }
 0x162   : > { %2705 = vmatprep.mubr.msk.bf16.mxu1 %vm667_vm0, %v624_v53 }
 0x163   : > { %2706 = vmatmul.mubr.msk.bf16.vlgmr.msra.gmra.mrb[0].mxu1 %vm667_vm0, %v626_v54 }
 0x164   : > { %2738 = vmatpush3.bf16.msra.mxu1 %v3960_v34 }
 0x165   : > { %v628_v56 = vpop.permute.xlu0 %627  ;;  %2739 = vmatprep.subr.bf16.mxu1 %v3048_v55  ;;  %v630_v57 = vpop.permute.xlu1 %629 }
 0x166   : > { %2690 = vmatmul.mubr.msk.bf16.gmra.mrb[16].mxu0 %vm667_vm0, %v610_v46  ;;  %2709 = vmatprep.mubr.msk.bf16.mxu1 %vm667_vm0, %v628_v56 }
 0x167   : > { %2693 = vmatprep.mubr.msk.bf16.mxu0 %vm667_vm0, %v612_v47 }
 0x168   : > { %2740 = vmatpush3.bf16.msra.mxu1 %v3048_v55 }
 0x169   : > { %v632_v58 = vpop.permute.xlu0 %631  ;;  %v634_v59 = vpop.permute.xlu1 %633 }
 0x16b   : > { %2710 = vmatmul.mubr.msk.bf16.gmra.mrb[4].mxu1 %vm667_vm0, %v630_v57 }
 0x16c   : > { %2713 = vmatprep.mubr.msk.bf16.mxu1 %vm667_vm0, %v632_v58 }
 0x16d   : > { %v636_v60 = vpop.permute.xlu0 %635  ;;  %v638_v61 = vpop.permute.xlu1 %637 }
 0x16e   : > { %2694 = vmatmul.mubr.msk.bf16.gmra.mrb[20].mxu0 %vm667_vm0, %v614_v48 }
 0x16f   : > { %2697 = vmatprep.mubr.msk.bf16.mxu0 %vm667_vm0, %v616_v49 }
 0x171   : > { %v640_v62 = vpop.permute.xlu0 %639  ;;  %v642_v63 = vpop.permute.xlu1 %641 }
 0x173   : > { %2714 = vmatmul.mubr.msk.bf16.gmra.mrb[8].mxu1 %vm667_vm0, %v634_v59 }
 0x174   : > { %2717 = vmatprep.mubr.msk.bf16.mxu1 %vm667_vm0, %v636_v60 }
 0x175   : > { %v644_v8 = vpop.permute.xlu0 %643  ;;  %v646_v11 = vpop.permute.xlu1 %645 }
 0x176   : > { %2698 = vmatmul.mubr.msk.bf16.gmra.mrb[24].mxu0 %vm667_vm0, %v618_v50 }
 0x177   : > { %2701 = vmatprep.mubr.msk.bf16.mxu0 %vm667_vm0, %v620_v51 }
 0x179   : > { %v648_v34 = vpop.permute.xlu0 %647  ;;  %v650_v35 = vpop.permute.xlu1 %649 }
 0x17b   : > { %2718 = vmatmul.mubr.msk.bf16.gmra.mrb[12].mxu1 %vm667_vm0, %v638_v61 }
 0x17c   : > { %2721 = vmatprep.mubr.msk.bf16.mxu1 %vm667_vm0, %v640_v62 }
 0x17d   : > { %v652_v36 = vpop.permute.xlu0 %651  ;;  %v654_v37 = vpop.permute.xlu1 %653 }
 0x17e   : > { %2702 = vmatmul.mubr.msk.bf16.gmra.mrb[28].mxu0 %vm667_vm0, %v622_v52 }
 0x181   : > { %v1058_v38 = vpop.permute.xlu0 %1057  ;;  %v1060_v39 = vpop.permute.xlu1 %1059 }
 0x183   : > { %2722 = vmatmul.mubr.msk.bf16.gmra.mrb[16].mxu1 %vm667_vm0, %v642_v63 }
 0x184   : > { %2725 = vmatprep.mubr.msk.bf16.mxu1 %vm667_vm0, %v644_v8 }
 0x185   : > { %v1062_v40 = vpop.permute.xlu0 %1061  ;;  %v1064_v41 = vpop.permute.xlu1 %1063 }
 0x189   : > { %v1066_v42 = vpop.permute.xlu0 %1065  ;;  %v1068_v43 = vpop.permute.xlu1 %1067 }
 0x18b   : > { %2726 = vmatmul.mubr.msk.bf16.gmra.mrb[20].mxu1 %vm667_vm0, %v646_v11 }
 0x18c   : > { %2729 = vmatprep.mubr.msk.bf16.mxu1 %vm667_vm0, %v648_v34 }
 0x18d   : > { %v1070_v44 = vpop.permute.xlu0 %1069  ;;  %v1072_v45 = vpop.permute.xlu1 %1071 }
 0x191   : > { %v1074_v46 = vpop.permute.xlu0 %1073  ;;  %v1076_v47 = vpop.permute.xlu1 %1075 }
 0x193   : > { %2730 = vmatmul.mubr.msk.bf16.gmra.mrb[24].mxu1 %vm667_vm0, %v650_v35 }
 0x194   : > { %2733 = vmatprep.mubr.msk.bf16.mxu1 %vm667_vm0, %v652_v36 }
 0x195   : > { %v1078_v48 = vpop.permute.xlu0 %1077  ;;  %v1080_v49 = vpop.permute.xlu1 %1079 }
 0x199   : > { %v1082_v50 = vpop.permute.xlu0 %1081  ;;  %v1084_v51 = vpop.permute.xlu1 %1083 }
 0x19b   : > { %2734 = vmatmul.mubr.msk.bf16.gmra.mrb[28].mxu1 %vm667_vm0, %v654_v37  ;;  %v1584_v37 = vunpack.c.l.bf16 %v3786_v1 }
 0x19c   : > { %2741 = vmatprep.mubr.msk.bf16.mxu1 %vm667_vm0, %v1058_v38  ;;  %v1585_v38 = vunpack.c.h.bf16 %v3786_v1  ;;  %v1589_v1 = vunpack.c.h.bf16 %v3792_v3 }
 0x19d   : > { %v1086_v52 = vpop.permute.xlu0 %1085  ;;  %v1088_v53 = vpop.permute.xlu1 %1087 }
 0x1a1   : > { %v1090_v54 = vpop.permute.xlu0 %1089  ;;  %v1092_v55 = vpop.permute.xlu1 %1091 }
 0x1a3   : > { %2742 = vmatmul.mubr.msk.bf16.vlgmr.msra.gmra.mrb[32].mxu1 %vm667_vm0, %v1060_v39 }
 0x1a4   : > { %2745 = vmatprep.mubr.msk.bf16.mxu1 %vm667_vm0, %v1062_v40 }
 0x1a5   : > { %v1094_v56 = vpop.permute.xlu0 %1093  ;;  %v1096_v57 = vpop.permute.xlu1 %1095 }
 0x1a9   : > { %v1098_v58 = vpop.permute.xlu0 %1097  ;;  %v1100_v59 = vpop.permute.xlu1 %1099 }
 0x1ab   : > { %2746 = vmatmul.mubr.msk.bf16.gmra.mrb[36].mxu1 %vm667_vm0, %v1064_v41  ;;  %v1582_v41 = vunpack.c.l.bf16 %v3783_v0 }
 0x1ac   : > { %2749 = vmatprep.mubr.msk.bf16.mxu1 %vm667_vm0, %v1066_v42  ;;  %v1583_v42 = vunpack.c.h.bf16 %v3783_v0  ;;  %v1586_v0 = vunpack.c.l.bf16 %v3789_v2 }
 0x1ad   : > { %v1102_v60 = vpop.permute.xlu0 %1101  ;;  %v1104_v61 = vpop.permute.xlu1 %1103 }
 0x1b1   : > { %v1106_v62 = vpop.permute.xlu0 %1105  ;;  %v1108_v63 = vpop.permute.xlu1 %1107 }
 0x1b3   : > { %2750 = vmatmul.mubr.msk.bf16.gmra.mrb[40].mxu1 %vm667_vm0, %v1068_v43 }
 0x1b4   : > { %2753 = vmatprep.mubr.msk.bf16.mxu1 %vm667_vm0, %v1070_v44 }
 0x1b5   : > { %v1110_v8 = vpop.permute.xlu0 %1109  ;;  %v1112_v11 = vpop.permute.xlu1 %1111 }
 0x1ba   : > { %v1114_v34 = vpop.permute.xlu0 %1113 }
 0x1bb   : > { %2754 = vmatmul.mubr.msk.bf16.gmra.mrb[44].mxu1 %vm667_vm0, %v1072_v45  ;;  %v1116_v35 = vpop.permute.xlu1 %1115 }
 0x1bc   : > { %2757 = vmatprep.mubr.msk.bf16.mxu1 %vm667_vm0, %v1074_v46 }
 0x1be   : > { %v1118_v36 = vpop.permute.xlu0 %1117 }
 0x1bf   : > { %v1120_v39 = vpop.permute.xlu1 %1119 }
 0x1c3   : > { %2758 = vmatmul.mubr.msk.bf16.gmra.mrb[48].mxu1 %vm667_vm0, %v1076_v47 }
 0x1c4   : > { %2761 = vmatprep.mubr.msk.bf16.mxu1 %vm667_vm0, %v1078_v48 }
 0x1cb   : > { %2762 = vmatmul.mubr.msk.bf16.gmra.mrb[52].mxu1 %vm667_vm0, %v1080_v49 }
 0x1cc   : > { %2765 = vmatprep.mubr.msk.bf16.mxu1 %vm667_vm0, %v1082_v50 }
 0x1d3   : > { %2766 = vmatmul.mubr.msk.bf16.gmra.mrb[56].mxu1 %vm667_vm0, %v1084_v51 }
 0x1d4   : > { %2769 = vmatprep.mubr.msk.bf16.mxu1 %vm667_vm0, %v1086_v52  ;;  %v1588_v52 = vunpack.c.l.bf16 %v3792_v3  ;;  %v1592_v3 = vunpack.c.l.bf16 %v3802_v5 }
 0x1db   : > { %2770 = vmatmul.mubr.msk.bf16.gmra.mrb[60].mxu1 %vm667_vm0, %v1088_v53 }
 0x1dc   : > { %2773 = vmatprep.mubr.msk.bf16.mxu1 %vm667_vm0, %v1090_v54  ;;  %v1587_v54 = vunpack.c.h.bf16 %v3789_v2  ;;  %v1590_v2 = vunpack.c.l.bf16 %v3799_v4 }
 0x1e3   : > { %2774 = vmatmul.mubr.msk.bf16.gmra.mrb[64].mxu1 %vm667_vm0, %v1092_v55 }
 0x1e4   : > { %2777 = vmatprep.mubr.msk.bf16.mxu1 %vm667_vm0, %v1094_v56 }
 0x1eb   : > { %2778 = vmatmul.mubr.msk.bf16.gmra.mrb[68].mxu1 %vm667_vm0, %v1096_v57 }
 0x1ec   : > { %2781 = vmatprep.mubr.msk.bf16.mxu1 %vm667_vm0, %v1098_v58 }
 0x1f3   : > { %2782 = vmatmul.mubr.msk.bf16.gmra.mrb[72].mxu1 %vm667_vm0, %v1100_v59 }
 0x1f4   : > { %2785 = vmatprep.mubr.msk.bf16.mxu1 %vm667_vm0, %v1102_v60 }
 0x1fb   : > { %2786 = vmatmul.mubr.msk.bf16.gmra.mrb[76].mxu1 %vm667_vm0, %v1104_v61 }
 0x1fc   : > { %2789 = vmatprep.mubr.msk.bf16.mxu1 %vm667_vm0, %v1106_v62 }
 0x203   : > { %2790 = vmatmul.mubr.msk.bf16.gmra.mrb[80].mxu1 %vm667_vm0, %v1108_v63 }
 0x204   : > { %2793 = vmatprep.mubr.msk.bf16.mxu1 %vm667_vm0, %v1110_v8  ;;  %v1593_v8 = vunpack.c.h.bf16 %v3802_v5  ;;  %v1596_v5 = vunpack.c.l.bf16 %v3812_v7 }
 0x20b   : > { %2794 = vmatmul.mubr.msk.bf16.gmra.mrb[84].mxu1 %vm667_vm0, %v1112_v11 }
 0x20c   : > { %2797 = vmatprep.mubr.msk.bf16.mxu1 %vm667_vm0, %v1114_v34  ;;  %v1591_v34 = vunpack.c.h.bf16 %v3799_v4  ;;  %v1594_v4 = vunpack.c.l.bf16 %v3809_v6 }
 0x213   : > { %2798 = vmatmul.mubr.msk.bf16.gmra.mrb[88].mxu1 %vm667_vm0, %v1116_v35 }
 0x214   : > { %2801 = vmatprep.mubr.msk.bf16.mxu1 %vm667_vm0, %v1118_v36 }
 0x219   : > { %v2675_v40 = vpop.f32.mrb[0].mxu0 }
 0x21a   : > { %v798_v43 = vpop.f32.mrb[1].mxu0  ;;  %v1648_v45 = vmul.f32 %v2675_v40, %v1584_v37 }
 0x21b   : > { %v2676_v44 = vpop.f32.mrb[2].mxu0  ;;  %2802 = vmatmul.mubr.msk.bf16.gmra.mrb[92].mxu1 %vm667_vm0, %v1120_v39  ;;  %v1646_v48 = vmul.f32 %v1582_v41, %v798_v43 }
 0x21c   : > { %v1649_v46 = vmul.f32 %v2676_v44, %v1585_v38  ;;  %v801_v47 = vpop.f32.mrb[3].mxu0  ;;  %v1597_v44 = vunpack.c.h.bf16 %v3812_v7 }
 0x21d   : > { %v1647_v49 = vmul.f32 %v1583_v42, %v801_v47 }
 0x21e   : > { %v1711_v50 = vpack.c.bf16 %v1649_v46, %v1648_v45  ;;  %v1595_v46 = vunpack.c.h.bf16 %v3809_v6 }
 0x21f   : > { %v1710_v51 = vpack.c.bf16 %v1647_v49, %v1646_v48  ;;  %v1616_v49 = vunpack.c.l.bf16 %v3862_v19 }
 0x221   : > { %v2679_v53 = vpop.f32.mrb[4].mxu0  ;;  %2809 = vmatprep.mubr.msk.bf16.mxu0 %vm667_vm0, %v1710_v51 }
 0x222   : > { %v814_v55 = vpop.f32.mrb[5].mxu0  ;;  %2810 = vmatmul.mubr.msk.bf16.vlgmr.msra.gmra.mrb[32].mxu0 %vm667_vm0, %v1711_v50  ;;  %v1652_v57 = vmul.f32 %v2679_v53, %v1588_v52 }
 0x223   : > { %v2680_v56 = vpop.f32.mrb[6].mxu0  ;;  %v1650_v60 = vmul.f32 %v1586_v0, %v814_v55  ;;  %v1617_v0 = vunpack.c.h.bf16 %v3862_v19  ;;  %v1598_v19 = vunpack.c.l.bf16 %v3819_v9 }
 0x224   : > { %v1653_v58 = vmul.f32 %v2680_v56, %v1589_v1  ;;  %v817_v59 = vpop.f32.mrb[7].mxu0  ;;  %v1614_v1 = vunpack.c.l.bf16 %v3859_v18  ;;  %v1615_v56 = vunpack.c.h.bf16 %v3859_v18 }
 0x225   : > { %v1651_v61 = vmul.f32 %v1587_v54, %v817_v59  ;;  %v1600_v59 = vunpack.c.l.bf16 %v3822_v10 }
 0x226   : > { %v1713_v62 = vpack.c.bf16 %v1653_v58, %v1652_v57 }
 0x227   : > { %v1712_v63 = vpack.c.bf16 %v1651_v61, %v1650_v60  ;;  %v1601_v60 = vunpack.c.h.bf16 %v3822_v10 }
 0x229   : > { %v2683_v11 = vpop.f32.mrb[8].mxu0  ;;  %2813 = vmatprep.mubr.msk.bf16.mxu0 %vm667_vm0, %v1712_v63 }
 0x22a   : > { %v830_v35 = vpop.f32.mrb[9].mxu0  ;;  %2814 = vmatmul.mubr.msk.bf16.gmra.mrb[36].mxu0 %vm667_vm0, %v1713_v62  ;;  %v1656_v37 = vmul.f32 %v2683_v11, %v1592_v3  ;;  %v1599_v3 = vunpack.c.h.bf16 %v3819_v9 }
 0x22b   : > { %v2684_v36 = vpop.f32.mrb[10].mxu0  ;;  %v1654_v40 = vmul.f32 %v1590_v2, %v830_v35  ;;  %v1620_v35 = vunpack.c.l.bf16 %v3872_v21 }
 0x22c   : > { %v1657_v38 = vmul.f32 %v2684_v36, %v1593_v8  ;;  %v833_v39 = vpop.f32.mrb[11].mxu0 }
 0x22d   : > { %v1655_v41 = vmul.f32 %v1591_v34, %v833_v39  ;;  %v1618_v39 = vunpack.c.l.bf16 %v3869_v20 }
 0x22e   : > { %v1715_v42 = vpack.c.bf16 %v1657_v38, %v1656_v37 }
 0x22f   : > { %v1714_v43 = vpack.c.bf16 %v1655_v41, %v1654_v40 }
 0x231   : > { %v2687_v45 = vpop.f32.mrb[12].mxu0  ;;  %2817 = vmatprep.mubr.msk.bf16.mxu0 %vm667_vm0, %v1714_v43 }
 0x232   : > { %v846_v47 = vpop.f32.mrb[13].mxu0  ;;  %2818 = vmatmul.mubr.msk.bf16.gmra.mrb[40].mxu0 %vm667_vm0, %v1715_v42  ;;  %v1660_v50 = vmul.f32 %v2687_v45, %v1596_v5  ;;  %v1621_v42 = vunpack.c.h.bf16 %v3872_v21  ;;  %v1602_v21 = vunpack.c.l.bf16 %v3829_v12 }
 0x233   : > { %v2688_v48 = vpop.f32.mrb[14].mxu0  ;;  %v1658_v53 = vmul.f32 %v1594_v4, %v846_v47  ;;  %v1604_v47 = vunpack.c.l.bf16 %v3832_v13 }
 0x234   : > { %v1661_v51 = vmul.f32 %v2688_v48, %v1597_v44  ;;  %v849_v52 = vpop.f32.mrb[15].mxu0  ;;  %v1619_v44 = vunpack.c.h.bf16 %v3869_v20  ;;  %v1605_v48 = vunpack.c.h.bf16 %v3832_v13 }
 0x235   : > { %v1659_v7 = vmul.f32 %v1595_v46, %v849_v52  ;;  %v1603_v52 = vunpack.c.h.bf16 %v3829_v12 }
 0x236   : > { %v1717_v54 = vpack.c.bf16 %v1661_v51, %v1660_v50  ;;  %v2707_v55 = vpop.f32.mrb[0].mxu1 }
 0x237   : > { %v1716_v6 = vpack.c.bf16 %v1659_v7, %v1658_v53  ;;  %v4104_v57 = vmul.f32 %v2707_v55, %v1616_v49  ;;  %v926_v58 = vpop.f32.mrb[1].mxu1 }
 0x238   : > { %v4108_v61 = vmul.f32 %v1614_v1, %v926_v58  ;;  %v2708_v62 = vpop.f32.mrb[2].mxu1  ;;  %v1622_v58 = vunpack.c.l.bf16 %v3879_v22 }
 0x239   : > { %v2691_v63 = vpop.f32.mrb[16].mxu0  ;;  %2821 = vmatprep.mubr.msk.bf16.mxu0 %vm667_vm0, %v1716_v6  ;;  %v4113_v8 = vmul.f32 %v2708_v62, %v1617_v0  ;;  %v929_v18 = vpop.f32.mrb[3].mxu1  ;;  %v1625_v62 = vunpack.c.h.bf16 %v3882_v23 }
 0x23a   : > { %v862_v11 = vpop.f32.mrb[17].mxu0  ;;  %2822 = vmatmul.mubr.msk.bf16.gmra.mrb[44].mxu0 %vm667_vm0, %v1717_v54  ;;  %v4116_v2 = vmul.f32 %v1615_v56, %v929_v18  ;;  %v1664_v36 = vmul.f32 %v2691_v63, %v1600_v59  ;;  %v1624_v54 = vunpack.c.l.bf16 %v3882_v23  ;;  %v1606_v23 = vunpack.c.l.bf16 %v3839_v14 }
 0x23b   : > { %v2692_v34 = vpop.f32.mrb[18].mxu0  ;;  %v1727_v10 = vpack.c.bf16 %v4113_v8, %v4104_v57  ;;  %v1662_v40 = vmul.f32 %v1598_v19, %v862_v11  ;;  %v1639_v8 = vunpack.c.h.bf16 %v3919_v30 }
 0x23c   : > { %v1665_v37 = vmul.f32 %v2692_v34, %v1601_v60  ;;  %v865_v38 = vpop.f32.mrb[19].mxu0  ;;  %v1726_v9 = vpack.c.bf16 %v4116_v2, %v4108_v61 }
 0x23d   : > { %v1663_v41 = vmul.f32 %v1599_v3, %v865_v38  ;;  %v1623_v3 = vunpack.c.h.bf16 %v3879_v22 }
 0x23e   : > { %v1719_v43 = vpack.c.bf16 %v1665_v37, %v1664_v36  ;;  %v2711_v5 = vpop.f32.mrb[4].mxu1  ;;  %v1609_v36 = vunpack.c.h.bf16 %v3842_v15 }
 0x23f   : > { %v1718_v45 = vpack.c.bf16 %v1663_v41, %v1662_v40  ;;  %v4126_v4 = vmul.f32 %v2711_v5, %v1620_v35  ;;  %v942_v46 = vpop.f32.mrb[5].mxu1  ;;  %v1608_v35 = vunpack.c.l.bf16 %v3842_v15  ;;  %v1607_v40 = vunpack.c.h.bf16 %v3839_v14 }
 0x240   : > { %v4130_v49 = vmul.f32 %v1618_v39, %v942_v46  ;;  %v2712_v50 = vpop.f32.mrb[6].mxu1 }
 0x241   : > { %v2695_v51 = vpop.f32.mrb[20].mxu0  ;;  %2825 = vmatprep.mubr.msk.bf16.mxu0 %vm667_vm0, %v1718_v45  ;;  %v4135_v1 = vmul.f32 %v2712_v50, %v1621_v42  ;;  %v945_v20 = vpop.f32.mrb[7].mxu1 }
 0x242   : > { %v878_v53 = vpop.f32.mrb[21].mxu0  ;;  %2826 = vmatmul.mubr.msk.bf16.gmra.mrb[48].mxu0 %vm667_vm0, %v1719_v43  ;;  %v4138_v7 = vmul.f32 %v1619_v44, %v945_v20  ;;  %v1668_v55 = vmul.f32 %v2695_v51, %v1604_v47  ;;  %v1628_v44 = vunpack.c.l.bf16 %v3892_v25 }
 0x243   : > { %v2696_v0 = vpop.f32.mrb[22].mxu0  ;;  %v1729_v13 = vpack.c.bf16 %v4135_v1, %v4126_v4  ;;  %v1666_v59 = vmul.f32 %v1602_v21, %v878_v53  ;;  %v1629_v21 = vunpack.c.h.bf16 %v3892_v25  ;;  %v1627_v53 = vunpack.c.h.bf16 %v3889_v24 }
 0x244   : > { %v1669_v56 = vmul.f32 %v2696_v0, %v1605_v48  ;;  %v881_v6 = vpop.f32.mrb[23].mxu0  ;;  %v1728_v12 = vpack.c.bf16 %v4138_v7, %v4130_v49  ;;  %v1626_v48 = vunpack.c.l.bf16 %v3889_v24  ;;  %v1610_v25 = vunpack.c.l.bf16 %v3849_v16 }
 0x245   : > { %v1667_v60 = vmul.f32 %v1603_v52, %v881_v6  ;;  %v1613_v6 = vunpack.c.h.bf16 %v3852_v17  ;;  %v1643_v1 = vunpack.c.h.bf16 %v3929_v32 }
 0x246   : > { %v1721_v63 = vpack.c.bf16 %v1669_v56, %v1668_v55  ;;  %v2715_v19 = vpop.f32.mrb[8].mxu1  ;;  %v1612_v56 = vunpack.c.l.bf16 %v3852_v17 }
 0x247   : > { %v1720_v18 = vpack.c.bf16 %v1667_v60, %v1666_v59  ;;  %v4148_v11 = vmul.f32 %v2715_v19, %v1624_v54  ;;  %v958_v34 = vpop.f32.mrb[9].mxu1 }
 0x248   : > { %v4152_v37 = vmul.f32 %v1622_v58, %v958_v34  ;;  %v2716_v38 = vpop.f32.mrb[10].mxu1  ;;  %v1632_v34 = vunpack.c.l.bf16 %v3902_v27 }
 0x249   : > { %v2699_v39 = vpop.f32.mrb[24].mxu0  ;;  %2829 = vmatprep.mubr.msk.bf16.mxu0 %vm667_vm0, %v1720_v18  ;;  %v4157_v41 = vmul.f32 %v2716_v38, %v1625_v62  ;;  %v961_v22 = vpop.f32.mrb[11].mxu1  ;;  %v1611_v62 = vunpack.c.h.bf16 %v3849_v16 }
 0x24a   : > { %v894_v42 = vpop.f32.mrb[25].mxu0  ;;  %2830 = vmatmul.mubr.msk.bf16.gmra.mrb[52].mxu0 %vm667_vm0, %v1721_v63  ;;  %v4160_v43 = vmul.f32 %v1623_v3, %v961_v22  ;;  %v1672_v45 = vmul.f32 %v2699_v39, %v1608_v35  ;;  %v1630_v39 = vunpack.c.l.bf16 %v3899_v26  ;;  %v1633_v22 = vunpack.c.h.bf16 %v3902_v27 }
 0x24b   : > { %v2700_v5 = vpop.f32.mrb[26].mxu0  ;;  %v1731_v15 = vpack.c.bf16 %v4157_v41, %v4148_v11  ;;  %v1670_v50 = vmul.f32 %v1606_v23, %v894_v42  ;;  %v1636_v27 = vunpack.c.l.bf16 %v3912_v29 }
 0x24c   : > { %v1673_v46 = vmul.f32 %v2700_v5, %v1609_v36  ;;  %v897_v47 = vpop.f32.mrb[27].mxu0  ;;  %v1730_v14 = vpack.c.bf16 %v4160_v43, %v4152_v37 }
 0x24d   : > { %v1671_v51 = vmul.f32 %v1607_v40, %v897_v47 }
 0x24e   : > { %v1723_v52 = vpack.c.bf16 %v1673_v46, %v1672_v45  ;;  %v2719_v20 = vpop.f32.mrb[12].mxu1 }
 0x24f   : > { %v1722_v0 = vpack.c.bf16 %v1671_v51, %v1670_v50  ;;  %v4170_v54 = vmul.f32 %v2719_v20, %v1628_v44  ;;  %v974_v55 = vpop.f32.mrb[13].mxu1  ;;  %v1631_v44 = vunpack.c.h.bf16 %v3899_v26 }
 0x250   : > { %v4174_v58 = vmul.f32 %v1626_v48, %v974_v55  ;;  %v2720_v59 = vpop.f32.mrb[14].mxu1 }
 0x251   : > { %v2703_v60 = vpop.f32.mrb[28].mxu0  ;;  %2833 = vmatprep.mubr.msk.bf16.mxu0 %vm667_vm0, %v1722_v0  ;;  %v4179_v63 = vmul.f32 %v2720_v59, %v1629_v21  ;;  %v977_v24 = vpop.f32.mrb[15].mxu1  ;;  %v1637_v0 = vunpack.c.h.bf16 %v3912_v29  ;;  %v1640_v29 = vunpack.c.l.bf16 %v3922_v31 }
 0x252   : > { %v910_v19 = vpop.f32.mrb[29].mxu0  ;;  %2834 = vmatmul.mubr.msk.bf16.gmra.mrb[56].mxu0 %vm667_vm0, %v1723_v52  ;;  %v4182_v3 = vmul.f32 %v1627_v53, %v977_v24  ;;  %v1676_v35 = vmul.f32 %v2703_v60, %v1612_v56  ;;  %v1634_v53 = vunpack.c.l.bf16 %v3909_v28  ;;  %v1635_v56 = vunpack.c.h.bf16 %v3909_v28 }
 0x253   : > { %v2704_v18 = vpop.f32.mrb[30].mxu0  ;;  %v1733_v17 = vpack.c.bf16 %v4179_v63, %v4170_v54  ;;  %v1674_v23 = vmul.f32 %v1610_v25, %v910_v19  ;;  %v1638_v24 = vunpack.c.l.bf16 %v3919_v30  ;;  %v1641_v19 = vunpack.c.h.bf16 %v3922_v31 }
 0x254   : > { %v1677_v36 = vmul.f32 %v2704_v18, %v1613_v6  ;;  %v913_v38 = vpop.f32.mrb[31].mxu0  ;;  %v1732_v16 = vpack.c.bf16 %v4182_v3, %v4174_v58  ;;  %v1644_v31 = vunpack.c.l.bf16 %v3932_v33 }
 0x255   : > { %v1675_v40 = vmul.f32 %v1611_v62, %v913_v38  ;;  %v1642_v38 = vunpack.c.l.bf16 %v3929_v32 }
 0x256   : > { %v1725_v42 = vpack.c.bf16 %v1677_v36, %v1676_v35  ;;  %v2723_v5 = vpop.f32.mrb[16].mxu1 }
 0x257   : > { %v1724_v45 = vpack.c.bf16 %v1675_v40, %v1674_v23  ;;  %v4192_v46 = vmul.f32 %v2723_v5, %v1632_v34  ;;  %v990_v47 = vpop.f32.mrb[17].mxu1 }
 0x258   : > { %v4194_v48 = vmul.f32 %v1630_v39, %v990_v47  ;;  %v2724_v50 = vpop.f32.mrb[18].mxu1  ;;  %v1645_v39 = vunpack.c.h.bf16 %v3932_v33 }
 0x259   : > { %2837 = vmatprep.mubr.msk.bf16.mxu0 %vm667_vm0, %v1724_v45  ;;  %v4197_v51 = vmul.f32 %v2724_v50, %v1633_v22  ;;  %v993_v21 = vpop.f32.mrb[19].mxu1 }
 0x25a   : > { %2838 = vmatmul.mubr.msk.bf16.gmra.mrb[60].mxu0 %vm667_vm0, %v1725_v42  ;;  %v4200_v52 = vmul.f32 %v1631_v44, %v993_v21 }
 0x25b   : > { %2841 = vmatprep.mubr.msk.bf16.mxu0 %vm667_vm0, %v1726_v9  ;;  %v1735_v26 = vpack.c.bf16 %v4197_v51, %v4192_v46 }
 0x25c   : > { %v1734_v20 = vpack.c.bf16 %v4200_v52, %v4194_v48 }
 0x25e   : > { %v2727_v55 = vpop.f32.mrb[20].mxu1 }
 0x25f   : > { %v4214_v6 = vmul.f32 %v2727_v55, %v1636_v27  ;;  %v1006_v61 = vpop.f32.mrb[21].mxu1 }
 0x260   : > { %v4216_v2 = vmul.f32 %v1634_v53, %v1006_v61  ;;  %v2728_v9 = vpop.f32.mrb[22].mxu1 }
 0x261   : > { %v4218_v59 = vmul.f32 %v2728_v9, %v1637_v0  ;;  %v1009_v60 = vpop.f32.mrb[23].mxu1 }
 0x262   : > { %2842 = vmatmul.mubr.msk.bf16.gmra.mrb[64].mxu0 %vm667_vm0, %v1727_v10  ;;  %v1699_v25 = vmul.f32 %v1635_v56, %v1009_v60 }
 0x263   : > { %2845 = vmatprep.mubr.msk.bf16.mxu0 %vm667_vm0, %v1728_v12  ;;  %v1737_v28 = vpack.c.bf16 %v4218_v59, %v4214_v6 }
 0x264   : > { %v1736_v62 = vpack.c.bf16 %v1699_v25, %v4216_v2 }
 0x266   : > { %v2731_v57 = vpop.f32.mrb[24].mxu1 }
 0x267   : > { %v4235_v10 = vmul.f32 %v2731_v57, %v1640_v29  ;;  %v1022_v18 = vpop.f32.mrb[25].mxu1 }
 0x268   : > { %v1702_v49 = vmul.f32 %v1638_v24, %v1022_v18  ;;  %v2732_v7 = vpop.f32.mrb[26].mxu1 }
 0x269   : > { %v4237_v12 = vmul.f32 %v2732_v7, %v1641_v19  ;;  %v1025_v34 = vpop.f32.mrb[27].mxu1 }
 0x26a   : > { %2846 = vmatmul.mubr.msk.bf16.gmra.mrb[68].mxu0 %vm667_vm0, %v1729_v13  ;;  %v1703_v35 = vmul.f32 %v1639_v8, %v1025_v34 }
 0x26b   : > { %2849 = vmatprep.mubr.msk.bf16.mxu0 %vm667_vm0, %v1730_v14  ;;  %v1739_v30 = vpack.c.bf16 %v4237_v12, %v4235_v10 }
 0x26c   : > { %v1738_v36 = vpack.c.bf16 %v1703_v35, %v1702_v49 }
 0x26e   : > { %v2735_v4 = vpop.f32.mrb[28].mxu1 }
 0x26f   : > { %v1708_v13 = vmul.f32 %v2735_v4, %v1644_v31  ;;  %v1038_v23 = vpop.f32.mrb[29].mxu1 }
 0x270   : > { %v1706_v40 = vmul.f32 %v1642_v38, %v1038_v23  ;;  %v2736_v37 = vpop.f32.mrb[30].mxu1 }
 0x271   : > { %v1709_v43 = vmul.f32 %v2736_v37, %v1645_v39  ;;  %v1041_v14 = vpop.f32.mrb[31].mxu1 }
 0x272   : > { %2850 = vmatmul.mubr.msk.bf16.gmra.mrb[72].mxu0 %vm667_vm0, %v1731_v15  ;;  %v1707_v22 = vmul.f32 %v1643_v1, %v1041_v14 }
 0x273   : > { %2853 = vmatprep.mubr.msk.bf16.mxu0 %vm667_vm0, %v1732_v16  ;;  %v1741_v33 = vpack.c.bf16 %v1709_v43, %v1708_v13 }
 0x274   : > { %v1740_v32 = vpack.c.bf16 %v1707_v22, %v1706_v40 }
 0x276   : > { %v2743_v42 = vpop.f32.mrb[32].mxu1 }
 0x277   : > { %1520 = vst.msk [vmem:[%s4264_s30 + $0x10] sm:$0xff] %vm667_vm0, %v2743_v42  ;;  %v1263_v11 = vpop.f32.mrb[33].mxu1 }
 0x278   : > { %1518 = vst.msk [vmem:[%s4264_s30] sm:$0xff] %vm667_vm0, %v1263_v11  ;;  %v2744_v41 = vpop.f32.mrb[34].mxu1 }
 0x279   : > { %1521 = vst.msk [vmem:[%s4264_s30 + $0x18] sm:$0xff] %vm667_vm0, %v2744_v41  ;;  %v1266_v15 = vpop.f32.mrb[35].mxu1 }
 0x27a   : > { %2854 = vmatmul.mubr.msk.bf16.gmra.mrb[76].mxu0 %vm667_vm0, %v1733_v17  ;;  %1519 = vst.msk [vmem:[%s4264_s30 + $0x8] sm:$0xff] %vm667_vm0, %v1266_v15 }
 0x27b   : > { %2857 = vmatprep.mubr.msk.bf16.mxu0 %vm667_vm0, %v1734_v20 }
 0x27e   : > { %v2747_v58 = vpop.f32.mrb[36].mxu1 }
 0x27f   : > { %1524 = vst.msk [vmem:[%s4264_s30 + $0x30] sm:$0xff] %vm667_vm0, %v2747_v58  ;;  %v1279_v3 = vpop.f32.mrb[37].mxu1 }
 0x280   : > { %1522 = vst.msk [vmem:[%s4264_s30 + $0x20] sm:$0xff] %vm667_vm0, %v1279_v3  ;;  %v2748_v16 = vpop.f32.mrb[38].mxu1 }
 0x281   : > { %1525 = vst.msk [vmem:[%s4264_s30 + $0x38] sm:$0xff] %vm667_vm0, %v2748_v16  ;;  %v1282_v54 = vpop.f32.mrb[39].mxu1 }
 0x282   : > { %2858 = vmatmul.mubr.msk.bf16.gmra.mrb[80].mxu0 %vm667_vm0, %v1735_v26  ;;  %1523 = vst.msk [vmem:[%s4264_s30 + $0x28] sm:$0xff] %vm667_vm0, %v1282_v54 }
 0x283   : > { %2861 = vmatprep.mubr.msk.bf16.mxu0 %vm667_vm0, %v1736_v62 }
 0x286   : > { %v2751_v63 = vpop.f32.mrb[40].mxu1 }
 0x287   : > { %1528 = vst.msk [vmem:[%s4264_s30 + $0x50] sm:$0xff] %vm667_vm0, %v2751_v63  ;;  %v1295_v17 = vpop.f32.mrb[41].mxu1 }
 0x288   : > { %1526 = vst.msk [vmem:[%s4264_s30 + $0x40] sm:$0xff] %vm667_vm0, %v1295_v17  ;;  %v2752_v5 = vpop.f32.mrb[42].mxu1 }
 0x289   : > { %1529 = vst.msk [vmem:[%s4264_s30 + $0x58] sm:$0xff] %vm667_vm0, %v2752_v5  ;;  %v1298_v44 = vpop.f32.mrb[43].mxu1 }
 0x28a   : > { %2862 = vmatmul.mubr.msk.bf16.gmra.mrb[84].mxu0 %vm667_vm0, %v1737_v28  ;;  %1527 = vst.msk [vmem:[%s4264_s30 + $0x48] sm:$0xff] %vm667_vm0, %v1298_v44 }
 0x28b   : > { %2865 = vmatprep.mubr.msk.bf16.mxu0 %vm667_vm0, %v1738_v36 }
 0x28e   : > { %v2755_v45 = vpop.f32.mrb[44].mxu1 }
 0x28f   : > { %1532 = vst.msk [vmem:[%s4264_s30 + $0x70] sm:$0xff] %vm667_vm0, %v2755_v45  ;;  %v1311_v46 = vpop.f32.mrb[45].mxu1 }
 0x290   : > { %1530 = vst.msk [vmem:[%s4264_s30 + $0x60] sm:$0xff] %vm667_vm0, %v1311_v46  ;;  %v2756_v47 = vpop.f32.mrb[46].mxu1 }
 0x291   : > { %1533 = vst.msk [vmem:[%s4264_s30 + $0x78] sm:$0xff] %vm667_vm0, %v2756_v47  ;;  %v1314_v48 = vpop.f32.mrb[47].mxu1 }
 0x292   : > { %2866 = vmatmul.mubr.msk.bf16.gmra.mrb[88].mxu0 %vm667_vm0, %v1739_v30  ;;  %1531 = vst.msk [vmem:[%s4264_s30 + $0x68] sm:$0xff] %vm667_vm0, %v1314_v48 }
 0x293   : > { %2869 = vmatprep.mubr.msk.bf16.mxu0 %vm667_vm0, %v1740_v32 }
 0x296   : > { %v2759_v50 = vpop.f32.mrb[48].mxu1 }
 0x297   : > { %1536 = vst.msk [vmem:[%s4264_s30 + $0x90] sm:$0xff] %vm667_vm0, %v2759_v50  ;;  %v1327_v51 = vpop.f32.mrb[49].mxu1 }
 0x298   : > { %1534 = vst.msk [vmem:[%s4264_s30 + $0x80] sm:$0xff] %vm667_vm0, %v1327_v51  ;;  %v2760_v21 = vpop.f32.mrb[50].mxu1 }
 0x299   : > { %1537 = vst.msk [vmem:[%s4264_s30 + $0x98] sm:$0xff] %vm667_vm0, %v2760_v21  ;;  %v1330_v52 = vpop.f32.mrb[51].mxu1 }
 0x29a   : > { %2870 = vmatmul.mubr.msk.bf16.gmra.mrb[92].mxu0 %vm667_vm0, %v1741_v33  ;;  %1535 = vst.msk [vmem:[%s4264_s30 + $0x88] sm:$0xff] %vm667_vm0, %v1330_v52 }
 0x29e   : > { %v2763_v26 = vpop.f32.mrb[52].mxu1 }
 0x29f   : > { %1540 = vst.msk [vmem:[%s4264_s30 + $0xb0] sm:$0xff] %vm667_vm0, %v2763_v26  ;;  %v1343_v27 = vpop.f32.mrb[53].mxu1 }
 0x2a0   : > { %1538 = vst.msk [vmem:[%s4264_s30 + $0xa0] sm:$0xff] %vm667_vm0, %v1343_v27  ;;  %v2764_v20 = vpop.f32.mrb[54].mxu1 }
 0x2a1   : > { %1541 = vst.msk [vmem:[%s4264_s30 + $0xb8] sm:$0xff] %vm667_vm0, %v2764_v20  ;;  %v1346_v53 = vpop.f32.mrb[55].mxu1 }
 0x2a2   : > { %1539 = vst.msk [vmem:[%s4264_s30 + $0xa8] sm:$0xff] %vm667_vm0, %v1346_v53 }
 0x2a6   : > { %v2767_v0 = vpop.f32.mrb[56].mxu1 }
 0x2a7   : > { %1544 = vst.msk [vmem:[%s4264_s30 + $0xd0] sm:$0xff] %vm667_vm0, %v2767_v0  ;;  %v1359_v55 = vpop.f32.mrb[57].mxu1 }
 0x2a8   : > { %1542 = vst.msk [vmem:[%s4264_s30 + $0xc0] sm:$0xff] %vm667_vm0, %v1359_v55  ;;  %v2768_v56 = vpop.f32.mrb[58].mxu1 }
 0x2a9   : > { %1545 = vst.msk [vmem:[%s4264_s30 + $0xd8] sm:$0xff] %vm667_vm0, %v2768_v56  ;;  %v1362_v6 = vpop.f32.mrb[59].mxu1 }
 0x2aa   : > { %1543 = vst.msk [vmem:[%s4264_s30 + $0xc8] sm:$0xff] %vm667_vm0, %v1362_v6 }
 0x2ae   : > { %v2771_v61 = vpop.f32.mrb[60].mxu1 }
 0x2af   : > { %1548 = vst.msk [vmem:[%s4264_s30 + $0xf0] sm:$0xff] %vm667_vm0, %v2771_v61  ;;  %v1375_v2 = vpop.f32.mrb[61].mxu1 }
 0x2b0   : > { %1546 = vst.msk [vmem:[%s4264_s30 + $0xe0] sm:$0xff] %vm667_vm0, %v1375_v2  ;;  %v2772_v9 = vpop.f32.mrb[62].mxu1 }
 0x2b1   : > { %1549 = vst.msk [vmem:[%s4264_s30 + $0xf8] sm:$0xff] %vm667_vm0, %v2772_v9  ;;  %v1378_v59 = vpop.f32.mrb[63].mxu1 }
 0x2b2   : > { %1547 = vst.msk [vmem:[%s4264_s30 + $0xe8] sm:$0xff] %vm667_vm0, %v1378_v59 }
 0x2b6   : > { %v2775_v60 = vpop.f32.mrb[64].mxu1 }
 0x2b7   : > { %1552 = vst.msk [vmem:[%s4264_s30 + $0x110] sm:$0xff] %vm667_vm0, %v2775_v60  ;;  %v1391_v25 = vpop.f32.mrb[65].mxu1 }
 0x2b8   : > { %1550 = vst.msk [vmem:[%s4264_s30 + $0x100] sm:$0xff] %vm667_vm0, %v1391_v25  ;;  %v2776_v28 = vpop.f32.mrb[66].mxu1 }
 0x2b9   : > { %1553 = vst.msk [vmem:[%s4264_s30 + $0x118] sm:$0xff] %vm667_vm0, %v2776_v28  ;;  %v1394_v29 = vpop.f32.mrb[67].mxu1 }
 0x2ba   : > { %1551 = vst.msk [vmem:[%s4264_s30 + $0x108] sm:$0xff] %vm667_vm0, %v1394_v29 }
 0x2be   : > { %v2779_v62 = vpop.f32.mrb[68].mxu1 }
 0x2bf   : > { %1556 = vst.msk [vmem:[%s4264_s30 + $0x130] sm:$0xff] %vm667_vm0, %v2779_v62  ;;  %v1407_v24 = vpop.f32.mrb[69].mxu1 }
 0x2c0   : > { %1554 = vst.msk [vmem:[%s4264_s30 + $0x120] sm:$0xff] %vm667_vm0, %v1407_v24  ;;  %v2780_v19 = vpop.f32.mrb[70].mxu1 }
 0x2c1   : > { %1557 = vst.msk [vmem:[%s4264_s30 + $0x138] sm:$0xff] %vm667_vm0, %v2780_v19  ;;  %v1410_v57 = vpop.f32.mrb[71].mxu1 }
 0x2c2   : > { %1555 = vst.msk [vmem:[%s4264_s30 + $0x128] sm:$0xff] %vm667_vm0, %v1410_v57 }
 0x2c6   : > { %v2783_v8 = vpop.f32.mrb[72].mxu1 }
 0x2c7   : > { %1560 = vst.msk [vmem:[%s4264_s30 + $0x150] sm:$0xff] %vm667_vm0, %v2783_v8  ;;  %v1423_v10 = vpop.f32.mrb[73].mxu1 }
 0x2c8   : > { %1558 = vst.msk [vmem:[%s4264_s30 + $0x140] sm:$0xff] %vm667_vm0, %v1423_v10  ;;  %v2784_v18 = vpop.f32.mrb[74].mxu1 }
 0x2c9   : > { %1561 = vst.msk [vmem:[%s4264_s30 + $0x158] sm:$0xff] %vm667_vm0, %v2784_v18  ;;  %v1426_v49 = vpop.f32.mrb[75].mxu1 }
 0x2ca   : > { %1559 = vst.msk [vmem:[%s4264_s30 + $0x148] sm:$0xff] %vm667_vm0, %v1426_v49 }
 0x2ce   : > { %v2787_v7 = vpop.f32.mrb[76].mxu1 }
 0x2cf   : > { %1564 = vst.msk [vmem:[%s4264_s30 + $0x170] sm:$0xff] %vm667_vm0, %v2787_v7  ;;  %v1439_v12 = vpop.f32.mrb[77].mxu1 }
 0x2d0   : > { %1562 = vst.msk [vmem:[%s4264_s30 + $0x160] sm:$0xff] %vm667_vm0, %v1439_v12  ;;  %v2788_v34 = vpop.f32.mrb[78].mxu1 }
 0x2d1   : > { %1565 = vst.msk [vmem:[%s4264_s30 + $0x178] sm:$0xff] %vm667_vm0, %v2788_v34  ;;  %v1442_v35 = vpop.f32.mrb[79].mxu1 }
 0x2d2   : > { %1563 = vst.msk [vmem:[%s4264_s30 + $0x168] sm:$0xff] %vm667_vm0, %v1442_v35 }
 0x2d6   : > { %v2791_v30 = vpop.f32.mrb[80].mxu1 }
 0x2d7   : > { %1568 = vst.msk [vmem:[%s4264_s30 + $0x190] sm:$0xff] %vm667_vm0, %v2791_v30  ;;  %v1455_v31 = vpop.f32.mrb[81].mxu1 }
 0x2d8   : > { %1566 = vst.msk [vmem:[%s4264_s30 + $0x180] sm:$0xff] %vm667_vm0, %v1455_v31  ;;  %v2792_v36 = vpop.f32.mrb[82].mxu1 }
 0x2d9   : > { %1569 = vst.msk [vmem:[%s4264_s30 + $0x198] sm:$0xff] %vm667_vm0, %v2792_v36  ;;  %v1458_v38 = vpop.f32.mrb[83].mxu1 }
 0x2da   : > { %1567 = vst.msk [vmem:[%s4264_s30 + $0x188] sm:$0xff] %vm667_vm0, %v1458_v38 }
 0x2de   : > { %v2795_v39 = vpop.f32.mrb[84].mxu1 }
 0x2df   : > { %1572 = vst.msk [vmem:[%s4264_s30 + $0x1b0] sm:$0xff] %vm667_vm0, %v2795_v39  ;;  %v1471_v4 = vpop.f32.mrb[85].mxu1 }
 0x2e0   : > { %1570 = vst.msk [vmem:[%s4264_s30 + $0x1a0] sm:$0xff] %vm667_vm0, %v1471_v4  ;;  %v2796_v1 = vpop.f32.mrb[86].mxu1 }
 0x2e1   : > { %1573 = vst.msk [vmem:[%s4264_s30 + $0x1b8] sm:$0xff] %vm667_vm0, %v2796_v1  ;;  %v1474_v13 = vpop.f32.mrb[87].mxu1 }
 0x2e2   : > { %1571 = vst.msk [vmem:[%s4264_s30 + $0x1a8] sm:$0xff] %vm667_vm0, %v1474_v13 }
 0x2e6   : > { %v2799_v23 = vpop.f32.mrb[88].mxu1 }
 0x2e7   : > { %1576 = vst.msk [vmem:[%s4264_s30 + $0x1d0] sm:$0xff] %vm667_vm0, %v2799_v23  ;;  %v1487_v40 = vpop.f32.mrb[89].mxu1 }
 0x2e8   : > { %1574 = vst.msk [vmem:[%s4264_s30 + $0x1c0] sm:$0xff] %vm667_vm0, %v1487_v40  ;;  %v2800_v37 = vpop.f32.mrb[90].mxu1 }
 0x2e9   : > { %1577 = vst.msk [vmem:[%s4264_s30 + $0x1d8] sm:$0xff] %vm667_vm0, %v2800_v37  ;;  %v1490_v43 = vpop.f32.mrb[91].mxu1 }
 0x2ea   : > { %1575 = vst.msk [vmem:[%s4264_s30 + $0x1c8] sm:$0xff] %vm667_vm0, %v1490_v43 }
 0x2ee   : > { %v2803_v14 = vpop.f32.mrb[92].mxu1 }
 0x2ef   : > { %1580 = vst.msk [vmem:[%s4264_s30 + $0x1f0] sm:$0xff] %vm667_vm0, %v2803_v14  ;;  %v1503_v22 = vpop.f32.mrb[93].mxu1 }
 0x2f0   : > { %1578 = vst.msk [vmem:[%s4264_s30 + $0x1e0] sm:$0xff] %vm667_vm0, %v1503_v22  ;;  %v2804_v33 = vpop.f32.mrb[94].mxu1 }
 0x2f1   : > { %1581 = vst.msk [vmem:[%s4264_s30 + $0x1f8] sm:$0xff] %vm667_vm0, %v2804_v33  ;;  %v1506_v32 = vpop.f32.mrb[95].mxu1 }
 0x2f2   : > { %1579 = vst.msk [vmem:[%s4264_s30 + $0x1e8] sm:$0xff] %vm667_vm0, %v1506_v32 }
 0x2f5   : > { %v2811_v42 = vpop.f32.mrb[32].mxu0 }
 0x2f6   : > { %2145 = vst [vmem:[%s4425_s26 + $0x10] sm:$0xff] %v2811_v42  ;;  %v1888_v11 = vpop.f32.mrb[33].mxu0 }
 0x2f7   : > { %3223 = shalt.err (!%p3220_p6)
}
 0x2f8   : > { %s3224_s4 = scalar_lea.hbm %s4418_s27, 8192  ;;  %s3228_s18 = scalar_lea.hbm %s4596_s6, 24576 }
 0x2f9   : > { %p3225_p2 = scmp.ne.s32.totalorder %s4418_s27, %s3224_s4  ;;  %p3229_p4 = scmp.lt.u32.totalorder %s4418_s27, %s4596_s6 }
 0x2fa   : > { %p3230_p3 = scmp.lt.u32.totalorder %s3228_s18, %s3224_s4  ;;  %p3232_p7 = scmp.lt.u32.totalorder %s3224_s4, %s4418_s27 }
 0x2fb   : > { %p3226_p8 = pnand %p3225_p2, %p4653_p12 }
 0x2fc   : > { %p3231_p13 = por %p3230_p3, %p3229_p4 }
 0x2fd   : > { %p3227_p0 = pneg %p3226_p8 }
 0x2fe   : > { %p3233_p11 = por %p3232_p7, %p3231_p13 }
 0x300   : > { %p3234_p5 = pnand %p3233_p11, %p3227_p0 }
 0x302   : > { %3237 = shalt.err (!%p3234_p5)
}
 0x303   : > { %s3382_s30 = smov 128   ;;  %s3383_s20 = smov 8   ;;  %2143 = vst [vmem:[%s4425_s26] sm:$0xff] %v1888_v11  ;;  %v2812_v41 = vpop.f32.mrb[34].mxu0 }
 0x304   : > { %2892 = dma.vmem_to_hbm [thread:$0]  (%p4653_p12), %s4421_s7, 8192, %s4418_s27, %s2213_s16, %s3382_s30, %s3382_s30, %s3383_s20   ;;  %v1891_v15 = vpop.f32.mrb[35].mxu0 }
 0x305   : > { %2146 = vst [vmem:[%s4425_s26 + $0x18] sm:$0xff] %v2812_v41  ;;  %2144 = vst [vmem:[%s4425_s26 + $0x8] sm:$0xff] %v1891_v15  ;;  %v2815_v58 = vpop.f32.mrb[36].mxu0  ;;  %s2226_s1 = sshll.u32 %s4425_s26, 4  ;;  %s4522_s16 = scalar_lea.hbm %s4595_s5, %s2565_s21  ;;  %s4524_s1 = int_to_ptr.vmem [resolvable:$true] %s2226_s1 }
 0x306   : > { %2149 = vst [vmem:[%s4425_s26 + $0x30] sm:$0xff] %v2815_v58  ;;  %v1904_v3 = vpop.f32.mrb[37].mxu0  ;;  %s2208_s19 = scalar_lea.sflag [#allocation6], %s3751_s22  ;;  %s3238_s10 = scalar_lea.vmem %s4524_s1, 8192 }
 0x307   : > { %2147 = vst [vmem:[%s4425_s26 + $0x20] sm:$0xff] %v1904_v3  ;;  %v2816_v16 = vpop.f32.mrb[38].mxu0  ;;  %p3239_p9 = scmp.ne.s32.totalorder %s4524_s1, %s3238_s10  ;;  %s3384_s17 = smov [#allocation12]  }
 0x308   : > { %2150 = vst [vmem:[%s4425_s26 + $0x38] sm:$0xff] %v2816_v16  ;;  %v1907_v54 = vpop.f32.mrb[39].mxu0  ;;  %s3242_s14 = sshll.u32 %s3384_s17, 4  ;;  %s3243_s14 = int_to_ptr.vmem [resolvable:$false] %s3242_s14 }
 0x309   : > { %2148 = vst [vmem:[%s4425_s26 + $0x28] sm:$0xff] %v1907_v54  ;;  %v2819_v63 = vpop.f32.mrb[40].mxu0  ;;  %p3240_p10 = pnand %p3239_p9, %p4653_p12  ;;  %s3244_s2 = scalar_lea.vmem %s3243_s14, 16384 }
 0x30a   : > { %2153 = vst [vmem:[%s4425_s26 + $0x50] sm:$0xff] %v2819_v63  ;;  %v1920_v17 = vpop.f32.mrb[41].mxu0  ;;  %p3245_p6 = scmp.lt.s32.totalorder %s4524_s1, %s3243_s14  ;;  %p3246_p2 = scmp.lt.s32.totalorder %s3244_s2, %s3238_s10 }
 0x30b   : > { %2151 = vst [vmem:[%s4425_s26 + $0x40] sm:$0xff] %v1920_v17  ;;  %v2820_v5 = vpop.f32.mrb[42].mxu0  ;;  %p3241_p1 = pneg %p3240_p10 }
 0x30c   : > { %2154 = vst [vmem:[%s4425_s26 + $0x58] sm:$0xff] %v2820_v5  ;;  %v1923_v44 = vpop.f32.mrb[43].mxu0  ;;  %p3247_p8 = por %p3246_p2, %p3245_p6 }
 0x30d   : > { %2152 = vst [vmem:[%s4425_s26 + $0x48] sm:$0xff] %v1923_v44  ;;  %v2823_v45 = vpop.f32.mrb[44].mxu0 }
 0x30e   : > { %2157 = vst [vmem:[%s4425_s26 + $0x70] sm:$0xff] %v2823_v45  ;;  %v1936_v46 = vpop.f32.mrb[45].mxu0  ;;  %p3248_p0 = pnand %p3247_p8, %p3241_p1 }
 0x30f   : > { %2155 = vst [vmem:[%s4425_s26 + $0x60] sm:$0xff] %v1936_v46  ;;  %v2824_v47 = vpop.f32.mrb[46].mxu0 }
 0x310   : > { %2158 = vst [vmem:[%s4425_s26 + $0x78] sm:$0xff] %v2824_v47  ;;  %v1939_v48 = vpop.f32.mrb[47].mxu0 }
 0x311   : > { %2156 = vst [vmem:[%s4425_s26 + $0x68] sm:$0xff] %v1939_v48 }
 0x315   : > { %v2827_v50 = vpop.f32.mrb[48].mxu0 }
 0x316   : > { %2161 = vst [vmem:[%s4425_s26 + $0x90] sm:$0xff] %v2827_v50  ;;  %v1952_v51 = vpop.f32.mrb[49].mxu0 }
 0x317   : > { %2159 = vst [vmem:[%s4425_s26 + $0x80] sm:$0xff] %v1952_v51  ;;  %v2828_v21 = vpop.f32.mrb[50].mxu0 }
 0x318   : > { %2162 = vst [vmem:[%s4425_s26 + $0x98] sm:$0xff] %v2828_v21  ;;  %v1955_v52 = vpop.f32.mrb[51].mxu0 }
 0x319   : > { %2160 = vst [vmem:[%s4425_s26 + $0x88] sm:$0xff] %v1955_v52 }
 0x31d   : > { %v2831_v26 = vpop.f32.mrb[52].mxu0 }
 0x31e   : > { %2165 = vst [vmem:[%s4425_s26 + $0xb0] sm:$0xff] %v2831_v26  ;;  %v1968_v27 = vpop.f32.mrb[53].mxu0 }
 0x31f   : > { %2163 = vst [vmem:[%s4425_s26 + $0xa0] sm:$0xff] %v1968_v27  ;;  %v2832_v20 = vpop.f32.mrb[54].mxu0 }
 0x320   : > { %2166 = vst [vmem:[%s4425_s26 + $0xb8] sm:$0xff] %v2832_v20  ;;  %v1971_v53 = vpop.f32.mrb[55].mxu0 }
 0x321   : > { %2164 = vst [vmem:[%s4425_s26 + $0xa8] sm:$0xff] %v1971_v53 }
 0x325   : > { %v2835_v0 = vpop.f32.mrb[56].mxu0 }
 0x326   : > { %2169 = vst [vmem:[%s4425_s26 + $0xd0] sm:$0xff] %v2835_v0  ;;  %v1984_v55 = vpop.f32.mrb[57].mxu0 }
 0x327   : > { %2167 = vst [vmem:[%s4425_s26 + $0xc0] sm:$0xff] %v1984_v55  ;;  %v2836_v56 = vpop.f32.mrb[58].mxu0 }
 0x328   : > { %2170 = vst [vmem:[%s4425_s26 + $0xd8] sm:$0xff] %v2836_v56  ;;  %v1987_v6 = vpop.f32.mrb[59].mxu0 }
 0x329   : > { %2168 = vst [vmem:[%s4425_s26 + $0xc8] sm:$0xff] %v1987_v6 }
 0x32d   : > { %v2839_v61 = vpop.f32.mrb[60].mxu0 }
 0x32e   : > { %2173 = vst [vmem:[%s4425_s26 + $0xf0] sm:$0xff] %v2839_v61  ;;  %v2000_v2 = vpop.f32.mrb[61].mxu0 }
 0x32f   : > { %2171 = vst [vmem:[%s4425_s26 + $0xe0] sm:$0xff] %v2000_v2  ;;  %v2840_v9 = vpop.f32.mrb[62].mxu0 }
 0x330   : > { %2174 = vst [vmem:[%s4425_s26 + $0xf8] sm:$0xff] %v2840_v9  ;;  %v2003_v59 = vpop.f32.mrb[63].mxu0 }
 0x331   : > { %2172 = vst [vmem:[%s4425_s26 + $0xe8] sm:$0xff] %v2003_v59 }
 0x335   : > { %v2843_v60 = vpop.f32.mrb[64].mxu0 }
 0x336   : > { %2177 = vst [vmem:[%s4425_s26 + $0x110] sm:$0xff] %v2843_v60  ;;  %v2016_v25 = vpop.f32.mrb[65].mxu0 }
 0x337   : > { %2175 = vst [vmem:[%s4425_s26 + $0x100] sm:$0xff] %v2016_v25  ;;  %v2844_v28 = vpop.f32.mrb[66].mxu0 }
 0x338   : > { %2178 = vst [vmem:[%s4425_s26 + $0x118] sm:$0xff] %v2844_v28  ;;  %v2019_v29 = vpop.f32.mrb[67].mxu0 }
 0x339   : > { %2176 = vst [vmem:[%s4425_s26 + $0x108] sm:$0xff] %v2019_v29 }
 0x33d   : > { %v2847_v62 = vpop.f32.mrb[68].mxu0 }
 0x33e   : > { %2181 = vst [vmem:[%s4425_s26 + $0x130] sm:$0xff] %v2847_v62  ;;  %v2032_v24 = vpop.f32.mrb[69].mxu0 }
 0x33f   : > { %2179 = vst [vmem:[%s4425_s26 + $0x120] sm:$0xff] %v2032_v24  ;;  %v2848_v19 = vpop.f32.mrb[70].mxu0 }
 0x340   : > { %2182 = vst [vmem:[%s4425_s26 + $0x138] sm:$0xff] %v2848_v19  ;;  %v2035_v57 = vpop.f32.mrb[71].mxu0 }
 0x341   : > { %2180 = vst [vmem:[%s4425_s26 + $0x128] sm:$0xff] %v2035_v57 }
 0x345   : > { %v2851_v8 = vpop.f32.mrb[72].mxu0 }
 0x346   : > { %2185 = vst [vmem:[%s4425_s26 + $0x150] sm:$0xff] %v2851_v8  ;;  %v2048_v10 = vpop.f32.mrb[73].mxu0 }
 0x347   : > { %2183 = vst [vmem:[%s4425_s26 + $0x140] sm:$0xff] %v2048_v10  ;;  %v2852_v18 = vpop.f32.mrb[74].mxu0 }
 0x348   : > { %2186 = vst [vmem:[%s4425_s26 + $0x158] sm:$0xff] %v2852_v18  ;;  %v2051_v49 = vpop.f32.mrb[75].mxu0 }
 0x349   : > { %2184 = vst [vmem:[%s4425_s26 + $0x148] sm:$0xff] %v2051_v49 }
 0x34d   : > { %v2855_v7 = vpop.f32.mrb[76].mxu0 }
 0x34e   : > { %2189 = vst [vmem:[%s4425_s26 + $0x170] sm:$0xff] %v2855_v7  ;;  %v2064_v12 = vpop.f32.mrb[77].mxu0 }
 0x34f   : > { %2187 = vst [vmem:[%s4425_s26 + $0x160] sm:$0xff] %v2064_v12  ;;  %v2856_v34 = vpop.f32.mrb[78].mxu0 }
 0x350   : > { %2190 = vst [vmem:[%s4425_s26 + $0x178] sm:$0xff] %v2856_v34  ;;  %v2067_v35 = vpop.f32.mrb[79].mxu0 }
 0x351   : > { %2188 = vst [vmem:[%s4425_s26 + $0x168] sm:$0xff] %v2067_v35 }
 0x355   : > { %v2859_v30 = vpop.f32.mrb[80].mxu0 }
 0x356   : > { %2193 = vst [vmem:[%s4425_s26 + $0x190] sm:$0xff] %v2859_v30  ;;  %v2080_v31 = vpop.f32.mrb[81].mxu0 }
 0x357   : > { %2191 = vst [vmem:[%s4425_s26 + $0x180] sm:$0xff] %v2080_v31  ;;  %v2860_v36 = vpop.f32.mrb[82].mxu0 }
 0x358   : > { %2194 = vst [vmem:[%s4425_s26 + $0x198] sm:$0xff] %v2860_v36  ;;  %v2083_v38 = vpop.f32.mrb[83].mxu0 }
 0x359   : > { %2192 = vst [vmem:[%s4425_s26 + $0x188] sm:$0xff] %v2083_v38 }
 0x35d   : > { %v2863_v39 = vpop.f32.mrb[84].mxu0 }
 0x35e   : > { %2197 = vst [vmem:[%s4425_s26 + $0x1b0] sm:$0xff] %v2863_v39  ;;  %v2096_v4 = vpop.f32.mrb[85].mxu0 }
 0x35f   : > { %2195 = vst [vmem:[%s4425_s26 + $0x1a0] sm:$0xff] %v2096_v4  ;;  %v2864_v1 = vpop.f32.mrb[86].mxu0 }
 0x360   : > { %2198 = vst [vmem:[%s4425_s26 + $0x1b8] sm:$0xff] %v2864_v1  ;;  %v2099_v13 = vpop.f32.mrb[87].mxu0 }
 0x361   : > { %2196 = vst [vmem:[%s4425_s26 + $0x1a8] sm:$0xff] %v2099_v13 }
 0x365   : > { %v2867_v23 = vpop.f32.mrb[88].mxu0 }
 0x366   : > { %2201 = vst [vmem:[%s4425_s26 + $0x1d0] sm:$0xff] %v2867_v23  ;;  %v2112_v40 = vpop.f32.mrb[89].mxu0 }
 0x367   : > { %2199 = vst [vmem:[%s4425_s26 + $0x1c0] sm:$0xff] %v2112_v40  ;;  %v2868_v37 = vpop.f32.mrb[90].mxu0 }
 0x368   : > { %2202 = vst [vmem:[%s4425_s26 + $0x1d8] sm:$0xff] %v2868_v37  ;;  %v2115_v43 = vpop.f32.mrb[91].mxu0 }
 0x369   : > { %2200 = vst [vmem:[%s4425_s26 + $0x1c8] sm:$0xff] %v2115_v43 }
 0x36d   : > { %v2871_v14 = vpop.f32.mrb[92].mxu0 }
 0x36e   : > { %2205 = vst [vmem:[%s4425_s26 + $0x1f0] sm:$0xff] %v2871_v14  ;;  %v2128_v22 = vpop.f32.mrb[93].mxu0 }
 0x36f   : > { %2203 = vst [vmem:[%s4425_s26 + $0x1e0] sm:$0xff] %v2128_v22  ;;  %v2872_v33 = vpop.f32.mrb[94].mxu0 }
 0x370   : > { %2206 = vst [vmem:[%s4425_s26 + $0x1f8] sm:$0xff] %v2872_v33  ;;  %v2131_v32 = vpop.f32.mrb[95].mxu0 }
 0x371   : > { %2204 = vst [vmem:[%s4425_s26 + $0x1e8] sm:$0xff] %v2131_v32 }
 0x372   : > { %3251 = shalt.err (!%p3248_p0)
}
 0x373   : > { %s3252_s21 = scalar_lea.hbm %s4522_s16, 8192  ;;  %s3256_s24 = scalar_lea.hbm %s4595_s5, 24576 }
 0x374   : > { %p3253_p4 = scmp.ne.s32.totalorder %s4522_s16, %s3252_s21  ;;  %p3257_p7 = scmp.lt.u32.totalorder %s4522_s16, %s4595_s5 }
 0x375   : > { %p3258_p11 = scmp.lt.u32.totalorder %s3256_s24, %s3252_s21  ;;  %p3260_p9 = scmp.lt.u32.totalorder %s3252_s21, %s4522_s16 }
 0x376   : > { %p3254_p3 = pnand %p3253_p4, %p4653_p12 }
 0x377   : > { %p3259_p5 = por %p3258_p11, %p3257_p7 }
 0x378   : > { %p3255_p13 = pneg %p3254_p3 }
 0x379   : > { %p3261_p10 = por %p3260_p9, %p3259_p5 }
 0x37b   : > { %p3262_p1 = pnand %p3261_p10, %p3255_p13 }
 0x37d   : > { %3265 = shalt.err (!%p3262_p1)
}
 0x37e   : > { %2891 = dma.vmem_to_hbm [thread:$0]  (%p4653_p12), %s4524_s1, 8192, %s4522_s16, %s2208_s19, %s3382_s30, %s3382_s30, %s3383_s20  }
 0x37f PF: > { %s4654_s28 = sld [smem:[#allocation31_spill]]  ;;  %p2923_p6 = scmp.ge.s32.totalorder %s3370_s15, 2 }
 0x380   : > { %s2257_s11 = sand.u32 1, %s3358_s12  }
 0x381   : > { %s2258_s27 = scalar_lea.sflag [#allocation6], %s2257_s11 }
 0x385   : > { %p4655_p2 = scmp.ne.s32.totalorder %s4654_s28, 0 }
 0x387   : > { %p2914_p8 = pnand %p2923_p6, %p4655_p2 }
 0x389   : > { %3325 = dma.done.wait (!%p2914_p8), %s2258_s27, 8192  }
 0x38a   : > { %3327 = vsyncadd (!%p2914_p8), %s2258_s27, 4294959104  ;;  %s2267_s29 = scalar_lea.sflag [#allocation14], %s2257_s11 }
 0x38b   : > { %3329 = dma.done.wait (!%p2914_p8), %s2267_s29, 8192  }
 0x38c   : > { %3331 = vsyncadd (!%p2914_p8), %s2267_s29, 4294959104  ;;  %s4656_s15 = sld [smem:[#allocation28_spill]]  ;;  %s4657_s22 = sld [smem:[#allocation26_spill]] }
 0x38d   : > { %s4658_s11 = sld [smem:[#allocation29_spill]]  ;;  %s4659_s30 = sld [smem:[#allocation27_spill]] }
 0x38e   : > { %s4660_s14 = sld [smem:[#allocation30_spill]]  ;;  %s4661_s7 = smov %s3338_s8 }
 0x38f   : > { %s4662_s8 = smov %s3342_s9  ;;  %s4663_s9 = smov %s3705_s25 }
 0x390   : > { %s4664_s10 = smov %s3350_s0  ;;  %s4666_s12 = smov %s3362_s13 }
 0x392   : > { %p31_p12 = scmp.ge.s32.totalorder %s4656_s15, 5   ;;  %s4665_s0 = smov %s4657_s22 }
 0x393   : > { %s4667_s13 = smov %s4659_s30 }
 0x394   :  { %33 = sbr.rel (!%p31_p12) target bundleno = 26 (0x1a), region = 126 }
 0x39b   :  { %2272 = vsyncpa [#allocation5], 1 }
 0x39c   :  { %2274 = vsyncpa [#allocation5 + $0x1], 1 }
 0x39d   :  { %2275 = vsyncpa [#allocation8], 1 }
 0x39e   :  { %2277 = vsyncpa [#allocation8 + $0x1], 1 }
 0x39f   :  { %2278 = vsyncpa [#allocation11], 1 }
 0x3a0   :  { %2279 = vsyncpa [#allocation6], 1 }
 0x3a1   :  { %2281 = vsyncpa [#allocation6 + $0x1], 1 }
 0x3a2   :  { %2282 = vsyncpa [#allocation14], 1 }
 0x3a3   :  { %2284 = vsyncpa [#allocation14 + $0x1], 1 }

// kernel: hgt_forward.10
= control target key start
LH: loop header
LB: loop body
LE: loop exit
PB: predicated region body
PF: predicated region fallthrough
CT: control target
= control target key end

     0   :  { %s6430_s0 = inlined_call_operand.hbm [shape: s32[4], index: 0, kind: input, shape index: {}]   ;;  %s6431_s1 = inlined_call_operand.hbm [shape: bf16[2048,32], index: 1, kind: input, shape index: {}]   ;;  %s6432_s2 = inlined_call_operand.hbm [shape: bf16[2048,32], index: 2, kind: input, shape index: {}]   ;;  %s6433_s3 = inlined_call_operand.hbm [shape: bf16[3,32,32], index: 3, kind: input, shape index: {}]   ;;  %s6434_s4 = inlined_call_operand.hbm [shape: f32[3,1,32], index: 4, kind: input, shape index: {}]   ;;  %s6435_s5 = inlined_call_operand.hbm [shape: f32[3,1,32], index: 5, kind: input, shape index: {}]   ;;  %s6436_s6 = inlined_call_operand.hbm [shape: f32[3,1,32], index: 6, kind: input, shape index: {}]   ;;  %s6437_s7 = inlined_call_operand.hbm [shape: f32[3,1,32], index: 7, kind: input, shape index: {}]   ;;  %s6438_s8 = inlined_call_operand.hbm [shape: bf16[2048,32], index: 8, kind: output, shape index: {}]  }
   0x1   :  { %6521 = sst [smem:[#allocation75_spill]] %s6431_s1  ;;  %s3807_s29 = scalar_lea.hbm %s6430_s0, 16 }
   0x2   :  { %6522 = sst [smem:[#allocation76_spill]] %s6432_s2  ;;  %p3808_p0 = scmp.ne.s32.totalorder %s6430_s0, %s3807_s29 }
   0x3   :  { %6523 = sst [smem:[#allocation77_spill]] %s6433_s3  ;;  %p3811_p1 = scmp.lt.u32.totalorder %s3807_s29, %s6430_s0 }
   0x4   :  { %6524 = sst [smem:[#allocation78_spill]] %s6434_s4 }
   0x5   :  { %6525 = sst [smem:[#allocation79_spill]] %s6435_s5  ;;  %p3813_p2 = pnand %p3811_p1, %p3808_p0 }
   0x6   :  { %6526 = sst [smem:[#allocation80_spill]] %s6436_s6 }
   0x7   :  { %6527 = sst [smem:[#allocation81_spill]] %s6437_s7 }
   0x8   :  { %6528 = sst [smem:[#allocation82_spill]] %s6438_s8 }
   0x9   :  { %3816 = shalt.err (!%p3813_p2)  }
   0xa   :  { %s4241_s12 = smov [#allocation3]  }
   0xb   :  { %14 = dma.hbm_to_smem %s6430_s0, 16, %s4241_s12, [#allocation2] }
   0xc   :  { %4131 = dma.done.wait [#allocation2], 16 }
   0xd   :  { %4132 = vsyncadd [#allocation2], 4294967280 }
   0xe   :  { %16 = sfence }
   0xf   :  { %17 = vsyncpa [#allocation5], 0 }
  0x10   :  { %19 = vsyncpa [#allocation5 + $0x1], 0 }
  0x11   :  { %20 = vsyncpa [#allocation8], 0 }
  0x12   :  { %22 = vsyncpa [#allocation8 + $0x1], 0 }
  0x13   :  { %23 = vsyncpa [#allocation11], 0 }
  0x14   :  { %25 = vsyncpa [#allocation11 + $0x1], 0 }
  0x15   :  { %26 = vsyncpa [#allocation14], 0 }
  0x16   :  { %28 = vsyncpa [#allocation14 + $0x1], 0 }
  0x17   :  { %29 = vsyncpa [#allocation6], 0 }
  0x18   :  { %31 = vsyncpa [#allocation6 + $0x1], 0  ;;  %s4311_s15 = smov 0   ;;  %s4313_s16 = smov 0  }
  0x19   :  { %s4315_s17 = smov 0   ;;  %s4317_s0 = smov 0  }
  0x1a   :  { %s4319_s18 = smov 0   ;;  %s4321_s19 = smov 0  }
  0x1b   :  { %s4323_s20 = smov 0   ;;  %s4325_s21 = smov 0  }
  0x1c   :  { %s4327_s22 = smov 0   ;;  %s4329_s23 = smov 0  }
  0x1d   :  { %s4331_s24 = smov 0   ;;  %s4333_s25 = smov 0  }
  0x1e   :  { %s4335_s26 = smov 0   ;;  %s4337_s27 = smov 0  }
  0x1f   :  { %s4339_s28 = smov 0   ;;  %s4341_s29 = smov 0  }
  0x20   :  { %s4343_s30 = smov 0   ;;  %s4345_s9 = smov 0  }
  0x21   :  { %s4347_s10 = smov 0  }
  0x22 LB: > { %6529 = sst [smem:[#allocation36_spill]] %s4167_s15  ;;  %s4407_s11 = sadd.s32 4294967295, %s4239_s10   ;;  %s4239_s10 = sphi %s4347_s10, %s6740_s10   ;;  %s4235_s9 = sphi %s4345_s9, %s6728_s9   ;;  %s4231_s30 = sphi %s4343_s30, %s6727_s30   ;;  %s4227_s29 = sphi %s4341_s29, %s6726_s29   ;;  %s4223_s28 = sphi %s4339_s28, %s6739_s28   ;;  %s4219_s27 = sphi %s4337_s27, %s6738_s27   ;;  %s4215_s26 = sphi %s4335_s26, %s6737_s26   ;;  %s4211_s25 = sphi %s4333_s25, %s6723_s25   ;;  %s4207_s24 = sphi %s4331_s24, %s6736_s24   ;;  %s4203_s23 = sphi %s4329_s23, %s6721_s23   ;;  %s4199_s22 = sphi %s4327_s22, %s6735_s22   ;;  %s4195_s21 = sphi %s4325_s21, %s6734_s21   ;;  %s4191_s20 = sphi %s4323_s20, %s6733_s20   ;;  %s4187_s19 = sphi %s4321_s19, %s6732_s19   ;;  %s4183_s18 = sphi %s4319_s18, %s6731_s18   ;;  %s4179_s0 = sphi %s4317_s0, %s6730_s0   ;;  %s4175_s17 = sphi %s4315_s17, %s6729_s17   ;;  %s4171_s16 = sphi %s4313_s16, %s6718_s16   ;;  %s4167_s15 = sphi %s4311_s15, %s6717_s15  }
  0x23   : > { %6530 = sst [smem:[#allocation37_spill]] %s4171_s16  ;;  %s2929_s12 = sadd.s32 4294967294, %s4239_s10  }
  0x24   : > { %6531 = sst [smem:[#allocation38_spill]] %s4175_s17  ;;  %s4411_s13 = sadd.s32 1, %s4239_s10  }
  0x25   : > { %6532 = sst [smem:[#allocation39_spill]] %s4191_s20  ;;  %s44_s14 = sadd.s32 1, %s4235_s9 }
  0x26   : > { %6533 = sst [smem:[#allocation40_spill]] %s4199_s22  ;;  %s41_s8 = ssub.s32 %s4239_s10, %s4411_s13 }
  0x27   : > { %6534 = sst [smem:[#allocation41_spill]] %s4207_s24  ;;  %p51_p3 = scmp.ne.s32.totalorder %s4235_s9, %s4231_s30 }
  0x28   : > { %6535 = sst [smem:[#allocation42_spill]] %s4211_s25  ;;  %p42_p4 = scmp.eq.s32.totalorder %s41_s8, 0 }
  0x29   : > { %6536 = sst [smem:[#allocation43_spill]] %s4223_s28  ;;  %p6457_p5 = scmp.eq.s32.totalorder %s4239_s10, 0 }
  0x2a   : > { %6537 = sst [smem:[#allocation44_spill]] %s4227_s29  ;;  %p57_p6 = scmp.ne.s32.totalorder %s4231_s30, %s4227_s29 }
  0x2b   : > { %6538 = sst [smem:[#allocation45_spill]] %s4231_s30  ;;  %p6456_p7 = scmp.eq.s32.totalorder %s4407_s11, 0 }
  0x2c   : > { %6539 = sst [smem:[#allocation46_spill]] %s4235_s9  ;;  %p53_p8 = por %p6457_p5, %p51_p3 }
  0x2d   : > { %s4423_s7 = scalar_select %p42_p4, %s4235_s9, %s44_s14  }
  0x2e   : > { %p4429_p9 = por %p6456_p7, %p57_p6  ;;  %p247_p10 = scmp.eq.s32.totalorder %s4407_s11, 3 }
  0x2f   : > { %6540 = sst [smem:[#allocation47_spill]] %s4423_s7  ;;  %p253_p11 = scmp.eq.s32.totalorder %s2929_s12, 3 }
  0x30   : > { %s6541_s5 = scalar_select %p4429_p9, 1, 0 }
  0x31   : > { %p6455_p12 = scmp.lt.s32.totalorder %s4239_s10, 4  ;;  %p4435_p13 = por %p247_p10, %p51_p3 }
  0x32   : > { %6542 = sst [smem:[#allocation48_spill]] %s6541_s5  ;;  %p4439_p0 = por %p253_p11, %p57_p6 }
  0x33   : > { %s6543_s8 = scalar_select %p4435_p13, 1, 0 }
  0x34   : > { %s6545_s29 = scalar_select %p4439_p0, 1, 0 }
  0x35   : > { %6544 = sst [smem:[#allocation49_spill]] %s6543_s8  ;;  %s6449_s14 = sand.u32 1, %s4235_s9  }
  0x36   : > { %6546 = sst [smem:[#allocation50_spill]] %s6545_s29  ;;  %s6453_s7 = sshll.u32 %s4239_s10, 12 }
  0x37   : > { %s4447_s30 = sshll.u32 %s6449_s14, 8  ;;  %p4451_p1 = pnand %p6455_p12, %p53_p8 }
  0x38   : > { %s4456_s12 = sand.u32 1, %s4239_s10   ;;  %s6549_s2 = sld [smem:[#allocation76_spill]] }
  0x39   : > { %s6547_s5 = scalar_select %p4451_p1, 1, 0 }
  0x3a   : > { %6548 = sst [smem:[#allocation51_spill]] %s4456_s12  ;;  %s298_s14 = scalar_lea.vmem [#allocation7], %s4447_s30 }
  0x3b   : > { %s305_s17 = sshll.u32 %s298_s14, 4  ;;  %s6459_s16 = scalar_lea.sflag [#allocation8], %s4456_s12  ;;  %s4466_s17 = int_to_ptr.vmem [resolvable:$true] %s305_s17 }
  0x3c   : > { %p6468_p4 = pneg %p4451_p1 }
  0x3e   : > { %s4463_s29 = scalar_lea.hbm %s6549_s2, %s6453_s7  ;;  %s3822_s7 = scalar_lea.hbm %s6549_s2, 16384 }
  0x3f   : > { %s3817_s3 = scalar_lea.hbm %s4463_s29, 4096  ;;  %p3823_p10 = scmp.lt.u32.totalorder %s4463_s29, %s6549_s2 }
  0x40   : > { %p3818_p3 = scmp.ne.s32.totalorder %s4463_s29, %s3817_s3  ;;  %p3824_p11 = scmp.lt.u32.totalorder %s3822_s7, %s3817_s3 }
  0x41   : > { %p3826_p7 = scmp.lt.u32.totalorder %s3817_s3, %s4463_s29 }
  0x42   : > { %p3820_p6 = pnand %p6468_p4, %p3818_p3  ;;  %p3825_p12 = por %p3824_p11, %p3823_p10 }
  0x44   : > { %p3821_p8 = pneg %p3820_p6  ;;  %p3827_p5 = por %p3826_p7, %p3825_p12 }
  0x46   : > { %p3828_p2 = pnand %p3827_p5, %p3821_p8 }
  0x48   : > { %3831 = shalt.err (!%p3828_p2)
}
  0x49   : > { %s3832_s14 = scalar_lea.vmem %s4466_s17, 4096  ;;  %s4242_s15 = smov [#allocation7]  }
  0x4a   : > { %p3833_p3 = scmp.ne.s32.totalorder %s4466_s17, %s3832_s14  ;;  %s3837_s8 = sshll.u32 %s4242_s15, 4  ;;  %s3838_s8 = int_to_ptr.vmem [resolvable:$false] %s3837_s8 }
  0x4b   : > { %s3839_s20 = scalar_lea.vmem %s3838_s8, 8192  ;;  %p3840_p13 = scmp.lt.s32.totalorder %s4466_s17, %s3838_s8 }
  0x4c   : > { %p3835_p6 = pnand %p3833_p3, %p6468_p4  ;;  %p3841_p10 = scmp.lt.s32.totalorder %s3839_s20, %s3832_s14 }
  0x4e   : > { %p3836_p0 = pneg %p3835_p6  ;;  %p3842_p11 = por %p3841_p10, %p3840_p13 }
  0x50   : > { %p3843_p7 = pnand %p3842_p11, %p3836_p0 }
  0x52   : > { %3846 = shalt.err (!%p3843_p7)
}
  0x53   : > { %s6460_s3 = smov 64   ;;  %s6462_s7 = smov 4  }
  0x54   : > { %3454 = dma.hbm_to_vmem [thread:$0]  (!%p4451_p1), %s4463_s29, 4096, %s4466_s17, %s6459_s16, %s6460_s3, %s6460_s3, %s6462_s7  }
  0x55   : > { %p407_p5 = scmp.lt.s32.totalorder %s4239_s10, 5  ;;  %p6550_p12 = scmp.ge.s32.totalorder %s4239_s10, 1 }
  0x56   : > { %s121_s14 = sld [smem:[#allocation3 + %s4239_s10]]  ;;  %s126_s8 = sadd.s32 1, %s4211_s25 }
  0x57   : > { %p4503_p13 = pnand %p6550_p12, %p407_p5  ;;  %s122_s15 = sld [smem:[#allocation3 + %s4411_s13]] }
  0x58   : > { %p133_p0 = scmp.ne.s32.totalorder %s4211_s25, %s4207_s24  ;;  %p139_p2 = scmp.ne.s32.totalorder %s4207_s24, %s4203_s23 }
  0x59   : > { %s6551_s22 = scalar_select %p4503_p13, 1, 0 }
  0x5a   : > { %p6552_p8 = scmp.eq.s32.totalorder %s4239_s10, 0  ;;  %s339_s29 = sand.u32 1, %s4211_s25  }
  0x5b   : > { %p6554_p6 = scmp.eq.s32.totalorder %s4407_s11, 0  ;;  %s340_s3 = scalar_lea.vmem [#allocation10], %s339_s29 }
  0x5c   : > { %p4516_p3 = por %p133_p0, %p6552_p8  ;;  %s348_s7 = sshll.u32 %s340_s3, 4  ;;  %s4529_s7 = int_to_ptr.vmem [resolvable:$true] %s348_s7 }
  0x5d   : > { %p4523_p10 = por %p139_p2, %p6554_p6  ;;  %s123_s16 = ssub.s32 %s121_s14, %s122_s15 }
  0x5e   : > { %s3427_s23 = scalar_select %p4516_p3, [#allocation3], [#allocation18] }
  0x5f   : > { %s6555_s20 = scalar_select %p4523_p10, 1, 0 }
  0x60   : > { %p124_p11 = scmp.eq.s32.totalorder %s123_s16, 0  ;;  %p6558_p7 = scmp.lt.s32.totalorder %s4239_s10, 4 }
  0x61   : > { %6556 = sst [smem:[#allocation52_spill]] %s6555_s20  ;;  %p189_p2 = scmp.ne.s32.totalorder %s4187_s19, %s4183_s18 }
  0x62   : > { %s3428_s2 = scalar_select %p4516_p3, %s4239_s10, 0 }
  0x63   : > { %s4535_s24 = scalar_select %p124_p11, %s4211_s25, %s126_s8  }
  0x64   : > { %s6742_s23 = smov (!%p6558_p7, %s3427_s23), [#allocation23]  ;;  %p6559_p5 = pmov %p6558_p7 }
  0x65   : > { %6557 = sst [smem:[#allocation53_spill]] %s4535_s24  ;;  %s6562_s4 = sld [smem:[#allocation78_spill]] }
  0x66   : > { %s6744_s2 = smov (!%p6559_p5, %s3428_s2), 0  ;;  %p6560_p12 = pmov %p6559_p5 }
  0x67   : > { %s341_s16 = sld [smem:[%s6742_s23 + %s6744_s2]] }
  0x68   : > { %p4545_p0 = pnand %p6560_p12, %p4516_p3  ;;  %s4550_s3 = sld [smem:[#allocation3 + %s4239_s10]] }
  0x69   : > { %s4553_s14 = sld [smem:[#allocation3 + %s4411_s13]]  ;;  %p6563_p3 = pmov %p6552_p8 }
  0x6a   : > { %p3849_p7 = pneg %p4545_p0 }
  0x6b   : > { %p4567_p6 = por %p189_p2, %p6563_p3 }
  0x6d   : > { %s2941_s8 = sshll.u32 %s341_s16, 4 }
  0x6e   : > { %s4563_s17 = scalar_lea.hbm %s6562_s4, %s2941_s8  ;;  %s3852_s8 = scalar_lea.hbm %s6562_s4, 48 }
  0x6f   : > { %s3847_s25 = scalar_lea.hbm %s4563_s17, 16  ;;  %p3853_p2 = scmp.lt.u32.totalorder %s4563_s17, %s6562_s4 }
  0x70   : > { %p3848_p11 = scmp.ne.s32.totalorder %s4563_s17, %s3847_s25  ;;  %p3854_p3 = scmp.lt.u32.totalorder %s3852_s8, %s3847_s25 }
  0x71   : > { %p3856_p8 = scmp.lt.u32.totalorder %s3847_s25, %s4563_s17 }
  0x72   : > { %p3850_p5 = pnand %p3849_p7, %p3848_p11  ;;  %p3855_p4 = por %p3854_p3, %p3853_p2 }
  0x74   : > { %p3851_p12 = pneg %p3850_p5  ;;  %p3857_p10 = por %p3856_p8, %p3855_p4 }
  0x76   : > { %p3858_p9 = pnand %p3857_p10, %p3851_p12 }
  0x78   : > { %3861 = shalt.err (!%p3858_p9)
}
  0x79   : > { %s3862_s23 = scalar_lea.vmem %s4529_s7, 16  ;;  %s4245_s24 = smov [#allocation10]  }
  0x7a   : > { %p3863_p11 = scmp.ne.s32.totalorder %s4529_s7, %s3862_s23  ;;  %s3867_s16 = sshll.u32 %s4245_s24, 4  ;;  %s3868_s16 = int_to_ptr.vmem [resolvable:$false] %s3867_s16 }
  0x7b   : > { %s3869_s15 = scalar_lea.vmem %s3868_s16, 32  ;;  %p3870_p1 = scmp.lt.s32.totalorder %s4529_s7, %s3868_s16 }
  0x7c   : > { %p3865_p5 = pnand %p3863_p11, %p3849_p7  ;;  %p3871_p2 = scmp.lt.s32.totalorder %s3869_s15, %s3862_s23 }
  0x7e   : > { %p3866_p13 = pneg %p3865_p5  ;;  %p3872_p3 = por %p3871_p2, %p3870_p1 }
  0x80   : > { %p3873_p4 = pnand %p3872_p3, %p3866_p13 }
  0x82   : > { %3876 = shalt.err (!%p3873_p4)
}
  0x83   : > { %s6565_s25 = scalar_lea.sflag [#allocation11], %s4456_s12  ;;  %p6566_p9 = scmp.eq.s32.totalorder %s4407_s11, 0 }
  0x84   : > { %3464 = dma.hbm_to_vmem [thread:$0]  (!%p4545_p0), %s4563_s17, 16, %s4529_s7, %s6565_s25  }
  0x85   : > { %p6567_p1 = scmp.ne.s32.totalorder %s4183_s18, %s4179_s0  ;;  %s375_s23 = sand.u32 1, %s4187_s19  }
  0x86   : > { %s179_s8 = ssub.s32 %s4550_s3, %s4553_s14  ;;  %s376_s29 = scalar_lea.vmem [#allocation13], %s375_s23 }
  0x87   : > { %p4604_p13 = por %p6567_p1, %p6566_p9  ;;  %p180_p10 = scmp.eq.s32.totalorder %s179_s8, 0 }
  0x88   : > { %s384_s24 = sshll.u32 %s376_s29, 4  ;;  %s6569_s15 = sadd.s32 1, %s4187_s19  ;;  %s4625_s24 = int_to_ptr.vmem [resolvable:$true] %s384_s24 }
  0x89   : > { %s6568_s20 = scalar_select %p4604_p13, 1, 0 }
  0x8a   : > { %s3433_s16 = scalar_select %p4567_p6, [#allocation3], [#allocation20] }
  0x8b   : > { %s4616_s4 = scalar_select %p180_p10, %s4187_s19, %s6569_s15  }
  0x8c   : > { %s3434_s7 = scalar_select %p4567_p6, %s4239_s10, 0 }
  0x8d   : > { %6570 = sst [smem:[#allocation54_spill]] %s4616_s4  ;;  %p6571_p0 = scmp.lt.s32.totalorder %s4239_s10, 4 }
  0x8e   : > { %s6575_s14 = sshll.u32 %s4239_s10, 12  ;;  %s6576_s1 = sld [smem:[#allocation75_spill]] }
  0x8f   : > { %s6746_s16 = smov (!%p6571_p0, %s3433_s16), [#allocation25]  ;;  %p6572_p8 = pmov %p6571_p0 }
  0x90   : > { %p6573_p7 = pmov %p6571_p0  ;;  %s277_s8 = scalar_lea.vmem [#allocation4], %s4447_s30 }
  0x91   : > { %s6748_s7 = smov (!%p6572_p8, %s3434_s7), 0  ;;  %s284_s29 = sshll.u32 %s277_s8, 4  ;;  %s4645_s29 = int_to_ptr.vmem [resolvable:$true] %s284_s29 }
  0x92   : > { %p4631_p12 = pnand %p6573_p7, %p4567_p6  ;;  %s4635_s3 = sld [smem:[%s6746_s16 + %s6748_s7]] }
  0x93   : > { %s6577_s2 = sand.u32 1, %s4235_s9   ;;  %p6578_p11 = scmp.ne.s32.totalorder %s6547_s5, 0 }
  0x94   : > { %s4642_s23 = scalar_lea.hbm %s6576_s1, %s6575_s14  ;;  %s4649_s15 = scalar_lea.sflag [#allocation5], %s6577_s2 }
  0x95   : > { %s3877_s4 = scalar_lea.hbm %s4642_s23, 4096  ;;  %p6579_p5 = pneg %p6578_p11 }
  0x96   : > { %p3878_p6 = scmp.ne.s32.totalorder %s4642_s23, %s3877_s4  ;;  %s3882_s14 = scalar_lea.hbm %s6576_s1, 16384 }
  0x97   : > { %p3883_p4 = scmp.lt.u32.totalorder %s4642_s23, %s6576_s1  ;;  %p3884_p9 = scmp.lt.u32.totalorder %s3882_s14, %s3877_s4 }
  0x98   : > { %p3880_p2 = pnand %p3878_p6, %p6579_p5  ;;  %p3886_p10 = scmp.lt.u32.totalorder %s3877_s4, %s4642_s23 }
  0x99   : > { %p3885_p1 = por %p3884_p9, %p3883_p4 }
  0x9a   : > { %p3881_p3 = pneg %p3880_p2 }
  0x9b   : > { %p3887_p0 = por %p3886_p10, %p3885_p1 }
  0x9d   : > { %p3888_p8 = pnand %p3887_p0, %p3881_p3 }
  0x9f   : > { %3891 = shalt.err (!%p3888_p8)
}
  0xa0   : > { %s3892_s30 = scalar_lea.vmem %s4645_s29, 4096  ;;  %p6580_p6 = pmov %p6579_p5 }
  0xa1   : > { %p3893_p7 = scmp.ne.s32.totalorder %s4645_s29, %s3892_s30  ;;  %s4246_s8 = smov [#allocation4]  }
  0xa2   : > { %s3897_s2 = sshll.u32 %s4246_s8, 4  ;;  %s3898_s2 = int_to_ptr.vmem [resolvable:$false] %s3897_s2 }
  0xa3   : > { %p3895_p5 = pnand %p3893_p7, %p6580_p6  ;;  %s3899_s16 = scalar_lea.vmem %s3898_s2, 8192 }
  0xa4   : > { %p3900_p13 = scmp.lt.s32.totalorder %s4645_s29, %s3898_s2  ;;  %p3901_p4 = scmp.lt.s32.totalorder %s3899_s16, %s3892_s30 }
  0xa5   : > { %p3896_p2 = pneg %p3895_p5 }
  0xa6   : > { %p3902_p9 = por %p3901_p4, %p3900_p13 }
  0xa8   : > { %p3903_p1 = pnand %p3902_p9, %p3896_p2 }
  0xaa   : > { %3906 = shalt.err (!%p3903_p1)
}
  0xab   : > { %s6581_s4 = smov 4   ;;  %s6582_s7 = smov 64  }
  0xac   : > { %3451 = dma.hbm_to_vmem [thread:$0]  (!%p6578_p11), %s4642_s23, 4096, %s4645_s29, %s4649_s15, %s6582_s7, %s6582_s7, %s6581_s4  }
  0xad   : > { %s2943_s14 = sshll.u32 %s4635_s3, 4  ;;  %s6583_s6 = sld [smem:[#allocation80_spill]] }
  0xae   : > { %s6474_s5 = scalar_lea.sflag [#allocation14], %s4456_s12  ;;  %p3909_p3 = pneg %p4631_p12 }
  0xb3   : > { %s4682_s30 = scalar_lea.hbm %s6583_s6, %s2943_s14  ;;  %s3912_s29 = scalar_lea.hbm %s6583_s6, 48 }
  0xb4   : > { %s3907_s8 = scalar_lea.hbm %s4682_s30, 16  ;;  %p3913_p11 = scmp.lt.u32.totalorder %s4682_s30, %s6583_s6 }
  0xb5   : > { %p3908_p13 = scmp.ne.s32.totalorder %s4682_s30, %s3907_s8  ;;  %p3914_p8 = scmp.lt.u32.totalorder %s3912_s29, %s3907_s8 }
  0xb6   : > { %p3916_p6 = scmp.lt.u32.totalorder %s3907_s8, %s4682_s30 }
  0xb7   : > { %p3910_p10 = pnand %p3909_p3, %p3908_p13  ;;  %p3915_p7 = por %p3914_p8, %p3913_p11 }
  0xb9   : > { %p3911_p0 = pneg %p3910_p10  ;;  %p3917_p5 = por %p3916_p6, %p3915_p7 }
  0xbb   : > { %p3918_p2 = pnand %p3917_p5, %p3911_p0 }
  0xbd   : > { %3921 = shalt.err (!%p3918_p2)
}
  0xbe   : > { %s3922_s16 = scalar_lea.vmem %s4625_s24, 16  ;;  %s4247_s14 = smov [#allocation13]  }
  0xbf   : > { %p3923_p4 = scmp.ne.s32.totalorder %s4625_s24, %s3922_s16  ;;  %s3927_s17 = sshll.u32 %s4247_s14, 4  ;;  %s3928_s17 = int_to_ptr.vmem [resolvable:$false] %s3927_s17 }
  0xc0   : > { %s3929_s25 = scalar_lea.vmem %s3928_s17, 32  ;;  %p3930_p13 = scmp.lt.s32.totalorder %s4625_s24, %s3928_s17 }
  0xc1   : > { %p3925_p9 = pnand %p3923_p4, %p3909_p3  ;;  %p3931_p10 = scmp.lt.s32.totalorder %s3929_s25, %s3922_s16 }
  0xc3   : > { %p3926_p1 = pneg %p3925_p9  ;;  %p3932_p11 = por %p3931_p10, %p3930_p13 }
  0xc5   : > { %p3933_p8 = pnand %p3932_p11, %p3926_p1 }
  0xc7   : > { %3936 = shalt.err (!%p3933_p8)
}
  0xc8   : > { %3474 = dma.hbm_to_vmem [thread:$0]  (!%p4631_p12), %s4682_s30, 16, %s4625_s24, %s6474_s5  }
  0xc9   : > { %s93_s8 = sld [smem:[#allocation3 + %s4239_s10]]  ;;  %p105_p3 = scmp.ne.s32.totalorder %s4223_s28, %s4219_s27 }
  0xca   : > { %s94_s0 = sld [smem:[#allocation3 + %s4411_s13]]  ;;  %p111_p0 = scmp.ne.s32.totalorder %s4219_s27, %s4215_s26 }
  0xcb   : > { %s98_s23 = sadd.s32 1, %s4223_s28  ;;  %s317_s3 = sand.u32 1, %s4223_s28  }
  0xcc   : > { %p6584_p7 = scmp.eq.s32.totalorder %s4407_s11, 0  ;;  %p6586_p5 = scmp.eq.s32.totalorder %s4239_s10, 0 }
  0xcd   : > { %s6587_s24 = sld [smem:[#allocation40_spill]]  ;;  %s2938_s30 = sshll.u32 %s317_s3, 4 }
  0xce   : > { %p4722_p6 = por %p111_p0, %p6584_p7  ;;  %p107_p2 = por %p105_p3, %p6586_p5 }
  0xcf   : > { %s6588_s15 = sld [smem:[#allocation39_spill]]  ;;  %p6589_p12 = scmp.lt.s32.totalorder %s4239_s10, 4 }
  0xd0   : > { %s6585_s29 = scalar_select %p4722_p6, 1, 0 }
  0xd1   : > { %s95_s2 = ssub.s32 %s93_s8, %s94_s0  ;;  %p4730_p4 = pnand %p6589_p12, %p107_p2 }
  0xd2   : > { %p96_p9 = scmp.eq.s32.totalorder %s95_s2, 0  ;;  %s319_s16 = scalar_lea.vmem [#allocation9], %s2938_s30 }
  0xd3   : > { %s327_s14 = sshll.u32 %s319_s16, 4  ;;  %p6592_p1 = pmov %p6589_p12  ;;  %s4748_s14 = int_to_ptr.vmem [resolvable:$true] %s327_s14 }
  0xd4   : > { %s3424_s17 = scalar_select %p107_p2, [#allocation3], [#allocation17] }
  0xd5   : > { %s4735_s25 = scalar_select %p96_p9, %s4223_s28, %s98_s23  }
  0xd6   : > { %s3425_s5 = scalar_select %p107_p2, %s4239_s10, 0 }
  0xd7   : > { %6591 = sst [smem:[#allocation55_spill]] %s4735_s25  ;;  %s6750_s17 = smov (!%p6592_p1, %s3424_s17), [#allocation22] }
  0xd8   : > { %p6593_p13 = pmov %p6592_p1  ;;  %s4743_s0 = sld [smem:[#allocation3 + %s4239_s10]] }
  0xd9   : > { %s4746_s3 = sld [smem:[#allocation3 + %s4411_s13]]  ;;  %p161_p10 = scmp.ne.s32.totalorder %s6587_s24, %s4195_s21 }
  0xda   : > { %s6752_s5 = smov (!%p6593_p13, %s3425_s5), 0  ;;  %p167_p11 = scmp.ne.s32.totalorder %s4195_s21, %s6588_s15 }
  0xdb   : > { %s320_s8 = sld [smem:[%s6750_s17 + %s6752_s5]]  ;;  %s357_s30 = sand.u32 1, %s6587_s24  }
  0xdc   : > { %p6594_p8 = pmov %p6584_p7  ;;  %s6596_s9 = sld [smem:[#allocation77_spill]] }
  0xdd   : > { %p6598_p0 = pmov %p6586_p5  ;;  %p3939_p2 = pneg %p4730_p4 }
  0xde   : > { %p4758_p3 = por %p167_p11, %p6594_p8 }
  0xdf   : > { %p4769_p7 = por %p161_p10, %p6598_p0 }
  0xe0   : > { %s6595_s16 = scalar_select %p4758_p3, 1, 0 }
  0xe1   : > { %s3091_s23 = sshll.u32 %s320_s8, 8 }
  0xe2   : > { %s6597_s12 = smov %s6596_s9  ;;  %s4765_s5 = scalar_lea.hbm %s6596_s9, %s3091_s23 }
  0xe3   : > { %s3937_s17 = scalar_lea.hbm %s4765_s5, 256  ;;  %s3942_s9 = scalar_lea.hbm %s6597_s12, 768 }
  0xe4   : > { %p3938_p5 = scmp.ne.s32.totalorder %s4765_s5, %s3937_s17  ;;  %p3943_p1 = scmp.lt.u32.totalorder %s4765_s5, %s6597_s12 }
  0xe5   : > { %p3944_p13 = scmp.lt.u32.totalorder %s3942_s9, %s3937_s17  ;;  %p3946_p11 = scmp.lt.u32.totalorder %s3937_s17, %s4765_s5 }
  0xe6   : > { %p3940_p12 = pnand %p3939_p2, %p3938_p5 }
  0xe7   : > { %p3945_p10 = por %p3944_p13, %p3943_p1 }
  0xe8   : > { %p3941_p9 = pneg %p3940_p12 }
  0xe9   : > { %p3947_p8 = por %p3946_p11, %p3945_p10 }
  0xeb   : > { %p3948_p0 = pnand %p3947_p8, %p3941_p9 }
  0xed   : > { %3951 = shalt.err (!%p3948_p0)
}
  0xee   : > { %s3952_s2 = scalar_lea.vmem %s4748_s14, 256  ;;  %s4248_s1 = smov [#allocation9]  }
  0xef   : > { %p3953_p5 = scmp.ne.s32.totalorder %s4748_s14, %s3952_s2  ;;  %s3957_s6 = sshll.u32 %s4248_s1, 4  ;;  %s3958_s6 = int_to_ptr.vmem [resolvable:$false] %s3957_s6 }
  0xf0   : > { %s3959_s8 = scalar_lea.vmem %s3958_s6, 512  ;;  %p3960_p6 = scmp.lt.s32.totalorder %s4748_s14, %s3958_s6 }
  0xf1   : > { %p3955_p12 = pnand %p3953_p5, %p3939_p2  ;;  %p3961_p1 = scmp.lt.s32.totalorder %s3959_s8, %s3952_s2 }
  0xf3   : > { %p3956_p3 = pneg %p3955_p12  ;;  %p3962_p13 = por %p3961_p1, %p3960_p6 }
  0xf5   : > { %p3963_p10 = pnand %p3962_p13, %p3956_p3 }
  0xf7   : > { %3966 = shalt.err (!%p3963_p10)
}
  0xf8   : > { %s6600_s17 = sld [smem:[#allocation51_spill]]  ;;  %s6602_s26 = sld [smem:[#allocation37_spill]] }
  0xf9   : > { %s6603_s2 = sld [smem:[#allocation38_spill]]  ;;  %s6604_s23 = sld [smem:[#allocation36_spill]] }
  0xfa   : > { %s151_s1 = ssub.s32 %s4743_s0, %s4746_s3  ;;  %s358_s6 = scalar_lea.vmem [#allocation12], %s357_s30 }
  0xfb   : > { %s366_s8 = sshll.u32 %s358_s6, 4  ;;  %p152_p6 = scmp.eq.s32.totalorder %s151_s1, 0  ;;  %s4837_s8 = int_to_ptr.vmem [resolvable:$true] %s366_s8 }
  0xfc   : > { %p6605_p3 = scmp.lt.s32.totalorder %s4239_s10, 4  ;;  %s6607_s28 = sadd.s32 1, %s6587_s24 }
  0xfd   : > { %s3430_s25 = scalar_select %p4769_p7, [#allocation3], [#allocation19] }
  0xfe   : > { %s6601_s9 = scalar_lea.sflag [#allocation8], %s6600_s17  ;;  %p4811_p2 = pnand %p6605_p3, %p4769_p7 }
  0xff   : > { %3459 = dma.hbm_to_vmem [thread:$0]  (!%p4730_p4), %s4765_s5, 256, %s4748_s14, %s6601_s9, %s6582_s7, %s6582_s7, %s6581_s4  }
 0x100   : > { %s6754_s24 = smov (!%p152_p6, %s6587_s24), %s6607_s28  ;;  %p6608_p4 = pmov %p6605_p3 }
 0x101   : > { %s3431_s4 = scalar_select %p4769_p7, %s4239_s10, 0 }
 0x102   : > { %s6756_s25 = smov (!%p6608_p4, %s3430_s25), [#allocation24]  ;;  %p6609_p9 = pmov %p6605_p3 }
 0x103   : > { %s4830_s14 = sld [smem:[#allocation3 + %s4239_s10]]  ;;  %p217_p11 = scmp.ne.s32.totalorder %s6603_s2, %s6602_s26 }
 0x104   : > { %s6758_s4 = smov (!%p6609_p9, %s3431_s4), 0  ;;  %s4833_s0 = sld [smem:[#allocation3 + %s4411_s13]] }
 0x105   : > { %s359_s7 = sld [smem:[%s6756_s25 + %s6758_s4]]  ;;  %p223_p8 = scmp.ne.s32.totalorder %s6602_s26, %s6604_s23 }
 0x106   : > { %p6610_p0 = scmp.eq.s32.totalorder %s4239_s10, 0  ;;  %s6612_s15 = sld [smem:[#allocation79_spill]] }
 0x107   : > { %p6614_p7 = scmp.eq.s32.totalorder %s4407_s11, 0  ;;  %p3969_p13 = pneg %p4811_p2 }
 0x108   : > { %p4843_p5 = por %p217_p11, %p6610_p0 }
 0x109   : > { %p4854_p12 = por %p223_p8, %p6614_p7 }
 0x10b   : > { %s2942_s3 = sshll.u32 %s359_s7, 4 }
 0x10c   : > { %s6613_s1 = smov %s6612_s15  ;;  %s4850_s9 = scalar_lea.hbm %s6612_s15, %s2942_s3 }
 0x10d   : > { %s6615_s25 = scalar_select %p4854_p12, 1, 0 }
 0x10e   : > { %s3967_s26 = scalar_lea.hbm %s4850_s9, 16  ;;  %s3972_s4 = scalar_lea.hbm %s6613_s1, 48 }
 0x10f   : > { %p3968_p1 = scmp.ne.s32.totalorder %s4850_s9, %s3967_s26  ;;  %p3973_p3 = scmp.lt.u32.totalorder %s4850_s9, %s6613_s1 }
 0x110   : > { %p3974_p4 = scmp.lt.u32.totalorder %s3972_s4, %s3967_s26  ;;  %p3976_p11 = scmp.lt.u32.totalorder %s3967_s26, %s4850_s9 }
 0x111   : > { %p3970_p10 = pnand %p3969_p13, %p3968_p1 }
 0x112   : > { %p3975_p9 = por %p3974_p4, %p3973_p3 }
 0x113   : > { %p3971_p6 = pneg %p3970_p10 }
 0x114   : > { %p3977_p8 = por %p3976_p11, %p3975_p9 }
 0x116   : > { %p3978_p0 = pnand %p3977_p8, %p3971_p6 }
 0x118   : > { %3981 = shalt.err (!%p3978_p0)
}
 0x119   : > { %s3982_s30 = scalar_lea.vmem %s4837_s8, 16  ;;  %s4249_s5 = smov [#allocation12]  }
 0x11a   : > { %p3983_p7 = scmp.ne.s32.totalorder %s4837_s8, %s3982_s30  ;;  %s3987_s15 = sshll.u32 %s4249_s5, 4  ;;  %s3988_s15 = int_to_ptr.vmem [resolvable:$false] %s3987_s15 }
 0x11b   : > { %s3989_s23 = scalar_lea.vmem %s3988_s15, 32  ;;  %p3990_p12 = scmp.lt.s32.totalorder %s4837_s8, %s3988_s15 }
 0x11c   : > { %p3985_p1 = pnand %p3983_p7, %p3969_p13  ;;  %p3991_p3 = scmp.lt.s32.totalorder %s3989_s23, %s3982_s30 }
 0x11e   : > { %p3986_p10 = pneg %p3985_p1  ;;  %p3992_p4 = por %p3991_p3, %p3990_p12 }
 0x120   : > { %p3993_p9 = pnand %p3992_p4, %p3986_p10 }
 0x122   : > { %3996 = shalt.err (!%p3993_p9)
}
 0x123   : > { %s6616_s26 = scalar_lea.sflag [#allocation11], %s6600_s17  ;;  %s207_s6 = ssub.s32 %s4830_s14, %s4833_s0 }
 0x124   : > { %3469 = dma.hbm_to_vmem [thread:$0]  (!%p4811_p2), %s4850_s9, 16, %s4837_s8, %s6616_s26  }
 0x125   : > { %s210_s4 = sadd.s32 1, %s6603_s2  ;;  %p208_p12 = scmp.eq.s32.totalorder %s207_s6, 0 }
 0x126   : > { %s393_s12 = sand.u32 1, %s6603_s2   ;;  %p6617_p13 = scmp.lt.s32.totalorder %s4239_s10, 4 }
 0x127   : > { %s3436_s7 = scalar_select %p4843_p5, [#allocation3], [#allocation21] }
 0x128   : > { %s6760_s2 = smov (!%p208_p12, %s6603_s2), %s210_s4  ;;  %p6618_p6 = pmov %p6617_p13 }
 0x129   : > { %s3437_s3 = scalar_select %p4843_p5, %s4239_s10, 0 }
 0x12a   : > { %s6762_s7 = smov (!%p6617_p13, %s3436_s7), [#allocation26]  ;;  %p6619_p11 = pmov %p6618_p6 }
 0x12b   : > { %s6764_s3 = smov (!%p6618_p6, %s3437_s3), 0  ;;  %s394_s14 = scalar_lea.vmem [#allocation15], %s393_s12 }
 0x12c   : > { %p4905_p8 = pnand %p6619_p11, %p4843_p5  ;;  %s395_s8 = sld [smem:[%s6762_s7 + %s6764_s3]] }
 0x12d   : > { %s402_s0 = sshll.u32 %s394_s14, 4  ;;  %s6621_s23 = sld [smem:[#allocation81_spill]]  ;;  %s4909_s0 = int_to_ptr.vmem [resolvable:$true] %s402_s0 }
 0x12e   : > { %p3999_p0 = pneg %p4905_p8 }
 0x132   : > { %s2944_s9 = sshll.u32 %s395_s8, 4 }
 0x133   : > { %s6622_s6 = smov %s6621_s23  ;;  %s400_s26 = scalar_lea.hbm %s6621_s23, %s2944_s9 }
 0x134   : > { %s3997_s4 = scalar_lea.hbm %s400_s26, 16  ;;  %s4002_s12 = scalar_lea.hbm %s6622_s6, 48 }
 0x135   : > { %p3998_p2 = scmp.ne.s32.totalorder %s400_s26, %s3997_s4  ;;  %p4003_p1 = scmp.lt.u32.totalorder %s400_s26, %s6622_s6 }
 0x136   : > { %p4004_p10 = scmp.lt.u32.totalorder %s4002_s12, %s3997_s4  ;;  %p4006_p4 = scmp.lt.u32.totalorder %s3997_s4, %s400_s26 }
 0x137   : > { %p4000_p5 = pnand %p3999_p0, %p3998_p2 }
 0x138   : > { %p4005_p3 = por %p4004_p10, %p4003_p1 }
 0x139   : > { %p4001_p7 = pneg %p4000_p5 }
 0x13a   : > { %p4007_p9 = por %p4006_p4, %p4005_p3 }
 0x13c   : > { %p4008_p12 = pnand %p4007_p9, %p4001_p7 }
 0x13e   : > { %4011 = shalt.err (!%p4008_p12)
}
 0x13f   : > { %s4012_s8 = scalar_lea.vmem %s4909_s0, 16  ;;  %s4250_s1 = smov [#allocation15]  }
 0x140   : > { %p4013_p13 = scmp.ne.s32.totalorder %s4909_s0, %s4012_s8  ;;  %s4017_s14 = sshll.u32 %s4250_s1, 4  ;;  %s4018_s14 = int_to_ptr.vmem [resolvable:$false] %s4017_s14 }
 0x141   : > { %s4019_s9 = scalar_lea.vmem %s4018_s14, 32  ;;  %p4020_p2 = scmp.lt.s32.totalorder %s4909_s0, %s4018_s14 }
 0x142   : > { %p4015_p6 = pnand %p4013_p13, %p3999_p0  ;;  %p4021_p5 = scmp.lt.s32.totalorder %s4019_s9, %s4012_s8 }
 0x144   : > { %p4016_p11 = pneg %p4015_p6  ;;  %p4022_p1 = por %p4021_p5, %p4020_p2 }
 0x146   : > { %p4023_p10 = pnand %p4022_p1, %p4016_p11 }
 0x148   : > { %4026 = shalt.err (!%p4023_p10)
}
 0x149   : > { %s6623_s5 = scalar_lea.sflag [#allocation14], %s6600_s17  ;;  %p6624_p7 = scmp.ne.s32.totalorder %s6551_s22, 0 }
 0x14a   : > { %3479 = dma.hbm_to_vmem [thread:$0]  (!%p4905_p8), %s400_s26, 16, %s4909_s0, %s6623_s5  }
 0x14b   : > { %411 = sbr.rel (%p6624_p7) target bundleno = 1065 (0x429), region = 48 }
 0x152   : > { %s6625_s15 = sld [smem:[#allocation45_spill]]  ;;  %s6626_s23 = sld [smem:[#allocation48_spill]] }
 0x158   : > { %s4939_s4 = sand.u32 1, %s6625_s15   ;;  %p6627_p0 = scmp.ne.s32.totalorder %s6626_s23, 0 }
 0x159   : > { %s4942_s28 = sshll.u32 %s4939_s4, 8  ;;  %s414_s12 = scalar_lea.sflag [#allocation5], %s4939_s4 }
 0x15a   : > { %s4946_s7 = scalar_lea.vmem [#allocation4], %s4942_s28 }
 0x15b   : > { %4134 = dma.done.wait (%p6627_p0), %s414_s12, 4096  }
 0x15c   : > { %4136 = vsyncadd (%p6627_p0), %s414_s12, 4294963200  ;;  %s422_s22 = sand.u32 1, %s4407_s11   ;;  %s4954_s30 = scalar_lea.vmem [#allocation7], %s4942_s28 }
 0x15d   : > { %s423_s17 = scalar_lea.sflag [#allocation8], %s422_s22 }
 0x15e   : > { %4138 = dma.done.wait (%p6627_p0), %s423_s17, 4096  }
 0x15f   : > { %4140 = vsyncadd (%p6627_p0), %s423_s17, 4294963200  ;;  %s433_s0 = sand.u32 1, %s4219_s27   ;;  %p6628_p8 = scmp.ne.s32.totalorder %s6585_s29, 0 }
 0x160   : > { %s2948_s26 = sshll.u32 %s433_s0, 4 }
 0x161   : > { %s435_s3 = scalar_lea.vmem [#allocation9], %s2948_s26 }
 0x162   : > { %4142 = dma.done.wait (%p6628_p8), %s423_s17, 256  }
 0x163   : > { %4144 = vsyncadd (%p6628_p8), %s423_s17, 4294967040  ;;  %s6629_s8 = sld [smem:[#allocation41_spill]]  ;;  %s441_s9 = scalar_lea.sflag [#allocation11], %s422_s22 }
 0x164   : > { %s6630_s1 = sld [smem:[#allocation52_spill]] }
 0x169   : > { %s442_s14 = sand.u32 1, %s6629_s8  }
 0x16a   : > { %s4966_s5 = scalar_lea.vmem [#allocation10], %s442_s14  ;;  %p6631_p3 = scmp.ne.s32.totalorder %s6630_s1, 0 }
 0x16c   : > { %4146 = dma.done.wait (%p6631_p3), %s441_s9, 16  }
 0x16d   : > { %4148 = vsyncadd (%p6631_p3), %s441_s9, 4294967280  ;;  %s450_s15 = sand.u32 1, %s4195_s21   ;;  %p6632_p4 = scmp.ne.s32.totalorder %s6595_s16, 0 }
 0x16e   : > { %s4973_s23 = scalar_lea.vmem [#allocation12], %s450_s15 }
 0x16f   : > { %4150 = dma.done.wait (%p6632_p4), %s441_s9, 16  }
 0x170   : > { %4152 = vsyncadd (%p6632_p4), %s441_s9, 4294967280  ;;  %s458_s29 = sand.u32 1, %s4183_s18   ;;  %s457_s12 = scalar_lea.sflag [#allocation14], %s422_s22 }
 0x171   : > { %s4980_s17 = scalar_lea.vmem [#allocation13], %s458_s29  ;;  %p6633_p9 = scmp.ne.s32.totalorder %s6568_s20, 0 }
 0x173   : > { %4154 = dma.done.wait (%p6633_p9), %s457_s12, 16  }
 0x174   : > { %4156 = vsyncadd (%p6633_p9), %s457_s12, 4294967280  ;;  %s6634_s0 = sld [smem:[#allocation37_spill]]  ;;  %p6635_p12 = scmp.ne.s32.totalorder %s6615_s25, 0 }
 0x17a   : > { %s466_s26 = sand.u32 1, %s6634_s0  }
 0x17b   : > { %s4987_s8 = scalar_lea.vmem [#allocation15], %s466_s26 }
 0x17c   : > { %4158 = dma.done.wait (%p6635_p12), %s457_s12, 16  }
 0x17d   : > { %4160 = vsyncadd (%p6635_p12), %s457_s12, 4294967280  ;;  %v3643_v0 = vld [vmem:[%s435_s3] sm:$0xff]   ;;  %v3644_v1 = vld [vmem:[%s435_s3 + $0x8] sm:$0xff]   ;;  %vm780_vm0 = vcmask 261120   ;;  %vm2660_vm1 = vcmask 257024   ;;  %s6012_s20 = scalar_lea.vmem [#allocation16], %s4942_s28 }
 0x17e   : > { %3350 = vmatprep.subr.bf16.mxu0 %v3643_v0  ;;  %3418 = vmatprep.subr.bf16.mxu1 %v3643_v0  ;;  %v3645_v2 = vld [vmem:[%s4946_s7] sm:$0xff]   ;;  %v3647_v4 = vld [vmem:[%s4946_s7 + $0x8] sm:$0xff]   ;;  %v3649_v6 = vld [vmem:[%s4946_s7 + $0x10] sm:$0xff]   ;;  %s6710_s16 = sld [smem:[#allocation49_spill]]  ;;  %s3156_s25 = sshll.u32 %s4407_s11, 12 }
 0x17f   : > { %3351 = vmatpush3.bf16.msra.mxu0 %v3643_v0  ;;  %3420 = vmatpush3.bf16.msra.mxu1 %v3643_v0  ;;  %v3646_v3 = vld [vmem:[%s4946_s7 + $0x80] sm:$0xff]   ;;  %v3648_v5 = vld [vmem:[%s4946_s7 + $0x88] sm:$0xff]   ;;  %v3651_v7 = vld [vmem:[%s4946_s7 + $0x90] sm:$0xff]   ;;  %s2739_s28 = sshll.u32 %s6012_s20, 4  ;;  %s2726_s11 = scalar_lea.sflag [#allocation6], %s4939_s4  ;;  %s6336_s28 = int_to_ptr.vmem [resolvable:$true] %s2739_s28 }
 0x180   : > { %3352 = vmatprep.subr.bf16.mxu0 %v3644_v1  ;;  %3419 = vmatprep.subr.bf16.mxu1 %v3644_v1  ;;  %v3650_v8 = vld [vmem:[%s4946_s7 + $0x18] sm:$0xff]   ;;  %v3653_v10 = vld [vmem:[%s4946_s7 + $0x20] sm:$0xff]   ;;  %v3654_v12 = vld [vmem:[%s4946_s7 + $0x28] sm:$0xff]   ;;  %s4027_s14 = scalar_lea.vmem %s6336_s28, 4096  ;;  %s4251_s9 = smov [#allocation16]  }
 0x181   : > { %3354 = vmatprep.mubr.msk.bf16.mxu0 %vm780_vm0, %v3645_v2  ;;  %3386 = vmatprep.mubr.msk.bf16.mxu1 %vm780_vm0, %v3646_v3  ;;  %v3652_v9 = vld [vmem:[%s4946_s7 + $0x98] sm:$0xff]   ;;  %v3655_v11 = vld [vmem:[%s4946_s7 + $0xa0] sm:$0xff]   ;;  %v3656_v13 = vld [vmem:[%s4946_s7 + $0xa8] sm:$0xff]   ;;  %p4028_p13 = scmp.ne.s32.totalorder %s6336_s28, %s4027_s14 }
 0x182   : > { %v3657_v14 = vld [vmem:[%s4946_s7 + $0x30] sm:$0xff]   ;;  %v3658_v16 = vld [vmem:[%s4946_s7 + $0x38] sm:$0xff]   ;;  %v3661_v18 = vld [vmem:[%s4946_s7 + $0x40] sm:$0xff]  }
 0x183   : > { %3353 = vmatpush3.bf16.msra.mxu0 %v3644_v1  ;;  %3421 = vmatpush3.bf16.msra.mxu1 %v3644_v1  ;;  %v3659_v15 = vld [vmem:[%s4946_s7 + $0xb0] sm:$0xff]   ;;  %v3660_v17 = vld [vmem:[%s4946_s7 + $0xb8] sm:$0xff]   ;;  %v3663_v19 = vld [vmem:[%s4946_s7 + $0xc0] sm:$0xff]  }
 0x184   : > { %v3662_v20 = vld [vmem:[%s4946_s7 + $0x48] sm:$0xff]   ;;  %v3665_v22 = vld [vmem:[%s4946_s7 + $0x50] sm:$0xff]   ;;  %v3666_v24 = vld [vmem:[%s4946_s7 + $0x58] sm:$0xff]   ;;  %p6713_p6 = scmp.ne.s32.totalorder %s6710_s16, 0 }
 0x185   : > { %v3664_v21 = vld [vmem:[%s4946_s7 + $0xc8] sm:$0xff]   ;;  %v3667_v23 = vld [vmem:[%s4946_s7 + $0xd0] sm:$0xff]   ;;  %v3668_v25 = vld [vmem:[%s4946_s7 + $0xd8] sm:$0xff]  }
 0x186   : > { %3355 = vmatmul.mubr.msk.bf16.vlgmr.msra.gmra.mrb[0].mxu0 %vm780_vm0, %v3647_v4  ;;  %3387 = vmatmul.mubr.msk.bf16.vlgmr.msra.gmra.mrb[0].mxu1 %vm780_vm0, %v3648_v5  ;;  %v3669_v26 = vld [vmem:[%s4946_s7 + $0x60] sm:$0xff]   ;;  %v3670_v28 = vld [vmem:[%s4946_s7 + $0x68] sm:$0xff]   ;;  %v3673_v30 = vld [vmem:[%s4946_s7 + $0x70] sm:$0xff]   ;;  %p4029_p11 = pnand %p4028_p13, %p6713_p6 }
 0x187   : > { %3358 = vmatprep.mubr.msk.bf16.mxu0 %vm780_vm0, %v3649_v6  ;;  %3390 = vmatprep.mubr.msk.bf16.mxu1 %vm780_vm0, %v3651_v7  ;;  %v3671_v27 = vld [vmem:[%s4946_s7 + $0xe0] sm:$0xff]   ;;  %v3672_v29 = vld [vmem:[%s4946_s7 + $0xe8] sm:$0xff]   ;;  %v3675_v31 = vld [vmem:[%s4946_s7 + $0xf0] sm:$0xff]  }
 0x188   : > { %v3674_v32 = vld [vmem:[%s4946_s7 + $0x78] sm:$0xff]   ;;  %v3301_v34 = vld [vmem:[%s4954_s30 + $0x88] sm:$0xff]   ;;  %v3158_v36 = vld [vmem:[%s4954_s30] sm:$0xff]   ;;  %p4030_p2 = pneg %p4029_p11 }
 0x189   : > { %v3676_v33 = vld [vmem:[%s4946_s7 + $0xf8] sm:$0xff]   ;;  %v3285_v35 = vld [vmem:[%s4954_s30 + $0x8] sm:$0xff]   ;;  %v3227_v37 = vunpack.c.l.bf16 %v3301_v34  ;;  %v3300_v39 = vld [vmem:[%s4954_s30 + $0x80] sm:$0xff]   ;;  %v3159_v42 = vunpack.c.l.bf16 %v3158_v36  ;;  %v3228_v49 = vunpack.c.h.bf16 %v3301_v34  ;;  %v3160_v5 = vunpack.c.h.bf16 %v3158_v36 }
 0x18a   : > { %v3163_v38 = vunpack.c.l.bf16 %v3285_v35  ;;  %v5062_v40 = vld [vmem:[%s4973_s23] ss:$0 sm:$0xff]  ;;  %v3164_v41 = vunpack.c.h.bf16 %v3285_v35  ;;  %v3223_v44 = vunpack.c.l.bf16 %v3300_v39  ;;  %v3224_v1 = vunpack.c.h.bf16 %v3300_v39  ;;  %v3287_v6 = vld [vmem:[%s4954_s30 + $0x18] sm:$0xff]   ;;  %v3286_v36 = vld [vmem:[%s4954_s30 + $0x10] sm:$0xff]  }
 0x18b   : > { %v5065_v43 = vld [vmem:[%s4966_s5] ss:$0 sm:$0xff]  ;;  %v1335_v45 = vmul.f32 %v3227_v37, %v5062_v40  ;;  %v1301_v55 = vmul.f32 %v3159_v42, %v5062_v40  ;;  %v1336_v4 = vmul.f32 %v3228_v49, %v5062_v40  ;;  %v3168_v42 = vunpack.c.h.bf16 %v3286_v36  ;;  %s4031_s5 = sshll.u32 %s4251_s9, 4  ;;  %s4032_s5 = int_to_ptr.vmem [resolvable:$false] %s4031_s5 }
 0x18c   : > { %v1303_v46 = vmul.f32 %v3163_v38, %v5062_v40  ;;  %v1304_v54 = vmul.f32 %v3164_v41, %v5062_v40  ;;  %v1333_v59 = vmul.f32 %v3223_v44, %v5062_v40  ;;  %v3167_v44 = vunpack.c.l.bf16 %v3286_v36  ;;  %s4033_s15 = scalar_lea.vmem %s4032_s5, 8192  ;;  %p4034_p5 = scmp.lt.s32.totalorder %s6336_s28, %s4032_s5 }
 0x18d   : > { %p4035_p1 = scmp.lt.s32.totalorder %s4033_s15, %s4027_s14 }
 0x18e   : > { %3359 = vmatmul.mubr.msk.bf16.gmra.mrb[4].mxu0 %vm780_vm0, %v3650_v8  ;;  %3391 = vmatmul.mubr.msk.bf16.gmra.mrb[4].mxu1 %vm780_vm0, %v3652_v9 }
 0x18f   : > { %3362 = vmatprep.mubr.msk.bf16.mxu0 %vm780_vm0, %v3653_v10  ;;  %3394 = vmatprep.mubr.msk.bf16.mxu1 %vm780_vm0, %v3655_v11  ;;  %v3172_v11 = vunpack.c.h.bf16 %v3287_v6  ;;  %p4036_p10 = por %p4035_p1, %p4034_p5 }
 0x191   : > { %p4037_p7 = pnand %p4036_p10, %p4030_p2 }
 0x196   : > { %3363 = vmatmul.mubr.msk.bf16.gmra.mrb[8].mxu0 %vm780_vm0, %v3654_v12  ;;  %3395 = vmatmul.mubr.msk.bf16.gmra.mrb[8].mxu1 %vm780_vm0, %v3656_v13  ;;  %v3171_v12 = vunpack.c.l.bf16 %v3287_v6 }
 0x197   : > { %3366 = vmatprep.mubr.msk.bf16.mxu0 %vm780_vm0, %v3657_v14  ;;  %3398 = vmatprep.mubr.msk.bf16.mxu1 %vm780_vm0, %v3659_v15 }
 0x19e   : > { %3367 = vmatmul.mubr.msk.bf16.gmra.mrb[12].mxu0 %vm780_vm0, %v3658_v16  ;;  %3399 = vmatmul.mubr.msk.bf16.gmra.mrb[12].mxu1 %vm780_vm0, %v3660_v17  ;;  %v1334_v17 = vmul.f32 %v3224_v1, %v5062_v40 }
 0x19f   : > { %3370 = vmatprep.mubr.msk.bf16.mxu0 %vm780_vm0, %v3661_v18  ;;  %3402 = vmatprep.mubr.msk.bf16.mxu1 %vm780_vm0, %v3663_v19  ;;  %v1302_v18 = vmul.f32 %v3160_v5, %v5062_v40  ;;  %v1305_v5 = vmul.f32 %v3167_v44, %v5062_v40 }
 0x1a6   : > { %3371 = vmatmul.mubr.msk.bf16.gmra.mrb[16].mxu0 %vm780_vm0, %v3662_v20  ;;  %3403 = vmatmul.mubr.msk.bf16.gmra.mrb[16].mxu1 %vm780_vm0, %v3664_v21 }
 0x1a7   : > { %3374 = vmatprep.mubr.msk.bf16.mxu0 %vm780_vm0, %v3665_v22  ;;  %3406 = vmatprep.mubr.msk.bf16.mxu1 %vm780_vm0, %v3667_v23 }
 0x1ae   : > { %3375 = vmatmul.mubr.msk.bf16.gmra.mrb[20].mxu0 %vm780_vm0, %v3666_v24  ;;  %3407 = vmatmul.mubr.msk.bf16.gmra.mrb[20].mxu1 %vm780_vm0, %v3668_v25  ;;  %v3303_v25 = vld [vmem:[%s4954_s30 + $0x98] sm:$0xff]  }
 0x1af   : > { %3378 = vmatprep.mubr.msk.bf16.mxu0 %vm780_vm0, %v3669_v26  ;;  %3410 = vmatprep.mubr.msk.bf16.mxu1 %vm780_vm0, %v3671_v27  ;;  %v3236_v34 = vunpack.c.h.bf16 %v3303_v25  ;;  %v3235_v35 = vunpack.c.l.bf16 %v3303_v25 }
 0x1b6   : > { %3379 = vmatmul.mubr.msk.bf16.gmra.mrb[24].mxu0 %vm780_vm0, %v3670_v28  ;;  %3411 = vmatmul.mubr.msk.bf16.gmra.mrb[24].mxu1 %vm780_vm0, %v3672_v29 }
 0x1b7   : > { %3382 = vmatprep.mubr.msk.bf16.mxu0 %vm780_vm0, %v3673_v30  ;;  %3414 = vmatprep.mubr.msk.bf16.mxu1 %vm780_vm0, %v3675_v31  ;;  %v1308_v30 = vmul.f32 %v3172_v11, %v5062_v40  ;;  %v1307_v31 = vmul.f32 %v3171_v12, %v5062_v40  ;;  %v3289_v12 = vld [vmem:[%s4954_s30 + $0x28] sm:$0xff]  }
 0x1be   : > { %3383 = vmatmul.mubr.msk.bf16.gmra.mrb[28].mxu0 %vm780_vm0, %v3674_v32  ;;  %3415 = vmatmul.mubr.msk.bf16.gmra.mrb[28].mxu1 %vm780_vm0, %v3676_v33 }
 0x259   : > { %v3356_v47 = vpop.f32.mrb[0].mxu0  ;;  %v3388_v48 = vpop.f32.mrb[0].mxu1 }
 0x25a   : > { %v920_v50 = vadd.f32 %v3356_v47, %v5065_v43  ;;  %v1048_v51 = vadd.f32 %v3388_v48, %v5065_v43  ;;  %v911_v52 = vpop.f32.mrb[1].mxu0  ;;  %v1039_v53 = vpop.f32.mrb[1].mxu1  ;;  %v1340_v47 = vmul.f32 %v3236_v34, %v5062_v40  ;;  %v1339_v48 = vmul.f32 %v3235_v35, %v5062_v40 }
 0x25b   : > { %v912_v56 = vadd.f32 %v5065_v43, %v911_v52  ;;  %v3357_v57 = vpop.f32.mrb[2].mxu0  ;;  %v3389_v58 = vpop.f32.mrb[2].mxu1  ;;  %v1040_v2 = vadd.f32 %v5065_v43, %v1039_v53 }
 0x25c   : > { %v923_v60 = vadd.f32 %v3357_v57, %v5065_v43  ;;  %v914_v61 = vpop.f32.mrb[3].mxu0  ;;  %v1042_v62 = vpop.f32.mrb[3].mxu1  ;;  %v5076_v63 = vadd.f32 %v1335_v45, %v1048_v51  ;;  %v5078_v0 = vadd.f32 %v1303_v46, %v920_v50  ;;  %v1051_v3 = vadd.f32 %v3389_v58, %v5065_v43  ;;  %v3302_v51 = vld [vmem:[%s4954_s30 + $0x90] sm:$0xff]  }
 0x25d   : > { %v5090_v10 = vadd.f32 %v1301_v55, %v912_v56  ;;  %v1043_v13 = vadd.f32 %v5065_v43, %v1042_v62  ;;  %v5093_v15 = vadd.f32 %v1333_v59, %v1040_v2  ;;  %v915_v19 = vadd.f32 %v5065_v43, %v914_v61 }
 0x25e   : > { %v1531_v7 = vsel %vm780_vm0, %v5076_v63, 0.0  ;;  %v1435_v8 = vsel %vm780_vm0, %v5078_v0, 0.0  ;;  %v5088_v9 = vadd.f32 %v1304_v54, %v923_v60  ;;  %v5102_v23 = vadd.f32 %v1336_v4, %v1051_v3 }
 0x25f   : > { %1532 = vadd.xlane.f32.xlu0 %v1531_v7  ;;  %1436 = vadd.xlane.f32.xlu1 %v1435_v8  ;;  %v1429_v21 = vsel %vm780_vm0, %v5090_v10, 0.0  ;;  %v1525_v32 = vsel %vm780_vm0, %v5093_v15, 0.0  ;;  %v5109_v33 = vadd.f32 %v1334_v17, %v1043_v13  ;;  %v5116_v41 = vadd.f32 %v1302_v18, %v915_v19 }
 0x260   : > { %v1438_v20 = vsel %vm780_vm0, %v5088_v9, 0.0  ;;  %v1534_v39 = vsel %vm780_vm0, %v5102_v23, 0.0  ;;  %v3232_v62 = vunpack.c.h.bf16 %v3302_v51  ;;  %v3231_v1 = vunpack.c.l.bf16 %v3302_v51 }
 0x261   : > { %v3360_v14 = vpop.f32.mrb[4].mxu0  ;;  %v3392_v16 = vpop.f32.mrb[4].mxu1  ;;  %v1528_v46 = vsel %vm780_vm0, %v5109_v33, 0.0  ;;  %v1432_v53 = vsel %vm780_vm0, %v5116_v41, 0.0  ;;  %v1306_v4 = vmul.f32 %v3168_v42, %v5062_v40  ;;  %v3180_v18 = vunpack.c.h.bf16 %v3289_v12 }
 0x262   : > { %v927_v22 = vpop.f32.mrb[5].mxu0  ;;  %v1055_v24 = vpop.f32.mrb[5].mxu1  ;;  %v936_v37 = vadd.f32 %v3360_v14, %v5065_v43  ;;  %v1064_v45 = vadd.f32 %v3392_v16, %v5065_v43  ;;  %v1338_v13 = vmul.f32 %v3232_v62, %v5062_v40  ;;  %v1337_v14 = vmul.f32 %v3231_v1, %v5062_v40 }
 0x263   : > { %1439 = vadd.xlane.f32.xlu1 %v1438_v20  ;;  %1430 = vadd.xlane.f32.xlu0 %v1429_v21  ;;  %v3361_v26 = vpop.f32.mrb[6].mxu0  ;;  %v3393_v27 = vpop.f32.mrb[6].mxu1  ;;  %v928_v2 = vadd.f32 %v5065_v43, %v927_v22  ;;  %v1056_v16 = vadd.f32 %v5065_v43, %v1055_v24  ;;  %v3179_v19 = vunpack.c.l.bf16 %v3289_v12  ;;  %v3305_v20 = vld [vmem:[%s4954_s30 + $0xa8] sm:$0xff]   ;;  %v3288_v22 = vld [vmem:[%s4954_s30 + $0x20] sm:$0xff]   ;;  %v1312_v44 = vmul.f32 %v3180_v18, %v5062_v40 }
 0x264   : > { %v930_v28 = vpop.f32.mrb[7].mxu0  ;;  %v1058_v29 = vpop.f32.mrb[7].mxu1  ;;  %v939_v38 = vadd.f32 %v3361_v26, %v5065_v43  ;;  %v1067_v52 = vadd.f32 %v3393_v27, %v5065_v43  ;;  %v5131_v55 = vadd.f32 %v1307_v31, %v936_v37  ;;  %v5142_v3 = vadd.f32 %v1339_v48, %v1064_v45 }
 0x265   : > { %v931_v6 = vadd.f32 %v5065_v43, %v930_v28  ;;  %v1059_v17 = vadd.f32 %v5065_v43, %v1058_v29  ;;  %v3244_v34 = vunpack.c.h.bf16 %v3305_v20  ;;  %v3243_v35 = vunpack.c.l.bf16 %v3305_v20 }
 0x266   : > { %v5129_v54 = vadd.f32 %v1308_v30, %v939_v38  ;;  %v1447_v8 = vsel %vm780_vm0, %v5131_v55, 0.0  ;;  %v5151_v11 = vadd.f32 %v1340_v47, %v1067_v52  ;;  %v1543_v27 = vsel %vm780_vm0, %v5142_v3, 0.0 }
 0x267   : > { %1535 = vadd.xlane.f32.xlu1 %v1534_v39  ;;  %1526 = vadd.xlane.f32.xlu0 %v1525_v32  ;;  %v5168_v28 = vadd.f32 %v1306_v4, %v931_v6  ;;  %v5170_v30 = vadd.f32 %v1305_v5, %v928_v2  ;;  %v3176_v37 = vunpack.c.h.bf16 %v3288_v22  ;;  %v5184_v39 = vadd.f32 %v1338_v13, %v1059_v17  ;;  %v3304_v2 = vld [vmem:[%s4954_s30 + $0xa0] sm:$0xff]   ;;  %v3291_v6 = vld [vmem:[%s4954_s30 + $0x38] sm:$0xff]  }
 0x268   : > { %v1450_v7 = vsel %vm780_vm0, %v5129_v54, 0.0  ;;  %v1546_v26 = vsel %vm780_vm0, %v5151_v11, 0.0  ;;  %v5186_v42 = vadd.f32 %v1337_v14, %v1056_v16  ;;  %v1311_v45 = vmul.f32 %v3179_v19, %v5062_v40 }
 0x269   : > { %v3364_v49 = vpop.f32.mrb[8].mxu0  ;;  %v5123_v50 = vpop.f32.mrb[8].mxu1  ;;  %6636 = vst [vmem:[#allocation56_spill] sm:$0xff] %v5168_v28  ;;  %6637 = vst [vmem:[#allocation57_spill] sm:$0xff] %v5170_v30  ;;  %v1444_v48 = vsel %vm780_vm0, %v5168_v28, 0.0  ;;  %v1441_v51 = vsel %vm780_vm0, %v5170_v30, 0.0  ;;  %v3175_v52 = vunpack.c.l.bf16 %v3288_v22  ;;  %v1343_v62 = vmul.f32 %v3243_v35, %v5062_v40 }
 0x26a   : > { %v5133_v56 = vpop.f32.mrb[9].mxu0  ;;  %v5135_v57 = vpop.f32.mrb[9].mxu1  ;;  %6638 = vst [vmem:[#allocation58_spill] sm:$0xff] %v5184_v39  ;;  %6639 = vst [vmem:[#allocation59_spill] sm:$0xff] %v5186_v42  ;;  %v1310_v1 = vmul.f32 %v3176_v37, %v5062_v40  ;;  %v1540_v4 = vsel %vm780_vm0, %v5184_v39, 0.0  ;;  %v1537_v5 = vsel %vm780_vm0, %v5186_v42, 0.0  ;;  %v3240_v18 = vunpack.c.h.bf16 %v3304_v2 }
 0x26b   : > { %1529 = vadd.xlane.f32.xlu1 %v1528_v46  ;;  %1433 = vadd.xlane.f32.xlu0 %v1432_v53  ;;  %v3365_v58 = vpop.f32.mrb[10].mxu0  ;;  %v3397_v59 = vpop.f32.mrb[10].mxu1  ;;  %v952_v46 = vadd.f32 %v3364_v49, %v5065_v43  ;;  %v1344_v53 = vmul.f32 %v3244_v34, %v5062_v40  ;;  %v1080_v49 = vadd.f32 %v5123_v50, %v5065_v43  ;;  %v3188_v34 = vunpack.c.h.bf16 %v3291_v6  ;;  %v3292_v28 = vld [vmem:[%s4954_s30 + $0x40] sm:$0xff]  }
 0x26c   : > { %v5137_v60 = vpop.f32.mrb[11].mxu0  ;;  %v5139_v61 = vpop.f32.mrb[11].mxu1  ;;  %v955_v47 = vadd.f32 %v3365_v58, %v5065_v43  ;;  %v1083_v58 = vadd.f32 %v3397_v59, %v5065_v43  ;;  %v1309_v17 = vmul.f32 %v3175_v52, %v5062_v40 }
 0x26d   : > { %v5210_v13 = vadd.f32 %v1311_v45, %v952_v46  ;;  %v944_v46 = vadd.f32 %v5065_v43, %v5133_v56  ;;  %v947_v52 = vadd.f32 %v5065_v43, %v5137_v60  ;;  %v3187_v56 = vunpack.c.l.bf16 %v3291_v6 }
 0x26e   : > { %v5208_v12 = vadd.f32 %v1312_v44, %v955_v47  ;;  %v5233_v47 = vadd.f32 %v1343_v62, %v1080_v49  ;;  %v1342_v62 = vmul.f32 %v3240_v18, %v5062_v40  ;;  %v1072_v60 = vadd.f32 %v5065_v43, %v5135_v57 }
 0x26f   : > { %1451 = vadd.xlane.f32.xlu1 %v1450_v7  ;;  %1448 = vadd.xlane.f32.xlu0 %v1447_v8  ;;  %6641 = vst [vmem:[#allocation61_spill] sm:$0xff] %v5210_v13 }
 0x270   : > { %6640 = vst [vmem:[#allocation60_spill] sm:$0xff] %v5208_v12  ;;  %6642 = vst [vmem:[#allocation62_spill] sm:$0xff] %v5233_v47 }
 0x271   : > { %v5159_v21 = vpop.f32.mrb[12].mxu0  ;;  %v5162_v25 = vpop.f32.mrb[12].mxu1 }
 0x272   : > { %v5172_v24 = vpop.f32.mrb[13].mxu0  ;;  %v5174_v29 = vpop.f32.mrb[13].mxu1 }
 0x273   : > { %1547 = vadd.xlane.f32.xlu1 %v1546_v26  ;;  %1544 = vadd.xlane.f32.xlu0 %v1543_v27  ;;  %v5176_v31 = vpop.f32.mrb[14].mxu0  ;;  %v5178_v32 = vpop.f32.mrb[14].mxu1  ;;  %v3239_v27 = vunpack.c.l.bf16 %v3304_v2  ;;  %v1462_v2 = vsel %vm780_vm0, %v5208_v12, 0.0 }
 0x274   : > { %v5180_v36 = vpop.f32.mrb[15].mxu0  ;;  %v5182_v38 = vpop.f32.mrb[15].mxu1 }
 0x275   : > { %v1341_v49 = vmul.f32 %v3239_v27, %v5062_v40 }
 0x277   : > { %1445 = vadd.xlane.f32.xlu1 %v1444_v48  ;;  %1442 = vadd.xlane.f32.xlu0 %v1441_v51 }
 0x279   : > { %v3372_v7 = vpop.f32.mrb[16].mxu0  ;;  %v3404_v8 = vpop.f32.mrb[16].mxu1 }
 0x27a   : > { %v5213_v14 = vadd.f32 %v3372_v7, %v5065_v43  ;;  %v975_v16 = vpop.f32.mrb[17].mxu0  ;;  %v5216_v50 = vadd.f32 %v3404_v8, %v5065_v43  ;;  %v1103_v59 = vpop.f32.mrb[17].mxu1  ;;  %v1316_v7 = vmul.f32 %v3188_v34, %v5062_v40  ;;  %v3290_v8 = vld [vmem:[%s4954_s30 + $0x30] sm:$0xff]  }
 0x27b   : > { %1541 = vadd.xlane.f32.xlu1 %v1540_v4  ;;  %1538 = vadd.xlane.f32.xlu0 %v1537_v5  ;;  %v5220_v19 = vadd.f32 %v5065_v43, %v975_v16  ;;  %v3373_v20 = vpop.f32.mrb[18].mxu0  ;;  %v5223_v22 = vadd.f32 %v5065_v43, %v1103_v59  ;;  %v3405_v26 = vpop.f32.mrb[18].mxu1  ;;  %v1459_v4 = vsel %vm780_vm0, %v5210_v13, 0.0  ;;  %v5247_v5 = vadd.f32 %v1344_v53, %v1083_v58  ;;  %v3307_v59 = vld [vmem:[%s4954_s30 + $0xb8] sm:$0xff]  }
 0x27c   : > { %v5226_v35 = vadd.f32 %v3373_v20, %v5065_v43  ;;  %v978_v37 = vpop.f32.mrb[19].mxu0  ;;  %v5229_v44 = vadd.f32 %v3405_v26, %v5065_v43  ;;  %v1106_v45 = vpop.f32.mrb[19].mxu1  ;;  %v1075_v16 = vadd.f32 %v5065_v43, %v5139_v61  ;;  %v1555_v53 = vsel %vm780_vm0, %v5233_v47, 0.0 }
 0x27d   : > { %v5236_v48 = vadd.f32 %v5065_v43, %v978_v37  ;;  %v5239_v51 = vadd.f32 %v5065_v43, %v1106_v45  ;;  %6643 = vst [vmem:[#allocation63_spill] sm:$0xff] %v5247_v5  ;;  %v5259_v58 = vadd.f32 %v1309_v17, %v944_v46  ;;  %v1558_v18 = vsel %vm780_vm0, %v5247_v5, 0.0 }
 0x27e   : > { %v5264_v26 = vadd.f32 %v1310_v1, %v947_v52  ;;  %v1315_v17 = vmul.f32 %v3187_v56, %v5062_v40  ;;  %v3184_v37 = vunpack.c.h.bf16 %v3290_v8  ;;  %v5285_v56 = vadd.f32 %v1342_v62, %v1075_v16 }
 0x27f   : > { %1463 = vadd.xlane.f32.xlu1 %v1462_v2  ;;  %1460 = vadd.xlane.f32.xlu0 %v1459_v4  ;;  %6644 = vst [vmem:[#allocation64_spill] sm:$0xff] %v5259_v58  ;;  %v3252_v2 = vunpack.c.h.bf16 %v3307_v59  ;;  %v3251_v4 = vunpack.c.l.bf16 %v3307_v59  ;;  %v5287_v47 = vadd.f32 %v1341_v49, %v1072_v60  ;;  %v968_v59 = vadd.f32 %v5159_v21, %v5065_v43 }
 0x280   : > { %6645 = vst [vmem:[#allocation65_spill] sm:$0xff] %v5264_v26  ;;  %6646 = vst [vmem:[#allocation66_spill] sm:$0xff] %v5285_v56  ;;  %v1453_v62 = vsel %vm780_vm0, %v5259_v58, 0.0  ;;  %v3183_v49 = vunpack.c.l.bf16 %v3290_v8  ;;  %v1096_v21 = vadd.f32 %v5162_v25, %v5065_v43 }
 0x281   : > { %v3376_v6 = vpop.f32.mrb[20].mxu0  ;;  %v3408_v20 = vpop.f32.mrb[20].mxu1  ;;  %6647 = vst [vmem:[#allocation67_spill] sm:$0xff] %v5287_v47  ;;  %v1348_v60 = vmul.f32 %v3252_v2, %v5062_v40  ;;  %v1347_v16 = vmul.f32 %v3251_v4, %v5062_v40  ;;  %v5317_v4 = vadd.f32 %v1315_v17, %v968_v59 }
 0x282   : > { %v5267_v27 = vadd.f32 %v3376_v6, %v5065_v43  ;;  %v991_v57 = vpop.f32.mrb[21].mxu0  ;;  %v5270_v34 = vadd.f32 %v3408_v20, %v5065_v43  ;;  %v1119_v61 = vpop.f32.mrb[21].mxu1 }
 0x283   : > { %1559 = vadd.xlane.f32.xlu1 %v1558_v18  ;;  %1556 = vadd.xlane.f32.xlu0 %v1555_v53  ;;  %v5274_v45 = vadd.f32 %v5065_v43, %v991_v57  ;;  %v3377_v46 = vpop.f32.mrb[22].mxu0  ;;  %v5277_v1 = vadd.f32 %v5065_v43, %v1119_v61  ;;  %v3409_v52 = vpop.f32.mrb[22].mxu1  ;;  %6649 = vst [vmem:[#allocation69_spill] sm:$0xff] %v5317_v4 }
 0x284   : > { %v5280_v6 = vadd.f32 %v3377_v46, %v5065_v43  ;;  %v994_v20 = vpop.f32.mrb[23].mxu0  ;;  %v5283_v18 = vadd.f32 %v3409_v52, %v5065_v43  ;;  %v1122_v53 = vpop.f32.mrb[23].mxu1  ;;  %v971_v46 = vadd.f32 %v5176_v31, %v5065_v43  ;;  %v1456_v52 = vsel %vm780_vm0, %v5264_v26, 0.0 }
 0x285   : > { %v5290_v57 = vadd.f32 %v5065_v43, %v994_v20  ;;  %v5293_v61 = vadd.f32 %v5065_v43, %v1122_v53  ;;  %v1314_v20 = vmul.f32 %v3184_v37, %v5062_v40  ;;  %v1099_v31 = vadd.f32 %v5178_v32, %v5065_v43 }
 0x286   : > { %v1552_v53 = vsel %vm780_vm0, %v5285_v56, 0.0  ;;  %v5315_v2 = vadd.f32 %v1316_v7, %v971_v46 }
 0x287   : > { %1457 = vadd.xlane.f32.xlu1 %v1456_v52  ;;  %1454 = vadd.xlane.f32.xlu0 %v1453_v62  ;;  %v1549_v52 = vsel %vm780_vm0, %v5287_v47, 0.0  ;;  %v3306_v62 = vld [vmem:[%s4954_s30 + $0xb0] sm:$0xff]   ;;  %v1313_v47 = vmul.f32 %v3183_v49, %v5062_v40  ;;  %v960_v49 = vadd.f32 %v5065_v43, %v5172_v24  ;;  %v5355_v24 = vadd.f32 %v1348_v60, %v1099_v31 }
 0x288   : > { %6648 = vst [vmem:[#allocation68_spill] sm:$0xff] %v5315_v2  ;;  %v3248_v46 = vunpack.c.h.bf16 %v3306_v62 }
 0x289   : > { %v3380_v8 = vpop.f32.mrb[24].mxu0  ;;  %v3412_v58 = vpop.f32.mrb[24].mxu1  ;;  %6651 = vst [vmem:[#allocation71_spill] sm:$0xff] %v5355_v24  ;;  %v5365_v42 = vadd.f32 %v1313_v47, %v960_v49 }
 0x28a   : > { %v5320_v37 = vadd.f32 %v3380_v8, %v5065_v43  ;;  %v1007_v25 = vpop.f32.mrb[25].mxu0  ;;  %v5323_v26 = vadd.f32 %v3412_v58, %v5065_v43  ;;  %v1135_v32 = vpop.f32.mrb[25].mxu1  ;;  %v3247_v8 = vunpack.c.l.bf16 %v3306_v62  ;;  %v963_v62 = vadd.f32 %v5065_v43, %v5180_v36 }
 0x28b   : > { %1553 = vadd.xlane.f32.xlu1 %v1552_v53  ;;  %1550 = vadd.xlane.f32.xlu0 %v1549_v52  ;;  %v5327_v56 = vadd.f32 %v5065_v43, %v1007_v25  ;;  %v3381_v7 = vpop.f32.mrb[26].mxu0  ;;  %v5330_v17 = vadd.f32 %v5065_v43, %v1135_v32  ;;  %v3413_v59 = vpop.f32.mrb[26].mxu1  ;;  %v5340_v52 = vadd.f32 %v1347_v16, %v1096_v21  ;;  %v3293_v25 = vld [vmem:[%s4954_s30 + $0x48] sm:$0xff]  }
 0x28c   : > { %v5333_v5 = vadd.f32 %v3381_v7, %v5065_v43  ;;  %v1010_v58 = vpop.f32.mrb[27].mxu0  ;;  %v5336_v13 = vadd.f32 %v3413_v59, %v5065_v43  ;;  %v1138_v53 = vpop.f32.mrb[27].mxu1  ;;  %v1474_v7 = vsel %vm780_vm0, %v5315_v2, 0.0  ;;  %v1471_v59 = vsel %vm780_vm0, %v5317_v4, 0.0  ;;  %6652 = vst [vmem:[#allocation72_spill] sm:$0xff] %v5365_v42 }
 0x28d   : > { %6650 = vst [vmem:[#allocation70_spill] sm:$0xff] %v5340_v52  ;;  %v5344_v32 = vadd.f32 %v5065_v43, %v1010_v58  ;;  %v5347_v12 = vadd.f32 %v5065_v43, %v1138_v53  ;;  %v1346_v16 = vmul.f32 %v3248_v46, %v5062_v40  ;;  %v1345_v21 = vmul.f32 %v3247_v8, %v5062_v40  ;;  %v3309_v8 = vld [vmem:[%s4954_s30 + $0xc8] sm:$0xff]  }
 0x28e   : > { %v3196_v58 = vunpack.c.h.bf16 %v3293_v25  ;;  %v3195_v53 = vunpack.c.l.bf16 %v3293_v25  ;;  %v1088_v36 = vadd.f32 %v5065_v43, %v5174_v29  ;;  %v1091_v2 = vadd.f32 %v5065_v43, %v5182_v38 }
 0x28f   : > { %1475 = vadd.xlane.f32.xlu1 %v1474_v7  ;;  %1472 = vadd.xlane.f32.xlu0 %v1471_v59  ;;  %v1567_v4 = vsel %vm780_vm0, %v5340_v52, 0.0  ;;  %v1570_v46 = vsel %vm780_vm0, %v5355_v24, 0.0  ;;  %v5369_v7 = vadd.f32 %v1314_v20, %v963_v62  ;;  %v3259_v39 = vunpack.c.l.bf16 %v3309_v8 }
 0x290   : > { %v1320_v62 = vmul.f32 %v3196_v58, %v5062_v40 }
 0x291   : > { %v3384_v60 = vpop.f32.mrb[28].mxu0  ;;  %v3416_v31 = vpop.f32.mrb[28].mxu1  ;;  %6653 = vst [vmem:[#allocation73_spill] sm:$0xff] %v5369_v7  ;;  %v1468_v58 = vsel %vm780_vm0, %v5369_v7, 0.0 }
 0x292   : > { %v5373_v25 = vadd.f32 %v3384_v60, %v5065_v43  ;;  %v1023_v29 = vpop.f32.mrb[29].mxu0  ;;  %v5376_v59 = vadd.f32 %v3416_v31, %v5065_v43  ;;  %v1151_v38 = vpop.f32.mrb[29].mxu1  ;;  %v1319_v60 = vmul.f32 %v3195_v53, %v5062_v40  ;;  %v1465_v53 = vsel %vm780_vm0, %v5365_v42, 0.0 }
 0x293   : > { %1571 = vadd.xlane.f32.xlu1 %v1570_v46  ;;  %1568 = vadd.xlane.f32.xlu0 %v1567_v4  ;;  %v5379_v47 = vadd.f32 %v5065_v43, %v1023_v29  ;;  %v3385_v49 = vpop.f32.mrb[30].mxu0  ;;  %v5382_v52 = vadd.f32 %v5065_v43, %v1151_v38  ;;  %v3417_v20 = vpop.f32.mrb[30].mxu1  ;;  %v3260_v29 = vunpack.c.h.bf16 %v3309_v8 }
 0x294   : > { %v5387_v24 = vadd.f32 %v3385_v49, %v5065_v43  ;;  %v1026_v31 = vpop.f32.mrb[31].mxu0  ;;  %v5390_v46 = vadd.f32 %v3417_v20, %v5065_v43  ;;  %v1154_v4 = vpop.f32.mrb[31].mxu1  ;;  %v5402_v49 = vadd.f32 %v1346_v16, %v1091_v2  ;;  %v5404_v20 = vadd.f32 %v1345_v21, %v1088_v36  ;;  %v3308_v21 = vld [vmem:[%s4954_s30 + $0xc0] sm:$0xff]  }
 0x295   : > { %v5393_v30 = vadd.f32 %v5065_v43, %v1026_v31  ;;  %v5396_v38 = vadd.f32 %v5065_v43, %v1154_v4  ;;  %v1352_v8 = vmul.f32 %v3260_v29, %v5062_v40  ;;  %v1351_v31 = vmul.f32 %v3259_v39, %v5062_v40 }
 0x296   : > { %v3192_v43 = vunpack.c.h.bf16 %v3292_v28  ;;  %v3191_v4 = vunpack.c.l.bf16 %v3292_v28  ;;  %v1564_v7 = vsel %vm780_vm0, %v5402_v49, 0.0  ;;  %v1561_v42 = vsel %vm780_vm0, %v5404_v20, 0.0 }
 0x297   : > { %1469 = vadd.xlane.f32.xlu1 %v1468_v58  ;;  %1466 = vadd.xlane.f32.xlu0 %v1465_v53  ;;  %v5414_v2 = vadd.f32 %v1320_v62, %v5226_v35  ;;  %v5417_v16 = vadd.f32 %v1319_v60, %v5213_v14  ;;  %v3256_v36 = vunpack.c.h.bf16 %v3308_v21  ;;  %v3255_v29 = vunpack.c.l.bf16 %v3308_v21 }
 0x298   : > { %v1318_v39 = vmul.f32 %v3192_v43, %v5062_v40  ;;  %v1317_v28 = vmul.f32 %v3191_v4, %v5062_v40  ;;  %v5427_v62 = vadd.f32 %v1352_v8, %v5229_v44  ;;  %v5430_v14 = vadd.f32 %v1351_v31, %v5216_v50  ;;  %v3311_v31 = vld [vmem:[%s4954_s30 + $0xd8] sm:$0xff]  }
 0x299   : > { %v1486_v58 = vsel %vm780_vm0, %v5414_v2, 0.0  ;;  %v1483_v35 = vsel %vm780_vm0, %v5417_v16, 0.0  ;;  %v1349_v60 = vmul.f32 %v3255_v29, %v5062_v40  ;;  %v3268_v29 = vunpack.c.h.bf16 %v3311_v31 }
 0x29a   : > { %v1582_v4 = vsel %vm780_vm0, %v5427_v62, 0.0  ;;  %v1579_v44 = vsel %vm780_vm0, %v5430_v14, 0.0  ;;  %v5440_v8 = vadd.f32 %v1318_v39, %v5236_v48  ;;  %v5443_v50 = vadd.f32 %v1317_v28, %v5220_v19  ;;  %v3294_v28 = vld [vmem:[%s4954_s30 + $0x50] sm:$0xff]  }
 0x29b   : > { %1565 = vadd.xlane.f32.xlu1 %v1564_v7  ;;  %1562 = vadd.xlane.f32.xlu0 %v1561_v42  ;;  %v3295_v42 = vld [vmem:[%s4954_s30 + $0x58] sm:$0xff]   ;;  %v1350_v7 = vmul.f32 %v3256_v36, %v5062_v40  ;;  %v5456_v19 = vadd.f32 %v1349_v60, %v5223_v22  ;;  %v3310_v60 = vld [vmem:[%s4954_s30 + $0xd0] sm:$0xff]  }
 0x29c   : > { %v3204_v53 = vunpack.c.h.bf16 %v3295_v42  ;;  %v3203_v43 = vunpack.c.l.bf16 %v3295_v42  ;;  %v1477_v48 = vsel %vm780_vm0, %v5443_v50, 0.0  ;;  %v1356_v42 = vmul.f32 %v3268_v29, %v5062_v40 }
 0x29d   : > { %v5453_v39 = vadd.f32 %v1350_v7, %v5239_v51  ;;  %v1573_v51 = vsel %vm780_vm0, %v5456_v19, 0.0 }
 0x29e   : > { %v1324_v21 = vmul.f32 %v3204_v53, %v5062_v40  ;;  %v1323_v36 = vmul.f32 %v3203_v43, %v5062_v40  ;;  %v3200_v43 = vunpack.c.h.bf16 %v3294_v28 }
 0x29f   : > { %1487 = vadd.xlane.f32.xlu1 %v1486_v58  ;;  %1484 = vadd.xlane.f32.xlu0 %v1483_v35  ;;  %v3267_v58 = vunpack.c.l.bf16 %v3311_v31  ;;  %v1480_v35 = vsel %vm780_vm0, %v5440_v8, 0.0 }
 0x2a0   : > { %v5466_v7 = vadd.f32 %v1324_v21, %v5280_v6  ;;  %v5469_v22 = vadd.f32 %v1323_v36, %v5267_v27  ;;  %v1322_v31 = vmul.f32 %v3200_v43, %v5062_v40  ;;  %v5479_v21 = vadd.f32 %v1356_v42, %v5283_v18  ;;  %v3297_v36 = vld [vmem:[%s4954_s30 + $0x68] sm:$0xff]  }
 0x2a1   : > { %v1355_v53 = vmul.f32 %v3267_v58, %v5062_v40  ;;  %v3264_v58 = vunpack.c.h.bf16 %v3310_v60 }
 0x2a2   : > { %v1495_v6 = vsel %vm780_vm0, %v5469_v22, 0.0  ;;  %v5492_v42 = vadd.f32 %v1322_v31, %v5290_v57 }
 0x2a3   : > { %1583 = vadd.xlane.f32.xlu1 %v1582_v4  ;;  %1580 = vadd.xlane.f32.xlu0 %v1579_v44  ;;  %v3199_v4 = vunpack.c.l.bf16 %v3294_v28  ;;  %v1576_v44 = vsel %vm780_vm0, %v5453_v39, 0.0  ;;  %v5482_v27 = vadd.f32 %v1355_v53, %v5270_v34  ;;  %v1354_v28 = vmul.f32 %v3264_v58, %v5062_v40  ;;  %v3313_v53 = vld [vmem:[%s4954_s30 + $0xe8] sm:$0xff]  }
 0x2a5   : > { %v1321_v29 = vmul.f32 %v3199_v4, %v5062_v40  ;;  %v3212_v4 = vunpack.c.h.bf16 %v3297_v36  ;;  %v1591_v18 = vsel %vm780_vm0, %v5482_v27, 0.0  ;;  %v5505_v31 = vadd.f32 %v1354_v28, %v5293_v61 }
 0x2a7   : > { %1481 = vadd.xlane.f32.xlu1 %v1480_v35  ;;  %1478 = vadd.xlane.f32.xlu0 %v1477_v48  ;;  %v3263_v35 = vunpack.c.l.bf16 %v3310_v60  ;;  %v1498_v48 = vsel %vm780_vm0, %v5466_v7, 0.0  ;;  %v5495_v34 = vadd.f32 %v1321_v29, %v5274_v45  ;;  %v1328_v60 = vmul.f32 %v3212_v4, %v5062_v40  ;;  %v3296_v29 = vld [vmem:[%s4954_s30 + $0x60] sm:$0xff]  }
 0x2a9   : > { %v1353_v43 = vmul.f32 %v3263_v35, %v5062_v40  ;;  %v3276_v35 = vunpack.c.h.bf16 %v3313_v53  ;;  %v1489_v57 = vsel %vm780_vm0, %v5495_v34, 0.0  ;;  %v5518_v28 = vadd.f32 %v1328_v60, %v5333_v5 }
 0x2ab   : > { %1577 = vadd.xlane.f32.xlu1 %v1576_v44  ;;  %1574 = vadd.xlane.f32.xlu0 %v1573_v51  ;;  %v3211_v44 = vunpack.c.l.bf16 %v3297_v36  ;;  %v1594_v51 = vsel %vm780_vm0, %v5479_v21, 0.0  ;;  %v5508_v45 = vadd.f32 %v1353_v43, %v5277_v1  ;;  %v1360_v36 = vmul.f32 %v3276_v35, %v5062_v40  ;;  %v3312_v43 = vld [vmem:[%s4954_s30 + $0xe0] sm:$0xff]  }
 0x2ad   : > { %v1327_v58 = vmul.f32 %v3211_v44, %v5062_v40  ;;  %v3208_v44 = vunpack.c.h.bf16 %v3296_v29  ;;  %v1585_v61 = vsel %vm780_vm0, %v5508_v45, 0.0  ;;  %v5531_v60 = vadd.f32 %v1360_v36, %v5336_v13 }
 0x2af   : > { %1499 = vadd.xlane.f32.xlu1 %v1498_v48  ;;  %1496 = vadd.xlane.f32.xlu0 %v1495_v6  ;;  %v3275_v48 = vunpack.c.l.bf16 %v3313_v53  ;;  %v1492_v6 = vsel %vm780_vm0, %v5492_v42, 0.0  ;;  %v5521_v1 = vadd.f32 %v1327_v58, %v5320_v37  ;;  %v1326_v53 = vmul.f32 %v3208_v44, %v5062_v40  ;;  %v3299_v58 = vld [vmem:[%s4954_s30 + $0x78] sm:$0xff]  }
 0x2b1   : > { %v1359_v4 = vmul.f32 %v3275_v48, %v5062_v40  ;;  %v3272_v48 = vunpack.c.h.bf16 %v3312_v43  ;;  %v1507_v5 = vsel %vm780_vm0, %v5521_v1, 0.0  ;;  %v5544_v36 = vadd.f32 %v1326_v53, %v5344_v32 }
 0x2b3   : > { %1595 = vadd.xlane.f32.xlu1 %v1594_v51  ;;  %1592 = vadd.xlane.f32.xlu0 %v1591_v18  ;;  %v3207_v51 = vunpack.c.l.bf16 %v3296_v29  ;;  %v1588_v18 = vsel %vm780_vm0, %v5505_v31, 0.0  ;;  %v5534_v37 = vadd.f32 %v1359_v4, %v5323_v26  ;;  %v1358_v29 = vmul.f32 %v3272_v48, %v5062_v40  ;;  %v3315_v4 = vld [vmem:[%s4954_s30 + $0xf8] sm:$0xff]  }
 0x2b5   : > { %v1325_v35 = vmul.f32 %v3207_v51, %v5062_v40  ;;  %v3220_v51 = vunpack.c.h.bf16 %v3299_v58  ;;  %v1603_v13 = vsel %vm780_vm0, %v5534_v37, 0.0  ;;  %v5557_v53 = vadd.f32 %v1358_v29, %v5347_v12  ;;  %v3314_v29 = vld [vmem:[%s4954_s30 + $0xf0] sm:$0xff]  }
 0x2b7   : > { %1493 = vadd.xlane.f32.xlu1 %v1492_v6  ;;  %1490 = vadd.xlane.f32.xlu0 %v1489_v57  ;;  %v3271_v6 = vunpack.c.l.bf16 %v3312_v43  ;;  %v1510_v57 = vsel %vm780_vm0, %v5518_v28, 0.0  ;;  %v5547_v26 = vadd.f32 %v1325_v35, %v5327_v56  ;;  %v1332_v43 = vmul.f32 %v3220_v51, %v5062_v40  ;;  %v3298_v35 = vld [vmem:[%s4954_s30 + $0x70] sm:$0xff]   ;;  %s6711_s30 = sld [smem:[#allocation82_spill]] }
 0x2b9   : > { %v1357_v44 = vmul.f32 %v3271_v6, %v5062_v40  ;;  %v3284_v6 = vunpack.c.h.bf16 %v3315_v4  ;;  %v1501_v32 = vsel %vm780_vm0, %v5547_v26, 0.0  ;;  %v5570_v12 = vadd.f32 %v1332_v43, %v5387_v24 }
 0x2bb   : > { %1589 = vadd.xlane.f32.xlu1 %v1588_v18  ;;  %1586 = vadd.xlane.f32.xlu0 %v1585_v61  ;;  %v3219_v18 = vunpack.c.l.bf16 %v3299_v58  ;;  %v1606_v61 = vsel %vm780_vm0, %v5531_v60, 0.0  ;;  %v5560_v56 = vadd.f32 %v1357_v44, %v5330_v17  ;;  %v1364_v58 = vmul.f32 %v3284_v6, %v5062_v40 }
 0x2bd   : > { %v1331_v48 = vmul.f32 %v3219_v18, %v5062_v40  ;;  %v3216_v18 = vunpack.c.h.bf16 %v3298_v35  ;;  %v5583_v24 = vadd.f32 %v1364_v58, %v5390_v46  ;;  %s6712_s3 = smov %s6711_s30  ;;  %s6334_s1 = scalar_lea.hbm %s6711_s30, %s3156_s25 }
 0x2bf   : > { %1511 = vadd.xlane.f32.xlu1 %v1510_v57  ;;  %1508 = vadd.xlane.f32.xlu0 %v1507_v5  ;;  %v3283_v57 = vunpack.c.l.bf16 %v3315_v4  ;;  %v1504_v5 = vsel %vm780_vm0, %v5544_v36, 0.0  ;;  %v1597_v4 = vsel %vm780_vm0, %v5560_v56, 0.0  ;;  %v5573_v17 = vadd.f32 %v1331_v48, %v5373_v25 }
 0x2c0   : > { %v1330_v44 = vmul.f32 %v3216_v18, %v5062_v40  ;;  %v1618_v18 = vsel %vm780_vm0, %v5583_v24, 0.0 }
 0x2c1   : > { %v1363_v51 = vmul.f32 %v3283_v57, %v5062_v40  ;;  %v3280_v57 = vunpack.c.h.bf16 %v3314_v29 }
 0x2c3   : > { %1607 = vadd.xlane.f32.xlu1 %v1606_v61  ;;  %1604 = vadd.xlane.f32.xlu0 %v1603_v13  ;;  %v3215_v61 = vunpack.c.l.bf16 %v3298_v35  ;;  %v1600_v13 = vsel %vm780_vm0, %v5557_v53, 0.0  ;;  %v1519_v35 = vsel %vm780_vm0, %v5573_v17, 0.0  ;;  %v5586_v25 = vadd.f32 %v1363_v51, %v5376_v59 }
 0x2c4   : > { %v1362_v43 = vmul.f32 %v3280_v57, %v5062_v40 }
 0x2c5   : > { %v1329_v6 = vmul.f32 %v3215_v61, %v5062_v40  ;;  %v1615_v61 = vsel %vm780_vm0, %v5586_v25, 0.0 }
 0x2c6   : > { %v5605_v58 = vadd.f32 %v1362_v43, %v5396_v38 }
 0x2c7   : > { %1505 = vadd.xlane.f32.xlu1 %v1504_v5  ;;  %1502 = vadd.xlane.f32.xlu0 %v1501_v32  ;;  %v3279_v5 = vunpack.c.l.bf16 %v3314_v29  ;;  %v1522_v32 = vsel %vm780_vm0, %v5570_v12, 0.0  ;;  %v5598_v46 = vadd.f32 %v1329_v6, %v5379_v47 }
 0x2c9   : > { %v1361_v48 = vmul.f32 %v3279_v5, %v5062_v40  ;;  %v1513_v40 = vsel %vm780_vm0, %v5598_v46, 0.0 }
 0x2cb   : > { %1601 = vadd.xlane.f32.xlu1 %v1600_v13  ;;  %1598 = vadd.xlane.f32.xlu0 %v1597_v4  ;;  %v5595_v13 = vadd.f32 %v1330_v44, %v5393_v30  ;;  %v5608_v51 = vadd.f32 %v1361_v48, %v5382_v52  ;;  %v1612_v30 = vsel %vm780_vm0, %v5605_v58, 0.0 }
 0x2cd   : > { %v1516_v59 = vsel %vm780_vm0, %v5595_v13, 0.0  ;;  %v1609_v47 = vsel %vm780_vm0, %v5608_v51, 0.0 }
 0x2cf   : > { %1523 = vadd.xlane.f32.xlu1 %v1522_v32  ;;  %1520 = vadd.xlane.f32.xlu0 %v1519_v35 }
 0x2d3   : > { %1619 = vadd.xlane.f32.xlu1 %v1618_v18  ;;  %1616 = vadd.xlane.f32.xlu0 %v1615_v61 }
 0x2d7   : > { %1517 = vadd.xlane.f32.xlu1 %v1516_v59  ;;  %1514 = vadd.xlane.f32.xlu0 %v1513_v40 }
 0x2db   : > { %1613 = vadd.xlane.f32.xlu1 %v1612_v30  ;;  %1610 = vadd.xlane.f32.xlu0 %v1609_v47 }
 0x2ec   : > { %v1533_v4 = vpop.xlane.xlu0 %1532  ;;  %v1437_v29 = vpop.xlane.xlu1 %1436 }
 0x2ed   : > { %v1656_v44 = vmul.f32 0.03125, %v1533_v4  ;;  %v1624_v6 = vmul.f32 0.03125, %v1437_v29 }
 0x2ef   : > { %v5615_v38 = vsub.f32 %v5076_v63, %v1656_v44  ;;  %v5618_v52 = vsub.f32 %v5078_v0, %v1624_v6 }
 0x2f0   : > { %v1440_v57 = vpop.xlane.xlu1 %1439  ;;  %v1431_v5 = vpop.xlane.xlu0 %1430 }
 0x2f1   : > { %v1625_v32 = vmul.f32 0.03125, %v1440_v57  ;;  %v1622_v35 = vmul.f32 0.03125, %v1431_v5  ;;  %v1752_v43 = vmul.f32 %v5618_v52, %v5618_v52  ;;  %v1784_v48 = vmul.f32 %v5615_v38, %v5615_v38 }
 0x2f3   : > { %v5625_v18 = vsub.f32 %v5088_v9, %v1625_v32  ;;  %v5628_v61 = vsub.f32 %v5090_v10, %v1622_v35  ;;  %v1820_v63 = vsel %vm780_vm0, %v1752_v43, 0.0  ;;  %v1916_v4 = vsel %vm780_vm0, %v1784_v48, 0.0 }
 0x2f4   : > { %v1536_v0 = vpop.xlane.xlu1 %1535  ;;  %1821 = vadd.xlane.f32.xlu0 %v1820_v63  ;;  %v1527_v59 = vpop.xlane.xlu0 %1526 }
 0x2f5   : > { %v1657_v40 = vmul.f32 0.03125, %v1536_v0  ;;  %v1654_v30 = vmul.f32 0.03125, %v1527_v59  ;;  %v1753_v47 = vmul.f32 %v5625_v18, %v5625_v18  ;;  %v1750_v44 = vmul.f32 %v5628_v61, %v5628_v61 }
 0x2f7   : > { %v5635_v29 = vsub.f32 %v5102_v23, %v1657_v40  ;;  %v5638_v9 = vsub.f32 %v5093_v15, %v1654_v30  ;;  %v1823_v10 = vsel %vm780_vm0, %v1753_v47, 0.0  ;;  %v1814_v63 = vsel %vm780_vm0, %v1750_v44, 0.0 }
 0x2f8   : > { %v1530_v6 = vpop.xlane.xlu1 %1529  ;;  %1824 = vadd.xlane.f32.xlu1 %v1823_v10  ;;  %1917 = vadd.xlane.f32.xlu0 %v1916_v4  ;;  %v1434_v57 = vpop.xlane.xlu0 %1433 }
 0x2f9   : > { %v1655_v5 = vmul.f32 0.03125, %v1530_v6  ;;  %v1623_v32 = vmul.f32 0.03125, %v1434_v57  ;;  %v1785_v35 = vmul.f32 %v5635_v29, %v5635_v29  ;;  %v1782_v23 = vmul.f32 %v5638_v9, %v5638_v9 }
 0x2fb   : > { %v5648_v15 = vsub.f32 %v5109_v33, %v1655_v5  ;;  %v5651_v43 = vsub.f32 %v5116_v41, %v1623_v32  ;;  %v1919_v48 = vsel %vm780_vm0, %v1785_v35, 0.0  ;;  %v1910_v4 = vsel %vm780_vm0, %v1782_v23, 0.0 }
 0x2fc   : > { %v1452_v0 = vpop.xlane.xlu1 %1451  ;;  %1920 = vadd.xlane.f32.xlu1 %v1919_v48  ;;  %1815 = vadd.xlane.f32.xlu0 %v1814_v63  ;;  %v1449_v59 = vpop.xlane.xlu0 %1448 }
 0x2fd   : > { %v1629_v40 = vmul.f32 0.03125, %v1452_v0  ;;  %v1628_v30 = vmul.f32 0.03125, %v1449_v59  ;;  %v1751_v47 = vmul.f32 %v5651_v43, %v5651_v43  ;;  %v1783_v44 = vmul.f32 %v5648_v15, %v5648_v15 }
 0x2ff   : > { %v5659_v33 = vsub.f32 %v5129_v54, %v1629_v40  ;;  %v5662_v41 = vsub.f32 %v5131_v55, %v1628_v30  ;;  %v1817_v10 = vsel %vm780_vm0, %v1751_v47, 0.0  ;;  %v1913_v48 = vsel %vm780_vm0, %v1783_v44, 0.0 }
 0x300   : > { %v1548_v6 = vpop.xlane.xlu1 %1547  ;;  %1911 = vadd.xlane.f32.xlu0 %v1910_v4  ;;  %1818 = vadd.xlane.f32.xlu1 %v1817_v10  ;;  %v1545_v57 = vpop.xlane.xlu0 %1544 }
 0x301   : > { %v1661_v5 = vmul.f32 0.03125, %v1548_v6  ;;  %v1660_v32 = vmul.f32 0.03125, %v1545_v57  ;;  %v1756_v35 = vmul.f32 %v5662_v41, %v5662_v41  ;;  %v1757_v54 = vmul.f32 %v5659_v33, %v5659_v33 }
 0x303   : > { %v5672_v55 = vsub.f32 %v5151_v11, %v1661_v5  ;;  %v5675_v23 = vsub.f32 %v5142_v3, %v1660_v32  ;;  %v1832_v63 = vsel %vm780_vm0, %v1756_v35, 0.0  ;;  %v1835_v4 = vsel %vm780_vm0, %v1757_v54, 0.0  ;;  %v6654_v11 = vld [vmem:[#allocation56_spill] sm:$0xff]  ;;  %v6656_v3 = vld [vmem:[#allocation57_spill] sm:$0xff] }
 0x304   : > { %v1446_v0 = vpop.xlane.xlu1 %1445  ;;  %1914 = vadd.xlane.f32.xlu1 %v1913_v48  ;;  %1833 = vadd.xlane.f32.xlu0 %v1832_v63  ;;  %v1443_v59 = vpop.xlane.xlu0 %1442 }
 0x305   : > { %v1627_v40 = vmul.f32 0.03125, %v1446_v0  ;;  %v1626_v30 = vmul.f32 0.03125, %v1443_v59  ;;  %v1788_v47 = vmul.f32 %v5675_v23, %v5675_v23  ;;  %v1789_v57 = vmul.f32 %v5672_v55, %v5672_v55  ;;  %v6657_v0 = vld [vmem:[#allocation58_spill] sm:$0xff] }
 0x307   : > { %v5683_v10 = vsub.f32 %v6654_v11, %v1627_v40  ;;  %v5686_v6 = vsub.f32 %v6656_v3, %v1626_v30  ;;  %v1928_v44 = vsel %vm780_vm0, %v1788_v47, 0.0  ;;  %v6659_v40 = vld [vmem:[#allocation59_spill] sm:$0xff]  ;;  %v1931_v47 = vsel %vm780_vm0, %v1789_v57, 0.0 }
 0x308   : > { %v1542_v5 = vpop.xlane.xlu1 %1541  ;;  %1836 = vadd.xlane.f32.xlu1 %v1835_v4  ;;  %1929 = vadd.xlane.f32.xlu0 %v1928_v44  ;;  %v1539_v32 = vpop.xlane.xlu0 %1538 }
 0x309   : > { %6655 = vst [vmem:[#allocation56_spill] sm:$0xff] %v5683_v10  ;;  %v1659_v35 = vmul.f32 0.03125, %v1542_v5  ;;  %v1658_v48 = vmul.f32 0.03125, %v1539_v32  ;;  %v1754_v54 = vmul.f32 %v5686_v6, %v5686_v6  ;;  %v1755_v63 = vmul.f32 %v5683_v10, %v5683_v10 }
 0x30b   : > { %v5696_v59 = vsub.f32 %v6657_v0, %v1659_v35  ;;  %v5699_v30 = vsub.f32 %v6659_v40, %v1658_v48  ;;  %v1826_v4 = vsel %vm780_vm0, %v1754_v54, 0.0  ;;  %v1829_v10 = vsel %vm780_vm0, %v1755_v63, 0.0  ;;  %v6661_v35 = vld [vmem:[#allocation60_spill] sm:$0xff]  ;;  %v6663_v48 = vld [vmem:[#allocation61_spill] sm:$0xff] }
 0x30c   : > { %v1464_v11 = vpop.xlane.xlu1 %1463  ;;  %1932 = vadd.xlane.f32.xlu1 %v1931_v47  ;;  %1827 = vadd.xlane.f32.xlu0 %v1826_v4  ;;  %v1461_v3 = vpop.xlane.xlu0 %1460 }
 0x30d   : > { %6658 = vst [vmem:[#allocation57_spill] sm:$0xff] %v5696_v59  ;;  %6660 = vst [vmem:[#allocation58_spill] sm:$0xff] %v5699_v30  ;;  %v1633_v44 = vmul.f32 0.03125, %v1464_v11  ;;  %v1632_v5 = vmul.f32 0.03125, %v1461_v3  ;;  %v1786_v32 = vmul.f32 %v5699_v30, %v5699_v30  ;;  %v1787_v54 = vmul.f32 %v5696_v59, %v5696_v59 }
 0x30f   : > { %v5707_v0 = vsub.f32 %v6661_v35, %v1633_v44  ;;  %v5710_v40 = vsub.f32 %v6663_v48, %v1632_v5  ;;  %v1922_v57 = vsel %vm780_vm0, %v1786_v32, 0.0  ;;  %v6665_v35 = vld [vmem:[#allocation63_spill] sm:$0xff]  ;;  %v6667_v48 = vld [vmem:[#allocation62_spill] sm:$0xff]  ;;  %v1925_v59 = vsel %vm780_vm0, %v1787_v54, 0.0 }
 0x310   : > { %v1560_v47 = vpop.xlane.xlu1 %1559  ;;  %1830 = vadd.xlane.f32.xlu1 %v1829_v10  ;;  %1923 = vadd.xlane.f32.xlu0 %v1922_v57  ;;  %v1557_v4 = vpop.xlane.xlu0 %1556 }
 0x311   : > { %6662 = vst [vmem:[#allocation59_spill] sm:$0xff] %v5707_v0  ;;  %6664 = vst [vmem:[#allocation60_spill] sm:$0xff] %v5710_v40  ;;  %v1665_v11 = vmul.f32 0.03125, %v1560_v47  ;;  %v1664_v3 = vmul.f32 0.03125, %v1557_v4  ;;  %v1760_v63 = vmul.f32 %v5710_v40, %v5710_v40  ;;  %v1761_v44 = vmul.f32 %v5707_v0, %v5707_v0 }
 0x313   : > { %v5720_v5 = vsub.f32 %v6665_v35, %v1665_v11  ;;  %v5723_v32 = vsub.f32 %v6667_v48, %v1664_v3  ;;  %v1844_v10 = vsel %vm780_vm0, %v1760_v63, 0.0  ;;  %v1847_v0 = vsel %vm780_vm0, %v1761_v44, 0.0  ;;  %v6669_v11 = vld [vmem:[#allocation65_spill] sm:$0xff]  ;;  %v6671_v3 = vld [vmem:[#allocation64_spill] sm:$0xff] }
 0x314   : > { %v1458_v57 = vpop.xlane.xlu1 %1457  ;;  %1926 = vadd.xlane.f32.xlu1 %v1925_v59  ;;  %1845 = vadd.xlane.f32.xlu0 %v1844_v10  ;;  %v1455_v47 = vpop.xlane.xlu0 %1454 }
 0x315   : > { %6666 = vst [vmem:[#allocation61_spill] sm:$0xff] %v5720_v5  ;;  %6668 = vst [vmem:[#allocation63_spill] sm:$0xff] %v5723_v32  ;;  %v1631_v4 = vmul.f32 0.03125, %v1458_v57  ;;  %v1630_v30 = vmul.f32 0.03125, %v1455_v47  ;;  %v1792_v40 = vmul.f32 %v5723_v32, %v5723_v32  ;;  %v1793_v59 = vmul.f32 %v5720_v5, %v5720_v5 }
 0x317   : > { %v5731_v35 = vsub.f32 %v6669_v11, %v1631_v4  ;;  %v5734_v48 = vsub.f32 %v6671_v3, %v1630_v30  ;;  %v1940_v54 = vsel %vm780_vm0, %v1792_v40, 0.0  ;;  %v6673_v11 = vld [vmem:[#allocation66_spill] sm:$0xff]  ;;  %v6675_v3 = vld [vmem:[#allocation67_spill] sm:$0xff]  ;;  %v1943_v5 = vsel %vm780_vm0, %v1793_v59, 0.0 }
 0x318   : > { %v1554_v63 = vpop.xlane.xlu1 %1553  ;;  %1848 = vadd.xlane.f32.xlu1 %v1847_v0  ;;  %1941 = vadd.xlane.f32.xlu0 %v1940_v54  ;;  %v1551_v10 = vpop.xlane.xlu0 %1550 }
 0x319   : > { %6670 = vst [vmem:[#allocation62_spill] sm:$0xff] %v5731_v35  ;;  %6672 = vst [vmem:[#allocation65_spill] sm:$0xff] %v5734_v48  ;;  %v1663_v57 = vmul.f32 0.03125, %v1554_v63  ;;  %v1662_v47 = vmul.f32 0.03125, %v1551_v10  ;;  %v1758_v44 = vmul.f32 %v5734_v48, %v5734_v48  ;;  %v1759_v4 = vmul.f32 %v5731_v35, %v5731_v35 }
 0x31b   : > { %v5744_v30 = vsub.f32 %v6673_v11, %v1663_v57  ;;  %v5747_v40 = vsub.f32 %v6675_v3, %v1662_v47  ;;  %v1838_v0 = vsel %vm780_vm0, %v1758_v44, 0.0  ;;  %v1841_v35 = vsel %vm780_vm0, %v1759_v4, 0.0  ;;  %v6677_v57 = vld [vmem:[#allocation68_spill] sm:$0xff]  ;;  %v6679_v47 = vld [vmem:[#allocation69_spill] sm:$0xff] }
 0x31c   : > { %v1476_v54 = vpop.xlane.xlu1 %1475  ;;  %1944 = vadd.xlane.f32.xlu1 %v1943_v5  ;;  %1839 = vadd.xlane.f32.xlu0 %v1838_v0  ;;  %v1473_v63 = vpop.xlane.xlu0 %1472 }
 0x31d   : > { %6674 = vst [vmem:[#allocation64_spill] sm:$0xff] %v5744_v30  ;;  %6676 = vst [vmem:[#allocation66_spill] sm:$0xff] %v5747_v40  ;;  %v1637_v10 = vmul.f32 0.03125, %v1476_v54  ;;  %v1636_v32 = vmul.f32 0.03125, %v1473_v63  ;;  %v1790_v48 = vmul.f32 %v5747_v40, %v5747_v40  ;;  %v1791_v5 = vmul.f32 %v5744_v30, %v5744_v30 }
 0x31f   : > { %v5755_v11 = vsub.f32 %v6677_v57, %v1637_v10  ;;  %v5758_v3 = vsub.f32 %v6679_v47, %v1636_v32  ;;  %v1934_v59 = vsel %vm780_vm0, %v1790_v48, 0.0  ;;  %v6681_v57 = vld [vmem:[#allocation71_spill] sm:$0xff]  ;;  %v6682_v47 = vld [vmem:[#allocation70_spill] sm:$0xff]  ;;  %v1937_v30 = vsel %vm780_vm0, %v1791_v5, 0.0 }
 0x320   : > { %v1572_v44 = vpop.xlane.xlu1 %1571  ;;  %1842 = vadd.xlane.f32.xlu1 %v1841_v35  ;;  %1935 = vadd.xlane.f32.xlu0 %v1934_v59  ;;  %v1569_v0 = vpop.xlane.xlu0 %1568 }
 0x321   : > { %6678 = vst [vmem:[#allocation67_spill] sm:$0xff] %v5755_v11  ;;  %6680 = vst [vmem:[#allocation68_spill] sm:$0xff] %v5758_v3  ;;  %v1669_v54 = vmul.f32 0.03125, %v1572_v44  ;;  %v1668_v63 = vmul.f32 0.03125, %v1569_v0  ;;  %v1764_v4 = vmul.f32 %v5758_v3, %v5758_v3  ;;  %v1765_v10 = vmul.f32 %v5755_v11, %v5755_v11 }
 0x323   : > { %v5768_v32 = vsub.f32 %v6681_v57, %v1669_v54  ;;  %v5771_v48 = vsub.f32 %v6682_v47, %v1668_v63  ;;  %v1856_v35 = vsel %vm780_vm0, %v1764_v4, 0.0  ;;  %v1859_v11 = vsel %vm780_vm0, %v1765_v10, 0.0  ;;  %v6683_v54 = vld [vmem:[#allocation73_spill] sm:$0xff]  ;;  %v6685_v63 = vld [vmem:[#allocation72_spill] sm:$0xff] }
 0x324   : > { %v1470_v59 = vpop.xlane.xlu1 %1469  ;;  %1938 = vadd.xlane.f32.xlu1 %v1937_v30  ;;  %1857 = vadd.xlane.f32.xlu0 %v1856_v35  ;;  %v1467_v44 = vpop.xlane.xlu0 %1466 }
 0x325   : > { %v1635_v0 = vmul.f32 0.03125, %v1470_v59  ;;  %v1634_v40 = vmul.f32 0.03125, %v1467_v44  ;;  %v1796_v3 = vmul.f32 %v5771_v48, %v5771_v48  ;;  %v1797_v30 = vmul.f32 %v5768_v32, %v5768_v32 }
 0x327   : > { %v5779_v57 = vsub.f32 %v6683_v54, %v1635_v0  ;;  %v5782_v47 = vsub.f32 %v6685_v63, %v1634_v40  ;;  %v1952_v5 = vsel %vm780_vm0, %v1796_v3, 0.0  ;;  %v1955_v54 = vsel %vm780_vm0, %v1797_v30, 0.0 }
 0x328   : > { %v1566_v4 = vpop.xlane.xlu1 %1565  ;;  %1860 = vadd.xlane.f32.xlu1 %v1859_v11  ;;  %1953 = vadd.xlane.f32.xlu0 %v1952_v5  ;;  %v1563_v35 = vpop.xlane.xlu0 %1562 }
 0x329   : > { %6684 = vst [vmem:[#allocation69_spill] sm:$0xff] %v5779_v57  ;;  %6686 = vst [vmem:[#allocation71_spill] sm:$0xff] %v5782_v47  ;;  %v1667_v59 = vmul.f32 0.03125, %v1566_v4  ;;  %v1666_v44 = vmul.f32 0.03125, %v1563_v35  ;;  %v1762_v10 = vmul.f32 %v5782_v47, %v5782_v47  ;;  %v1763_v0 = vmul.f32 %v5779_v57, %v5779_v57 }
 0x32b   : > { %v5792_v40 = vsub.f32 %v5402_v49, %v1667_v59  ;;  %v5795_v3 = vsub.f32 %v5404_v20, %v1666_v44  ;;  %v1850_v11 = vsel %vm780_vm0, %v1762_v10, 0.0  ;;  %v1853_v57 = vsel %vm780_vm0, %v1763_v0, 0.0 }
 0x32c   : > { %v1488_v63 = vpop.xlane.xlu1 %1487  ;;  %1956 = vadd.xlane.f32.xlu1 %v1955_v54  ;;  %1851 = vadd.xlane.f32.xlu0 %v1850_v11  ;;  %v1485_v5 = vpop.xlane.xlu0 %1484 }
 0x32d   : > { %v1641_v4 = vmul.f32 0.03125, %v1488_v63  ;;  %v1640_v35 = vmul.f32 0.03125, %v1485_v5  ;;  %v1794_v47 = vmul.f32 %v5795_v3, %v5795_v3  ;;  %v1795_v59 = vmul.f32 %v5792_v40, %v5792_v40 }
 0x32f   : > { %v5803_v49 = vsub.f32 %v5414_v2, %v1641_v4  ;;  %v5806_v20 = vsub.f32 %v5417_v16, %v1640_v35  ;;  %v1946_v30 = vsel %vm780_vm0, %v1794_v47, 0.0  ;;  %v1949_v63 = vsel %vm780_vm0, %v1795_v59, 0.0 }
 0x330   : > { %v1584_v44 = vpop.xlane.xlu1 %1583  ;;  %1854 = vadd.xlane.f32.xlu1 %v1853_v57  ;;  %1947 = vadd.xlane.f32.xlu0 %v1946_v30  ;;  %v1581_v10 = vpop.xlane.xlu0 %1580 }
 0x331   : > { %v1673_v54 = vmul.f32 0.03125, %v1584_v44  ;;  %v1672_v11 = vmul.f32 0.03125, %v1581_v10  ;;  %v1768_v0 = vmul.f32 %v5806_v20, %v5806_v20  ;;  %v1769_v2 = vmul.f32 %v5803_v49, %v5803_v49 }
 0x333   : > { %v5816_v16 = vsub.f32 %v5427_v62, %v1673_v54  ;;  %v5819_v47 = vsub.f32 %v5430_v14, %v1672_v11  ;;  %v1868_v57 = vsel %vm780_vm0, %v1768_v0, 0.0  ;;  %v1871_v10 = vsel %vm780_vm0, %v1769_v2, 0.0 }
 0x334   : > { %v1482_v5 = vpop.xlane.xlu1 %1481  ;;  %1950 = vadd.xlane.f32.xlu1 %v1949_v63  ;;  %1869 = vadd.xlane.f32.xlu0 %v1868_v57  ;;  %v1479_v4 = vpop.xlane.xlu0 %1478 }
 0x335   : > { %v1639_v35 = vmul.f32 0.03125, %v1482_v5  ;;  %v1638_v30 = vmul.f32 0.03125, %v1479_v4  ;;  %v1800_v44 = vmul.f32 %v5819_v47, %v5819_v47  ;;  %v1801_v54 = vmul.f32 %v5816_v16, %v5816_v16 }
 0x337   : > { %v5827_v62 = vsub.f32 %v5440_v8, %v1639_v35  ;;  %v5830_v14 = vsub.f32 %v5443_v50, %v1638_v30  ;;  %v1964_v59 = vsel %vm780_vm0, %v1800_v44, 0.0  ;;  %v1967_v4 = vsel %vm780_vm0, %v1801_v54, 0.0 }
 0x338   : > { %v1578_v11 = vpop.xlane.xlu1 %1577  ;;  %1872 = vadd.xlane.f32.xlu1 %v1871_v10  ;;  %1965 = vadd.xlane.f32.xlu0 %v1964_v59  ;;  %v1575_v0 = vpop.xlane.xlu0 %1574 }
 0x339   : > { %v1671_v63 = vmul.f32 0.03125, %v1578_v11  ;;  %v1670_v57 = vmul.f32 0.03125, %v1575_v0  ;;  %v1766_v2 = vmul.f32 %v5830_v14, %v5830_v14  ;;  %v1767_v8 = vmul.f32 %v5827_v62, %v5827_v62 }
 0x33b   : > { %v5840_v50 = vsub.f32 %v5453_v39, %v1671_v63  ;;  %v5843_v5 = vsub.f32 %v5456_v19, %v1670_v57  ;;  %v1862_v35 = vsel %vm780_vm0, %v1766_v2, 0.0  ;;  %v1865_v0 = vsel %vm780_vm0, %v1767_v8, 0.0 }
 0x33c   : > { %v1500_v30 = vpop.xlane.xlu1 %1499  ;;  %1968 = vadd.xlane.f32.xlu1 %v1967_v4  ;;  %1863 = vadd.xlane.f32.xlu0 %v1862_v35  ;;  %v1497_v44 = vpop.xlane.xlu0 %1496 }
 0x33d   : > { %v1645_v10 = vmul.f32 0.03125, %v1500_v30  ;;  %v1644_v59 = vmul.f32 0.03125, %v1497_v44  ;;  %v1798_v11 = vmul.f32 %v5843_v5, %v5843_v5  ;;  %v1799_v63 = vmul.f32 %v5840_v50, %v5840_v50 }
 0x33f   : > { %v5851_v39 = vsub.f32 %v5466_v7, %v1645_v10  ;;  %v5854_v19 = vsub.f32 %v5469_v22, %v1644_v59  ;;  %v1958_v54 = vsel %vm780_vm0, %v1798_v11, 0.0  ;;  %v1961_v44 = vsel %vm780_vm0, %v1799_v63, 0.0 }
 0x340   : > { %v1596_v57 = vpop.xlane.xlu1 %1595  ;;  %1866 = vadd.xlane.f32.xlu1 %v1865_v0  ;;  %1959 = vadd.xlane.f32.xlu0 %v1958_v54  ;;  %v1593_v2 = vpop.xlane.xlu0 %1592 }
 0x341   : > { %v1677_v4 = vmul.f32 0.03125, %v1596_v57  ;;  %v1676_v35 = vmul.f32 0.03125, %v1593_v2  ;;  %v1772_v8 = vmul.f32 %v5854_v19, %v5854_v19  ;;  %v1773_v7 = vmul.f32 %v5851_v39, %v5851_v39 }
 0x343   : > { %v5864_v22 = vsub.f32 %v5479_v21, %v1677_v4  ;;  %v5867_v30 = vsub.f32 %v5482_v27, %v1676_v35  ;;  %v1880_v10 = vsel %vm780_vm0, %v1772_v8, 0.0  ;;  %v1883_v2 = vsel %vm780_vm0, %v1773_v7, 0.0 }
 0x344   : > { %v1494_v59 = vpop.xlane.xlu1 %1493  ;;  %1962 = vadd.xlane.f32.xlu1 %v1961_v44  ;;  %1881 = vadd.xlane.f32.xlu0 %v1880_v10  ;;  %v1491_v11 = vpop.xlane.xlu0 %1490 }
 0x345   : > { %v1643_v0 = vmul.f32 0.03125, %v1494_v59  ;;  %v1642_v54 = vmul.f32 0.03125, %v1491_v11  ;;  %v1804_v57 = vmul.f32 %v5867_v30, %v5867_v30  ;;  %v1805_v4 = vmul.f32 %v5864_v22, %v5864_v22 }
 0x347   : > { %v5875_v21 = vsub.f32 %v5492_v42, %v1643_v0  ;;  %v5878_v27 = vsub.f32 %v5495_v34, %v1642_v54  ;;  %v1976_v63 = vsel %vm780_vm0, %v1804_v57, 0.0  ;;  %v1979_v11 = vsel %vm780_vm0, %v1805_v4, 0.0 }
 0x348   : > { %v1590_v35 = vpop.xlane.xlu1 %1589  ;;  %1884 = vadd.xlane.f32.xlu1 %v1883_v2  ;;  %1977 = vadd.xlane.f32.xlu0 %v1976_v63  ;;  %v1587_v8 = vpop.xlane.xlu0 %1586 }
 0x349   : > { %v1675_v44 = vmul.f32 0.03125, %v1590_v35  ;;  %v1674_v10 = vmul.f32 0.03125, %v1587_v8  ;;  %v1770_v7 = vmul.f32 %v5878_v27, %v5878_v27  ;;  %v1771_v42 = vmul.f32 %v5875_v21, %v5875_v21 }
 0x34b   : > { %v5888_v34 = vsub.f32 %v5505_v31, %v1675_v44  ;;  %v5891_v59 = vsub.f32 %v5508_v45, %v1674_v10  ;;  %v1874_v0 = vsel %vm780_vm0, %v1770_v7, 0.0  ;;  %v1877_v8 = vsel %vm780_vm0, %v1771_v42, 0.0 }
 0x34c   : > { %v1512_v54 = vpop.xlane.xlu1 %1511  ;;  %1980 = vadd.xlane.f32.xlu1 %v1979_v11  ;;  %1875 = vadd.xlane.f32.xlu0 %v1874_v0  ;;  %v1509_v57 = vpop.xlane.xlu0 %1508 }
 0x34d   : > { %v1649_v2 = vmul.f32 0.03125, %v1512_v54  ;;  %v1648_v63 = vmul.f32 0.03125, %v1509_v57  ;;  %v1802_v35 = vmul.f32 %v5891_v59, %v5891_v59  ;;  %v1803_v44 = vmul.f32 %v5888_v34, %v5888_v34 }
 0x34f   : > { %v5899_v31 = vsub.f32 %v5518_v28, %v1649_v2  ;;  %v5902_v45 = vsub.f32 %v5521_v1, %v1648_v63  ;;  %v1970_v4 = vsel %vm780_vm0, %v1802_v35, 0.0  ;;  %v1973_v57 = vsel %vm780_vm0, %v1803_v44, 0.0 }
 0x350   : > { %v1608_v10 = vpop.xlane.xlu1 %1607  ;;  %1878 = vadd.xlane.f32.xlu1 %v1877_v8  ;;  %1971 = vadd.xlane.f32.xlu0 %v1970_v4  ;;  %v1605_v7 = vpop.xlane.xlu0 %1604 }
 0x351   : > { %v1681_v11 = vmul.f32 0.03125, %v1608_v10  ;;  %v1680_v0 = vmul.f32 0.03125, %v1605_v7  ;;  %v1776_v42 = vmul.f32 %v5902_v45, %v5902_v45  ;;  %v1777_v28 = vmul.f32 %v5899_v31, %v5899_v31 }
 0x353   : > { %v5912_v1 = vsub.f32 %v5531_v60, %v1681_v11  ;;  %v5915_v54 = vsub.f32 %v5534_v37, %v1680_v0  ;;  %v1892_v2 = vsel %vm780_vm0, %v1776_v42, 0.0  ;;  %v1895_v7 = vsel %vm780_vm0, %v1777_v28, 0.0 }
 0x354   : > { %v1506_v63 = vpop.xlane.xlu1 %1505  ;;  %1974 = vadd.xlane.f32.xlu1 %v1973_v57  ;;  %1893 = vadd.xlane.f32.xlu0 %v1892_v2  ;;  %v1503_v35 = vpop.xlane.xlu0 %1502 }
 0x355   : > { %v1647_v8 = vmul.f32 0.03125, %v1506_v63  ;;  %v1646_v4 = vmul.f32 0.03125, %v1503_v35  ;;  %v1808_v10 = vmul.f32 %v5915_v54, %v5915_v54  ;;  %v1809_v11 = vmul.f32 %v5912_v1, %v5912_v1 }
 0x357   : > { %v5923_v60 = vsub.f32 %v5544_v36, %v1647_v8  ;;  %v5926_v37 = vsub.f32 %v5547_v26, %v1646_v4  ;;  %v1988_v44 = vsel %vm780_vm0, %v1808_v10, 0.0  ;;  %v1991_v35 = vsel %vm780_vm0, %v1809_v11, 0.0 }
 0x358   : > { %v1602_v0 = vpop.xlane.xlu1 %1601  ;;  %1896 = vadd.xlane.f32.xlu1 %v1895_v7  ;;  %1989 = vadd.xlane.f32.xlu0 %v1988_v44  ;;  %v1599_v42 = vpop.xlane.xlu0 %1598 }
 0x359   : > { %v1679_v57 = vmul.f32 0.03125, %v1602_v0  ;;  %v1678_v2 = vmul.f32 0.03125, %v1599_v42  ;;  %v1774_v28 = vmul.f32 %v5926_v37, %v5926_v37  ;;  %v1775_v36 = vmul.f32 %v5923_v60, %v5923_v60 }
 0x35b   : > { %v5936_v26 = vsub.f32 %v5557_v53, %v1679_v57  ;;  %v5939_v63 = vsub.f32 %v5560_v56, %v1678_v2  ;;  %v1886_v8 = vsel %vm780_vm0, %v1774_v28, 0.0  ;;  %v1889_v42 = vsel %vm780_vm0, %v1775_v36, 0.0 }
 0x35c   : > { %v1524_v4 = vpop.xlane.xlu1 %1523  ;;  %1992 = vadd.xlane.f32.xlu1 %v1991_v35  ;;  %1887 = vadd.xlane.f32.xlu0 %v1886_v8  ;;  %v1521_v10 = vpop.xlane.xlu0 %1520 }
 0x35d   : > { %6687 = vst [vmem:[#allocation70_spill] sm:$0xff] %v5936_v26  ;;  %v1653_v7 = vmul.f32 0.03125, %v1524_v4  ;;  %v1652_v44 = vmul.f32 0.03125, %v1521_v10  ;;  %v1806_v0 = vmul.f32 %v5939_v63, %v5939_v63  ;;  %v1807_v57 = vmul.f32 %v5936_v26, %v5936_v26 }
 0x35f   : > { %v5947_v53 = vsub.f32 %v5570_v12, %v1653_v7  ;;  %v5950_v56 = vsub.f32 %v5573_v17, %v1652_v44  ;;  %v1982_v11 = vsel %vm780_vm0, %v1806_v0, 0.0  ;;  %v1985_v36 = vsel %vm780_vm0, %v1807_v57, 0.0 }
 0x360   : > { %v1620_v2 = vpop.xlane.xlu1 %1619  ;;  %1890 = vadd.xlane.f32.xlu1 %v1889_v42  ;;  %1983 = vadd.xlane.f32.xlu0 %v1982_v11  ;;  %v1617_v28 = vpop.xlane.xlu0 %1616 }
 0x361   : > { %6688 = vst [vmem:[#allocation73_spill] sm:$0xff] %v5947_v53  ;;  %6689 = vst [vmem:[#allocation72_spill] sm:$0xff] %v5950_v56  ;;  %v1780_v35 = vmul.f32 %v5950_v56, %v5950_v56  ;;  %v1781_v17 = vmul.f32 %v5947_v53, %v5947_v53  ;;  %v1685_v44 = vmul.f32 0.03125, %v1620_v2  ;;  %v1684_v0 = vmul.f32 0.03125, %v1617_v28 }
 0x363   : > { %v1904_v12 = vsel %vm780_vm0, %v1780_v35, 0.0  ;;  %v1907_v57 = vsel %vm780_vm0, %v1781_v17, 0.0  ;;  %v5973_v28 = vsub.f32 %v5583_v24, %v1685_v44 }
 0x364   : > { %v1518_v8 = vpop.xlane.xlu1 %1517  ;;  %1986 = vadd.xlane.f32.xlu1 %v1985_v36  ;;  %1905 = vadd.xlane.f32.xlu0 %v1904_v12  ;;  %v1515_v4 = vpop.xlane.xlu0 %1514 }
 0x365   : > { %v1651_v10 = vmul.f32 0.03125, %v1518_v8  ;;  %v1650_v7 = vmul.f32 0.03125, %v1515_v4 }
 0x367   : > { %v5962_v42 = vsub.f32 %v5595_v13, %v1651_v10  ;;  %v5965_v11 = vsub.f32 %v5598_v46, %v1650_v7  ;;  %v5976_v13 = vsub.f32 %v5586_v25, %v1684_v0 }
 0x368   : > { %v1614_v35 = vpop.xlane.xlu1 %1613  ;;  %1908 = vadd.xlane.f32.xlu1 %v1907_v57  ;;  %v1611_v56 = vpop.xlane.xlu0 %1610 }
 0x369   : > { %v1683_v53 = vmul.f32 0.03125, %v1614_v35  ;;  %v1682_v26 = vmul.f32 0.03125, %v1611_v56  ;;  %v1779_v36 = vmul.f32 %v5962_v42, %v5962_v42  ;;  %v1778_v2 = vmul.f32 %v5965_v11, %v5965_v11  ;;  %6690 = vst [vmem:[#allocation74_spill] sm:$0xff] %v5976_v13 }
 0x36b   : > { %v5979_v46 = vsub.f32 %v5605_v58, %v1683_v53  ;;  %v5982_v12 = vsub.f32 %v5608_v51, %v1682_v26  ;;  %v1901_v56 = vsel %vm780_vm0, %v1779_v36, 0.0  ;;  %v1898_v17 = vsel %vm780_vm0, %v1778_v2, 0.0 }
 0x36c   : > { %1902 = vadd.xlane.f32.xlu1 %v1901_v56  ;;  %1899 = vadd.xlane.f32.xlu0 %v1898_v17  ;;  %v1813_v51 = vmul.f32 %v5973_v28, %v5973_v28  ;;  %v1812_v26 = vmul.f32 %v5976_v13, %v5976_v13 }
 0x36d   : > { %v1811_v8 = vmul.f32 %v5979_v46, %v5979_v46  ;;  %v1810_v24 = vmul.f32 %v5982_v12, %v5982_v12 }
 0x36e   : > { %v2003_v53 = vsel %vm780_vm0, %v1813_v51, 0.0  ;;  %v2000_v4 = vsel %vm780_vm0, %v1812_v26, 0.0 }
 0x36f   : > { %v1997_v25 = vsel %vm780_vm0, %v1811_v8, 0.0  ;;  %v1994_v58 = vsel %vm780_vm0, %v1810_v24, 0.0 }
 0x370   : > { %1998 = vadd.xlane.f32.xlu1 %v1997_v25  ;;  %1995 = vadd.xlane.f32.xlu0 %v1994_v58 }
 0x374   : > { %2004 = vadd.xlane.f32.xlu1 %v2003_v53  ;;  %2001 = vadd.xlane.f32.xlu0 %v2000_v4 }
 0x381   : > { %v1822_v10 = vpop.xlane.xlu0 %1821 }
 0x382   : > { %v2008_v7 = vmul.f32 0.03125, %v1822_v10 }
 0x384   : > { %v2072_v44 = vadd.f32 1e-05, %v2008_v7 }
 0x385   : > { %v1825_v0 = vpop.xlane.xlu1 %1824  ;;  %v1918_v57 = vpop.xlane.xlu0 %1917 }
 0x386   : > { %3677 = vrsqrt.f32 %v2072_v44  ;;  %v2009_v35 = vmul.f32 0.03125, %v1825_v0  ;;  %v2040_v36 = vmul.f32 0.03125, %v1918_v57  ;;  %v5999_v44 = vld [vmem:[%s4980_s17] ss:$0 sm:$0xff] }
 0x388   : > { %v2073_v2 = vadd.f32 1e-05, %v2009_v35  ;;  %v2104_v56 = vadd.f32 1e-05, %v2040_v36 }
 0x389   : > { %v1921_v17 = vpop.xlane.xlu1 %1920  ;;  %v1816_v8 = vpop.xlane.xlu0 %1815 }
 0x38a   : > { %3679 = vrsqrt.f32 %v2073_v2  ;;  %v2041_v24 = vmul.f32 0.03125, %v1921_v17  ;;  %v2006_v25 = vmul.f32 0.03125, %v1816_v8  ;;  %v6003_v17 = vld [vmem:[%s4987_s8] ss:$0 sm:$0xff] }
 0x38b   : > { %3681 = vrsqrt.f32 %v2104_v56 }
 0x38c   : > { %v2105_v58 = vadd.f32 1e-05, %v2041_v24  ;;  %v2070_v51 = vadd.f32 1e-05, %v2006_v25 }
 0x38d   : > { %v1819_v26 = vpop.xlane.xlu1 %1818  ;;  %v1912_v53 = vpop.xlane.xlu0 %1911 }
 0x38e   : > { %3683 = vrsqrt.f32 %v2105_v58  ;;  %v2007_v4 = vmul.f32 0.03125, %v1819_v26  ;;  %v2038_v10 = vmul.f32 0.03125, %v1912_v53 }
 0x38f   : > { %3685 = vrsqrt.f32 %v2070_v51 }
 0x390   : > { %v3678_v7 = vpop.eup %3677  ;;  %v2071_v0 = vadd.f32 1e-05, %v2007_v4  ;;  %v2102_v57 = vadd.f32 1e-05, %v2038_v10 }
 0x391   : > { %v2200_v35 = vmul.f32 %v3678_v7, %v5618_v52  ;;  %v1915_v36 = vpop.xlane.xlu1 %1914  ;;  %v1834_v2 = vpop.xlane.xlu0 %1833 }
 0x392   : > { %3687 = vrsqrt.f32 %v2071_v0  ;;  %v2039_v56 = vmul.f32 0.03125, %v1915_v36  ;;  %v2012_v8 = vmul.f32 0.03125, %v1834_v2 }
 0x393   : > { %v2271_v24 = vmul.f32 %v5999_v44, %v2200_v35  ;;  %3689 = vrsqrt.f32 %v2102_v57 }
 0x394   : > { %v3680_v25 = vpop.eup %3679  ;;  %v2103_v58 = vadd.f32 1e-05, %v2039_v56  ;;  %v2076_v51 = vadd.f32 1e-05, %v2012_v8 }
 0x395   : > { %v3682_v26 = vpop.eup %3681  ;;  %v2342_v53 = vadd.f32 %v6003_v17, %v2271_v24  ;;  %v2201_v52 = vmul.f32 %v3680_v25, %v5625_v18  ;;  %v1837_v4 = vpop.xlane.xlu1 %1836 }
 0x396   : > { %v1930_v10 = vpop.xlane.xlu0 %1929  ;;  %v2232_v7 = vmul.f32 %v3682_v26, %v5615_v38  ;;  %3691 = vrsqrt.f32 %v2103_v58  ;;  %v2013_v0 = vmul.f32 0.03125, %v1837_v4 }
 0x397   : > { %v2044_v36 = vmul.f32 0.03125, %v1930_v10  ;;  %v3094_v2 = vpack.c.bf16 %v2342_v53, %v2342_v53  ;;  %v2272_v57 = vmul.f32 %v5999_v44, %v2201_v52  ;;  %3693 = vrsqrt.f32 %v2076_v51 }
 0x398   : > { %v3684_v35 = vpop.eup %3683  ;;  %v2303_v56 = vmul.f32 %v5999_v44, %v2232_v7  ;;  %v2077_v8 = vadd.f32 1e-05, %v2013_v0 }
 0x399   : > { %v2108_v13 = vadd.f32 1e-05, %v2044_v36  ;;  %v3686_v24 = vpop.eup %3685  ;;  %2663 = vst.msk [vmem:[%s6012_s20 + $0x8] sm:$0xf] %vm2660_vm1, %v3094_v2  ;;  %v2343_v38 = vadd.f32 %v6003_v17, %v2272_v57  ;;  %v2233_v18 = vmul.f32 %v3684_v35, %v5635_v29  ;;  %v1933_v25 = vpop.xlane.xlu1 %1932 }
 0x39a   : > { %v1828_v58 = vpop.xlane.xlu0 %1827  ;;  %v2374_v51 = vadd.f32 %v6003_v17, %v2303_v56  ;;  %v2198_v26 = vmul.f32 %v3686_v24, %v5628_v61  ;;  %3695 = vrsqrt.f32 %v2077_v8  ;;  %v2045_v53 = vmul.f32 0.03125, %v1933_v25 }
 0x39b   : > { %v3095_v52 = vpack.c.bf16 %v2343_v38, %v2343_v38  ;;  %v2304_v4 = vmul.f32 %v5999_v44, %v2233_v18  ;;  %3697 = vrsqrt.f32 %v2108_v13  ;;  %v2010_v10 = vmul.f32 0.03125, %v1828_v58 }
 0x39c   : > { %v3688_v7 = vpop.eup %3687  ;;  %v3126_v0 = vpack.c.bf16 %v2374_v51, %v2374_v51  ;;  %v2269_v36 = vmul.f32 %v5999_v44, %v2198_v26  ;;  %v2109_v29 = vadd.f32 1e-05, %v2045_v53 }
 0x39d   : > { %v3690_v2 = vpop.eup %3689  ;;  %2664 = vst.msk [vmem:[%s6012_s20 + $0xc] sm:$0xf] %vm2660_vm1, %v3095_v52  ;;  %v2375_v57 = vadd.f32 %v6003_v17, %v2304_v4  ;;  %v2199_v61 = vmul.f32 %v3688_v7, %v5651_v43  ;;  %v2074_v35 = vadd.f32 1e-05, %v2010_v10  ;;  %v1831_v56 = vpop.xlane.xlu1 %1830 }
 0x39e   : > { %v1924_v8 = vpop.xlane.xlu0 %1923  ;;  %2695 = vst.msk [vmem:[%s6012_s20 + $0x88] sm:$0xf] %vm2660_vm1, %v3126_v0  ;;  %v2340_v13 = vadd.f32 %v6003_v17, %v2269_v36  ;;  %v2230_v24 = vmul.f32 %v3690_v2, %v5638_v9  ;;  %3699 = vrsqrt.f32 %v2109_v29  ;;  %v2011_v38 = vmul.f32 0.03125, %v1831_v56 }
 0x39f   : > { %v3127_v18 = vpack.c.bf16 %v2375_v57, %v2375_v57  ;;  %v2270_v25 = vmul.f32 %v5999_v44, %v2199_v61  ;;  %3701 = vrsqrt.f32 %v2074_v35  ;;  %v2042_v58 = vmul.f32 0.03125, %v1924_v8 }
 0x3a0   : > { %v3692_v51 = vpop.eup %3691  ;;  %v3092_v43 = vpack.c.bf16 %v2340_v13, %v2340_v13  ;;  %v2301_v26 = vmul.f32 %v5999_v44, %v2230_v24  ;;  %v2075_v53 = vadd.f32 1e-05, %v2011_v38 }
 0x3a1   : > { %v3694_v52 = vpop.eup %3693  ;;  %2696 = vst.msk [vmem:[%s6012_s20 + $0x8c] sm:$0xf] %vm2660_vm1, %v3127_v18  ;;  %v2341_v4 = vadd.f32 %v6003_v17, %v2270_v25  ;;  %v2231_v9 = vmul.f32 %v3692_v51, %v5648_v15  ;;  %v2106_v10 = vadd.f32 1e-05, %v2042_v58  ;;  %v1927_v7 = vpop.xlane.xlu1 %1926 }
 0x3a2   : > { %v1846_v0 = vpop.xlane.xlu0 %1845  ;;  %2661 = vst.msk [vmem:[%s6012_s20] sm:$0xf] %vm2660_vm1, %v3092_v43  ;;  %v2372_v36 = vadd.f32 %v6003_v17, %v2301_v26  ;;  %v2204_v29 = vmul.f32 %v3694_v52, %v5662_v41  ;;  %3703 = vrsqrt.f32 %v2075_v53  ;;  %v2043_v2 = vmul.f32 0.03125, %v1927_v7 }
 0x3a3   : > { %v3093_v57 = vpack.c.bf16 %v2341_v4, %v2341_v4  ;;  %v2302_v61 = vmul.f32 %v5999_v44, %v2231_v9  ;;  %3705 = vrsqrt.f32 %v2106_v10  ;;  %v2016_v35 = vmul.f32 0.03125, %v1846_v0 }
 0x3a4   : > { %v3696_v56 = vpop.eup %3695  ;;  %v3124_v15 = vpack.c.bf16 %v2372_v36, %v2372_v36  ;;  %v2275_v8 = vmul.f32 %v5999_v44, %v2204_v29  ;;  %v2107_v13 = vadd.f32 1e-05, %v2043_v2 }
 0x3a5   : > { %v3698_v24 = vpop.eup %3697  ;;  %2662 = vst.msk [vmem:[%s6012_s20 + $0x4] sm:$0xf] %vm2660_vm1, %v3093_v57  ;;  %v2373_v38 = vadd.f32 %v6003_v17, %v2302_v61  ;;  %v2205_v41 = vmul.f32 %v3696_v56, %v5659_v33  ;;  %v2080_v18 = vadd.f32 1e-05, %v2016_v35  ;;  %v1849_v25 = vpop.xlane.xlu1 %1848 }
 0x3a6   : > { %v1942_v58 = vpop.xlane.xlu0 %1941  ;;  %2693 = vst.msk [vmem:[%s6012_s20 + $0x80] sm:$0xf] %vm2660_vm1, %v3124_v15  ;;  %v2346_v51 = vadd.f32 %v6003_v17, %v2275_v8  ;;  %v2236_v43 = vmul.f32 %v3698_v24, %v5675_v23  ;;  %3707 = vrsqrt.f32 %v2107_v13  ;;  %v2017_v26 = vmul.f32 0.03125, %v1849_v25 }
 0x3a7   : > { %v3125_v53 = vpack.c.bf16 %v2373_v38, %v2373_v38  ;;  %v2276_v52 = vmul.f32 %v5999_v44, %v2205_v41  ;;  %3709 = vrsqrt.f32 %v2080_v18  ;;  %v2048_v4 = vmul.f32 0.03125, %v1942_v58  ;;  %v6691_v58 = vld [vmem:[#allocation56_spill] sm:$0xff] }
 0x3a8   : > { %v3700_v9 = vpop.eup %3699  ;;  %v3098_v33 = vpack.c.bf16 %v2346_v51, %v2346_v51  ;;  %v2307_v10 = vmul.f32 %v5999_v44, %v2236_v43  ;;  %v2081_v7 = vadd.f32 1e-05, %v2017_v26 }
 0x3a9   : > { %v3702_v0 = vpop.eup %3701  ;;  %2694 = vst.msk [vmem:[%s6012_s20 + $0x84] sm:$0xf] %vm2660_vm1, %v3125_v53  ;;  %v2347_v36 = vadd.f32 %v6003_v17, %v2276_v52  ;;  %v2237_v23 = vmul.f32 %v3700_v9, %v5672_v55  ;;  %v2112_v29 = vadd.f32 1e-05, %v2048_v4  ;;  %v1945_v2 = vpop.xlane.xlu1 %1944  ;;  %v6692_v52 = vld [vmem:[#allocation58_spill] sm:$0xff] }
 0x3aa   : > { %v1840_v57 = vpop.xlane.xlu0 %1839  ;;  %2667 = vst.msk [vmem:[%s6012_s20 + $0x18] sm:$0xf] %vm2660_vm1, %v3098_v33  ;;  %v2378_v61 = vadd.f32 %v6003_v17, %v2307_v10  ;;  %v2202_v35 = vmul.f32 %v3702_v0, %v5686_v6  ;;  %3711 = vrsqrt.f32 %v2081_v7  ;;  %v2049_v56 = vmul.f32 0.03125, %v1945_v2 }
 0x3ab   : > { %v3099_v15 = vpack.c.bf16 %v2347_v36, %v2347_v36  ;;  %v2308_v8 = vmul.f32 %v5999_v44, %v2237_v23  ;;  %3713 = vrsqrt.f32 %v2112_v29  ;;  %v2014_v13 = vmul.f32 0.03125, %v1840_v57 }
 0x3ac   : > { %v3704_v24 = vpop.eup %3703  ;;  %v3130_v55 = vpack.c.bf16 %v2378_v61, %v2378_v61  ;;  %v2273_v38 = vmul.f32 %v5999_v44, %v2202_v35  ;;  %v2113_v41 = vadd.f32 1e-05, %v2049_v56  ;;  %v6693_v61 = vld [vmem:[#allocation57_spill] sm:$0xff] }
 0x3ad   : > { %v3706_v18 = vpop.eup %3705  ;;  %2668 = vst.msk [vmem:[%s6012_s20 + $0x1c] sm:$0xf] %vm2660_vm1, %v3099_v15  ;;  %v2379_v25 = vadd.f32 %v6003_v17, %v2308_v8  ;;  %v2203_v6 = vmul.f32 %v3704_v24, %v6691_v58  ;;  %v2078_v51 = vadd.f32 1e-05, %v2014_v13  ;;  %v1843_v43 = vpop.xlane.xlu1 %1842  ;;  %v6694_v24 = vld [vmem:[#allocation60_spill] sm:$0xff] }
 0x3ae   : > { %v1936_v26 = vpop.xlane.xlu0 %1935  ;;  %2699 = vst.msk [vmem:[%s6012_s20 + $0x98] sm:$0xf] %vm2660_vm1, %v3130_v55  ;;  %v2344_v53 = vadd.f32 %v6003_v17, %v2273_v38  ;;  %v2234_v4 = vmul.f32 %v3706_v18, %v6692_v52  ;;  %3715 = vrsqrt.f32 %v2113_v41  ;;  %v2015_v9 = vmul.f32 0.03125, %v1843_v43  ;;  %v6695_v52 = vld [vmem:[#allocation59_spill] sm:$0xff] }
 0x3af   : > { %v3131_v33 = vpack.c.bf16 %v2379_v25, %v2379_v25  ;;  %v2274_v10 = vmul.f32 %v5999_v44, %v2203_v6  ;;  %3717 = vrsqrt.f32 %v2078_v51  ;;  %v2046_v7 = vmul.f32 0.03125, %v1936_v26 }
 0x3b0   : > { %v3708_v0 = vpop.eup %3707  ;;  %v3096_v36 = vpack.c.bf16 %v2344_v53, %v2344_v53  ;;  %v2305_v23 = vmul.f32 %v5999_v44, %v2234_v4  ;;  %v2079_v29 = vadd.f32 1e-05, %v2015_v9 }
 0x3b1   : > { %v3710_v2 = vpop.eup %3709  ;;  %2700 = vst.msk [vmem:[%s6012_s20 + $0x9c] sm:$0xf] %vm2660_vm1, %v3131_v33  ;;  %v2345_v57 = vadd.f32 %v6003_v17, %v2274_v10  ;;  %v2235_v35 = vmul.f32 %v3708_v0, %v6693_v61  ;;  %v2110_v56 = vadd.f32 1e-05, %v2046_v7  ;;  %v1939_v15 = vpop.xlane.xlu1 %1938  ;;  %v6696_v0 = vld [vmem:[#allocation63_spill] sm:$0xff] }
 0x3b2   : > { %v1858_v8 = vpop.xlane.xlu0 %1857  ;;  %2665 = vst.msk [vmem:[%s6012_s20 + $0x10] sm:$0xf] %vm2660_vm1, %v3096_v36  ;;  %v2376_v13 = vadd.f32 %v6003_v17, %v2305_v23  ;;  %v2208_v55 = vmul.f32 %v3710_v2, %v6694_v24  ;;  %3719 = vrsqrt.f32 %v2079_v29  ;;  %v2047_v38 = vmul.f32 0.03125, %v1939_v15  ;;  %v6697_v24 = vld [vmem:[#allocation61_spill] sm:$0xff] }
 0x3b3   : > { %v3097_v41 = vpack.c.bf16 %v2345_v57, %v2345_v57  ;;  %v2306_v18 = vmul.f32 %v5999_v44, %v2235_v35  ;;  %3721 = vrsqrt.f32 %v2110_v56  ;;  %v2020_v25 = vmul.f32 0.03125, %v1858_v8 }
 0x3b4   : > { %v3712_v58 = vpop.eup %3711  ;;  %v3128_v6 = vpack.c.bf16 %v2376_v13, %v2376_v13  ;;  %v2279_v51 = vmul.f32 %v5999_v44, %v2208_v55  ;;  %v2111_v43 = vadd.f32 1e-05, %v2047_v38 }
 0x3b5   : > { %v3714_v26 = vpop.eup %3713  ;;  %2666 = vst.msk [vmem:[%s6012_s20 + $0x14] sm:$0xf] %vm2660_vm1, %v3097_v41  ;;  %v2377_v53 = vadd.f32 %v6003_v17, %v2306_v18  ;;  %v2209_v4 = vmul.f32 %v3712_v58, %v6695_v52  ;;  %v2084_v9 = vadd.f32 1e-05, %v2020_v25  ;;  %v1861_v33 = vpop.xlane.xlu1 %1860  ;;  %v6698_v58 = vld [vmem:[#allocation65_spill] sm:$0xff] }
 0x3b6   : > { %v1954_v10 = vpop.xlane.xlu0 %1953  ;;  %2697 = vst.msk [vmem:[%s6012_s20 + $0x90] sm:$0xf] %vm2660_vm1, %v3128_v6  ;;  %v2350_v7 = vadd.f32 %v6003_v17, %v2279_v51  ;;  %v2240_v36 = vmul.f32 %v3714_v26, %v6696_v0  ;;  %3723 = vrsqrt.f32 %v2111_v43  ;;  %v2021_v23 = vmul.f32 0.03125, %v1861_v33  ;;  %v6699_v0 = vld [vmem:[#allocation62_spill] sm:$0xff] }
 0x3b7   : > { %v3129_v29 = vpack.c.bf16 %v2377_v53, %v2377_v53  ;;  %v2280_v2 = vmul.f32 %v5999_v44, %v2209_v4  ;;  %3725 = vrsqrt.f32 %v2084_v9  ;;  %v2052_v57 = vmul.f32 0.03125, %v1954_v10 }
 0x3b8   : > { %v3716_v61 = vpop.eup %3715  ;;  %v3102_v35 = vpack.c.bf16 %v2350_v7, %v2350_v7  ;;  %v2311_v56 = vmul.f32 %v5999_v44, %v2240_v36  ;;  %v2085_v15 = vadd.f32 1e-05, %v2021_v23 }
 0x3b9   : > { %v3718_v8 = vpop.eup %3717  ;;  %2698 = vst.msk [vmem:[%s6012_s20 + $0x94] sm:$0xf] %vm2660_vm1, %v3129_v29  ;;  %v2351_v13 = vadd.f32 %v6003_v17, %v2280_v2  ;;  %v2241_v55 = vmul.f32 %v3716_v61, %v6697_v24  ;;  %v2116_v38 = vadd.f32 1e-05, %v2052_v57  ;;  %v1957_v41 = vpop.xlane.xlu1 %1956  ;;  %v6700_v61 = vld [vmem:[#allocation66_spill] sm:$0xff] }
 0x3ba   : > { %v1852_v18 = vpop.xlane.xlu0 %1851  ;;  %2671 = vst.msk [vmem:[%s6012_s20 + $0x28] sm:$0xf] %vm2660_vm1, %v3102_v35  ;;  %v2382_v25 = vadd.f32 %v6003_v17, %v2311_v56  ;;  %v2206_v6 = vmul.f32 %v3718_v8, %v6698_v58  ;;  %3727 = vrsqrt.f32 %v2085_v15  ;;  %v2053_v51 = vmul.f32 0.03125, %v1957_v41  ;;  %v6701_v58 = vld [vmem:[#allocation64_spill] sm:$0xff] }
 0x3bb   : > { %v3103_v43 = vpack.c.bf16 %v2351_v13, %v2351_v13  ;;  %v2312_v26 = vmul.f32 %v5999_v44, %v2241_v55  ;;  %3729 = vrsqrt.f32 %v2116_v38  ;;  %v2018_v53 = vmul.f32 0.03125, %v1852_v18 }
 0x3bc   : > { %v3720_v52 = vpop.eup %3719  ;;  %v3134_v4 = vpack.c.bf16 %v2382_v25, %v2382_v25  ;;  %v2277_v9 = vmul.f32 %v5999_v44, %v2206_v6  ;;  %v2117_v33 = vadd.f32 1e-05, %v2053_v51 }
 0x3bd   : > { %v3722_v10 = vpop.eup %3721  ;;  %2672 = vst.msk [vmem:[%s6012_s20 + $0x2c] sm:$0xf] %vm2660_vm1, %v3103_v43  ;;  %v2383_v7 = vadd.f32 %v6003_v17, %v2312_v26  ;;  %v2207_v36 = vmul.f32 %v3720_v52, %v6699_v0  ;;  %v2082_v23 = vadd.f32 1e-05, %v2018_v53  ;;  %v1855_v29 = vpop.xlane.xlu1 %1854  ;;  %v6702_v52 = vld [vmem:[#allocation68_spill] sm:$0xff] }
 0x3be   : > { %v1948_v2 = vpop.xlane.xlu0 %1947  ;;  %2703 = vst.msk [vmem:[%s6012_s20 + $0xa8] sm:$0xf] %vm2660_vm1, %v3134_v4  ;;  %v2348_v57 = vadd.f32 %v6003_v17, %v2277_v9  ;;  %v2238_v35 = vmul.f32 %v3722_v10, %v6700_v61  ;;  %3731 = vrsqrt.f32 %v2117_v33  ;;  %v2019_v56 = vmul.f32 0.03125, %v1855_v29  ;;  %v6703_v61 = vld [vmem:[#allocation67_spill] sm:$0xff] }
 0x3bf   : > { %v3135_v15 = vpack.c.bf16 %v2383_v7, %v2383_v7  ;;  %v2278_v8 = vmul.f32 %v5999_v44, %v2207_v36  ;;  %3733 = vrsqrt.f32 %v2082_v23  ;;  %v2050_v13 = vmul.f32 0.03125, %v1948_v2 }
 0x3c0   : > { %v3724_v24 = vpop.eup %3723  ;;  %v3100_v55 = vpack.c.bf16 %v2348_v57, %v2348_v57  ;;  %v2309_v38 = vmul.f32 %v5999_v44, %v2238_v35  ;;  %v2083_v41 = vadd.f32 1e-05, %v2019_v56 }
 0x3c1   : > { %v3726_v18 = vpop.eup %3725  ;;  %2704 = vst.msk [vmem:[%s6012_s20 + $0xac] sm:$0xf] %vm2660_vm1, %v3135_v15  ;;  %v2349_v25 = vadd.f32 %v6003_v17, %v2278_v8  ;;  %v2239_v6 = vmul.f32 %v3724_v24, %v6701_v58  ;;  %v2114_v51 = vadd.f32 1e-05, %v2050_v13  ;;  %v1951_v43 = vpop.xlane.xlu1 %1950 }
 0x3c2   : > { %v1870_v26 = vpop.xlane.xlu0 %1869  ;;  %2669 = vst.msk [vmem:[%s6012_s20 + $0x20] sm:$0xf] %vm2660_vm1, %v3100_v55  ;;  %v2380_v53 = vadd.f32 %v6003_v17, %v2309_v38  ;;  %v2212_v4 = vmul.f32 %v3726_v18, %v6702_v52  ;;  %3735 = vrsqrt.f32 %v2083_v41  ;;  %v2051_v9 = vmul.f32 0.03125, %v1951_v43 }
 0x3c3   : > { %v3101_v33 = vpack.c.bf16 %v2349_v25, %v2349_v25  ;;  %v2310_v10 = vmul.f32 %v5999_v44, %v2239_v6  ;;  %3737 = vrsqrt.f32 %v2114_v51  ;;  %v2024_v7 = vmul.f32 0.03125, %v1870_v26 }
 0x3c4   : > { %v3728_v0 = vpop.eup %3727  ;;  %v3132_v36 = vpack.c.bf16 %v2380_v53, %v2380_v53  ;;  %v2283_v23 = vmul.f32 %v5999_v44, %v2212_v4  ;;  %v2115_v29 = vadd.f32 1e-05, %v2051_v9 }
 0x3c5   : > { %v3730_v2 = vpop.eup %3729  ;;  %2670 = vst.msk [vmem:[%s6012_s20 + $0x24] sm:$0xf] %vm2660_vm1, %v3101_v33  ;;  %v2381_v57 = vadd.f32 %v6003_v17, %v2310_v10  ;;  %v2213_v35 = vmul.f32 %v3728_v0, %v6703_v61  ;;  %v2088_v56 = vadd.f32 1e-05, %v2024_v7  ;;  %v1873_v15 = vpop.xlane.xlu1 %1872  ;;  %v6704_v33 = vld [vmem:[#allocation71_spill] sm:$0xff] }
 0x3c6   : > { %v1966_v8 = vpop.xlane.xlu0 %1965  ;;  %2701 = vst.msk [vmem:[%s6012_s20 + $0xa0] sm:$0xf] %vm2660_vm1, %v3132_v36  ;;  %v2354_v13 = vadd.f32 %v6003_v17, %v2283_v23  ;;  %v2244_v24 = vmul.f32 %v3730_v2, %v5771_v48  ;;  %3739 = vrsqrt.f32 %v2115_v29  ;;  %v2025_v55 = vmul.f32 0.03125, %v1873_v15 }
 0x3c7   : > { %v3133_v38 = vpack.c.bf16 %v2381_v57, %v2381_v57  ;;  %v2284_v41 = vmul.f32 %v5999_v44, %v2213_v35  ;;  %3741 = vrsqrt.f32 %v2088_v56  ;;  %v2056_v18 = vmul.f32 0.03125, %v1966_v8  ;;  %v6705_v56 = vld [vmem:[#allocation69_spill] sm:$0xff] }
 0x3c8   : > { %v3732_v25 = vpop.eup %3731  ;;  %v3106_v58 = vpack.c.bf16 %v2354_v13, %v2354_v13  ;;  %v2315_v6 = vmul.f32 %v5999_v44, %v2244_v24  ;;  %v2089_v51 = vadd.f32 1e-05, %v2025_v55 }
 0x3c9   : > { %v3734_v43 = vpop.eup %3733  ;;  %2702 = vst.msk [vmem:[%s6012_s20 + $0xa4] sm:$0xf] %vm2660_vm1, %v3133_v38  ;;  %v2355_v26 = vadd.f32 %v6003_v17, %v2284_v41  ;;  %v2245_v48 = vmul.f32 %v3732_v25, %v5768_v32  ;;  %v2120_v53 = vadd.f32 1e-05, %v2056_v18  ;;  %v1969_v52 = vpop.xlane.xlu1 %1968 }
 0x3ca   : > { %v1864_v4 = vpop.xlane.xlu0 %1863  ;;  %2675 = vst.msk [vmem:[%s6012_s20 + $0x38] sm:$0xf] %vm2660_vm1, %v3106_v58  ;;  %v2386_v9 = vadd.f32 %v6003_v17, %v2315_v6  ;;  %v2210_v10 = vmul.f32 %v3734_v43, %v6704_v33  ;;  %3743 = vrsqrt.f32 %v2089_v51  ;;  %v2057_v7 = vmul.f32 0.03125, %v1969_v52 }
 0x3cb   : > { %v3107_v0 = vpack.c.bf16 %v2355_v26, %v2355_v26  ;;  %v2316_v36 = vmul.f32 %v5999_v44, %v2245_v48  ;;  %3745 = vrsqrt.f32 %v2120_v53  ;;  %v2022_v23 = vmul.f32 0.03125, %v1864_v4 }
 0x3cc   : > { %v3736_v29 = vpop.eup %3735  ;;  %v3138_v32 = vpack.c.bf16 %v2386_v9, %v2386_v9  ;;  %v2281_v2 = vmul.f32 %v5999_v44, %v2210_v10  ;;  %v2121_v57 = vadd.f32 1e-05, %v2057_v7 }
 0x3cd   : > { %v3738_v61 = vpop.eup %3737  ;;  %2676 = vst.msk [vmem:[%s6012_s20 + $0x3c] sm:$0xf] %vm2660_vm1, %v3107_v0  ;;  %v2387_v35 = vadd.f32 %v6003_v17, %v2316_v36  ;;  %v2211_v15 = vmul.f32 %v3736_v29, %v6705_v56  ;;  %v2086_v8 = vadd.f32 1e-05, %v2022_v23  ;;  %v1867_v13 = vpop.xlane.xlu1 %1866 }
 0x3ce   : > { %v1960_v24 = vpop.xlane.xlu0 %1959  ;;  %2707 = vst.msk [vmem:[%s6012_s20 + $0xb8] sm:$0xf] %vm2660_vm1, %v3138_v32  ;;  %v2352_v55 = vadd.f32 %v6003_v17, %v2281_v2  ;;  %v2242_v38 = vmul.f32 %v3738_v61, %v5795_v3  ;;  %3747 = vrsqrt.f32 %v2121_v57  ;;  %v2023_v41 = vmul.f32 0.03125, %v1867_v13 }
 0x3cf   : > { %v3139_v18 = vpack.c.bf16 %v2387_v35, %v2387_v35  ;;  %v2282_v25 = vmul.f32 %v5999_v44, %v2211_v15  ;;  %3749 = vrsqrt.f32 %v2086_v8  ;;  %v2054_v58 = vmul.f32 0.03125, %v1960_v24 }
 0x3d0   : > { %v3740_v6 = vpop.eup %3739  ;;  %v3104_v51 = vpack.c.bf16 %v2352_v55, %v2352_v55  ;;  %v2313_v43 = vmul.f32 %v5999_v44, %v2242_v38  ;;  %v2087_v26 = vadd.f32 1e-05, %v2023_v41 }
 0x3d1   : > { %v3742_v48 = vpop.eup %3741  ;;  %2708 = vst.msk [vmem:[%s6012_s20 + $0xbc] sm:$0xf] %vm2660_vm1, %v3139_v18  ;;  %v2353_v53 = vadd.f32 %v6003_v17, %v2282_v25  ;;  %v2243_v3 = vmul.f32 %v3740_v6, %v5792_v40  ;;  %v2118_v52 = vadd.f32 1e-05, %v2054_v58  ;;  %v1963_v4 = vpop.xlane.xlu1 %1962 }
 0x3d2   : > { %v1882_v9 = vpop.xlane.xlu0 %1881  ;;  %2673 = vst.msk [vmem:[%s6012_s20 + $0x30] sm:$0xf] %vm2660_vm1, %v3104_v51  ;;  %v2384_v33 = vadd.f32 %v6003_v17, %v2313_v43  ;;  %v2216_v10 = vmul.f32 %v3742_v48, %v5806_v20  ;;  %3751 = vrsqrt.f32 %v2087_v26  ;;  %v2055_v7 = vmul.f32 0.03125, %v1963_v4 }
 0x3d3   : > { %v3105_v0 = vpack.c.bf16 %v2353_v53, %v2353_v53  ;;  %v2314_v36 = vmul.f32 %v5999_v44, %v2243_v3  ;;  %3753 = vrsqrt.f32 %v2118_v52  ;;  %v2028_v23 = vmul.f32 0.03125, %v1882_v9 }
 0x3d4   : > { %v3744_v29 = vpop.eup %3743  ;;  %v3136_v40 = vpack.c.bf16 %v2384_v33, %v2384_v33  ;;  %v2287_v32 = vmul.f32 %v5999_v44, %v2216_v10  ;;  %v2119_v2 = vadd.f32 1e-05, %v2055_v7 }
 0x3d5   : > { %v3746_v57 = vpop.eup %3745  ;;  %2674 = vst.msk [vmem:[%s6012_s20 + $0x34] sm:$0xf] %vm2660_vm1, %v3105_v0  ;;  %v2385_v61 = vadd.f32 %v6003_v17, %v2314_v36  ;;  %v2217_v20 = vmul.f32 %v3744_v29, %v5803_v49  ;;  %v2092_v35 = vadd.f32 1e-05, %v2028_v23  ;;  %v1885_v56 = vpop.xlane.xlu1 %1884 }
 0x3d6   : > { %v1978_v15 = vpop.xlane.xlu0 %1977  ;;  %2705 = vst.msk [vmem:[%s6012_s20 + $0xb0] sm:$0xf] %vm2660_vm1, %v3136_v40  ;;  %v2358_v8 = vadd.f32 %v6003_v17, %v2287_v32  ;;  %v2248_v13 = vmul.f32 %v3746_v57, %v5819_v47  ;;  %3755 = vrsqrt.f32 %v2119_v2  ;;  %v2029_v24 = vmul.f32 0.03125, %v1885_v56 }
 0x3d7   : > { %v3137_v55 = vpack.c.bf16 %v2385_v61, %v2385_v61  ;;  %v2288_v38 = vmul.f32 %v5999_v44, %v2217_v20  ;;  %3757 = vrsqrt.f32 %v2092_v35  ;;  %v2060_v41 = vmul.f32 0.03125, %v1978_v15 }
 0x3d8   : > { %v3748_v18 = vpop.eup %3747  ;;  %v3110_v49 = vpack.c.bf16 %v2358_v8, %v2358_v8  ;;  %v2319_v25 = vmul.f32 %v5999_v44, %v2248_v13  ;;  %v2093_v58 = vadd.f32 1e-05, %v2029_v24 }
 0x3d9   : > { %v3750_v6 = vpop.eup %3749  ;;  %2706 = vst.msk [vmem:[%s6012_s20 + $0xb4] sm:$0xf] %vm2660_vm1, %v3137_v55  ;;  %v2359_v51 = vadd.f32 %v6003_v17, %v2288_v38  ;;  %v2249_v47 = vmul.f32 %v3748_v18, %v5816_v16  ;;  %v2124_v43 = vadd.f32 1e-05, %v2060_v41  ;;  %v1981_v26 = vpop.xlane.xlu1 %1980 }
 0x3da   : > { %v1876_v48 = vpop.xlane.xlu0 %1875  ;;  %2679 = vst.msk [vmem:[%s6012_s20 + $0x48] sm:$0xf] %vm2660_vm1, %v3110_v49  ;;  %v2390_v53 = vadd.f32 %v6003_v17, %v2319_v25  ;;  %v2214_v3 = vmul.f32 %v3750_v6, %v5830_v14  ;;  %3759 = vrsqrt.f32 %v2093_v58  ;;  %v2061_v52 = vmul.f32 0.03125, %v1981_v26 }
 0x3db   : > { %v3111_v4 = vpack.c.bf16 %v2359_v51, %v2359_v51  ;;  %v2320_v9 = vmul.f32 %v5999_v44, %v2249_v47  ;;  %3761 = vrsqrt.f32 %v2124_v43  ;;  %v2026_v33 = vmul.f32 0.03125, %v1876_v48 }
 0x3dc   : > { %v3752_v10 = vpop.eup %3751  ;;  %v3142_v16 = vpack.c.bf16 %v2390_v53, %v2390_v53  ;;  %v2285_v7 = vmul.f32 %v5999_v44, %v2214_v3  ;;  %v2125_v0 = vadd.f32 1e-05, %v2061_v52 }
 0x3dd   : > { %v3754_v36 = vpop.eup %3753  ;;  %2680 = vst.msk [vmem:[%s6012_s20 + $0x4c] sm:$0xf] %vm2660_vm1, %v3111_v4  ;;  %v2391_v23 = vadd.f32 %v6003_v17, %v2320_v9  ;;  %v2215_v14 = vmul.f32 %v3752_v10, %v5827_v62  ;;  %v2090_v29 = vadd.f32 1e-05, %v2026_v33  ;;  %v1879_v40 = vpop.xlane.xlu1 %1878 }
 0x3de   : > { %v1972_v32 = vpop.xlane.xlu0 %1971  ;;  %2711 = vst.msk [vmem:[%s6012_s20 + $0xc8] sm:$0xf] %vm2660_vm1, %v3142_v16  ;;  %v2356_v2 = vadd.f32 %v6003_v17, %v2285_v7  ;;  %v2246_v57 = vmul.f32 %v3754_v36, %v5843_v5  ;;  %3763 = vrsqrt.f32 %v2125_v0  ;;  %v2027_v61 = vmul.f32 0.03125, %v1879_v40 }
 0x3df   : > { %v3143_v20 = vpack.c.bf16 %v2391_v23, %v2391_v23  ;;  %v2286_v35 = vmul.f32 %v5999_v44, %v2215_v14  ;;  %3765 = vrsqrt.f32 %v2090_v29  ;;  %v2058_v56 = vmul.f32 0.03125, %v1972_v32 }
 0x3e0   : > { %v3756_v15 = vpop.eup %3755  ;;  %v3108_v62 = vpack.c.bf16 %v2356_v2, %v2356_v2  ;;  %v2317_v8 = vmul.f32 %v5999_v44, %v2246_v57  ;;  %v2091_v13 = vadd.f32 1e-05, %v2027_v61 }
 0x3e1   : > { %v3758_v24 = vpop.eup %3757  ;;  %2712 = vst.msk [vmem:[%s6012_s20 + $0xcc] sm:$0xf] %vm2660_vm1, %v3143_v20  ;;  %v2357_v55 = vadd.f32 %v6003_v17, %v2286_v35  ;;  %v2247_v5 = vmul.f32 %v3756_v15, %v5840_v50  ;;  %v2122_v38 = vadd.f32 1e-05, %v2058_v56  ;;  %v1975_v41 = vpop.xlane.xlu1 %1974 }
 0x3e2   : > { %v1894_v18 = vpop.xlane.xlu0 %1893  ;;  %2677 = vst.msk [vmem:[%s6012_s20 + $0x40] sm:$0xf] %vm2660_vm1, %v3108_v62  ;;  %v2388_v49 = vadd.f32 %v6003_v17, %v2317_v8  ;;  %v2220_v25 = vmul.f32 %v3758_v24, %v5854_v19  ;;  %3767 = vrsqrt.f32 %v2091_v13  ;;  %v2059_v58 = vmul.f32 0.03125, %v1975_v41 }
 0x3e3   : > { %v3109_v6 = vpack.c.bf16 %v2357_v55, %v2357_v55  ;;  %v2318_v51 = vmul.f32 %v5999_v44, %v2247_v5  ;;  %3769 = vrsqrt.f32 %v2122_v38  ;;  %v2032_v47 = vmul.f32 0.03125, %v1894_v18 }
 0x3e4   : > { %v3760_v43 = vpop.eup %3759  ;;  %v3140_v50 = vpack.c.bf16 %v2388_v49, %v2388_v49  ;;  %v2291_v26 = vmul.f32 %v5999_v44, %v2220_v25  ;;  %v2123_v48 = vadd.f32 1e-05, %v2059_v58 }
 0x3e5   : > { %v3762_v53 = vpop.eup %3761  ;;  %2678 = vst.msk [vmem:[%s6012_s20 + $0x44] sm:$0xf] %vm2660_vm1, %v3109_v6  ;;  %v2389_v3 = vadd.f32 %v6003_v17, %v2318_v51  ;;  %v2221_v19 = vmul.f32 %v3760_v43, %v5851_v39  ;;  %v2096_v52 = vadd.f32 1e-05, %v2032_v47  ;;  %v1897_v4 = vpop.xlane.xlu1 %1896 }
 0x3e6   : > { %v1990_v9 = vpop.xlane.xlu0 %1989  ;;  %2709 = vst.msk [vmem:[%s6012_s20 + $0xc0] sm:$0xf] %vm2660_vm1, %v3140_v50  ;;  %v2362_v33 = vadd.f32 %v6003_v17, %v2291_v26  ;;  %v2252_v10 = vmul.f32 %v3762_v53, %v5867_v30  ;;  %3771 = vrsqrt.f32 %v2123_v48  ;;  %v2033_v16 = vmul.f32 0.03125, %v1897_v4 }
 0x3e7   : > { %v3141_v7 = vpack.c.bf16 %v2389_v3, %v2389_v3  ;;  %v2292_v0 = vmul.f32 %v5999_v44, %v2221_v19  ;;  %3773 = vrsqrt.f32 %v2096_v52  ;;  %v2064_v36 = vmul.f32 0.03125, %v1990_v9 }
 0x3e8   : > { %v3764_v23 = vpop.eup %3763  ;;  %v3114_v39 = vpack.c.bf16 %v2362_v33, %v2362_v33  ;;  %v2323_v14 = vmul.f32 %v5999_v44, %v2252_v10  ;;  %v2097_v29 = vadd.f32 1e-05, %v2033_v16 }
 0x3e9   : > { %v3766_v40 = vpop.eup %3765  ;;  %2710 = vst.msk [vmem:[%s6012_s20 + $0xc4] sm:$0xf] %vm2660_vm1, %v3141_v7  ;;  %v2363_v32 = vadd.f32 %v6003_v17, %v2292_v0  ;;  %v2253_v30 = vmul.f32 %v3764_v23, %v5864_v22  ;;  %v2128_v2 = vadd.f32 1e-05, %v2064_v36  ;;  %v1993_v57 = vpop.xlane.xlu1 %1992 }
 0x3ea   : > { %v1888_v61 = vpop.xlane.xlu0 %1887  ;;  %2683 = vst.msk [vmem:[%s6012_s20 + $0x58] sm:$0xf] %vm2660_vm1, %v3114_v39  ;;  %v2394_v20 = vadd.f32 %v6003_v17, %v2323_v14  ;;  %v2218_v35 = vmul.f32 %v3766_v40, %v5878_v27  ;;  %3775 = vrsqrt.f32 %v2097_v29  ;;  %v2065_v56 = vmul.f32 0.03125, %v1993_v57 }
 0x3eb   : > { %v3115_v15 = vpack.c.bf16 %v2363_v32, %v2363_v32  ;;  %v2324_v62 = vmul.f32 %v5999_v44, %v2253_v30  ;;  %3777 = vrsqrt.f32 %v2128_v2  ;;  %v2030_v8 = vmul.f32 0.03125, %v1888_v61 }
 0x3ec   : > { %v3768_v13 = vpop.eup %3767  ;;  %v3146_v22 = vpack.c.bf16 %v2394_v20, %v2394_v20  ;;  %v2289_v24 = vmul.f32 %v5999_v44, %v2218_v35  ;;  %v2129_v55 = vadd.f32 1e-05, %v2065_v56 }
 0x3ed   : > { %v3770_v5 = vpop.eup %3769  ;;  %2684 = vst.msk [vmem:[%s6012_s20 + $0x5c] sm:$0xf] %vm2660_vm1, %v3115_v15  ;;  %v2395_v38 = vadd.f32 %v6003_v17, %v2324_v62  ;;  %v2219_v27 = vmul.f32 %v3768_v13, %v5875_v21  ;;  %v2094_v41 = vadd.f32 1e-05, %v2030_v8  ;;  %v1891_v18 = vpop.xlane.xlu1 %1890 }
 0x3ee   : > { %v1984_v49 = vpop.xlane.xlu0 %1983  ;;  %2715 = vst.msk [vmem:[%s6012_s20 + $0xd8] sm:$0xf] %vm2660_vm1, %v3146_v22  ;;  %v2360_v25 = vadd.f32 %v6003_v17, %v2289_v24  ;;  %v2250_v58 = vmul.f32 %v3770_v5, %v5891_v59  ;;  %3779 = vrsqrt.f32 %v2129_v55  ;;  %v2031_v6 = vmul.f32 0.03125, %v1891_v18 }
 0x3ef   : > { %v3147_v51 = vpack.c.bf16 %v2395_v38, %v2395_v38  ;;  %v2290_v47 = vmul.f32 %v5999_v44, %v2219_v27  ;;  %3781 = vrsqrt.f32 %v2094_v41  ;;  %v2062_v43 = vmul.f32 0.03125, %v1984_v49  ;;  %v6261_v38 = vld [vmem:[%s4980_s17] ss:$0 sm:$0xff] }
 0x3f0   : > { %v3772_v50 = vpop.eup %3771  ;;  %v3112_v21 = vpack.c.bf16 %v2360_v25, %v2360_v25  ;;  %v2321_v26 = vmul.f32 %v5999_v44, %v2250_v58  ;;  %v2095_v48 = vadd.f32 1e-05, %v2031_v6 }
 0x3f1   : > { %v3774_v53 = vpop.eup %3773  ;;  %2716 = vst.msk [vmem:[%s6012_s20 + $0xdc] sm:$0xf] %vm2660_vm1, %v3147_v51  ;;  %v2361_v3 = vadd.f32 %v6003_v17, %v2290_v47  ;;  %v2251_v59 = vmul.f32 %v3772_v50, %v5888_v34  ;;  %v2126_v19 = vadd.f32 1e-05, %v2062_v43  ;;  %v1987_v52 = vpop.xlane.xlu1 %1986 }
 0x3f2   : > { %v1906_v4 = vpop.xlane.xlu0 %1905  ;;  %2681 = vst.msk [vmem:[%s6012_s20 + $0x50] sm:$0xf] %vm2660_vm1, %v3112_v21  ;;  %v2392_v9 = vadd.f32 %v6003_v17, %v2321_v26  ;;  %v2224_v33 = vmul.f32 %v3774_v53, %v5902_v45  ;;  %3783 = vrsqrt.f32 %v2095_v48  ;;  %v2063_v10 = vmul.f32 0.03125, %v1987_v52 }
 0x3f3   : > { %v3113_v16 = vpack.c.bf16 %v2361_v3, %v2361_v3  ;;  %v2322_v7 = vmul.f32 %v5999_v44, %v2251_v59  ;;  %3785 = vrsqrt.f32 %v2126_v19  ;;  %v2036_v0 = vmul.f32 0.03125, %v1906_v4 }
 0x3f4   : > { %v3776_v36 = vpop.eup %3775  ;;  %v3144_v34 = vpack.c.bf16 %v2392_v9, %v2392_v9  ;;  %v2295_v23 = vmul.f32 %v5999_v44, %v2224_v33  ;;  %v2127_v39 = vadd.f32 1e-05, %v2063_v10  ;;  %v6706_v33 = vld [vmem:[#allocation70_spill] sm:$0xff] }
 0x3f5   : > { %v3778_v14 = vpop.eup %3777  ;;  %2682 = vst.msk [vmem:[%s6012_s20 + $0x54] sm:$0xf] %vm2660_vm1, %v3113_v16  ;;  %v2393_v29 = vadd.f32 %v6003_v17, %v2322_v7  ;;  %v2225_v45 = vmul.f32 %v3776_v36, %v5899_v31  ;;  %v2100_v40 = vadd.f32 1e-05, %v2036_v0  ;;  %v1909_v32 = vpop.xlane.xlu1 %1908  ;;  %v6707_v36 = vld [vmem:[#allocation72_spill] sm:$0xff] }
 0x3f6   : > { %2713 = vst.msk [vmem:[%s6012_s20 + $0xd0] sm:$0xf] %vm2660_vm1, %v3144_v34  ;;  %v2366_v30 = vadd.f32 %v6003_v17, %v2295_v23  ;;  %v2256_v2 = vmul.f32 %v3778_v14, %v5915_v54  ;;  %3787 = vrsqrt.f32 %v2127_v39  ;;  %v2037_v57 = vmul.f32 0.03125, %v1909_v32 }
 0x3f7   : > { %v3145_v61 = vpack.c.bf16 %v2393_v29, %v2393_v29  ;;  %v2296_v20 = vmul.f32 %v5999_v44, %v2225_v45  ;;  %3789 = vrsqrt.f32 %v2100_v40 }
 0x3f8   : > { %v3780_v35 = vpop.eup %3779  ;;  %v3118_v56 = vpack.c.bf16 %v2366_v30, %v2366_v30  ;;  %v2327_v31 = vmul.f32 %v5999_v44, %v2256_v2  ;;  %v2101_v15 = vadd.f32 1e-05, %v2037_v57  ;;  %v6708_v57 = vld [vmem:[#allocation73_spill] sm:$0xff] }
 0x3f9   : > { %v3782_v62 = vpop.eup %3781  ;;  %2714 = vst.msk [vmem:[%s6012_s20 + $0xd4] sm:$0xf] %vm2660_vm1, %v3145_v61  ;;  %v2367_v8 = vadd.f32 %v6003_v17, %v2296_v20  ;;  %v2257_v54 = vmul.f32 %v3780_v35, %v5912_v1  ;;  %v1903_v13 = vpop.xlane.xlu1 %1902 }
 0x3fa   : > { %v1900_v22 = vpop.xlane.xlu0 %1899  ;;  %2687 = vst.msk [vmem:[%s6012_s20 + $0x68] sm:$0xf] %vm2660_vm1, %v3118_v56  ;;  %v2398_v24 = vadd.f32 %v6003_v17, %v2327_v31  ;;  %v2222_v55 = vmul.f32 %v3782_v62, %v5926_v37  ;;  %3791 = vrsqrt.f32 %v2101_v15  ;;  %v2035_v44 = vmul.f32 0.03125, %v1903_v13  ;;  %v6268_v17 = vld [vmem:[%s4987_s8] ss:$0 sm:$0xff] }
 0x3fb   : > { %v3119_v5 = vpack.c.bf16 %v2367_v8, %v2367_v8  ;;  %v2328_v27 = vmul.f32 %v6261_v38, %v2257_v54  ;;  %v2034_v41 = vmul.f32 0.03125, %v1900_v22 }
 0x3fc   : > { %v3784_v1 = vpop.eup %3783  ;;  %v3150_v18 = vpack.c.bf16 %v2398_v24, %v2398_v24  ;;  %v2293_v49 = vmul.f32 %v6261_v38, %v2222_v55  ;;  %v2099_v25 = vadd.f32 1e-05, %v2035_v44 }
 0x3fd   : > { %v3786_v58 = vpop.eup %3785  ;;  %2688 = vst.msk [vmem:[%s6012_s20 + $0x6c] sm:$0xf] %vm2660_vm1, %v3119_v5  ;;  %v2399_v37 = vadd.f32 %v6268_v17, %v2328_v27  ;;  %v2223_v6 = vmul.f32 %v3784_v1, %v5923_v60  ;;  %v2098_v51 = vadd.f32 1e-05, %v2034_v41  ;;  %v1999_v47 = vpop.xlane.xlu1 %1998 }
 0x3fe   : > { %v1996_v43 = vpop.xlane.xlu0 %1995  ;;  %2719 = vst.msk [vmem:[%s6012_s20 + $0xe8] sm:$0xf] %vm2660_vm1, %v3150_v18  ;;  %v2364_v50 = vadd.f32 %v6268_v17, %v2293_v49  ;;  %v2254_v21 = vmul.f32 %v3786_v58, %v5939_v63  ;;  %3793 = vrsqrt.f32 %v2099_v25  ;;  %v2067_v26 = vmul.f32 0.03125, %v1999_v47  ;;  %v6709_v47 = vld [vmem:[#allocation74_spill] sm:$0xff] }
 0x3ff   : > { %v3151_v48 = vpack.c.bf16 %v2399_v37, %v2399_v37  ;;  %v2294_v53 = vmul.f32 %v6261_v38, %v2223_v6  ;;  %3795 = vrsqrt.f32 %v2098_v51  ;;  %v2066_v3 = vmul.f32 0.03125, %v1996_v43 }
 0x400   : > { %v3788_v59 = vpop.eup %3787  ;;  %v3116_v60 = vpack.c.bf16 %v2364_v50, %v2364_v50  ;;  %v2325_v19 = vmul.f32 %v6261_v38, %v2254_v21  ;;  %v2131_v52 = vadd.f32 1e-05, %v2067_v26 }
 0x401   : > { %v3790_v4 = vpop.eup %3789  ;;  %2720 = vst.msk [vmem:[%s6012_s20 + $0xec] sm:$0xf] %vm2660_vm1, %v3151_v48  ;;  %v2365_v9 = vadd.f32 %v6268_v17, %v2294_v53  ;;  %v2255_v63 = vmul.f32 %v3788_v59, %v6706_v33  ;;  %v2130_v10 = vadd.f32 1e-05, %v2066_v3  ;;  %v2005_v16 = vpop.xlane.xlu1 %2004 }
 0x402   : > { %v2002_v7 = vpop.xlane.xlu0 %2001  ;;  %2685 = vst.msk [vmem:[%s6012_s20 + $0x60] sm:$0xf] %vm2660_vm1, %v3116_v60  ;;  %v2396_v0 = vadd.f32 %v6268_v17, %v2325_v19  ;;  %v2228_v34 = vmul.f32 %v3790_v4, %v6707_v36  ;;  %3797 = vrsqrt.f32 %v2131_v52  ;;  %v2069_v23 = vmul.f32 0.03125, %v2005_v16 }
 0x403   : > { %v3117_v39 = vpack.c.bf16 %v2365_v9, %v2365_v9  ;;  %v2326_v14 = vmul.f32 %v6261_v38, %v2255_v63  ;;  %3799 = vrsqrt.f32 %v2130_v10  ;;  %v2068_v29 = vmul.f32 0.03125, %v2002_v7 }
 0x404   : > { %v3792_v45 = vpop.eup %3791  ;;  %v3148_v40 = vpack.c.bf16 %v2396_v0, %v2396_v0  ;;  %v2299_v32 = vmul.f32 %v6261_v38, %v2228_v34  ;;  %v2133_v30 = vadd.f32 1e-05, %v2069_v23 }
 0x405   : > { %2686 = vst.msk [vmem:[%s6012_s20 + $0x64] sm:$0xf] %vm2660_vm1, %v3117_v39  ;;  %v2397_v2 = vadd.f32 %v6268_v17, %v2326_v14  ;;  %v2229_v61 = vmul.f32 %v3792_v45, %v6708_v57  ;;  %v2132_v20 = vadd.f32 1e-05, %v2068_v29 }
 0x406   : > { %2717 = vst.msk [vmem:[%s6012_s20 + $0xe0] sm:$0xf] %vm2660_vm1, %v3148_v40  ;;  %v2370_v35 = vadd.f32 %v6268_v17, %v2299_v32  ;;  %3801 = vrsqrt.f32 %v2133_v30 }
 0x407   : > { %v3149_v56 = vpack.c.bf16 %v2397_v2, %v2397_v2  ;;  %v2300_v31 = vmul.f32 %v6261_v38, %v2229_v61  ;;  %3803 = vrsqrt.f32 %v2132_v20 }
 0x408   : > { %v3794_v15 = vpop.eup %3793  ;;  %v3122_v62 = vpack.c.bf16 %v2370_v35, %v2370_v35 }
 0x409   : > { %v3796_v8 = vpop.eup %3795  ;;  %2718 = vst.msk [vmem:[%s6012_s20 + $0xe4] sm:$0xf] %vm2660_vm1, %v3149_v56  ;;  %v2371_v54 = vadd.f32 %v6268_v17, %v2300_v31  ;;  %v2227_v13 = vmul.f32 %v3794_v15, %v5962_v42 }
 0x40a   : > { %2691 = vst.msk [vmem:[%s6012_s20 + $0x78] sm:$0xf] %vm2660_vm1, %v3122_v62  ;;  %v2226_v22 = vmul.f32 %v3796_v8, %v5965_v11 }
 0x40b   : > { %v3123_v24 = vpack.c.bf16 %v2371_v54, %v2371_v54  ;;  %v2298_v55 = vmul.f32 %v6261_v38, %v2227_v13 }
 0x40c   : > { %v3798_v44 = vpop.eup %3797  ;;  %v2297_v5 = vmul.f32 %v6261_v38, %v2226_v22 }
 0x40d   : > { %v3800_v27 = vpop.eup %3799  ;;  %2692 = vst.msk [vmem:[%s6012_s20 + $0x7c] sm:$0xf] %vm2660_vm1, %v3123_v24  ;;  %v2369_v41 = vadd.f32 %v6268_v17, %v2298_v55  ;;  %v2259_v1 = vmul.f32 %v3798_v44, %v5979_v46 }
 0x40e   : > { %v2368_v42 = vadd.f32 %v6268_v17, %v2297_v5  ;;  %v2258_v18 = vmul.f32 %v3800_v27, %v5982_v12 }
 0x40f   : > { %v3121_v11 = vpack.c.bf16 %v2369_v41, %v2369_v41  ;;  %v2330_v49 = vmul.f32 %v6261_v38, %v2259_v1 }
 0x410   : > { %v3802_v25 = vpop.eup %3801  ;;  %v3120_v58 = vpack.c.bf16 %v2368_v42, %v2368_v42  ;;  %v2329_v37 = vmul.f32 %v6261_v38, %v2258_v18 }
 0x411   : > { %v3804_v6 = vpop.eup %3803  ;;  %2690 = vst.msk [vmem:[%s6012_s20 + $0x74] sm:$0xf] %vm2660_vm1, %v3121_v11  ;;  %v2401_v46 = vadd.f32 %v6268_v17, %v2330_v49  ;;  %v2261_v51 = vmul.f32 %v3802_v25, %v5973_v28 }
 0x412   : > { %2689 = vst.msk [vmem:[%s6012_s20 + $0x70] sm:$0xf] %vm2660_vm1, %v3120_v58  ;;  %v2400_v12 = vadd.f32 %v6268_v17, %v2329_v37  ;;  %v2260_v43 = vmul.f32 %v3804_v6, %v6709_v47 }
 0x413   : > { %v3153_v50 = vpack.c.bf16 %v2401_v46, %v2401_v46  ;;  %v2332_v21 = vmul.f32 %v6261_v38, %v2261_v51 }
 0x414   : > { %v3152_v26 = vpack.c.bf16 %v2400_v12, %v2400_v12  ;;  %v2331_v48 = vmul.f32 %v6261_v38, %v2260_v43 }
 0x415   : > { %2722 = vst.msk [vmem:[%s6012_s20 + $0xf4] sm:$0xf] %vm2660_vm1, %v3153_v50  ;;  %v2403_v28 = vadd.f32 %v6268_v17, %v2332_v21 }
 0x416   : > { %2721 = vst.msk [vmem:[%s6012_s20 + $0xf0] sm:$0xf] %vm2660_vm1, %v3152_v26  ;;  %v2402_v53 = vadd.f32 %v6268_v17, %v2331_v48 }
 0x417   : > { %v3155_v3 = vpack.c.bf16 %v2403_v28, %v2403_v28 }
 0x418   : > { %v3154_v38 = vpack.c.bf16 %v2402_v53, %v2402_v53 }
 0x419   : > { %2724 = vst.msk [vmem:[%s6012_s20 + $0xfc] sm:$0xf] %vm2660_vm1, %v3155_v3 }
 0x41a   : > { %2723 = vst.msk [vmem:[%s6012_s20 + $0xf8] sm:$0xf] %vm2660_vm1, %v3154_v38 }
 0x41b   : > { %4040 = shalt.err (!%p4037_p7)
}
 0x41c   : > { %s4041_s23 = scalar_lea.hbm %s6334_s1, 4096  ;;  %s4045_s17 = scalar_lea.hbm %s6712_s3, 16384 }
 0x41d   : > { %p4042_p0 = scmp.ne.s32.totalorder %s6334_s1, %s4041_s23  ;;  %p4046_p4 = scmp.lt.u32.totalorder %s6334_s1, %s6712_s3 }
 0x41e   : > { %p4047_p9 = scmp.lt.u32.totalorder %s4045_s17, %s4041_s23  ;;  %p4049_p13 = scmp.lt.u32.totalorder %s4041_s23, %s6334_s1 }
 0x41f   : > { %p4043_p8 = pnand %p4042_p0, %p6713_p6 }
 0x420   : > { %p4048_p12 = por %p4047_p9, %p4046_p4 }
 0x421   : > { %p4044_p3 = pneg %p4043_p8 }
 0x422   : > { %p4050_p11 = por %p4049_p13, %p4048_p12 }
 0x424   : > { %p4051_p2 = pnand %p4050_p11, %p4044_p3 }
 0x426   : > { %4054 = shalt.err (!%p4051_p2)
}
 0x427   : > { %s4252_s8 = smov 64   ;;  %s4253_s20 = smov 4  }
 0x428   : > { %3446 = dma.vmem_to_hbm [thread:$0]  (%p6713_p6), %s6336_s28, 4096, %s6334_s1, %s2726_s11, %s4252_s8, %s4252_s8, %s4253_s20  }
 0x429 PF: > { %s6714_s25 = sld [smem:[#allocation44_spill]]  ;;  %s6715_s7 = sld [smem:[#allocation50_spill]] }
 0x42a   : > { %p3485_p5 = scmp.ge.s32.totalorder %s4239_s10, 2 }
 0x42f   : > { %s2754_s22 = sand.u32 1, %s6714_s25   ;;  %p6716_p1 = scmp.ne.s32.totalorder %s6715_s7, 0 }
 0x430   : > { %s2755_s30 = scalar_lea.sflag [#allocation6], %s2754_s22 }
 0x431   : > { %p3481_p10 = pnand %p3485_p5, %p6716_p1 }
 0x433   : > { %4162 = dma.done.wait (!%p3481_p10), %s2755_s30, 4096  }
 0x434   : > { %4164 = vsyncadd (!%p3481_p10), %s2755_s30, 4294963200  ;;  %s6717_s15 = sld [smem:[#allocation37_spill]]  ;;  %s6718_s16 = sld [smem:[#allocation38_spill]] }
 0x435   : > { %s6719_s14 = sld [smem:[#allocation54_spill]]  ;;  %s6721_s23 = sld [smem:[#allocation41_spill]] }
 0x436   : > { %s6720_s4 = sld [smem:[#allocation40_spill]]  ;;  %s6722_s28 = sld [smem:[#allocation42_spill]] }
 0x437   : > { %s6723_s25 = sld [smem:[#allocation53_spill]]  ;;  %s6724_s10 = sld [smem:[#allocation43_spill]] }
 0x438   : > { %s6725_s1 = sld [smem:[#allocation55_spill]]  ;;  %p34_p6 = scmp.ge.s32.totalorder %s4411_s13, 6  }
 0x439   : > { %s6726_s29 = sld [smem:[#allocation45_spill]]  ;;  %s6727_s30 = sld [smem:[#allocation46_spill]] }
 0x43a   : > { %s6728_s9 = sld [smem:[#allocation47_spill]]  ;;  %s6729_s17 = smov %s6760_s2 }
 0x43b   : > { %s6730_s0 = smov %s4183_s18  ;;  %s6731_s18 = smov %s4187_s19 }
 0x43c   : > { %s6732_s19 = smov %s6719_s14  ;;  %s6733_s20 = smov %s4195_s21 }
 0x43d   : > { %s6734_s21 = smov %s6720_s4  ;;  %s6735_s22 = smov %s6754_s24 }
 0x43e   : > { %s6736_s24 = smov %s6722_s28  ;;  %s6737_s26 = smov %s4219_s27 }
 0x43f   : > { %s6738_s27 = smov %s6724_s10  ;;  %s6739_s28 = smov %s6725_s1 }
 0x440   : > { %s6740_s10 = smov %s4411_s13  ;;  %36 = sbr.rel (!%p34_p6) target bundleno = 34 (0x22), region = 165 }
 0x447   :  { %2760 = vsyncpa [#allocation5], 1 }
 0x448   :  { %2762 = vsyncpa [#allocation5 + $0x1], 1 }
 0x449   :  { %2763 = vsyncpa [#allocation8], 1 }
 0x44a   :  { %2765 = vsyncpa [#allocation8 + $0x1], 1 }
 0x44b   :  { %2766 = vsyncpa [#allocation11], 1 }
 0x44c   :  { %2768 = vsyncpa [#allocation11 + $0x1], 1 }
 0x44d   :  { %2769 = vsyncpa [#allocation14], 1 }
 0x44e   :  { %2771 = vsyncpa [#allocation14 + $0x1], 1 }
 0x44f   :  { %2772 = vsyncpa [#allocation6], 1 }
 0x450   :  { %2774 = vsyncpa [#allocation6 + $0x1], 1 }

</bundles_post_ra>
